<compile_context>
chip_gen: v5e
topology: v5e:2x2
jax: 0.10.0
libtpu: 0.0.40
codegen_flags: <defaults>
</compile_context>

<pallas_src>
import functools

import jax
import jax.numpy as jnp
from jax import lax
from jax.experimental import pallas as pl
from jax.experimental.pallas import tpu as pltpu

LANE = 128
SUBLANE = 8


def _round_up(x, m):
    return ((x + m - 1) // m) * m


def _choose_time_chunk(T, Bp, target_rows=256, max_rows=2048):
    """Smallest divisor of T with tc*Bp >= target_rows (MXU M-dim fill /
    grid-step amortization), capped at max_rows to bound VMEM per chunk."""
    best = 1
    for cand in range(1, T + 1):
        if T % cand:
            continue
        rows = cand * Bp
        if rows > max_rows:
            break
        best = cand
        if rows >= target_rows:
            break
    return best


# ----------------------------------------------------------------------------
# Kernel: one GRU layer; both directions interleaved; tc time steps / grid step
# ----------------------------------------------------------------------------
def _bigru_layer_kernel(inp_ref, wih_ref, whh_ref, bi_ref, bhn_ref,
                        out_ref, h_ref, gi_ref, *, tc, bp, hp, unroll):
    c = pl.program_id(0)  # time-chunk index (processing order)

    @pl.when(c == 0)
    def _init():
        h_ref[...] = jnp.zeros_like(h_ref)

    # Hoisted input projection for the whole chunk, both directions:
    # (tc*Bp, D_in) @ (D_in, 3*Hp), bf16 inputs, f32 accumulation.  bi already
    # holds b_ih (+ b_hh for the r and z gates).
    gi_ref[0] = (jnp.dot(inp_ref[0], wih_ref[0],
                         preferred_element_type=jnp.float32) + bi_ref[0])
    gi_ref[1] = (jnp.dot(inp_ref[1], wih_ref[1],
                         preferred_element_type=jnp.float32) + bi_ref[1])

    # Loop-invariant broadcasts hoisted out of the recurrence (JAX does not
    # CSE broadcast_in_dim).
    bhn_f = jnp.broadcast_to(bhn_ref[0], (bp, hp))
    bhn_b = jnp.broadcast_to(bhn_ref[1], (bp, hp))

    def gru_update(gi, gh, bhn, h):
        r = jax.nn.sigmoid(gi[:, :hp] + gh[:, :hp])
        z = jax.nn.sigmoid(gi[:, hp:2 * hp] + gh[:, hp:2 * hp])
        n = jnp.tanh(gi[:, 2 * hp:] + r * (gh[:, 2 * hp:] + bhn))
        return (1.0 - z) * n + z * h

    def step(k, carry):
        hf, hb = carry
        row = pl.multiple_of(k * bp, SUBLANE)            # sublane-aligned
        gi_f = gi_ref[0, pl.ds(row, bp), :]
        gi_b = gi_ref[1, pl.ds(row, bp), :]
        # Two independent directions back-to-back: their small h @ W_hh
        # matmuls and gate math interleave, hiding MXU/EUP latency.  W_hh is
        # kept f32 so the carried state is never rounded to bf16.
        gh_f = jnp.dot(hf, whh_ref[0], preferred_element_type=jnp.float32)
        gh_b = jnp.dot(hb, whh_ref[1], preferred_element_type=jnp.float32)
        hf = gru_update(gi_f, gh_f, bhn_f, hf)
        hb = gru_update(gi_b, gh_b, bhn_b, hb)
        out_ref[0, pl.ds(row, bp), :] = hf.astype(out_ref.dtype)
        out_ref[1, pl.ds(row, bp), :] = hb.astype(out_ref.dtype)
        return hf, hb

    hf, hb = lax.fori_loop(0, tc, step, (h_ref[0], h_ref[1]), unroll=unroll)
    h_ref[0] = hf
    h_ref[1] = hb


def _run_layer(inp, wih_s, whh_s, bi_s, bhn_s, *, Bp, T, d_in_p, Hp, tc, nc):
    rows = tc * Bp
    unroll = tc <= 8  # small chunks: full unroll; big chunks: visible loop
    kernel = functools.partial(_bigru_layer_kernel, tc=tc, bp=Bp, hp=Hp,
                               unroll=unroll)

    # Rough per-layer VMEM need (double-buffered I/O + weights + gi scratch),
    # used to set an explicit scoped-VMEM limit that also fits v7x (64 MiB).
    bytes_in = 2 * rows * d_in_p * 2
    bytes_out = 2 * rows * Hp * 2
    bytes_h = 2 * Bp * Hp * 4
    bytes_w = 2 * d_in_p * 3 * Hp * 2 + 2 * Hp * 3 * Hp * 4 + 2 * 4 * Hp * 4
    bytes_gi = 2 * rows * 3 * Hp * 4
    vmem_need = 2 * (bytes_in + bytes_out + bytes_h + bytes_w) + bytes_gi
    vmem_limit = int(min(max(vmem_need + (16 << 20), 32 << 20), 64 << 20))

    out, h = pl.pallas_call(
        kernel,
        grid=(nc,),  # time-chunk axis (sequential recurrence)
        in_specs=[
            pl.BlockSpec((2, rows, d_in_p), lambda c: (0, c, 0)),
            pl.BlockSpec((2, d_in_p, 3 * Hp), lambda c: (0, 0, 0)),
            pl.BlockSpec((2, Hp, 3 * Hp), lambda c: (0, 0, 0)),
            pl.BlockSpec((2, 1, 3 * Hp), lambda c: (0, 0, 0)),
            pl.BlockSpec((2, 1, Hp), lambda c: (0, 0, 0)),
        ],
        out_specs=(
            pl.BlockSpec((2, rows, Hp), lambda c: (0, c, 0)),
            pl.BlockSpec((2, Bp, Hp), lambda c: (0, 0, 0)),  # carried h
        ),
        out_shape=(
            jax.ShapeDtypeStruct((2, T * Bp, Hp), jnp.bfloat16),  # bf16 stream
            jax.ShapeDtypeStruct((2, Bp, Hp), jnp.float32),
        ),
        scratch_shapes=[pltpu.VMEM((2, rows, 3 * Hp), jnp.float32)],
        compiler_params=pltpu.CompilerParams(
            dimension_semantics=("arbitrary",),
            vmem_limit_bytes=vmem_limit),
    )(inp, wih_s, whh_s, bi_s, bhn_s)
    return out, h


# ----------------------------------------------------------------------------
# Parameter packing: pad / transpose gates, pre-sum r/z biases (done once,
# outside the per-call forward path).
# ----------------------------------------------------------------------------
def _prep_direction(p, H, Hp, d_in, d_in_p):
    wih, whh, bih, bhh = p
    wih3 = jnp.pad(wih.reshape(3, H, d_in),
                   ((0, 0), (0, Hp - H), (0, d_in_p - d_in)))
    wih_t = jnp.transpose(wih3, (2, 0, 1)).reshape(d_in_p, 3 * Hp)
    whh3 = jnp.pad(whh.reshape(3, H, H), ((0, 0), (0, Hp - H), (0, Hp - H)))
    whh_t = jnp.transpose(whh3, (2, 0, 1)).reshape(Hp, 3 * Hp)
    bih3, bhh3 = bih.reshape(3, H), bhh.reshape(3, H)
    # b_ih + b_hh folded for the r and z gates; b_hn stays separate (it lives
    # inside the r * (W_hn h + b_hn) term).
    bi3 = jnp.concatenate([bih3[:2] + bhh3[:2], bih3[2:]], axis=0)
    bi = jnp.pad(bi3, ((0, 0), (0, Hp - H))).reshape(1, 3 * Hp)
    bhn = jnp.pad(bhh3[2:], ((0, 0), (0, Hp - H)))
    return (wih_t.astype(jnp.bfloat16),        # big matmul: bf16 is fine
            whh_t.astype(jnp.float32),         # recurrence: keep f32
            bi.astype(jnp.float32),
            bhn.astype(jnp.float32))


def pack_params(params, input_size, hidden_size, num_layers):
    H, Hp = hidden_size, _round_up(hidden_size, LANE)
    d_in, d_in_p = input_size, _round_up(input_size, LANE)
    packed = []
    for j in range(num_layers):
        pf = _prep_direction(params["f"][j], H, Hp, d_in, d_in_p)
        pb = _prep_direction(params["b"][j], H, Hp, d_in, d_in_p)
        packed.append(tuple(jnp.stack([a, b], axis=0)
                            for a, b in zip(pf, pb)))
        d_in, d_in_p = H, Hp
    return packed


# ----------------------------------------------------------------------------
# Wrapper
# ----------------------------------------------------------------------------
@functools.partial(jax.jit,
                   static_argnames=("hidden_size", "num_layers", "time_chunk"))
def bidirectional_gru_encoder(x, packed, hidden_size, num_layers,
                              time_chunk=None):
    """x: (B, T, D) float32.  Returns (out (B, T, 2H), h (L, B, 2H))."""
    B, T, D = x.shape
    H, L = hidden_size, num_layers
    Hp = _round_up(H, LANE)
    Bp = _round_up(B, SUBLANE)
    Dp = _round_up(D, LANE)
    tc = time_chunk if time_chunk is not None else _choose_time_chunk(T, Bp)
    assert T % tc == 0
    nc = T // tc

    # (B,T,D) -> (T,Bp,Dp) padded, bf16; both direction streams kept in
    # processing order (forward: time order, backward: reversed), so every
    # in-kernel index is static; the single time-reversal of the backward
    # output happens once below.
    x_t = jnp.transpose(x, (1, 0, 2))
    x_t = jnp.pad(x_t, ((0, 0), (0, Bp - B), (0, Dp - D)))
    x_bf = x_t.astype(jnp.bfloat16)
    inp = jnp.stack([x_bf, x_bf[::-1]], axis=0).reshape(2, T * Bp, Dp)

    h_layers = []
    d_in_p = Dp
    for j in range(L):
        wih_s, whh_s, bi_s, bhn_s = packed[j]
        inp, h_j = _run_layer(inp, wih_s, whh_s, bi_s, bhn_s,
                              Bp=Bp, T=T, d_in_p=d_in_p, Hp=Hp, tc=tc, nc=nc)
        h_layers.append(h_j)
        d_in_p = Hp

    out_pr = inp.reshape(2, T, Bp, Hp)
    out_f = out_pr[0, :, :B, :H]
    out_b = out_pr[1, ::-1, :B, :H]             # back to time order
    out = jnp.transpose(jnp.concatenate([out_f, out_b], axis=-1),
                        (1, 0, 2)).astype(jnp.float32)
    h = jnp.stack([jnp.concatenate([hj[0, :B, :H], hj[1, :B, :H]], axis=-1)
                   for hj in h_layers], axis=0)
    return out, h


# ----------------------------------------------------------------------------
# Pure-JAX reference (mirrors the PyTorch module exactly, f32 end-to-end)
# ----------------------------------------------------------------------------
def _ref_forward(x, params, hidden_size, num_layers):
    B, T, _ = x.shape
    H, L = hidden_size, num_layers

    def cell(x_t, h, p):
        wih, whh, bih, bhh = p
        gi = x_t @ wih.T + bih
        gh = h @ whh.T + bhh
        i_r, i_z, i_n = gi[:, :H], gi[:, H:2 * H], gi[:, 2 * H:]
        h_r, h_z, h_n = gh[:, :H], gh[:, H:2 * H], gh[:, 2 * H:]
        r = jax.nn.sigmoid(i_r + h_r)
        z = jax.nn.sigmoid(i_z + h_z)
        n = jnp.tanh(i_n + r * h_n)
        return (1.0 - z) * n + z * h

    h_f = [jnp.zeros((B, H), jnp.float32)] * L
    h_b = [jnp.zeros((B, H), jnp.float32)] * L
    rev = x[:, ::-1, :]
    out_f, out_b = [], []
    for i in range(T):
        xf, xb = x[:, i, :], rev[:, i, :]
        for j in range(L):
            xf = cell(xf, h_f[j], params["f"][j])
            xb = cell(xb, h_b[j], params["b"][j])
            h_f[j], h_b[j] = xf, xb
        out_f.append(xf)
        out_b.append(xb)
    out_f = jnp.stack(out_f, 1)
    out_b = jnp.stack(out_b, 1)[:, ::-1, :]
    out = jnp.concatenate([out_f, out_b], 2)
    h = jnp.concatenate([jnp.stack(h_f, 0), jnp.stack(h_b, 0)], 2)
    return out, h


# ----------------------------------------------------------------------------
# Deterministic parameter init (PyTorch GRUCell default: U(-1/sqrt(H), 1/sqrt(H)))
# ----------------------------------------------------------------------------
def init_params(key, input_size, hidden_size, num_layers):
    H = hidden_size
    bound = 1.0 / (H ** 0.5)
    params = {"f": [], "b": []}
    d_in = input_size
    for _ in range(num_layers):
        for d in ("f", "b"):
            key, k1, k2, k3, k4 = jax.random.split(key, 5)
            wih = jax.random.uniform(k1, (3 * H, d_in), jnp.float32, -bound, bound)
            whh = jax.random.uniform(k2, (3 * H, H), jnp.float32, -bound, bound)
            bih = jax.random.uniform(k3, (3 * H,), jnp.float32, -bound, bound)
            bhh = jax.random.uniform(k4, (3 * H,), jnp.float32, -bound, bound)
            params[d].append((wih, whh, bih, bhh))
        d_in = H
    return params


if __name__ == "__main__":
    B, T, D, H, L = 2, 8, 16, 32, 2

    key = jax.random.PRNGKey(0)
    key, kx = jax.random.split(key)
    x = jax.random.normal(kx, (B, T, D), jnp.float32)
    params = init_params(key, D, H, L)

    # Pack / pad / transpose weights once, outside the per-call forward path.
    packed = pack_params(params, D, H, L)

    out, h = bidirectional_gru_encoder(x, packed, hidden_size=H, num_layers=L)
    out, h = jax.block_until_ready((out, h))

    out_ref, h_ref = _ref_forward(x, params, hidden_size=H, num_layers=L)

    assert out.shape == (B, T, 2 * H) and h.shape == (L, B, 2 * H)
    # bf16 input projection / inter-layer activations (f32 recurrence), so the
    # tolerance vs. the f32 reference is loosened accordingly.
    assert jnp.allclose(out, out_ref, atol=5e-2, rtol=5e-2), \
        f"out max err {jnp.max(jnp.abs(out - out_ref))}"
    assert jnp.allclose(h, h_ref, atol=5e-2, rtol=5e-2), \
        f"h max err {jnp.max(jnp.abs(h - h_ref))}"

    print("KERNEL_OK")
</pallas_src>

<mosaic_0001>
module attributes {stable_mosaic.version = 11 : i64} {
  func.func @_bigru_layer_kernel(%arg0: i32, %arg1: memref<2x64x128xbf16, #tpu.memory_space<vmem>>, %arg2: memref<2x128x384xbf16, #tpu.memory_space<vmem>>, %arg3: memref<2x128x384xf32, #tpu.memory_space<vmem>>, %arg4: memref<2x1x384xf32, #tpu.memory_space<vmem>>, %arg5: memref<2x1x128xf32, #tpu.memory_space<vmem>>, %arg6: memref<2x64x128xbf16, #tpu.memory_space<vmem>>, %arg7: memref<2x8x128xf32, #tpu.memory_space<vmem>>, %arg8: memref<2x64x384xf32, #tpu.memory_space<vmem>>) attributes {dimension_semantics = [#tpu.dimension_semantics<arbitrary>], iteration_bounds = array<i64: 1>, scalar_prefetch = 0 : i64, scratch_operands = 1 : i64, tpu.core_type = #tpu.core_type<tc>, window_params = [{transform_indices = @transform_0, window_bounds = array<i64: 2, 64, 128>}, {pipeline_mode = #tpu.pipeline_mode<synchronous>, transform_indices = @transform_1, window_bounds = array<i64: 2, 128, 384>}, {pipeline_mode = #tpu.pipeline_mode<synchronous>, transform_indices = @transform_2, window_bounds = array<i64: 2, 128, 384>}, {pipeline_mode = #tpu.pipeline_mode<synchronous>, transform_indices = @transform_3, window_bounds = array<i64: 2, 1, 384>}, {pipeline_mode = #tpu.pipeline_mode<synchronous>, transform_indices = @transform_4, window_bounds = array<i64: 2, 1, 128>}, {transform_indices = @transform_5, window_bounds = array<i64: 2, 64, 128>}, {pipeline_mode = #tpu.pipeline_mode<synchronous>, transform_indices = @transform_6, window_bounds = array<i64: 2, 8, 128>}]} {
    %c0_i32 = arith.constant 0 : i32
    %0 = arith.cmpi eq, %arg0, %c0_i32 : i32
    %1 = arith.extui %0 : i1 to i32
    %c0_i32_0 = arith.constant 0 : i32
    %2 = arith.cmpi ne, %1, %c0_i32_0 : i32
    scf.if %2 {
      %cst_227 = arith.constant 0.000000e+00 : f32
      %669 = vector.broadcast %cst_227 : f32 to vector<2x8x128xf32>
      %c0_228 = arith.constant 0 : index
      %c0_229 = arith.constant 0 : index
      %c0_230 = arith.constant 0 : index
      %670 = vector.load %arg7[%c0_228, %c0_229, %c0_230] : memref<2x8x128xf32, #tpu.memory_space<vmem>>, vector<2x8x128xf32>
      tpu.vector_store %arg7[%c0_228, %c0_229, %c0_230], %669 {strides = array<i32>} : memref<2x8x128xf32, #tpu.memory_space<vmem>>, vector<2x8x128xf32>,
    } else {
    }
    %c0 = arith.constant 0 : index
    %c0_1 = arith.constant 0 : index
    %c0_2 = arith.constant 0 : index
    %3 = vector.load %arg1[%c0, %c0_1, %c0_2] : memref<2x64x128xbf16, #tpu.memory_space<vmem>>, vector<1x64x128xbf16>
    %4 = vector.shape_cast %3 : vector<1x64x128xbf16> to vector<64x128xbf16>
    %c0_3 = arith.constant 0 : index
    %c0_4 = arith.constant 0 : index
    %c0_5 = arith.constant 0 : index
    %5 = vector.load %arg2[%c0_3, %c0_4, %c0_5] : memref<2x128x384xbf16, #tpu.memory_space<vmem>>, vector<1x128x384xbf16>
    %6 = vector.shape_cast %5 : vector<1x128x384xbf16> to vector<128x384xbf16>
    %cst = arith.constant dense<0.000000e+00> : vector<64x384xf32>
    %7 = tpu.matmul %4, %6, %cst {dimension_numbers = #tpu.dot_dimension_numbers<[1], [0], [0], [1], [0, 0, 1, 1], [], []>} : vector<64x128xbf16>, vector<128x384xbf16>, vector<64x384xf32> -> vector<64x384xf32>
    %c0_6 = arith.constant 0 : index
    %c0_7 = arith.constant 0 : index
    %c0_8 = arith.constant 0 : index
    %8 = vector.load %arg4[%c0_6, %c0_7, %c0_8] : memref<2x1x384xf32, #tpu.memory_space<vmem>>, vector<1x1x384xf32>
    %9 = vector.shape_cast %8 : vector<1x1x384xf32> to vector<1x384xf32>
    %10 = vector.broadcast %9 : vector<1x384xf32> to vector<64x384xf32>
    %11 = arith.addf %7, %10 : vector<64x384xf32>
    %c0_9 = arith.constant 0 : index
    %c0_10 = arith.constant 0 : index
    %c0_11 = arith.constant 0 : index
    %12 = vector.load %arg8[%c0_9, %c0_10, %c0_11] : memref<2x64x384xf32, #tpu.memory_space<vmem>>, vector<1x64x384xf32>
    %13 = vector.shape_cast %12 : vector<1x64x384xf32> to vector<64x384xf32>
    %14 = vector.shape_cast %11 : vector<64x384xf32> to vector<1x64x384xf32>
    tpu.vector_store %arg8[%c0_9, %c0_10, %c0_11], %14 {strides = array<i32>} : memref<2x64x384xf32, #tpu.memory_space<vmem>>, vector<1x64x384xf32>,
    %c1 = arith.constant 1 : index
    %c0_12 = arith.constant 0 : index
    %c0_13 = arith.constant 0 : index
    %15 = vector.load %arg1[%c1, %c0_12, %c0_13] : memref<2x64x128xbf16, #tpu.memory_space<vmem>>, vector<1x64x128xbf16>
    %16 = vector.shape_cast %15 : vector<1x64x128xbf16> to vector<64x128xbf16>
    %c1_14 = arith.constant 1 : index
    %c0_15 = arith.constant 0 : index
    %c0_16 = arith.constant 0 : index
    %17 = vector.load %arg2[%c1_14, %c0_15, %c0_16] : memref<2x128x384xbf16, #tpu.memory_space<vmem>>, vector<1x128x384xbf16>
    %18 = vector.shape_cast %17 : vector<1x128x384xbf16> to vector<128x384xbf16>
    %cst_17 = arith.constant dense<0.000000e+00> : vector<64x384xf32>
    %19 = tpu.matmul %16, %18, %cst_17 {dimension_numbers = #tpu.dot_dimension_numbers<[1], [0], [0], [1], [0, 0, 1, 1], [], []>} : vector<64x128xbf16>, vector<128x384xbf16>, vector<64x384xf32> -> vector<64x384xf32>
    %c1_18 = arith.constant 1 : index
    %c0_19 = arith.constant 0 : index
    %c0_20 = arith.constant 0 : index
    %20 = vector.load %arg4[%c1_18, %c0_19, %c0_20] : memref<2x1x384xf32, #tpu.memory_space<vmem>>, vector<1x1x384xf32>
    %21 = vector.shape_cast %20 : vector<1x1x384xf32> to vector<1x384xf32>
    %22 = vector.broadcast %21 : vector<1x384xf32> to vector<64x384xf32>
    %23 = arith.addf %19, %22 : vector<64x384xf32>
    %c1_21 = arith.constant 1 : index
    %c0_22 = arith.constant 0 : index
    %c0_23 = arith.constant 0 : index
    %24 = vector.load %arg8[%c1_21, %c0_22, %c0_23] : memref<2x64x384xf32, #tpu.memory_space<vmem>>, vector<1x64x384xf32>
    %25 = vector.shape_cast %24 : vector<1x64x384xf32> to vector<64x384xf32>
    %26 = vector.shape_cast %23 : vector<64x384xf32> to vector<1x64x384xf32>
    tpu.vector_store %arg8[%c1_21, %c0_22, %c0_23], %26 {strides = array<i32>} : memref<2x64x384xf32, #tpu.memory_space<vmem>>, vector<1x64x384xf32>,
    %c0_24 = arith.constant 0 : index
    %c0_25 = arith.constant 0 : index
    %c0_26 = arith.constant 0 : index
    %27 = vector.load %arg5[%c0_24, %c0_25, %c0_26] : memref<2x1x128xf32, #tpu.memory_space<vmem>>, vector<1x1x128xf32>
    %28 = vector.shape_cast %27 : vector<1x1x128xf32> to vector<1x128xf32>
    %29 = vector.shape_cast %28 : vector<1x128xf32> to vector<1x128xf32>
    %30 = vector.broadcast %29 : vector<1x128xf32> to vector<8x128xf32>
    %c1_27 = arith.constant 1 : index
    %c0_28 = arith.constant 0 : index
    %c0_29 = arith.constant 0 : index
    %31 = vector.load %arg5[%c1_27, %c0_28, %c0_29] : memref<2x1x128xf32, #tpu.memory_space<vmem>>, vector<1x1x128xf32>
    %32 = vector.shape_cast %31 : vector<1x1x128xf32> to vector<1x128xf32>
    %33 = vector.shape_cast %32 : vector<1x128xf32> to vector<1x128xf32>
    %34 = vector.broadcast %33 : vector<1x128xf32> to vector<8x128xf32>
    %c0_30 = arith.constant 0 : index
    %c0_31 = arith.constant 0 : index
    %c0_32 = arith.constant 0 : index
    %35 = vector.load %arg7[%c0_30, %c0_31, %c0_32] : memref<2x8x128xf32, #tpu.memory_space<vmem>>, vector<1x8x128xf32>
    %36 = vector.shape_cast %35 : vector<1x8x128xf32> to vector<8x128xf32>
    %c1_33 = arith.constant 1 : index
    %c0_34 = arith.constant 0 : index
    %c0_35 = arith.constant 0 : index
    %37 = vector.load %arg7[%c1_33, %c0_34, %c0_35] : memref<2x8x128xf32, #tpu.memory_space<vmem>>, vector<1x8x128xf32>
    %38 = vector.shape_cast %37 : vector<1x8x128xf32> to vector<8x128xf32>
    %c0_i32_36 = arith.constant 0 : i32
    %c8_i32 = arith.constant 8 : i32
    %39 = arith.muli %c0_i32_36, %c8_i32 : i32
    %40 = tpu.assume_multiple %39, 8 : i32
    %c0_37 = arith.constant 0 : index
    %41 = arith.index_cast %40 : i32 to index
    %c0_38 = arith.constant 0 : index
    %42 = vector.load %arg8[%c0_37, %41, %c0_38] : memref<2x64x384xf32, #tpu.memory_space<vmem>>, vector<1x8x384xf32>
    %43 = vector.shape_cast %42 : vector<1x8x384xf32> to vector<8x384xf32>
    %c1_39 = arith.constant 1 : index
    %44 = arith.index_cast %40 : i32 to index
    %c0_40 = arith.constant 0 : index
    %45 = vector.load %arg8[%c1_39, %44, %c0_40] : memref<2x64x384xf32, #tpu.memory_space<vmem>>, vector<1x8x384xf32>
    %46 = vector.shape_cast %45 : vector<1x8x384xf32> to vector<8x384xf32>
    %c0_41 = arith.constant 0 : index
    %c0_42 = arith.constant 0 : index
    %c0_43 = arith.constant 0 : index
    %47 = vector.load %arg3[%c0_41, %c0_42, %c0_43] : memref<2x128x384xf32, #tpu.memory_space<vmem>>, vector<1x128x384xf32>
    %48 = vector.shape_cast %47 : vector<1x128x384xf32> to vector<128x384xf32>
    %cst_44 = arith.constant dense<0.000000e+00> : vector<8x384xf32>
    %49 = tpu.matmul %36, %48, %cst_44 {dimension_numbers = #tpu.dot_dimension_numbers<[1], [0], [0], [1], [0, 0, 1, 1], [], []>} : vector<8x128xf32>, vector<128x384xf32>, vector<8x384xf32> -> vector<8x384xf32>
    %c1_45 = arith.constant 1 : index
    %c0_46 = arith.constant 0 : index
    %c0_47 = arith.constant 0 : index
    %50 = vector.load %arg3[%c1_45, %c0_46, %c0_47] : memref<2x128x384xf32, #tpu.memory_space<vmem>>, vector<1x128x384xf32>
    %51 = vector.shape_cast %50 : vector<1x128x384xf32> to vector<128x384xf32>
    %cst_48 = arith.constant dense<0.000000e+00> : vector<8x384xf32>
    %52 = tpu.matmul %38, %51, %cst_48 {dimension_numbers = #tpu.dot_dimension_numbers<[1], [0], [0], [1], [0, 0, 1, 1], [], []>} : vector<8x128xf32>, vector<128x384xf32>, vector<8x384xf32> -> vector<8x384xf32>
    %53 = vector.extract_strided_slice %43 {offsets = [0, 0], sizes = [8, 128], strides = [1, 1]} : vector<8x384xf32> to vector<8x128xf32>
    %54 = vector.extract_strided_slice %49 {offsets = [0, 0], sizes = [8, 128], strides = [1, 1]} : vector<8x384xf32> to vector<8x128xf32>
    %55 = arith.addf %53, %54 : vector<8x128xf32>
    %56 = arith.negf %55 : vector<8x128xf32>
    %57 = math.exp %56 : vector<8x128xf32>
    %cst_49 = arith.constant 1.000000e+00 : f32
    %58 = vector.broadcast %cst_49 : f32 to vector<8x128xf32>
    %59 = arith.addf %58, %57 : vector<8x128xf32>
    %60 = arith.divf %58, %59 : vector<8x128xf32>
    %61 = vector.extract_strided_slice %43 {offsets = [0, 128], sizes = [8, 128], strides = [1, 1]} : vector<8x384xf32> to vector<8x128xf32>
    %62 = vector.extract_strided_slice %49 {offsets = [0, 128], sizes = [8, 128], strides = [1, 1]} : vector<8x384xf32> to vector<8x128xf32>
    %63 = arith.addf %61, %62 : vector<8x128xf32>
    %64 = arith.negf %63 : vector<8x128xf32>
    %65 = math.exp %64 : vector<8x128xf32>
    %cst_50 = arith.constant 1.000000e+00 : f32
    %66 = vector.broadcast %cst_50 : f32 to vector<8x128xf32>
    %67 = arith.addf %66, %65 : vector<8x128xf32>
    %68 = arith.divf %66, %67 : vector<8x128xf32>
    %69 = vector.extract_strided_slice %43 {offsets = [0, 256], sizes = [8, 128], strides = [1, 1]} : vector<8x384xf32> to vector<8x128xf32>
    %70 = vector.extract_strided_slice %49 {offsets = [0, 256], sizes = [8, 128], strides = [1, 1]} : vector<8x384xf32> to vector<8x128xf32>
    %71 = arith.addf %70, %30 : vector<8x128xf32>
    %72 = arith.mulf %60, %71 : vector<8x128xf32>
    %73 = arith.addf %69, %72 : vector<8x128xf32>
    %74 = math.tanh %73 : vector<8x128xf32>
    %cst_51 = arith.constant 1.000000e+00 : f32
    %75 = vector.broadcast %cst_51 : f32 to vector<8x128xf32>
    %76 = arith.subf %75, %68 : vector<8x128xf32>
    %77 = arith.mulf %76, %74 : vector<8x128xf32>
    %78 = arith.mulf %68, %36 : vector<8x128xf32>
    %79 = arith.addf %77, %78 : vector<8x128xf32>
    %80 = vector.extract_strided_slice %46 {offsets = [0, 0], sizes = [8, 128], strides = [1, 1]} : vector<8x384xf32> to vector<8x128xf32>
    %81 = vector.extract_strided_slice %52 {offsets = [0, 0], sizes = [8, 128], strides = [1, 1]} : vector<8x384xf32> to vector<8x128xf32>
    %82 = arith.addf %80, %81 : vector<8x128xf32>
    %83 = arith.negf %82 : vector<8x128xf32>
    %84 = math.exp %83 : vector<8x128xf32>
    %cst_52 = arith.constant 1.000000e+00 : f32
    %85 = vector.broadcast %cst_52 : f32 to vector<8x128xf32>
    %86 = arith.addf %85, %84 : vector<8x128xf32>
    %87 = arith.divf %85, %86 : vector<8x128xf32>
    %88 = vector.extract_strided_slice %46 {offsets = [0, 128], sizes = [8, 128], strides = [1, 1]} : vector<8x384xf32> to vector<8x128xf32>
    %89 = vector.extract_strided_slice %52 {offsets = [0, 128], sizes = [8, 128], strides = [1, 1]} : vector<8x384xf32> to vector<8x128xf32>
    %90 = arith.addf %88, %89 : vector<8x128xf32>
    %91 = arith.negf %90 : vector<8x128xf32>
    %92 = math.exp %91 : vector<8x128xf32>
    %cst_53 = arith.constant 1.000000e+00 : f32
    %93 = vector.broadcast %cst_53 : f32 to vector<8x128xf32>
    %94 = arith.addf %93, %92 : vector<8x128xf32>
    %95 = arith.divf %93, %94 : vector<8x128xf32>
    %96 = vector.extract_strided_slice %46 {offsets = [0, 256], sizes = [8, 128], strides = [1, 1]} : vector<8x384xf32> to vector<8x128xf32>
    %97 = vector.extract_strided_slice %52 {offsets = [0, 256], sizes = [8, 128], strides = [1, 1]} : vector<8x384xf32> to vector<8x128xf32>
    %98 = arith.addf %97, %34 : vector<8x128xf32>
    %99 = arith.mulf %87, %98 : vector<8x128xf32>
    %100 = arith.addf %96, %99 : vector<8x128xf32>
    %101 = math.tanh %100 : vector<8x128xf32>
    %cst_54 = arith.constant 1.000000e+00 : f32
    %102 = vector.broadcast %cst_54 : f32 to vector<8x128xf32>
    %103 = arith.subf %102, %95 : vector<8x128xf32>
    %104 = arith.mulf %103, %101 : vector<8x128xf32>
    %105 = arith.mulf %95, %38 : vector<8x128xf32>
    %106 = arith.addf %104, %105 : vector<8x128xf32>
    %107 = arith.truncf %79 : vector<8x128xf32> to vector<8x128xbf16>
    %c0_55 = arith.constant 0 : index
    %108 = arith.index_cast %40 : i32 to index
    %c0_56 = arith.constant 0 : index
    %109 = vector.load %arg6[%c0_55, %108, %c0_56] : memref<2x64x128xbf16, #tpu.memory_space<vmem>>, vector<1x8x128xbf16>
    %110 = vector.shape_cast %109 : vector<1x8x128xbf16> to vector<8x128xbf16>
    %111 = vector.shape_cast %107 : vector<8x128xbf16> to vector<1x8x128xbf16>
    tpu.vector_store %arg6[%c0_55, %108, %c0_56], %111 {strides = array<i32>} : memref<2x64x128xbf16, #tpu.memory_space<vmem>>, vector<1x8x128xbf16>,
    %112 = arith.truncf %106 : vector<8x128xf32> to vector<8x128xbf16>
    %c1_57 = arith.constant 1 : index
    %113 = arith.index_cast %40 : i32 to index
    %c0_58 = arith.constant 0 : index
    %114 = vector.load %arg6[%c1_57, %113, %c0_58] : memref<2x64x128xbf16, #tpu.memory_space<vmem>>, vector<1x8x128xbf16>
    %115 = vector.shape_cast %114 : vector<1x8x128xbf16> to vector<8x128xbf16>
    %116 = vector.shape_cast %112 : vector<8x128xbf16> to vector<1x8x128xbf16>
    tpu.vector_store %arg6[%c1_57, %113, %c0_58], %116 {strides = array<i32>} : memref<2x64x128xbf16, #tpu.memory_space<vmem>>, vector<1x8x128xbf16>,
    %c1_i32 = arith.constant 1 : i32
    %c8_i32_59 = arith.constant 8 : i32
    %117 = arith.muli %c1_i32, %c8_i32_59 : i32
    %118 = tpu.assume_multiple %117, 8 : i32
    %c0_60 = arith.constant 0 : index
    %119 = arith.index_cast %118 : i32 to index
    %c0_61 = arith.constant 0 : index
    %120 = vector.load %arg8[%c0_60, %119, %c0_61] : memref<2x64x384xf32, #tpu.memory_space<vmem>>, vector<1x8x384xf32>
    %121 = vector.shape_cast %120 : vector<1x8x384xf32> to vector<8x384xf32>
    %c1_62 = arith.constant 1 : index
    %122 = arith.index_cast %118 : i32 to index
    %c0_63 = arith.constant 0 : index
    %123 = vector.load %arg8[%c1_62, %122, %c0_63] : memref<2x64x384xf32, #tpu.memory_space<vmem>>, vector<1x8x384xf32>
    %124 = vector.shape_cast %123 : vector<1x8x384xf32> to vector<8x384xf32>
    %c0_64 = arith.constant 0 : index
    %c0_65 = arith.constant 0 : index
    %c0_66 = arith.constant 0 : index
    %125 = vector.load %arg3[%c0_64, %c0_65, %c0_66] : memref<2x128x384xf32, #tpu.memory_space<vmem>>, vector<1x128x384xf32>
    %126 = vector.shape_cast %125 : vector<1x128x384xf32> to vector<128x384xf32>
    %cst_67 = arith.constant dense<0.000000e+00> : vector<8x384xf32>
    %127 = tpu.matmul %79, %126, %cst_67 {dimension_numbers = #tpu.dot_dimension_numbers<[1], [0], [0], [1], [0, 0, 1, 1], [], []>} : vector<8x128xf32>, vector<128x384xf32>, vector<8x384xf32> -> vector<8x384xf32>
    %c1_68 = arith.constant 1 : index
    %c0_69 = arith.constant 0 : index
    %c0_70 = arith.constant 0 : index
    %128 = vector.load %arg3[%c1_68, %c0_69, %c0_70] : memref<2x128x384xf32, #tpu.memory_space<vmem>>, vector<1x128x384xf32>
    %129 = vector.shape_cast %128 : vector<1x128x384xf32> to vector<128x384xf32>
    %cst_71 = arith.constant dense<0.000000e+00> : vector<8x384xf32>
    %130 = tpu.matmul %106, %129, %cst_71 {dimension_numbers = #tpu.dot_dimension_numbers<[1], [0], [0], [1], [0, 0, 1, 1], [], []>} : vector<8x128xf32>, vector<128x384xf32>, vector<8x384xf32> -> vector<8x384xf32>
    %131 = vector.extract_strided_slice %121 {offsets = [0, 0], sizes = [8, 128], strides = [1, 1]} : vector<8x384xf32> to vector<8x128xf32>
    %132 = vector.extract_strided_slice %127 {offsets = [0, 0], sizes = [8, 128], strides = [1, 1]} : vector<8x384xf32> to vector<8x128xf32>
    %133 = arith.addf %131, %132 : vector<8x128xf32>
    %134 = arith.negf %133 : vector<8x128xf32>
    %135 = math.exp %134 : vector<8x128xf32>
    %cst_72 = arith.constant 1.000000e+00 : f32
    %136 = vector.broadcast %cst_72 : f32 to vector<8x128xf32>
    %137 = arith.addf %136, %135 : vector<8x128xf32>
    %138 = arith.divf %136, %137 : vector<8x128xf32>
    %139 = vector.extract_strided_slice %121 {offsets = [0, 128], sizes = [8, 128], strides = [1, 1]} : vector<8x384xf32> to vector<8x128xf32>
    %140 = vector.extract_strided_slice %127 {offsets = [0, 128], sizes = [8, 128], strides = [1, 1]} : vector<8x384xf32> to vector<8x128xf32>
    %141 = arith.addf %139, %140 : vector<8x128xf32>
    %142 = arith.negf %141 : vector<8x128xf32>
    %143 = math.exp %142 : vector<8x128xf32>
    %cst_73 = arith.constant 1.000000e+00 : f32
    %144 = vector.broadcast %cst_73 : f32 to vector<8x128xf32>
    %145 = arith.addf %144, %143 : vector<8x128xf32>
    %146 = arith.divf %144, %145 : vector<8x128xf32>
    %147 = vector.extract_strided_slice %121 {offsets = [0, 256], sizes = [8, 128], strides = [1, 1]} : vector<8x384xf32> to vector<8x128xf32>
    %148 = vector.extract_strided_slice %127 {offsets = [0, 256], sizes = [8, 128], strides = [1, 1]} : vector<8x384xf32> to vector<8x128xf32>
    %149 = arith.addf %148, %30 : vector<8x128xf32>
    %150 = arith.mulf %138, %149 : vector<8x128xf32>
    %151 = arith.addf %147, %150 : vector<8x128xf32>
    %152 = math.tanh %151 : vector<8x128xf32>
    %cst_74 = arith.constant 1.000000e+00 : f32
    %153 = vector.broadcast %cst_74 : f32 to vector<8x128xf32>
    %154 = arith.subf %153, %146 : vector<8x128xf32>
    %155 = arith.mulf %154, %152 : vector<8x128xf32>
    %156 = arith.mulf %146, %79 : vector<8x128xf32>
    %157 = arith.addf %155, %156 : vector<8x128xf32>
    %158 = vector.extract_strided_slice %124 {offsets = [0, 0], sizes = [8, 128], strides = [1, 1]} : vector<8x384xf32> to vector<8x128xf32>
    %159 = vector.extract_strided_slice %130 {offsets = [0, 0], sizes = [8, 128], strides = [1, 1]} : vector<8x384xf32> to vector<8x128xf32>
    %160 = arith.addf %158, %159 : vector<8x128xf32>
    %161 = arith.negf %160 : vector<8x128xf32>
    %162 = math.exp %161 : vector<8x128xf32>
    %cst_75 = arith.constant 1.000000e+00 : f32
    %163 = vector.broadcast %cst_75 : f32 to vector<8x128xf32>
    %164 = arith.addf %163, %162 : vector<8x128xf32>
    %165 = arith.divf %163, %164 : vector<8x128xf32>
    %166 = vector.extract_strided_slice %124 {offsets = [0, 128], sizes = [8, 128], strides = [1, 1]} : vector<8x384xf32> to vector<8x128xf32>
    %167 = vector.extract_strided_slice %130 {offsets = [0, 128], sizes = [8, 128], strides = [1, 1]} : vector<8x384xf32> to vector<8x128xf32>
    %168 = arith.addf %166, %167 : vector<8x128xf32>
    %169 = arith.negf %168 : vector<8x128xf32>
    %170 = math.exp %169 : vector<8x128xf32>
    %cst_76 = arith.constant 1.000000e+00 : f32
    %171 = vector.broadcast %cst_76 : f32 to vector<8x128xf32>
    %172 = arith.addf %171, %170 : vector<8x128xf32>
    %173 = arith.divf %171, %172 : vector<8x128xf32>
    %174 = vector.extract_strided_slice %124 {offsets = [0, 256], sizes = [8, 128], strides = [1, 1]} : vector<8x384xf32> to vector<8x128xf32>
    %175 = vector.extract_strided_slice %130 {offsets = [0, 256], sizes = [8, 128], strides = [1, 1]} : vector<8x384xf32> to vector<8x128xf32>
    %176 = arith.addf %175, %34 : vector<8x128xf32>
    %177 = arith.mulf %165, %176 : vector<8x128xf32>
    %178 = arith.addf %174, %177 : vector<8x128xf32>
    %179 = math.tanh %178 : vector<8x128xf32>
    %cst_77 = arith.constant 1.000000e+00 : f32
    %180 = vector.broadcast %cst_77 : f32 to vector<8x128xf32>
    %181 = arith.subf %180, %173 : vector<8x128xf32>
    %182 = arith.mulf %181, %179 : vector<8x128xf32>
    %183 = arith.mulf %173, %106 : vector<8x128xf32>
    %184 = arith.addf %182, %183 : vector<8x128xf32>
    %185 = arith.truncf %157 : vector<8x128xf32> to vector<8x128xbf16>
    %c0_78 = arith.constant 0 : index
    %186 = arith.index_cast %118 : i32 to index
    %c0_79 = arith.constant 0 : index
    %187 = vector.load %arg6[%c0_78, %186, %c0_79] : memref<2x64x128xbf16, #tpu.memory_space<vmem>>, vector<1x8x128xbf16>
    %188 = vector.shape_cast %187 : vector<1x8x128xbf16> to vector<8x128xbf16>
    %189 = vector.shape_cast %185 : vector<8x128xbf16> to vector<1x8x128xbf16>
    tpu.vector_store %arg6[%c0_78, %186, %c0_79], %189 {strides = array<i32>} : memref<2x64x128xbf16, #tpu.memory_space<vmem>>, vector<1x8x128xbf16>,
    %190 = arith.truncf %184 : vector<8x128xf32> to vector<8x128xbf16>
    %c1_80 = arith.constant 1 : index
    %191 = arith.index_cast %118 : i32 to index
    %c0_81 = arith.constant 0 : index
    %192 = vector.load %arg6[%c1_80, %191, %c0_81] : memref<2x64x128xbf16, #tpu.memory_space<vmem>>, vector<1x8x128xbf16>
    %193 = vector.shape_cast %192 : vector<1x8x128xbf16> to vector<8x128xbf16>
    %194 = vector.shape_cast %190 : vector<8x128xbf16> to vector<1x8x128xbf16>
    tpu.vector_store %arg6[%c1_80, %191, %c0_81], %194 {strides = array<i32>} : memref<2x64x128xbf16, #tpu.memory_space<vmem>>, vector<1x8x128xbf16>,
    %c2_i32 = arith.constant 2 : i32
    %c8_i32_82 = arith.constant 8 : i32
    %195 = arith.muli %c2_i32, %c8_i32_82 : i32
    %196 = tpu.assume_multiple %195, 8 : i32
    %c0_83 = arith.constant 0 : index
    %197 = arith.index_cast %196 : i32 to index
    %c0_84 = arith.constant 0 : index
    %198 = vector.load %arg8[%c0_83, %197, %c0_84] : memref<2x64x384xf32, #tpu.memory_space<vmem>>, vector<1x8x384xf32>
    %199 = vector.shape_cast %198 : vector<1x8x384xf32> to vector<8x384xf32>
    %c1_85 = arith.constant 1 : index
    %200 = arith.index_cast %196 : i32 to index
    %c0_86 = arith.constant 0 : index
    %201 = vector.load %arg8[%c1_85, %200, %c0_86] : memref<2x64x384xf32, #tpu.memory_space<vmem>>, vector<1x8x384xf32>
    %202 = vector.shape_cast %201 : vector<1x8x384xf32> to vector<8x384xf32>
    %c0_87 = arith.constant 0 : index
    %c0_88 = arith.constant 0 : index
    %c0_89 = arith.constant 0 : index
    %203 = vector.load %arg3[%c0_87, %c0_88, %c0_89] : memref<2x128x384xf32, #tpu.memory_space<vmem>>, vector<1x128x384xf32>
    %204 = vector.shape_cast %203 : vector<1x128x384xf32> to vector<128x384xf32>
    %cst_90 = arith.constant dense<0.000000e+00> : vector<8x384xf32>
    %205 = tpu.matmul %157, %204, %cst_90 {dimension_numbers = #tpu.dot_dimension_numbers<[1], [0], [0], [1], [0, 0, 1, 1], [], []>} : vector<8x128xf32>, vector<128x384xf32>, vector<8x384xf32> -> vector<8x384xf32>
    %c1_91 = arith.constant 1 : index
    %c0_92 = arith.constant 0 : index
    %c0_93 = arith.constant 0 : index
    %206 = vector.load %arg3[%c1_91, %c0_92, %c0_93] : memref<2x128x384xf32, #tpu.memory_space<vmem>>, vector<1x128x384xf32>
    %207 = vector.shape_cast %206 : vector<1x128x384xf32> to vector<128x384xf32>
    %cst_94 = arith.constant dense<0.000000e+00> : vector<8x384xf32>
    %208 = tpu.matmul %184, %207, %cst_94 {dimension_numbers = #tpu.dot_dimension_numbers<[1], [0], [0], [1], [0, 0, 1, 1], [], []>} : vector<8x128xf32>, vector<128x384xf32>, vector<8x384xf32> -> vector<8x384xf32>
    %209 = vector.extract_strided_slice %199 {offsets = [0, 0], sizes = [8, 128], strides = [1, 1]} : vector<8x384xf32> to vector<8x128xf32>
    %210 = vector.extract_strided_slice %205 {offsets = [0, 0], sizes = [8, 128], strides = [1, 1]} : vector<8x384xf32> to vector<8x128xf32>
    %211 = arith.addf %209, %210 : vector<8x128xf32>
    %212 = arith.negf %211 : vector<8x128xf32>
    %213 = math.exp %212 : vector<8x128xf32>
    %cst_95 = arith.constant 1.000000e+00 : f32
    %214 = vector.broadcast %cst_95 : f32 to vector<8x128xf32>
    %215 = arith.addf %214, %213 : vector<8x128xf32>
    %216 = arith.divf %214, %215 : vector<8x128xf32>
    %217 = vector.extract_strided_slice %199 {offsets = [0, 128], sizes = [8, 128], strides = [1, 1]} : vector<8x384xf32> to vector<8x128xf32>
    %218 = vector.extract_strided_slice %205 {offsets = [0, 128], sizes = [8, 128], strides = [1, 1]} : vector<8x384xf32> to vector<8x128xf32>
    %219 = arith.addf %217, %218 : vector<8x128xf32>
    %220 = arith.negf %219 : vector<8x128xf32>
    %221 = math.exp %220 : vector<8x128xf32>
    %cst_96 = arith.constant 1.000000e+00 : f32
    %222 = vector.broadcast %cst_96 : f32 to vector<8x128xf32>
    %223 = arith.addf %222, %221 : vector<8x128xf32>
    %224 = arith.divf %222, %223 : vector<8x128xf32>
    %225 = vector.extract_strided_slice %199 {offsets = [0, 256], sizes = [8, 128], strides = [1, 1]} : vector<8x384xf32> to vector<8x128xf32>
    %226 = vector.extract_strided_slice %205 {offsets = [0, 256], sizes = [8, 128], strides = [1, 1]} : vector<8x384xf32> to vector<8x128xf32>
    %227 = arith.addf %226, %30 : vector<8x128xf32>
    %228 = arith.mulf %216, %227 : vector<8x128xf32>
    %229 = arith.addf %225, %228 : vector<8x128xf32>
    %230 = math.tanh %229 : vector<8x128xf32>
    %cst_97 = arith.constant 1.000000e+00 : f32
    %231 = vector.broadcast %cst_97 : f32 to vector<8x128xf32>
    %232 = arith.subf %231, %224 : vector<8x128xf32>
    %233 = arith.mulf %232, %230 : vector<8x128xf32>
    %234 = arith.mulf %224, %157 : vector<8x128xf32>
    %235 = arith.addf %233, %234 : vector<8x128xf32>
    %236 = vector.extract_strided_slice %202 {offsets = [0, 0], sizes = [8, 128], strides = [1, 1]} : vector<8x384xf32> to vector<8x128xf32>
    %237 = vector.extract_strided_slice %208 {offsets = [0, 0], sizes = [8, 128], strides = [1, 1]} : vector<8x384xf32> to vector<8x128xf32>
    %238 = arith.addf %236, %237 : vector<8x128xf32>
    %239 = arith.negf %238 : vector<8x128xf32>
    %240 = math.exp %239 : vector<8x128xf32>
    %cst_98 = arith.constant 1.000000e+00 : f32
    %241 = vector.broadcast %cst_98 : f32 to vector<8x128xf32>
    %242 = arith.addf %241, %240 : vector<8x128xf32>
    %243 = arith.divf %241, %242 : vector<8x128xf32>
    %244 = vector.extract_strided_slice %202 {offsets = [0, 128], sizes = [8, 128], strides = [1, 1]} : vector<8x384xf32> to vector<8x128xf32>
    %245 = vector.extract_strided_slice %208 {offsets = [0, 128], sizes = [8, 128], strides = [1, 1]} : vector<8x384xf32> to vector<8x128xf32>
    %246 = arith.addf %244, %245 : vector<8x128xf32>
    %247 = arith.negf %246 : vector<8x128xf32>
    %248 = math.exp %247 : vector<8x128xf32>
    %cst_99 = arith.constant 1.000000e+00 : f32
    %249 = vector.broadcast %cst_99 : f32 to vector<8x128xf32>
    %250 = arith.addf %249, %248 : vector<8x128xf32>
    %251 = arith.divf %249, %250 : vector<8x128xf32>
    %252 = vector.extract_strided_slice %202 {offsets = [0, 256], sizes = [8, 128], strides = [1, 1]} : vector<8x384xf32> to vector<8x128xf32>
    %253 = vector.extract_strided_slice %208 {offsets = [0, 256], sizes = [8, 128], strides = [1, 1]} : vector<8x384xf32> to vector<8x128xf32>
    %254 = arith.addf %253, %34 : vector<8x128xf32>
    %255 = arith.mulf %243, %254 : vector<8x128xf32>
    %256 = arith.addf %252, %255 : vector<8x128xf32>
    %257 = math.tanh %256 : vector<8x128xf32>
    %cst_100 = arith.constant 1.000000e+00 : f32
    %258 = vector.broadcast %cst_100 : f32 to vector<8x128xf32>
    %259 = arith.subf %258, %251 : vector<8x128xf32>
    %260 = arith.mulf %259, %257 : vector<8x128xf32>
    %261 = arith.mulf %251, %184 : vector<8x128xf32>
    %262 = arith.addf %260, %261 : vector<8x128xf32>
    %263 = arith.truncf %235 : vector<8x128xf32> to vector<8x128xbf16>
    %c0_101 = arith.constant 0 : index
    %264 = arith.index_cast %196 : i32 to index
    %c0_102 = arith.constant 0 : index
    %265 = vector.load %arg6[%c0_101, %264, %c0_102] : memref<2x64x128xbf16, #tpu.memory_space<vmem>>, vector<1x8x128xbf16>
    %266 = vector.shape_cast %265 : vector<1x8x128xbf16> to vector<8x128xbf16>
    %267 = vector.shape_cast %263 : vector<8x128xbf16> to vector<1x8x128xbf16>
    tpu.vector_store %arg6[%c0_101, %264, %c0_102], %267 {strides = array<i32>} : memref<2x64x128xbf16, #tpu.memory_space<vmem>>, vector<1x8x128xbf16>,
    %268 = arith.truncf %262 : vector<8x128xf32> to vector<8x128xbf16>
    %c1_103 = arith.constant 1 : index
    %269 = arith.index_cast %196 : i32 to index
    %c0_104 = arith.constant 0 : index
    %270 = vector.load %arg6[%c1_103, %269, %c0_104] : memref<2x64x128xbf16, #tpu.memory_space<vmem>>, vector<1x8x128xbf16>
    %271 = vector.shape_cast %270 : vector<1x8x128xbf16> to vector<8x128xbf16>
    %272 = vector.shape_cast %268 : vector<8x128xbf16> to vector<1x8x128xbf16>
    tpu.vector_store %arg6[%c1_103, %269, %c0_104], %272 {strides = array<i32>} : memref<2x64x128xbf16, #tpu.memory_space<vmem>>, vector<1x8x128xbf16>,
    %c3_i32 = arith.constant 3 : i32
    %c8_i32_105 = arith.constant 8 : i32
    %273 = arith.muli %c3_i32, %c8_i32_105 : i32
    %274 = tpu.assume_multiple %273, 8 : i32
    %c0_106 = arith.constant 0 : index
    %275 = arith.index_cast %274 : i32 to index
    %c0_107 = arith.constant 0 : index
    %276 = vector.load %arg8[%c0_106, %275, %c0_107] : memref<2x64x384xf32, #tpu.memory_space<vmem>>, vector<1x8x384xf32>
    %277 = vector.shape_cast %276 : vector<1x8x384xf32> to vector<8x384xf32>
    %c1_108 = arith.constant 1 : index
    %278 = arith.index_cast %274 : i32 to index
    %c0_109 = arith.constant 0 : index
    %279 = vector.load %arg8[%c1_108, %278, %c0_109] : memref<2x64x384xf32, #tpu.memory_space<vmem>>, vector<1x8x384xf32>
    %280 = vector.shape_cast %279 : vector<1x8x384xf32> to vector<8x384xf32>
    %c0_110 = arith.constant 0 : index
    %c0_111 = arith.constant 0 : index
    %c0_112 = arith.constant 0 : index
    %281 = vector.load %arg3[%c0_110, %c0_111, %c0_112] : memref<2x128x384xf32, #tpu.memory_space<vmem>>, vector<1x128x384xf32>
    %282 = vector.shape_cast %281 : vector<1x128x384xf32> to vector<128x384xf32>
    %cst_113 = arith.constant dense<0.000000e+00> : vector<8x384xf32>
    %283 = tpu.matmul %235, %282, %cst_113 {dimension_numbers = #tpu.dot_dimension_numbers<[1], [0], [0], [1], [0, 0, 1, 1], [], []>} : vector<8x128xf32>, vector<128x384xf32>, vector<8x384xf32> -> vector<8x384xf32>
    %c1_114 = arith.constant 1 : index
    %c0_115 = arith.constant 0 : index
    %c0_116 = arith.constant 0 : index
    %284 = vector.load %arg3[%c1_114, %c0_115, %c0_116] : memref<2x128x384xf32, #tpu.memory_space<vmem>>, vector<1x128x384xf32>
    %285 = vector.shape_cast %284 : vector<1x128x384xf32> to vector<128x384xf32>
    %cst_117 = arith.constant dense<0.000000e+00> : vector<8x384xf32>
    %286 = tpu.matmul %262, %285, %cst_117 {dimension_numbers = #tpu.dot_dimension_numbers<[1], [0], [0], [1], [0, 0, 1, 1], [], []>} : vector<8x128xf32>, vector<128x384xf32>, vector<8x384xf32> -> vector<8x384xf32>
    %287 = vector.extract_strided_slice %277 {offsets = [0, 0], sizes = [8, 128], strides = [1, 1]} : vector<8x384xf32> to vector<8x128xf32>
    %288 = vector.extract_strided_slice %283 {offsets = [0, 0], sizes = [8, 128], strides = [1, 1]} : vector<8x384xf32> to vector<8x128xf32>
    %289 = arith.addf %287, %288 : vector<8x128xf32>
    %290 = arith.negf %289 : vector<8x128xf32>
    %291 = math.exp %290 : vector<8x128xf32>
    %cst_118 = arith.constant 1.000000e+00 : f32
    %292 = vector.broadcast %cst_118 : f32 to vector<8x128xf32>
    %293 = arith.addf %292, %291 : vector<8x128xf32>
    %294 = arith.divf %292, %293 : vector<8x128xf32>
    %295 = vector.extract_strided_slice %277 {offsets = [0, 128], sizes = [8, 128], strides = [1, 1]} : vector<8x384xf32> to vector<8x128xf32>
    %296 = vector.extract_strided_slice %283 {offsets = [0, 128], sizes = [8, 128], strides = [1, 1]} : vector<8x384xf32> to vector<8x128xf32>
    %297 = arith.addf %295, %296 : vector<8x128xf32>
    %298 = arith.negf %297 : vector<8x128xf32>
    %299 = math.exp %298 : vector<8x128xf32>
    %cst_119 = arith.constant 1.000000e+00 : f32
    %300 = vector.broadcast %cst_119 : f32 to vector<8x128xf32>
    %301 = arith.addf %300, %299 : vector<8x128xf32>
    %302 = arith.divf %300, %301 : vector<8x128xf32>
    %303 = vector.extract_strided_slice %277 {offsets = [0, 256], sizes = [8, 128], strides = [1, 1]} : vector<8x384xf32> to vector<8x128xf32>
    %304 = vector.extract_strided_slice %283 {offsets = [0, 256], sizes = [8, 128], strides = [1, 1]} : vector<8x384xf32> to vector<8x128xf32>
    %305 = arith.addf %304, %30 : vector<8x128xf32>
    %306 = arith.mulf %294, %305 : vector<8x128xf32>
    %307 = arith.addf %303, %306 : vector<8x128xf32>
    %308 = math.tanh %307 : vector<8x128xf32>
    %cst_120 = arith.constant 1.000000e+00 : f32
    %309 = vector.broadcast %cst_120 : f32 to vector<8x128xf32>
    %310 = arith.subf %309, %302 : vector<8x128xf32>
    %311 = arith.mulf %310, %308 : vector<8x128xf32>
    %312 = arith.mulf %302, %235 : vector<8x128xf32>
    %313 = arith.addf %311, %312 : vector<8x128xf32>
    %314 = vector.extract_strided_slice %280 {offsets = [0, 0], sizes = [8, 128], strides = [1, 1]} : vector<8x384xf32> to vector<8x128xf32>
    %315 = vector.extract_strided_slice %286 {offsets = [0, 0], sizes = [8, 128], strides = [1, 1]} : vector<8x384xf32> to vector<8x128xf32>
    %316 = arith.addf %314, %315 : vector<8x128xf32>
    %317 = arith.negf %316 : vector<8x128xf32>
    %318 = math.exp %317 : vector<8x128xf32>
    %cst_121 = arith.constant 1.000000e+00 : f32
    %319 = vector.broadcast %cst_121 : f32 to vector<8x128xf32>
    %320 = arith.addf %319, %318 : vector<8x128xf32>
    %321 = arith.divf %319, %320 : vector<8x128xf32>
    %322 = vector.extract_strided_slice %280 {offsets = [0, 128], sizes = [8, 128], strides = [1, 1]} : vector<8x384xf32> to vector<8x128xf32>
    %323 = vector.extract_strided_slice %286 {offsets = [0, 128], sizes = [8, 128], strides = [1, 1]} : vector<8x384xf32> to vector<8x128xf32>
    %324 = arith.addf %322, %323 : vector<8x128xf32>
    %325 = arith.negf %324 : vector<8x128xf32>
    %326 = math.exp %325 : vector<8x128xf32>
    %cst_122 = arith.constant 1.000000e+00 : f32
    %327 = vector.broadcast %cst_122 : f32 to vector<8x128xf32>
    %328 = arith.addf %327, %326 : vector<8x128xf32>
    %329 = arith.divf %327, %328 : vector<8x128xf32>
    %330 = vector.extract_strided_slice %280 {offsets = [0, 256], sizes = [8, 128], strides = [1, 1]} : vector<8x384xf32> to vector<8x128xf32>
    %331 = vector.extract_strided_slice %286 {offsets = [0, 256], sizes = [8, 128], strides = [1, 1]} : vector<8x384xf32> to vector<8x128xf32>
    %332 = arith.addf %331, %34 : vector<8x128xf32>
    %333 = arith.mulf %321, %332 : vector<8x128xf32>
    %334 = arith.addf %330, %333 : vector<8x128xf32>
    %335 = math.tanh %334 : vector<8x128xf32>
    %cst_123 = arith.constant 1.000000e+00 : f32
    %336 = vector.broadcast %cst_123 : f32 to vector<8x128xf32>
    %337 = arith.subf %336, %329 : vector<8x128xf32>
    %338 = arith.mulf %337, %335 : vector<8x128xf32>
    %339 = arith.mulf %329, %262 : vector<8x128xf32>
    %340 = arith.addf %338, %339 : vector<8x128xf32>
    %341 = arith.truncf %313 : vector<8x128xf32> to vector<8x128xbf16>
    %c0_124 = arith.constant 0 : index
    %342 = arith.index_cast %274 : i32 to index
    %c0_125 = arith.constant 0 : index
    %343 = vector.load %arg6[%c0_124, %342, %c0_125] : memref<2x64x128xbf16, #tpu.memory_space<vmem>>, vector<1x8x128xbf16>
    %344 = vector.shape_cast %343 : vector<1x8x128xbf16> to vector<8x128xbf16>
    %345 = vector.shape_cast %341 : vector<8x128xbf16> to vector<1x8x128xbf16>
    tpu.vector_store %arg6[%c0_124, %342, %c0_125], %345 {strides = array<i32>} : memref<2x64x128xbf16, #tpu.memory_space<vmem>>, vector<1x8x128xbf16>,
    %346 = arith.truncf %340 : vector<8x128xf32> to vector<8x128xbf16>
    %c1_126 = arith.constant 1 : index
    %347 = arith.index_cast %274 : i32 to index
    %c0_127 = arith.constant 0 : index
    %348 = vector.load %arg6[%c1_126, %347, %c0_127] : memref<2x64x128xbf16, #tpu.memory_space<vmem>>, vector<1x8x128xbf16>
    %349 = vector.shape_cast %348 : vector<1x8x128xbf16> to vector<8x128xbf16>
    %350 = vector.shape_cast %346 : vector<8x128xbf16> to vector<1x8x128xbf16>
    tpu.vector_store %arg6[%c1_126, %347, %c0_127], %350 {strides = array<i32>} : memref<2x64x128xbf16, #tpu.memory_space<vmem>>, vector<1x8x128xbf16>,
    %c4_i32 = arith.constant 4 : i32
    %c8_i32_128 = arith.constant 8 : i32
    %351 = arith.muli %c4_i32, %c8_i32_128 : i32
    %352 = tpu.assume_multiple %351, 8 : i32
    %c0_129 = arith.constant 0 : index
    %353 = arith.index_cast %352 : i32 to index
    %c0_130 = arith.constant 0 : index
    %354 = vector.load %arg8[%c0_129, %353, %c0_130] : memref<2x64x384xf32, #tpu.memory_space<vmem>>, vector<1x8x384xf32>
    %355 = vector.shape_cast %354 : vector<1x8x384xf32> to vector<8x384xf32>
    %c1_131 = arith.constant 1 : index
    %356 = arith.index_cast %352 : i32 to index
    %c0_132 = arith.constant 0 : index
    %357 = vector.load %arg8[%c1_131, %356, %c0_132] : memref<2x64x384xf32, #tpu.memory_space<vmem>>, vector<1x8x384xf32>
    %358 = vector.shape_cast %357 : vector<1x8x384xf32> to vector<8x384xf32>
    %c0_133 = arith.constant 0 : index
    %c0_134 = arith.constant 0 : index
    %c0_135 = arith.constant 0 : index
    %359 = vector.load %arg3[%c0_133, %c0_134, %c0_135] : memref<2x128x384xf32, #tpu.memory_space<vmem>>, vector<1x128x384xf32>
    %360 = vector.shape_cast %359 : vector<1x128x384xf32> to vector<128x384xf32>
    %cst_136 = arith.constant dense<0.000000e+00> : vector<8x384xf32>
    %361 = tpu.matmul %313, %360, %cst_136 {dimension_numbers = #tpu.dot_dimension_numbers<[1], [0], [0], [1], [0, 0, 1, 1], [], []>} : vector<8x128xf32>, vector<128x384xf32>, vector<8x384xf32> -> vector<8x384xf32>
    %c1_137 = arith.constant 1 : index
    %c0_138 = arith.constant 0 : index
    %c0_139 = arith.constant 0 : index
    %362 = vector.load %arg3[%c1_137, %c0_138, %c0_139] : memref<2x128x384xf32, #tpu.memory_space<vmem>>, vector<1x128x384xf32>
    %363 = vector.shape_cast %362 : vector<1x128x384xf32> to vector<128x384xf32>
    %cst_140 = arith.constant dense<0.000000e+00> : vector<8x384xf32>
    %364 = tpu.matmul %340, %363, %cst_140 {dimension_numbers = #tpu.dot_dimension_numbers<[1], [0], [0], [1], [0, 0, 1, 1], [], []>} : vector<8x128xf32>, vector<128x384xf32>, vector<8x384xf32> -> vector<8x384xf32>
    %365 = vector.extract_strided_slice %355 {offsets = [0, 0], sizes = [8, 128], strides = [1, 1]} : vector<8x384xf32> to vector<8x128xf32>
    %366 = vector.extract_strided_slice %361 {offsets = [0, 0], sizes = [8, 128], strides = [1, 1]} : vector<8x384xf32> to vector<8x128xf32>
    %367 = arith.addf %365, %366 : vector<8x128xf32>
    %368 = arith.negf %367 : vector<8x128xf32>
    %369 = math.exp %368 : vector<8x128xf32>
    %cst_141 = arith.constant 1.000000e+00 : f32
    %370 = vector.broadcast %cst_141 : f32 to vector<8x128xf32>
    %371 = arith.addf %370, %369 : vector<8x128xf32>
    %372 = arith.divf %370, %371 : vector<8x128xf32>
    %373 = vector.extract_strided_slice %355 {offsets = [0, 128], sizes = [8, 128], strides = [1, 1]} : vector<8x384xf32> to vector<8x128xf32>
    %374 = vector.extract_strided_slice %361 {offsets = [0, 128], sizes = [8, 128], strides = [1, 1]} : vector<8x384xf32> to vector<8x128xf32>
    %375 = arith.addf %373, %374 : vector<8x128xf32>
    %376 = arith.negf %375 : vector<8x128xf32>
    %377 = math.exp %376 : vector<8x128xf32>
    %cst_142 = arith.constant 1.000000e+00 : f32
    %378 = vector.broadcast %cst_142 : f32 to vector<8x128xf32>
    %379 = arith.addf %378, %377 : vector<8x128xf32>
    %380 = arith.divf %378, %379 : vector<8x128xf32>
    %381 = vector.extract_strided_slice %355 {offsets = [0, 256], sizes = [8, 128], strides = [1, 1]} : vector<8x384xf32> to vector<8x128xf32>
    %382 = vector.extract_strided_slice %361 {offsets = [0, 256], sizes = [8, 128], strides = [1, 1]} : vector<8x384xf32> to vector<8x128xf32>
    %383 = arith.addf %382, %30 : vector<8x128xf32>
    %384 = arith.mulf %372, %383 : vector<8x128xf32>
    %385 = arith.addf %381, %384 : vector<8x128xf32>
    %386 = math.tanh %385 : vector<8x128xf32>
    %cst_143 = arith.constant 1.000000e+00 : f32
    %387 = vector.broadcast %cst_143 : f32 to vector<8x128xf32>
    %388 = arith.subf %387, %380 : vector<8x128xf32>
    %389 = arith.mulf %388, %386 : vector<8x128xf32>
    %390 = arith.mulf %380, %313 : vector<8x128xf32>
    %391 = arith.addf %389, %390 : vector<8x128xf32>
    %392 = vector.extract_strided_slice %358 {offsets = [0, 0], sizes = [8, 128], strides = [1, 1]} : vector<8x384xf32> to vector<8x128xf32>
    %393 = vector.extract_strided_slice %364 {offsets = [0, 0], sizes = [8, 128], strides = [1, 1]} : vector<8x384xf32> to vector<8x128xf32>
    %394 = arith.addf %392, %393 : vector<8x128xf32>
    %395 = arith.negf %394 : vector<8x128xf32>
    %396 = math.exp %395 : vector<8x128xf32>
    %cst_144 = arith.constant 1.000000e+00 : f32
    %397 = vector.broadcast %cst_144 : f32 to vector<8x128xf32>
    %398 = arith.addf %397, %396 : vector<8x128xf32>
    %399 = arith.divf %397, %398 : vector<8x128xf32>
    %400 = vector.extract_strided_slice %358 {offsets = [0, 128], sizes = [8, 128], strides = [1, 1]} : vector<8x384xf32> to vector<8x128xf32>
    %401 = vector.extract_strided_slice %364 {offsets = [0, 128], sizes = [8, 128], strides = [1, 1]} : vector<8x384xf32> to vector<8x128xf32>
    %402 = arith.addf %400, %401 : vector<8x128xf32>
    %403 = arith.negf %402 : vector<8x128xf32>
    %404 = math.exp %403 : vector<8x128xf32>
    %cst_145 = arith.constant 1.000000e+00 : f32
    %405 = vector.broadcast %cst_145 : f32 to vector<8x128xf32>
    %406 = arith.addf %405, %404 : vector<8x128xf32>
    %407 = arith.divf %405, %406 : vector<8x128xf32>
    %408 = vector.extract_strided_slice %358 {offsets = [0, 256], sizes = [8, 128], strides = [1, 1]} : vector<8x384xf32> to vector<8x128xf32>
    %409 = vector.extract_strided_slice %364 {offsets = [0, 256], sizes = [8, 128], strides = [1, 1]} : vector<8x384xf32> to vector<8x128xf32>
    %410 = arith.addf %409, %34 : vector<8x128xf32>
    %411 = arith.mulf %399, %410 : vector<8x128xf32>
    %412 = arith.addf %408, %411 : vector<8x128xf32>
    %413 = math.tanh %412 : vector<8x128xf32>
    %cst_146 = arith.constant 1.000000e+00 : f32
    %414 = vector.broadcast %cst_146 : f32 to vector<8x128xf32>
    %415 = arith.subf %414, %407 : vector<8x128xf32>
    %416 = arith.mulf %415, %413 : vector<8x128xf32>
    %417 = arith.mulf %407, %340 : vector<8x128xf32>
    %418 = arith.addf %416, %417 : vector<8x128xf32>
    %419 = arith.truncf %391 : vector<8x128xf32> to vector<8x128xbf16>
    %c0_147 = arith.constant 0 : index
    %420 = arith.index_cast %352 : i32 to index
    %c0_148 = arith.constant 0 : index
    %421 = vector.load %arg6[%c0_147, %420, %c0_148] : memref<2x64x128xbf16, #tpu.memory_space<vmem>>, vector<1x8x128xbf16>
    %422 = vector.shape_cast %421 : vector<1x8x128xbf16> to vector<8x128xbf16>
    %423 = vector.shape_cast %419 : vector<8x128xbf16> to vector<1x8x128xbf16>
    tpu.vector_store %arg6[%c0_147, %420, %c0_148], %423 {strides = array<i32>} : memref<2x64x128xbf16, #tpu.memory_space<vmem>>, vector<1x8x128xbf16>,
    %424 = arith.truncf %418 : vector<8x128xf32> to vector<8x128xbf16>
    %c1_149 = arith.constant 1 : index
    %425 = arith.index_cast %352 : i32 to index
    %c0_150 = arith.constant 0 : index
    %426 = vector.load %arg6[%c1_149, %425, %c0_150] : memref<2x64x128xbf16, #tpu.memory_space<vmem>>, vector<1x8x128xbf16>
    %427 = vector.shape_cast %426 : vector<1x8x128xbf16> to vector<8x128xbf16>
    %428 = vector.shape_cast %424 : vector<8x128xbf16> to vector<1x8x128xbf16>
    tpu.vector_store %arg6[%c1_149, %425, %c0_150], %428 {strides = array<i32>} : memref<2x64x128xbf16, #tpu.memory_space<vmem>>, vector<1x8x128xbf16>,
    %c5_i32 = arith.constant 5 : i32
    %c8_i32_151 = arith.constant 8 : i32
    %429 = arith.muli %c5_i32, %c8_i32_151 : i32
    %430 = tpu.assume_multiple %429, 8 : i32
    %c0_152 = arith.constant 0 : index
    %431 = arith.index_cast %430 : i32 to index
    %c0_153 = arith.constant 0 : index
    %432 = vector.load %arg8[%c0_152, %431, %c0_153] : memref<2x64x384xf32, #tpu.memory_space<vmem>>, vector<1x8x384xf32>
    %433 = vector.shape_cast %432 : vector<1x8x384xf32> to vector<8x384xf32>
    %c1_154 = arith.constant 1 : index
    %434 = arith.index_cast %430 : i32 to index
    %c0_155 = arith.constant 0 : index
    %435 = vector.load %arg8[%c1_154, %434, %c0_155] : memref<2x64x384xf32, #tpu.memory_space<vmem>>, vector<1x8x384xf32>
    %436 = vector.shape_cast %435 : vector<1x8x384xf32> to vector<8x384xf32>
    %c0_156 = arith.constant 0 : index
    %c0_157 = arith.constant 0 : index
    %c0_158 = arith.constant 0 : index
    %437 = vector.load %arg3[%c0_156, %c0_157, %c0_158] : memref<2x128x384xf32, #tpu.memory_space<vmem>>, vector<1x128x384xf32>
    %438 = vector.shape_cast %437 : vector<1x128x384xf32> to vector<128x384xf32>
    %cst_159 = arith.constant dense<0.000000e+00> : vector<8x384xf32>
    %439 = tpu.matmul %391, %438, %cst_159 {dimension_numbers = #tpu.dot_dimension_numbers<[1], [0], [0], [1], [0, 0, 1, 1], [], []>} : vector<8x128xf32>, vector<128x384xf32>, vector<8x384xf32> -> vector<8x384xf32>
    %c1_160 = arith.constant 1 : index
    %c0_161 = arith.constant 0 : index
    %c0_162 = arith.constant 0 : index
    %440 = vector.load %arg3[%c1_160, %c0_161, %c0_162] : memref<2x128x384xf32, #tpu.memory_space<vmem>>, vector<1x128x384xf32>
    %441 = vector.shape_cast %440 : vector<1x128x384xf32> to vector<128x384xf32>
    %cst_163 = arith.constant dense<0.000000e+00> : vector<8x384xf32>
    %442 = tpu.matmul %418, %441, %cst_163 {dimension_numbers = #tpu.dot_dimension_numbers<[1], [0], [0], [1], [0, 0, 1, 1], [], []>} : vector<8x128xf32>, vector<128x384xf32>, vector<8x384xf32> -> vector<8x384xf32>
    %443 = vector.extract_strided_slice %433 {offsets = [0, 0], sizes = [8, 128], strides = [1, 1]} : vector<8x384xf32> to vector<8x128xf32>
    %444 = vector.extract_strided_slice %439 {offsets = [0, 0], sizes = [8, 128], strides = [1, 1]} : vector<8x384xf32> to vector<8x128xf32>
    %445 = arith.addf %443, %444 : vector<8x128xf32>
    %446 = arith.negf %445 : vector<8x128xf32>
    %447 = math.exp %446 : vector<8x128xf32>
    %cst_164 = arith.constant 1.000000e+00 : f32
    %448 = vector.broadcast %cst_164 : f32 to vector<8x128xf32>
    %449 = arith.addf %448, %447 : vector<8x128xf32>
    %450 = arith.divf %448, %449 : vector<8x128xf32>
    %451 = vector.extract_strided_slice %433 {offsets = [0, 128], sizes = [8, 128], strides = [1, 1]} : vector<8x384xf32> to vector<8x128xf32>
    %452 = vector.extract_strided_slice %439 {offsets = [0, 128], sizes = [8, 128], strides = [1, 1]} : vector<8x384xf32> to vector<8x128xf32>
    %453 = arith.addf %451, %452 : vector<8x128xf32>
    %454 = arith.negf %453 : vector<8x128xf32>
    %455 = math.exp %454 : vector<8x128xf32>
    %cst_165 = arith.constant 1.000000e+00 : f32
    %456 = vector.broadcast %cst_165 : f32 to vector<8x128xf32>
    %457 = arith.addf %456, %455 : vector<8x128xf32>
    %458 = arith.divf %456, %457 : vector<8x128xf32>
    %459 = vector.extract_strided_slice %433 {offsets = [0, 256], sizes = [8, 128], strides = [1, 1]} : vector<8x384xf32> to vector<8x128xf32>
    %460 = vector.extract_strided_slice %439 {offsets = [0, 256], sizes = [8, 128], strides = [1, 1]} : vector<8x384xf32> to vector<8x128xf32>
    %461 = arith.addf %460, %30 : vector<8x128xf32>
    %462 = arith.mulf %450, %461 : vector<8x128xf32>
    %463 = arith.addf %459, %462 : vector<8x128xf32>
    %464 = math.tanh %463 : vector<8x128xf32>
    %cst_166 = arith.constant 1.000000e+00 : f32
    %465 = vector.broadcast %cst_166 : f32 to vector<8x128xf32>
    %466 = arith.subf %465, %458 : vector<8x128xf32>
    %467 = arith.mulf %466, %464 : vector<8x128xf32>
    %468 = arith.mulf %458, %391 : vector<8x128xf32>
    %469 = arith.addf %467, %468 : vector<8x128xf32>
    %470 = vector.extract_strided_slice %436 {offsets = [0, 0], sizes = [8, 128], strides = [1, 1]} : vector<8x384xf32> to vector<8x128xf32>
    %471 = vector.extract_strided_slice %442 {offsets = [0, 0], sizes = [8, 128], strides = [1, 1]} : vector<8x384xf32> to vector<8x128xf32>
    %472 = arith.addf %470, %471 : vector<8x128xf32>
    %473 = arith.negf %472 : vector<8x128xf32>
    %474 = math.exp %473 : vector<8x128xf32>
    %cst_167 = arith.constant 1.000000e+00 : f32
    %475 = vector.broadcast %cst_167 : f32 to vector<8x128xf32>
    %476 = arith.addf %475, %474 : vector<8x128xf32>
    %477 = arith.divf %475, %476 : vector<8x128xf32>
    %478 = vector.extract_strided_slice %436 {offsets = [0, 128], sizes = [8, 128], strides = [1, 1]} : vector<8x384xf32> to vector<8x128xf32>
    %479 = vector.extract_strided_slice %442 {offsets = [0, 128], sizes = [8, 128], strides = [1, 1]} : vector<8x384xf32> to vector<8x128xf32>
    %480 = arith.addf %478, %479 : vector<8x128xf32>
    %481 = arith.negf %480 : vector<8x128xf32>
    %482 = math.exp %481 : vector<8x128xf32>
    %cst_168 = arith.constant 1.000000e+00 : f32
    %483 = vector.broadcast %cst_168 : f32 to vector<8x128xf32>
    %484 = arith.addf %483, %482 : vector<8x128xf32>
    %485 = arith.divf %483, %484 : vector<8x128xf32>
    %486 = vector.extract_strided_slice %436 {offsets = [0, 256], sizes = [8, 128], strides = [1, 1]} : vector<8x384xf32> to vector<8x128xf32>
    %487 = vector.extract_strided_slice %442 {offsets = [0, 256], sizes = [8, 128], strides = [1, 1]} : vector<8x384xf32> to vector<8x128xf32>
    %488 = arith.addf %487, %34 : vector<8x128xf32>
    %489 = arith.mulf %477, %488 : vector<8x128xf32>
    %490 = arith.addf %486, %489 : vector<8x128xf32>
    %491 = math.tanh %490 : vector<8x128xf32>
    %cst_169 = arith.constant 1.000000e+00 : f32
    %492 = vector.broadcast %cst_169 : f32 to vector<8x128xf32>
    %493 = arith.subf %492, %485 : vector<8x128xf32>
    %494 = arith.mulf %493, %491 : vector<8x128xf32>
    %495 = arith.mulf %485, %418 : vector<8x128xf32>
    %496 = arith.addf %494, %495 : vector<8x128xf32>
    %497 = arith.truncf %469 : vector<8x128xf32> to vector<8x128xbf16>
    %c0_170 = arith.constant 0 : index
    %498 = arith.index_cast %430 : i32 to index
    %c0_171 = arith.constant 0 : index
    %499 = vector.load %arg6[%c0_170, %498, %c0_171] : memref<2x64x128xbf16, #tpu.memory_space<vmem>>, vector<1x8x128xbf16>
    %500 = vector.shape_cast %499 : vector<1x8x128xbf16> to vector<8x128xbf16>
    %501 = vector.shape_cast %497 : vector<8x128xbf16> to vector<1x8x128xbf16>
    tpu.vector_store %arg6[%c0_170, %498, %c0_171], %501 {strides = array<i32>} : memref<2x64x128xbf16, #tpu.memory_space<vmem>>, vector<1x8x128xbf16>,
    %502 = arith.truncf %496 : vector<8x128xf32> to vector<8x128xbf16>
    %c1_172 = arith.constant 1 : index
    %503 = arith.index_cast %430 : i32 to index
    %c0_173 = arith.constant 0 : index
    %504 = vector.load %arg6[%c1_172, %503, %c0_173] : memref<2x64x128xbf16, #tpu.memory_space<vmem>>, vector<1x8x128xbf16>
    %505 = vector.shape_cast %504 : vector<1x8x128xbf16> to vector<8x128xbf16>
    %506 = vector.shape_cast %502 : vector<8x128xbf16> to vector<1x8x128xbf16>
    tpu.vector_store %arg6[%c1_172, %503, %c0_173], %506 {strides = array<i32>} : memref<2x64x128xbf16, #tpu.memory_space<vmem>>, vector<1x8x128xbf16>,
    %c6_i32 = arith.constant 6 : i32
    %c8_i32_174 = arith.constant 8 : i32
    %507 = arith.muli %c6_i32, %c8_i32_174 : i32
    %508 = tpu.assume_multiple %507, 8 : i32
    %c0_175 = arith.constant 0 : index
    %509 = arith.index_cast %508 : i32 to index
    %c0_176 = arith.constant 0 : index
    %510 = vector.load %arg8[%c0_175, %509, %c0_176] : memref<2x64x384xf32, #tpu.memory_space<vmem>>, vector<1x8x384xf32>
    %511 = vector.shape_cast %510 : vector<1x8x384xf32> to vector<8x384xf32>
    %c1_177 = arith.constant 1 : index
    %512 = arith.index_cast %508 : i32 to index
    %c0_178 = arith.constant 0 : index
    %513 = vector.load %arg8[%c1_177, %512, %c0_178] : memref<2x64x384xf32, #tpu.memory_space<vmem>>, vector<1x8x384xf32>
    %514 = vector.shape_cast %513 : vector<1x8x384xf32> to vector<8x384xf32>
    %c0_179 = arith.constant 0 : index
    %c0_180 = arith.constant 0 : index
    %c0_181 = arith.constant 0 : index
    %515 = vector.load %arg3[%c0_179, %c0_180, %c0_181] : memref<2x128x384xf32, #tpu.memory_space<vmem>>, vector<1x128x384xf32>
    %516 = vector.shape_cast %515 : vector<1x128x384xf32> to vector<128x384xf32>
    %cst_182 = arith.constant dense<0.000000e+00> : vector<8x384xf32>
    %517 = tpu.matmul %469, %516, %cst_182 {dimension_numbers = #tpu.dot_dimension_numbers<[1], [0], [0], [1], [0, 0, 1, 1], [], []>} : vector<8x128xf32>, vector<128x384xf32>, vector<8x384xf32> -> vector<8x384xf32>
    %c1_183 = arith.constant 1 : index
    %c0_184 = arith.constant 0 : index
    %c0_185 = arith.constant 0 : index
    %518 = vector.load %arg3[%c1_183, %c0_184, %c0_185] : memref<2x128x384xf32, #tpu.memory_space<vmem>>, vector<1x128x384xf32>
    %519 = vector.shape_cast %518 : vector<1x128x384xf32> to vector<128x384xf32>
    %cst_186 = arith.constant dense<0.000000e+00> : vector<8x384xf32>
    %520 = tpu.matmul %496, %519, %cst_186 {dimension_numbers = #tpu.dot_dimension_numbers<[1], [0], [0], [1], [0, 0, 1, 1], [], []>} : vector<8x128xf32>, vector<128x384xf32>, vector<8x384xf32> -> vector<8x384xf32>
    %521 = vector.extract_strided_slice %511 {offsets = [0, 0], sizes = [8, 128], strides = [1, 1]} : vector<8x384xf32> to vector<8x128xf32>
    %522 = vector.extract_strided_slice %517 {offsets = [0, 0], sizes = [8, 128], strides = [1, 1]} : vector<8x384xf32> to vector<8x128xf32>
    %523 = arith.addf %521, %522 : vector<8x128xf32>
    %524 = arith.negf %523 : vector<8x128xf32>
    %525 = math.exp %524 : vector<8x128xf32>
    %cst_187 = arith.constant 1.000000e+00 : f32
    %526 = vector.broadcast %cst_187 : f32 to vector<8x128xf32>
    %527 = arith.addf %526, %525 : vector<8x128xf32>
    %528 = arith.divf %526, %527 : vector<8x128xf32>
    %529 = vector.extract_strided_slice %511 {offsets = [0, 128], sizes = [8, 128], strides = [1, 1]} : vector<8x384xf32> to vector<8x128xf32>
    %530 = vector.extract_strided_slice %517 {offsets = [0, 128], sizes = [8, 128], strides = [1, 1]} : vector<8x384xf32> to vector<8x128xf32>
    %531 = arith.addf %529, %530 : vector<8x128xf32>
    %532 = arith.negf %531 : vector<8x128xf32>
    %533 = math.exp %532 : vector<8x128xf32>
    %cst_188 = arith.constant 1.000000e+00 : f32
    %534 = vector.broadcast %cst_188 : f32 to vector<8x128xf32>
    %535 = arith.addf %534, %533 : vector<8x128xf32>
    %536 = arith.divf %534, %535 : vector<8x128xf32>
    %537 = vector.extract_strided_slice %511 {offsets = [0, 256], sizes = [8, 128], strides = [1, 1]} : vector<8x384xf32> to vector<8x128xf32>
    %538 = vector.extract_strided_slice %517 {offsets = [0, 256], sizes = [8, 128], strides = [1, 1]} : vector<8x384xf32> to vector<8x128xf32>
    %539 = arith.addf %538, %30 : vector<8x128xf32>
    %540 = arith.mulf %528, %539 : vector<8x128xf32>
    %541 = arith.addf %537, %540 : vector<8x128xf32>
    %542 = math.tanh %541 : vector<8x128xf32>
    %cst_189 = arith.constant 1.000000e+00 : f32
    %543 = vector.broadcast %cst_189 : f32 to vector<8x128xf32>
    %544 = arith.subf %543, %536 : vector<8x128xf32>
    %545 = arith.mulf %544, %542 : vector<8x128xf32>
    %546 = arith.mulf %536, %469 : vector<8x128xf32>
    %547 = arith.addf %545, %546 : vector<8x128xf32>
    %548 = vector.extract_strided_slice %514 {offsets = [0, 0], sizes = [8, 128], strides = [1, 1]} : vector<8x384xf32> to vector<8x128xf32>
    %549 = vector.extract_strided_slice %520 {offsets = [0, 0], sizes = [8, 128], strides = [1, 1]} : vector<8x384xf32> to vector<8x128xf32>
    %550 = arith.addf %548, %549 : vector<8x128xf32>
    %551 = arith.negf %550 : vector<8x128xf32>
    %552 = math.exp %551 : vector<8x128xf32>
    %cst_190 = arith.constant 1.000000e+00 : f32
    %553 = vector.broadcast %cst_190 : f32 to vector<8x128xf32>
    %554 = arith.addf %553, %552 : vector<8x128xf32>
    %555 = arith.divf %553, %554 : vector<8x128xf32>
    %556 = vector.extract_strided_slice %514 {offsets = [0, 128], sizes = [8, 128], strides = [1, 1]} : vector<8x384xf32> to vector<8x128xf32>
    %557 = vector.extract_strided_slice %520 {offsets = [0, 128], sizes = [8, 128], strides = [1, 1]} : vector<8x384xf32> to vector<8x128xf32>
    %558 = arith.addf %556, %557 : vector<8x128xf32>
    %559 = arith.negf %558 : vector<8x128xf32>
    %560 = math.exp %559 : vector<8x128xf32>
    %cst_191 = arith.constant 1.000000e+00 : f32
    %561 = vector.broadcast %cst_191 : f32 to vector<8x128xf32>
    %562 = arith.addf %561, %560 : vector<8x128xf32>
    %563 = arith.divf %561, %562 : vector<8x128xf32>
    %564 = vector.extract_strided_slice %514 {offsets = [0, 256], sizes = [8, 128], strides = [1, 1]} : vector<8x384xf32> to vector<8x128xf32>
    %565 = vector.extract_strided_slice %520 {offsets = [0, 256], sizes = [8, 128], strides = [1, 1]} : vector<8x384xf32> to vector<8x128xf32>
    %566 = arith.addf %565, %34 : vector<8x128xf32>
    %567 = arith.mulf %555, %566 : vector<8x128xf32>
    %568 = arith.addf %564, %567 : vector<8x128xf32>
    %569 = math.tanh %568 : vector<8x128xf32>
    %cst_192 = arith.constant 1.000000e+00 : f32
    %570 = vector.broadcast %cst_192 : f32 to vector<8x128xf32>
    %571 = arith.subf %570, %563 : vector<8x128xf32>
    %572 = arith.mulf %571, %569 : vector<8x128xf32>
    %573 = arith.mulf %563, %496 : vector<8x128xf32>
    %574 = arith.addf %572, %573 : vector<8x128xf32>
    %575 = arith.truncf %547 : vector<8x128xf32> to vector<8x128xbf16>
    %c0_193 = arith.constant 0 : index
    %576 = arith.index_cast %508 : i32 to index
    %c0_194 = arith.constant 0 : index
    %577 = vector.load %arg6[%c0_193, %576, %c0_194] : memref<2x64x128xbf16, #tpu.memory_space<vmem>>, vector<1x8x128xbf16>
    %578 = vector.shape_cast %577 : vector<1x8x128xbf16> to vector<8x128xbf16>
    %579 = vector.shape_cast %575 : vector<8x128xbf16> to vector<1x8x128xbf16>
    tpu.vector_store %arg6[%c0_193, %576, %c0_194], %579 {strides = array<i32>} : memref<2x64x128xbf16, #tpu.memory_space<vmem>>, vector<1x8x128xbf16>,
    %580 = arith.truncf %574 : vector<8x128xf32> to vector<8x128xbf16>
    %c1_195 = arith.constant 1 : index
    %581 = arith.index_cast %508 : i32 to index
    %c0_196 = arith.constant 0 : index
    %582 = vector.load %arg6[%c1_195, %581, %c0_196] : memref<2x64x128xbf16, #tpu.memory_space<vmem>>, vector<1x8x128xbf16>
    %583 = vector.shape_cast %582 : vector<1x8x128xbf16> to vector<8x128xbf16>
    %584 = vector.shape_cast %580 : vector<8x128xbf16> to vector<1x8x128xbf16>
    tpu.vector_store %arg6[%c1_195, %581, %c0_196], %584 {strides = array<i32>} : memref<2x64x128xbf16, #tpu.memory_space<vmem>>, vector<1x8x128xbf16>,
    %c7_i32 = arith.constant 7 : i32
    %c8_i32_197 = arith.constant 8 : i32
    %585 = arith.muli %c7_i32, %c8_i32_197 : i32
    %586 = tpu.assume_multiple %585, 8 : i32
    %c0_198 = arith.constant 0 : index
    %587 = arith.index_cast %586 : i32 to index
    %c0_199 = arith.constant 0 : index
    %588 = vector.load %arg8[%c0_198, %587, %c0_199] : memref<2x64x384xf32, #tpu.memory_space<vmem>>, vector<1x8x384xf32>
    %589 = vector.shape_cast %588 : vector<1x8x384xf32> to vector<8x384xf32>
    %c1_200 = arith.constant 1 : index
    %590 = arith.index_cast %586 : i32 to index
    %c0_201 = arith.constant 0 : index
    %591 = vector.load %arg8[%c1_200, %590, %c0_201] : memref<2x64x384xf32, #tpu.memory_space<vmem>>, vector<1x8x384xf32>
    %592 = vector.shape_cast %591 : vector<1x8x384xf32> to vector<8x384xf32>
    %c0_202 = arith.constant 0 : index
    %c0_203 = arith.constant 0 : index
    %c0_204 = arith.constant 0 : index
    %593 = vector.load %arg3[%c0_202, %c0_203, %c0_204] : memref<2x128x384xf32, #tpu.memory_space<vmem>>, vector<1x128x384xf32>
    %594 = vector.shape_cast %593 : vector<1x128x384xf32> to vector<128x384xf32>
    %cst_205 = arith.constant dense<0.000000e+00> : vector<8x384xf32>
    %595 = tpu.matmul %547, %594, %cst_205 {dimension_numbers = #tpu.dot_dimension_numbers<[1], [0], [0], [1], [0, 0, 1, 1], [], []>} : vector<8x128xf32>, vector<128x384xf32>, vector<8x384xf32> -> vector<8x384xf32>
    %c1_206 = arith.constant 1 : index
    %c0_207 = arith.constant 0 : index
    %c0_208 = arith.constant 0 : index
    %596 = vector.load %arg3[%c1_206, %c0_207, %c0_208] : memref<2x128x384xf32, #tpu.memory_space<vmem>>, vector<1x128x384xf32>
    %597 = vector.shape_cast %596 : vector<1x128x384xf32> to vector<128x384xf32>
    %cst_209 = arith.constant dense<0.000000e+00> : vector<8x384xf32>
    %598 = tpu.matmul %574, %597, %cst_209 {dimension_numbers = #tpu.dot_dimension_numbers<[1], [0], [0], [1], [0, 0, 1, 1], [], []>} : vector<8x128xf32>, vector<128x384xf32>, vector<8x384xf32> -> vector<8x384xf32>
    %599 = vector.extract_strided_slice %589 {offsets = [0, 0], sizes = [8, 128], strides = [1, 1]} : vector<8x384xf32> to vector<8x128xf32>
    %600 = vector.extract_strided_slice %595 {offsets = [0, 0], sizes = [8, 128], strides = [1, 1]} : vector<8x384xf32> to vector<8x128xf32>
    %601 = arith.addf %599, %600 : vector<8x128xf32>
    %602 = arith.negf %601 : vector<8x128xf32>
    %603 = math.exp %602 : vector<8x128xf32>
    %cst_210 = arith.constant 1.000000e+00 : f32
    %604 = vector.broadcast %cst_210 : f32 to vector<8x128xf32>
    %605 = arith.addf %604, %603 : vector<8x128xf32>
    %606 = arith.divf %604, %605 : vector<8x128xf32>
    %607 = vector.extract_strided_slice %589 {offsets = [0, 128], sizes = [8, 128], strides = [1, 1]} : vector<8x384xf32> to vector<8x128xf32>
    %608 = vector.extract_strided_slice %595 {offsets = [0, 128], sizes = [8, 128], strides = [1, 1]} : vector<8x384xf32> to vector<8x128xf32>
    %609 = arith.addf %607, %608 : vector<8x128xf32>
    %610 = arith.negf %609 : vector<8x128xf32>
    %611 = math.exp %610 : vector<8x128xf32>
    %cst_211 = arith.constant 1.000000e+00 : f32
    %612 = vector.broadcast %cst_211 : f32 to vector<8x128xf32>
    %613 = arith.addf %612, %611 : vector<8x128xf32>
    %614 = arith.divf %612, %613 : vector<8x128xf32>
    %615 = vector.extract_strided_slice %589 {offsets = [0, 256], sizes = [8, 128], strides = [1, 1]} : vector<8x384xf32> to vector<8x128xf32>
    %616 = vector.extract_strided_slice %595 {offsets = [0, 256], sizes = [8, 128], strides = [1, 1]} : vector<8x384xf32> to vector<8x128xf32>
    %617 = arith.addf %616, %30 : vector<8x128xf32>
    %618 = arith.mulf %606, %617 : vector<8x128xf32>
    %619 = arith.addf %615, %618 : vector<8x128xf32>
    %620 = math.tanh %619 : vector<8x128xf32>
    %cst_212 = arith.constant 1.000000e+00 : f32
    %621 = vector.broadcast %cst_212 : f32 to vector<8x128xf32>
    %622 = arith.subf %621, %614 : vector<8x128xf32>
    %623 = arith.mulf %622, %620 : vector<8x128xf32>
    %624 = arith.mulf %614, %547 : vector<8x128xf32>
    %625 = arith.addf %623, %624 : vector<8x128xf32>
    %626 = vector.extract_strided_slice %592 {offsets = [0, 0], sizes = [8, 128], strides = [1, 1]} : vector<8x384xf32> to vector<8x128xf32>
    %627 = vector.extract_strided_slice %598 {offsets = [0, 0], sizes = [8, 128], strides = [1, 1]} : vector<8x384xf32> to vector<8x128xf32>
    %628 = arith.addf %626, %627 : vector<8x128xf32>
    %629 = arith.negf %628 : vector<8x128xf32>
    %630 = math.exp %629 : vector<8x128xf32>
    %cst_213 = arith.constant 1.000000e+00 : f32
    %631 = vector.broadcast %cst_213 : f32 to vector<8x128xf32>
    %632 = arith.addf %631, %630 : vector<8x128xf32>
    %633 = arith.divf %631, %632 : vector<8x128xf32>
    %634 = vector.extract_strided_slice %592 {offsets = [0, 128], sizes = [8, 128], strides = [1, 1]} : vector<8x384xf32> to vector<8x128xf32>
    %635 = vector.extract_strided_slice %598 {offsets = [0, 128], sizes = [8, 128], strides = [1, 1]} : vector<8x384xf32> to vector<8x128xf32>
    %636 = arith.addf %634, %635 : vector<8x128xf32>
    %637 = arith.negf %636 : vector<8x128xf32>
    %638 = math.exp %637 : vector<8x128xf32>
    %cst_214 = arith.constant 1.000000e+00 : f32
    %639 = vector.broadcast %cst_214 : f32 to vector<8x128xf32>
    %640 = arith.addf %639, %638 : vector<8x128xf32>
    %641 = arith.divf %639, %640 : vector<8x128xf32>
    %642 = vector.extract_strided_slice %592 {offsets = [0, 256], sizes = [8, 128], strides = [1, 1]} : vector<8x384xf32> to vector<8x128xf32>
    %643 = vector.extract_strided_slice %598 {offsets = [0, 256], sizes = [8, 128], strides = [1, 1]} : vector<8x384xf32> to vector<8x128xf32>
    %644 = arith.addf %643, %34 : vector<8x128xf32>
    %645 = arith.mulf %633, %644 : vector<8x128xf32>
    %646 = arith.addf %642, %645 : vector<8x128xf32>
    %647 = math.tanh %646 : vector<8x128xf32>
    %cst_215 = arith.constant 1.000000e+00 : f32
    %648 = vector.broadcast %cst_215 : f32 to vector<8x128xf32>
    %649 = arith.subf %648, %641 : vector<8x128xf32>
    %650 = arith.mulf %649, %647 : vector<8x128xf32>
    %651 = arith.mulf %641, %574 : vector<8x128xf32>
    %652 = arith.addf %650, %651 : vector<8x128xf32>
    %653 = arith.truncf %625 : vector<8x128xf32> to vector<8x128xbf16>
    %c0_216 = arith.constant 0 : index
    %654 = arith.index_cast %586 : i32 to index
    %c0_217 = arith.constant 0 : index
    %655 = vector.load %arg6[%c0_216, %654, %c0_217] : memref<2x64x128xbf16, #tpu.memory_space<vmem>>, vector<1x8x128xbf16>
    %656 = vector.shape_cast %655 : vector<1x8x128xbf16> to vector<8x128xbf16>
    %657 = vector.shape_cast %653 : vector<8x128xbf16> to vector<1x8x128xbf16>
    tpu.vector_store %arg6[%c0_216, %654, %c0_217], %657 {strides = array<i32>} : memref<2x64x128xbf16, #tpu.memory_space<vmem>>, vector<1x8x128xbf16>,
    %658 = arith.truncf %652 : vector<8x128xf32> to vector<8x128xbf16>
    %c1_218 = arith.constant 1 : index
    %659 = arith.index_cast %586 : i32 to index
    %c0_219 = arith.constant 0 : index
    %660 = vector.load %arg6[%c1_218, %659, %c0_219] : memref<2x64x128xbf16, #tpu.memory_space<vmem>>, vector<1x8x128xbf16>
    %661 = vector.shape_cast %660 : vector<1x8x128xbf16> to vector<8x128xbf16>
    %662 = vector.shape_cast %658 : vector<8x128xbf16> to vector<1x8x128xbf16>
    tpu.vector_store %arg6[%c1_218, %659, %c0_219], %662 {strides = array<i32>} : memref<2x64x128xbf16, #tpu.memory_space<vmem>>, vector<1x8x128xbf16>,
    %c8_i32_220 = arith.constant 8 : i32
    %c0_221 = arith.constant 0 : index
    %c0_222 = arith.constant 0 : index
    %c0_223 = arith.constant 0 : index
    %663 = vector.load %arg7[%c0_221, %c0_222, %c0_223] : memref<2x8x128xf32, #tpu.memory_space<vmem>>, vector<1x8x128xf32>
    %664 = vector.shape_cast %663 : vector<1x8x128xf32> to vector<8x128xf32>
    %665 = vector.shape_cast %625 : vector<8x128xf32> to vector<1x8x128xf32>
    tpu.vector_store %arg7[%c0_221, %c0_222, %c0_223], %665 {strides = array<i32>} : memref<2x8x128xf32, #tpu.memory_space<vmem>>, vector<1x8x128xf32>,
    %c1_224 = arith.constant 1 : index
    %c0_225 = arith.constant 0 : index
    %c0_226 = arith.constant 0 : index
    %666 = vector.load %arg7[%c1_224, %c0_225, %c0_226] : memref<2x8x128xf32, #tpu.memory_space<vmem>>, vector<1x8x128xf32>
    %667 = vector.shape_cast %666 : vector<1x8x128xf32> to vector<8x128xf32>
    %668 = vector.shape_cast %652 : vector<8x128xf32> to vector<1x8x128xf32>
    tpu.vector_store %arg7[%c1_224, %c0_225, %c0_226], %668 {strides = array<i32>} : memref<2x8x128xf32, #tpu.memory_space<vmem>>, vector<1x8x128xf32>,
    return
  }
  func.func @transform_0(%arg0: i32) -> (i32, i32, i32) {
    %c0_i32 = arith.constant 0 : i32
    %c0_i32_0 = arith.constant 0 : i32
    %c0_i32_1 = arith.constant 0 : i32
    return %c0_i32, %arg0, %c0_i32_0 : i32, i32, i32
  }
  func.func @transform_1(%arg0: i32) -> (i32, i32, i32) {
    %c0_i32 = arith.constant 0 : i32
    %c0_i32_0 = arith.constant 0 : i32
    %c0_i32_1 = arith.constant 0 : i32
    %c0_i32_2 = arith.constant 0 : i32
    return %c0_i32, %c0_i32_0, %c0_i32_1 : i32, i32, i32
  }
  func.func @transform_2(%arg0: i32) -> (i32, i32, i32) {
    %c0_i32 = arith.constant 0 : i32
    %c0_i32_0 = arith.constant 0 : i32
    %c0_i32_1 = arith.constant 0 : i32
    %c0_i32_2 = arith.constant 0 : i32
    return %c0_i32, %c0_i32_0, %c0_i32_1 : i32, i32, i32
  }
  func.func @transform_3(%arg0: i32) -> (i32, i32, i32) {
    %c0_i32 = arith.constant 0 : i32
    %c0_i32_0 = arith.constant 0 : i32
    %c0_i32_1 = arith.constant 0 : i32
    %c0_i32_2 = arith.constant 0 : i32
    return %c0_i32, %c0_i32_0, %c0_i32_1 : i32, i32, i32
  }
  func.func @transform_4(%arg0: i32) -> (i32, i32, i32) {
    %c0_i32 = arith.constant 0 : i32
    %c0_i32_0 = arith.constant 0 : i32
    %c0_i32_1 = arith.constant 0 : i32
    %c0_i32_2 = arith.constant 0 : i32
    return %c0_i32, %c0_i32_0, %c0_i32_1 : i32, i32, i32
  }
  func.func @transform_5(%arg0: i32) -> (i32, i32, i32) {
    %c0_i32 = arith.constant 0 : i32
    %c0_i32_0 = arith.constant 0 : i32
    %c0_i32_1 = arith.constant 0 : i32
    return %c0_i32, %arg0, %c0_i32_0 : i32, i32, i32
  }
  func.func @transform_6(%arg0: i32) -> (i32, i32, i32) {
    %c0_i32 = arith.constant 0 : i32
    %c0_i32_0 = arith.constant 0 : i32
    %c0_i32_1 = arith.constant 0 : i32
    %c0_i32_2 = arith.constant 0 : i32
    return %c0_i32, %c0_i32_0, %c0_i32_1 : i32, i32, i32
  }
}

module attributes {stable_mosaic.version = 11 : i64} {
  func.func @_bigru_layer_kernel(%arg0: i32, %arg1: memref<2x64x128xbf16, #tpu.memory_space<vmem>>, %arg2: memref<2x128x384xbf16, #tpu.memory_space<vmem>>, %arg3: memref<2x128x384xf32, #tpu.memory_space<vmem>>, %arg4: memref<2x1x384xf32, #tpu.memory_space<vmem>>, %arg5: memref<2x1x128xf32, #tpu.memory_space<vmem>>, %arg6: memref<2x64x128xbf16, #tpu.memory_space<vmem>>, %arg7: memref<2x8x128xf32, #tpu.memory_space<vmem>>, %arg8: memref<2x64x384xf32, #tpu.memory_space<vmem>>) attributes {dimension_semantics = [#tpu.dimension_semantics<arbitrary>], iteration_bounds = array<i64: 1>, scalar_prefetch = 0 : i64, scratch_operands = 1 : i64, tpu.core_type = #tpu.core_type<tc>, window_params = [{transform_indices = @transform_0, window_bounds = array<i64: 2, 64, 128>}, {pipeline_mode = #tpu.pipeline_mode<synchronous>, transform_indices = @transform_1, window_bounds = array<i64: 2, 128, 384>}, {pipeline_mode = #tpu.pipeline_mode<synchronous>, transform_indices = @transform_2, window_bounds = array<i64: 2, 128, 384>}, {pipeline_mode = #tpu.pipeline_mode<synchronous>, transform_indices = @transform_3, window_bounds = array<i64: 2, 1, 384>}, {pipeline_mode = #tpu.pipeline_mode<synchronous>, transform_indices = @transform_4, window_bounds = array<i64: 2, 1, 128>}, {transform_indices = @transform_5, window_bounds = array<i64: 2, 64, 128>}, {pipeline_mode = #tpu.pipeline_mode<synchronous>, transform_indices = @transform_6, window_bounds = array<i64: 2, 8, 128>}]} {
    %c0_i32 = arith.constant 0 : i32
    %0 = arith.cmpi eq, %arg0, %c0_i32 : i32
    %1 = arith.extui %0 : i1 to i32
    %c0_i32_0 = arith.constant 0 : i32
    %2 = arith.cmpi ne, %1, %c0_i32_0 : i32
    scf.if %2 {
      %cst_227 = arith.constant 0.000000e+00 : f32
      %669 = vector.broadcast %cst_227 : f32 to vector<2x8x128xf32>
      %c0_228 = arith.constant 0 : index
      %c0_229 = arith.constant 0 : index
      %c0_230 = arith.constant 0 : index
      %670 = vector.load %arg7[%c0_228, %c0_229, %c0_230] : memref<2x8x128xf32, #tpu.memory_space<vmem>>, vector<2x8x128xf32>
      tpu.vector_store %arg7[%c0_228, %c0_229, %c0_230], %669 {strides = array<i32>} : memref<2x8x128xf32, #tpu.memory_space<vmem>>, vector<2x8x128xf32>,
    } else {
    }
    %c0 = arith.constant 0 : index
    %c0_1 = arith.constant 0 : index
    %c0_2 = arith.constant 0 : index
    %3 = vector.load %arg1[%c0, %c0_1, %c0_2] : memref<2x64x128xbf16, #tpu.memory_space<vmem>>, vector<1x64x128xbf16>
    %4 = vector.shape_cast %3 : vector<1x64x128xbf16> to vector<64x128xbf16>
    %c0_3 = arith.constant 0 : index
    %c0_4 = arith.constant 0 : index
    %c0_5 = arith.constant 0 : index
    %5 = vector.load %arg2[%c0_3, %c0_4, %c0_5] : memref<2x128x384xbf16, #tpu.memory_space<vmem>>, vector<1x128x384xbf16>
    %6 = vector.shape_cast %5 : vector<1x128x384xbf16> to vector<128x384xbf16>
    %cst = arith.constant dense<0.000000e+00> : vector<64x384xf32>
    %7 = tpu.matmul %4, %6, %cst {dimension_numbers = #tpu.dot_dimension_numbers<[1], [0], [0], [1], [0, 0, 1, 1], [], []>} : vector<64x128xbf16>, vector<128x384xbf16>, vector<64x384xf32> -> vector<64x384xf32>
    %c0_6 = arith.constant 0 : index
    %c0_7 = arith.constant 0 : index
    %c0_8 = arith.constant 0 : index
    %8 = vector.load %arg4[%c0_6, %c0_7, %c0_8] : memref<2x1x384xf32, #tpu.memory_space<vmem>>, vector<1x1x384xf32>
    %9 = vector.shape_cast %8 : vector<1x1x384xf32> to vector<1x384xf32>
    %10 = vector.broadcast %9 : vector<1x384xf32> to vector<64x384xf32>
    %11 = arith.addf %7, %10 : vector<64x384xf32>
    %c0_9 = arith.constant 0 : index
    %c0_10 = arith.constant 0 : index
    %c0_11 = arith.constant 0 : index
    %12 = vector.load %arg8[%c0_9, %c0_10, %c0_11] : memref<2x64x384xf32, #tpu.memory_space<vmem>>, vector<1x64x384xf32>
    %13 = vector.shape_cast %12 : vector<1x64x384xf32> to vector<64x384xf32>
    %14 = vector.shape_cast %11 : vector<64x384xf32> to vector<1x64x384xf32>
    tpu.vector_store %arg8[%c0_9, %c0_10, %c0_11], %14 {strides = array<i32>} : memref<2x64x384xf32, #tpu.memory_space<vmem>>, vector<1x64x384xf32>,
    %c1 = arith.constant 1 : index
    %c0_12 = arith.constant 0 : index
    %c0_13 = arith.constant 0 : index
    %15 = vector.load %arg1[%c1, %c0_12, %c0_13] : memref<2x64x128xbf16, #tpu.memory_space<vmem>>, vector<1x64x128xbf16>
    %16 = vector.shape_cast %15 : vector<1x64x128xbf16> to vector<64x128xbf16>
    %c1_14 = arith.constant 1 : index
    %c0_15 = arith.constant 0 : index
    %c0_16 = arith.constant 0 : index
    %17 = vector.load %arg2[%c1_14, %c0_15, %c0_16] : memref<2x128x384xbf16, #tpu.memory_space<vmem>>, vector<1x128x384xbf16>
    %18 = vector.shape_cast %17 : vector<1x128x384xbf16> to vector<128x384xbf16>
    %cst_17 = arith.constant dense<0.000000e+00> : vector<64x384xf32>
    %19 = tpu.matmul %16, %18, %cst_17 {dimension_numbers = #tpu.dot_dimension_numbers<[1], [0], [0], [1], [0, 0, 1, 1], [], []>} : vector<64x128xbf16>, vector<128x384xbf16>, vector<64x384xf32> -> vector<64x384xf32>
    %c1_18 = arith.constant 1 : index
    %c0_19 = arith.constant 0 : index
    %c0_20 = arith.constant 0 : index
    %20 = vector.load %arg4[%c1_18, %c0_19, %c0_20] : memref<2x1x384xf32, #tpu.memory_space<vmem>>, vector<1x1x384xf32>
    %21 = vector.shape_cast %20 : vector<1x1x384xf32> to vector<1x384xf32>
    %22 = vector.broadcast %21 : vector<1x384xf32> to vector<64x384xf32>
    %23 = arith.addf %19, %22 : vector<64x384xf32>
    %c1_21 = arith.constant 1 : index
    %c0_22 = arith.constant 0 : index
    %c0_23 = arith.constant 0 : index
    %24 = vector.load %arg8[%c1_21, %c0_22, %c0_23] : memref<2x64x384xf32, #tpu.memory_space<vmem>>, vector<1x64x384xf32>
    %25 = vector.shape_cast %24 : vector<1x64x384xf32> to vector<64x384xf32>
    %26 = vector.shape_cast %23 : vector<64x384xf32> to vector<1x64x384xf32>
    tpu.vector_store %arg8[%c1_21, %c0_22, %c0_23], %26 {strides = array<i32>} : memref<2x64x384xf32, #tpu.memory_space<vmem>>, vector<1x64x384xf32>,
    %c0_24 = arith.constant 0 : index
    %c0_25 = arith.constant 0 : index
    %c0_26 = arith.constant 0 : index
    %27 = vector.load %arg5[%c0_24, %c0_25, %c0_26] : memref<2x1x128xf32, #tpu.memory_space<vmem>>, vector<1x1x128xf32>
    %28 = vector.shape_cast %27 : vector<1x1x128xf32> to vector<1x128xf32>
    %29 = vector.shape_cast %28 : vector<1x128xf32> to vector<1x128xf32>
    %30 = vector.broadcast %29 : vector<1x128xf32> to vector<8x128xf32>
    %c1_27 = arith.constant 1 : index
    %c0_28 = arith.constant 0 : index
    %c0_29 = arith.constant 0 : index
    %31 = vector.load %arg5[%c1_27, %c0_28, %c0_29] : memref<2x1x128xf32, #tpu.memory_space<vmem>>, vector<1x1x128xf32>
    %32 = vector.shape_cast %31 : vector<1x1x128xf32> to vector<1x128xf32>
    %33 = vector.shape_cast %32 : vector<1x128xf32> to vector<1x128xf32>
    %34 = vector.broadcast %33 : vector<1x128xf32> to vector<8x128xf32>
    %c0_30 = arith.constant 0 : index
    %c0_31 = arith.constant 0 : index
    %c0_32 = arith.constant 0 : index
    %35 = vector.load %arg7[%c0_30, %c0_31, %c0_32] : memref<2x8x128xf32, #tpu.memory_space<vmem>>, vector<1x8x128xf32>
    %36 = vector.shape_cast %35 : vector<1x8x128xf32> to vector<8x128xf32>
    %c1_33 = arith.constant 1 : index
    %c0_34 = arith.constant 0 : index
    %c0_35 = arith.constant 0 : index
    %37 = vector.load %arg7[%c1_33, %c0_34, %c0_35] : memref<2x8x128xf32, #tpu.memory_space<vmem>>, vector<1x8x128xf32>
    %38 = vector.shape_cast %37 : vector<1x8x128xf32> to vector<8x128xf32>
    %c0_i32_36 = arith.constant 0 : i32
    %c8_i32 = arith.constant 8 : i32
    %39 = arith.muli %c0_i32_36, %c8_i32 : i32
    %40 = tpu.assume_multiple %39, 8 : i32
    %c0_37 = arith.constant 0 : index
    %41 = arith.index_cast %40 : i32 to index
    %c0_38 = arith.constant 0 : index
    %42 = vector.load %arg8[%c0_37, %41, %c0_38] : memref<2x64x384xf32, #tpu.memory_space<vmem>>, vector<1x8x384xf32>
    %43 = vector.shape_cast %42 : vector<1x8x384xf32> to vector<8x384xf32>
    %c1_39 = arith.constant 1 : index
    %44 = arith.index_cast %40 : i32 to index
    %c0_40 = arith.constant 0 : index
    %45 = vector.load %arg8[%c1_39, %44, %c0_40] : memref<2x64x384xf32, #tpu.memory_space<vmem>>, vector<1x8x384xf32>
    %46 = vector.shape_cast %45 : vector<1x8x384xf32> to vector<8x384xf32>
    %c0_41 = arith.constant 0 : index
    %c0_42 = arith.constant 0 : index
    %c0_43 = arith.constant 0 : index
    %47 = vector.load %arg3[%c0_41, %c0_42, %c0_43] : memref<2x128x384xf32, #tpu.memory_space<vmem>>, vector<1x128x384xf32>
    %48 = vector.shape_cast %47 : vector<1x128x384xf32> to vector<128x384xf32>
    %cst_44 = arith.constant dense<0.000000e+00> : vector<8x384xf32>
    %49 = tpu.matmul %36, %48, %cst_44 {dimension_numbers = #tpu.dot_dimension_numbers<[1], [0], [0], [1], [0, 0, 1, 1], [], []>} : vector<8x128xf32>, vector<128x384xf32>, vector<8x384xf32> -> vector<8x384xf32>
    %c1_45 = arith.constant 1 : index
    %c0_46 = arith.constant 0 : index
    %c0_47 = arith.constant 0 : index
    %50 = vector.load %arg3[%c1_45, %c0_46, %c0_47] : memref<2x128x384xf32, #tpu.memory_space<vmem>>, vector<1x128x384xf32>
    %51 = vector.shape_cast %50 : vector<1x128x384xf32> to vector<128x384xf32>
    %cst_48 = arith.constant dense<0.000000e+00> : vector<8x384xf32>
    %52 = tpu.matmul %38, %51, %cst_48 {dimension_numbers = #tpu.dot_dimension_numbers<[1], [0], [0], [1], [0, 0, 1, 1], [], []>} : vector<8x128xf32>, vector<128x384xf32>, vector<8x384xf32> -> vector<8x384xf32>
    %53 = vector.extract_strided_slice %43 {offsets = [0, 0], sizes = [8, 128], strides = [1, 1]} : vector<8x384xf32> to vector<8x128xf32>
    %54 = vector.extract_strided_slice %49 {offsets = [0, 0], sizes = [8, 128], strides = [1, 1]} : vector<8x384xf32> to vector<8x128xf32>
    %55 = arith.addf %53, %54 : vector<8x128xf32>
    %56 = arith.negf %55 : vector<8x128xf32>
    %57 = math.exp %56 : vector<8x128xf32>
    %cst_49 = arith.constant 1.000000e+00 : f32
    %58 = vector.broadcast %cst_49 : f32 to vector<8x128xf32>
    %59 = arith.addf %58, %57 : vector<8x128xf32>
    %60 = arith.divf %58, %59 : vector<8x128xf32>
    %61 = vector.extract_strided_slice %43 {offsets = [0, 128], sizes = [8, 128], strides = [1, 1]} : vector<8x384xf32> to vector<8x128xf32>
    %62 = vector.extract_strided_slice %49 {offsets = [0, 128], sizes = [8, 128], strides = [1, 1]} : vector<8x384xf32> to vector<8x128xf32>
    %63 = arith.addf %61, %62 : vector<8x128xf32>
    %64 = arith.negf %63 : vector<8x128xf32>
    %65 = math.exp %64 : vector<8x128xf32>
    %cst_50 = arith.constant 1.000000e+00 : f32
    %66 = vector.broadcast %cst_50 : f32 to vector<8x128xf32>
    %67 = arith.addf %66, %65 : vector<8x128xf32>
    %68 = arith.divf %66, %67 : vector<8x128xf32>
    %69 = vector.extract_strided_slice %43 {offsets = [0, 256], sizes = [8, 128], strides = [1, 1]} : vector<8x384xf32> to vector<8x128xf32>
    %70 = vector.extract_strided_slice %49 {offsets = [0, 256], sizes = [8, 128], strides = [1, 1]} : vector<8x384xf32> to vector<8x128xf32>
    %71 = arith.addf %70, %30 : vector<8x128xf32>
    %72 = arith.mulf %60, %71 : vector<8x128xf32>
    %73 = arith.addf %69, %72 : vector<8x128xf32>
    %74 = math.tanh %73 : vector<8x128xf32>
    %cst_51 = arith.constant 1.000000e+00 : f32
    %75 = vector.broadcast %cst_51 : f32 to vector<8x128xf32>
    %76 = arith.subf %75, %68 : vector<8x128xf32>
    %77 = arith.mulf %76, %74 : vector<8x128xf32>
    %78 = arith.mulf %68, %36 : vector<8x128xf32>
    %79 = arith.addf %77, %78 : vector<8x128xf32>
    %80 = vector.extract_strided_slice %46 {offsets = [0, 0], sizes = [8, 128], strides = [1, 1]} : vector<8x384xf32> to vector<8x128xf32>
    %81 = vector.extract_strided_slice %52 {offsets = [0, 0], sizes = [8, 128], strides = [1, 1]} : vector<8x384xf32> to vector<8x128xf32>
    %82 = arith.addf %80, %81 : vector<8x128xf32>
    %83 = arith.negf %82 : vector<8x128xf32>
    %84 = math.exp %83 : vector<8x128xf32>
    %cst_52 = arith.constant 1.000000e+00 : f32
    %85 = vector.broadcast %cst_52 : f32 to vector<8x128xf32>
    %86 = arith.addf %85, %84 : vector<8x128xf32>
    %87 = arith.divf %85, %86 : vector<8x128xf32>
    %88 = vector.extract_strided_slice %46 {offsets = [0, 128], sizes = [8, 128], strides = [1, 1]} : vector<8x384xf32> to vector<8x128xf32>
    %89 = vector.extract_strided_slice %52 {offsets = [0, 128], sizes = [8, 128], strides = [1, 1]} : vector<8x384xf32> to vector<8x128xf32>
    %90 = arith.addf %88, %89 : vector<8x128xf32>
    %91 = arith.negf %90 : vector<8x128xf32>
    %92 = math.exp %91 : vector<8x128xf32>
    %cst_53 = arith.constant 1.000000e+00 : f32
    %93 = vector.broadcast %cst_53 : f32 to vector<8x128xf32>
    %94 = arith.addf %93, %92 : vector<8x128xf32>
    %95 = arith.divf %93, %94 : vector<8x128xf32>
    %96 = vector.extract_strided_slice %46 {offsets = [0, 256], sizes = [8, 128], strides = [1, 1]} : vector<8x384xf32> to vector<8x128xf32>
    %97 = vector.extract_strided_slice %52 {offsets = [0, 256], sizes = [8, 128], strides = [1, 1]} : vector<8x384xf32> to vector<8x128xf32>
    %98 = arith.addf %97, %34 : vector<8x128xf32>
    %99 = arith.mulf %87, %98 : vector<8x128xf32>
    %100 = arith.addf %96, %99 : vector<8x128xf32>
    %101 = math.tanh %100 : vector<8x128xf32>
    %cst_54 = arith.constant 1.000000e+00 : f32
    %102 = vector.broadcast %cst_54 : f32 to vector<8x128xf32>
    %103 = arith.subf %102, %95 : vector<8x128xf32>
    %104 = arith.mulf %103, %101 : vector<8x128xf32>
    %105 = arith.mulf %95, %38 : vector<8x128xf32>
    %106 = arith.addf %104, %105 : vector<8x128xf32>
    %107 = arith.truncf %79 : vector<8x128xf32> to vector<8x128xbf16>
    %c0_55 = arith.constant 0 : index
    %108 = arith.index_cast %40 : i32 to index
    %c0_56 = arith.constant 0 : index
    %109 = vector.load %arg6[%c0_55, %108, %c0_56] : memref<2x64x128xbf16, #tpu.memory_space<vmem>>, vector<1x8x128xbf16>
    %110 = vector.shape_cast %109 : vector<1x8x128xbf16> to vector<8x128xbf16>
    %111 = vector.shape_cast %107 : vector<8x128xbf16> to vector<1x8x128xbf16>
    tpu.vector_store %arg6[%c0_55, %108, %c0_56], %111 {strides = array<i32>} : memref<2x64x128xbf16, #tpu.memory_space<vmem>>, vector<1x8x128xbf16>,
    %112 = arith.truncf %106 : vector<8x128xf32> to vector<8x128xbf16>
    %c1_57 = arith.constant 1 : index
    %113 = arith.index_cast %40 : i32 to index
    %c0_58 = arith.constant 0 : index
    %114 = vector.load %arg6[%c1_57, %113, %c0_58] : memref<2x64x128xbf16, #tpu.memory_space<vmem>>, vector<1x8x128xbf16>
    %115 = vector.shape_cast %114 : vector<1x8x128xbf16> to vector<8x128xbf16>
    %116 = vector.shape_cast %112 : vector<8x128xbf16> to vector<1x8x128xbf16>
    tpu.vector_store %arg6[%c1_57, %113, %c0_58], %116 {strides = array<i32>} : memref<2x64x128xbf16, #tpu.memory_space<vmem>>, vector<1x8x128xbf16>,
    %c1_i32 = arith.constant 1 : i32
    %c8_i32_59 = arith.constant 8 : i32
    %117 = arith.muli %c1_i32, %c8_i32_59 : i32
    %118 = tpu.assume_multiple %117, 8 : i32
    %c0_60 = arith.constant 0 : index
    %119 = arith.index_cast %118 : i32 to index
    %c0_61 = arith.constant 0 : index
    %120 = vector.load %arg8[%c0_60, %119, %c0_61] : memref<2x64x384xf32, #tpu.memory_space<vmem>>, vector<1x8x384xf32>
    %121 = vector.shape_cast %120 : vector<1x8x384xf32> to vector<8x384xf32>
    %c1_62 = arith.constant 1 : index
    %122 = arith.index_cast %118 : i32 to index
    %c0_63 = arith.constant 0 : index
    %123 = vector.load %arg8[%c1_62, %122, %c0_63] : memref<2x64x384xf32, #tpu.memory_space<vmem>>, vector<1x8x384xf32>
    %124 = vector.shape_cast %123 : vector<1x8x384xf32> to vector<8x384xf32>
    %c0_64 = arith.constant 0 : index
    %c0_65 = arith.constant 0 : index
    %c0_66 = arith.constant 0 : index
    %125 = vector.load %arg3[%c0_64, %c0_65, %c0_66] : memref<2x128x384xf32, #tpu.memory_space<vmem>>, vector<1x128x384xf32>
    %126 = vector.shape_cast %125 : vector<1x128x384xf32> to vector<128x384xf32>
    %cst_67 = arith.constant dense<0.000000e+00> : vector<8x384xf32>
    %127 = tpu.matmul %79, %126, %cst_67 {dimension_numbers = #tpu.dot_dimension_numbers<[1], [0], [0], [1], [0, 0, 1, 1], [], []>} : vector<8x128xf32>, vector<128x384xf32>, vector<8x384xf32> -> vector<8x384xf32>
    %c1_68 = arith.constant 1 : index
    %c0_69 = arith.constant 0 : index
    %c0_70 = arith.constant 0 : index
    %128 = vector.load %arg3[%c1_68, %c0_69, %c0_70] : memref<2x128x384xf32, #tpu.memory_space<vmem>>, vector<1x128x384xf32>
    %129 = vector.shape_cast %128 : vector<1x128x384xf32> to vector<128x384xf32>
    %cst_71 = arith.constant dense<0.000000e+00> : vector<8x384xf32>
    %130 = tpu.matmul %106, %129, %cst_71 {dimension_numbers = #tpu.dot_dimension_numbers<[1], [0], [0], [1], [0, 0, 1, 1], [], []>} : vector<8x128xf32>, vector<128x384xf32>, vector<8x384xf32> -> vector<8x384xf32>
    %131 = vector.extract_strided_slice %121 {offsets = [0, 0], sizes = [8, 128], strides = [1, 1]} : vector<8x384xf32> to vector<8x128xf32>
    %132 = vector.extract_strided_slice %127 {offsets = [0, 0], sizes = [8, 128], strides = [1, 1]} : vector<8x384xf32> to vector<8x128xf32>
    %133 = arith.addf %131, %132 : vector<8x128xf32>
    %134 = arith.negf %133 : vector<8x128xf32>
    %135 = math.exp %134 : vector<8x128xf32>
    %cst_72 = arith.constant 1.000000e+00 : f32
    %136 = vector.broadcast %cst_72 : f32 to vector<8x128xf32>
    %137 = arith.addf %136, %135 : vector<8x128xf32>
    %138 = arith.divf %136, %137 : vector<8x128xf32>
    %139 = vector.extract_strided_slice %121 {offsets = [0, 128], sizes = [8, 128], strides = [1, 1]} : vector<8x384xf32> to vector<8x128xf32>
    %140 = vector.extract_strided_slice %127 {offsets = [0, 128], sizes = [8, 128], strides = [1, 1]} : vector<8x384xf32> to vector<8x128xf32>
    %141 = arith.addf %139, %140 : vector<8x128xf32>
    %142 = arith.negf %141 : vector<8x128xf32>
    %143 = math.exp %142 : vector<8x128xf32>
    %cst_73 = arith.constant 1.000000e+00 : f32
    %144 = vector.broadcast %cst_73 : f32 to vector<8x128xf32>
    %145 = arith.addf %144, %143 : vector<8x128xf32>
    %146 = arith.divf %144, %145 : vector<8x128xf32>
    %147 = vector.extract_strided_slice %121 {offsets = [0, 256], sizes = [8, 128], strides = [1, 1]} : vector<8x384xf32> to vector<8x128xf32>
    %148 = vector.extract_strided_slice %127 {offsets = [0, 256], sizes = [8, 128], strides = [1, 1]} : vector<8x384xf32> to vector<8x128xf32>
    %149 = arith.addf %148, %30 : vector<8x128xf32>
    %150 = arith.mulf %138, %149 : vector<8x128xf32>
    %151 = arith.addf %147, %150 : vector<8x128xf32>
    %152 = math.tanh %151 : vector<8x128xf32>
    %cst_74 = arith.constant 1.000000e+00 : f32
    %153 = vector.broadcast %cst_74 : f32 to vector<8x128xf32>
    %154 = arith.subf %153, %146 : vector<8x128xf32>
    %155 = arith.mulf %154, %152 : vector<8x128xf32>
    %156 = arith.mulf %146, %79 : vector<8x128xf32>
    %157 = arith.addf %155, %156 : vector<8x128xf32>
    %158 = vector.extract_strided_slice %124 {offsets = [0, 0], sizes = [8, 128], strides = [1, 1]} : vector<8x384xf32> to vector<8x128xf32>
    %159 = vector.extract_strided_slice %130 {offsets = [0, 0], sizes = [8, 128], strides = [1, 1]} : vector<8x384xf32> to vector<8x128xf32>
    %160 = arith.addf %158, %159 : vector<8x128xf32>
    %161 = arith.negf %160 : vector<8x128xf32>
    %162 = math.exp %161 : vector<8x128xf32>
    %cst_75 = arith.constant 1.000000e+00 : f32
    %163 = vector.broadcast %cst_75 : f32 to vector<8x128xf32>
    %164 = arith.addf %163, %162 : vector<8x128xf32>
    %165 = arith.divf %163, %164 : vector<8x128xf32>
    %166 = vector.extract_strided_slice %124 {offsets = [0, 128], sizes = [8, 128], strides = [1, 1]} : vector<8x384xf32> to vector<8x128xf32>
    %167 = vector.extract_strided_slice %130 {offsets = [0, 128], sizes = [8, 128], strides = [1, 1]} : vector<8x384xf32> to vector<8x128xf32>
    %168 = arith.addf %166, %167 : vector<8x128xf32>
    %169 = arith.negf %168 : vector<8x128xf32>
    %170 = math.exp %169 : vector<8x128xf32>
    %cst_76 = arith.constant 1.000000e+00 : f32
    %171 = vector.broadcast %cst_76 : f32 to vector<8x128xf32>
    %172 = arith.addf %171, %170 : vector<8x128xf32>
    %173 = arith.divf %171, %172 : vector<8x128xf32>
    %174 = vector.extract_strided_slice %124 {offsets = [0, 256], sizes = [8, 128], strides = [1, 1]} : vector<8x384xf32> to vector<8x128xf32>
    %175 = vector.extract_strided_slice %130 {offsets = [0, 256], sizes = [8, 128], strides = [1, 1]} : vector<8x384xf32> to vector<8x128xf32>
    %176 = arith.addf %175, %34 : vector<8x128xf32>
    %177 = arith.mulf %165, %176 : vector<8x128xf32>
    %178 = arith.addf %174, %177 : vector<8x128xf32>
    %179 = math.tanh %178 : vector<8x128xf32>
    %cst_77 = arith.constant 1.000000e+00 : f32
    %180 = vector.broadcast %cst_77 : f32 to vector<8x128xf32>
    %181 = arith.subf %180, %173 : vector<8x128xf32>
    %182 = arith.mulf %181, %179 : vector<8x128xf32>
    %183 = arith.mulf %173, %106 : vector<8x128xf32>
    %184 = arith.addf %182, %183 : vector<8x128xf32>
    %185 = arith.truncf %157 : vector<8x128xf32> to vector<8x128xbf16>
    %c0_78 = arith.constant 0 : index
    %186 = arith.index_cast %118 : i32 to index
    %c0_79 = arith.constant 0 : index
    %187 = vector.load %arg6[%c0_78, %186, %c0_79] : memref<2x64x128xbf16, #tpu.memory_space<vmem>>, vector<1x8x128xbf16>
    %188 = vector.shape_cast %187 : vector<1x8x128xbf16> to vector<8x128xbf16>
    %189 = vector.shape_cast %185 : vector<8x128xbf16> to vector<1x8x128xbf16>
    tpu.vector_store %arg6[%c0_78, %186, %c0_79], %189 {strides = array<i32>} : memref<2x64x128xbf16, #tpu.memory_space<vmem>>, vector<1x8x128xbf16>,
    %190 = arith.truncf %184 : vector<8x128xf32> to vector<8x128xbf16>
    %c1_80 = arith.constant 1 : index
    %191 = arith.index_cast %118 : i32 to index
    %c0_81 = arith.constant 0 : index
    %192 = vector.load %arg6[%c1_80, %191, %c0_81] : memref<2x64x128xbf16, #tpu.memory_space<vmem>>, vector<1x8x128xbf16>
    %193 = vector.shape_cast %192 : vector<1x8x128xbf16> to vector<8x128xbf16>
    %194 = vector.shape_cast %190 : vector<8x128xbf16> to vector<1x8x128xbf16>
    tpu.vector_store %arg6[%c1_80, %191, %c0_81], %194 {strides = array<i32>} : memref<2x64x128xbf16, #tpu.memory_space<vmem>>, vector<1x8x128xbf16>,
    %c2_i32 = arith.constant 2 : i32
    %c8_i32_82 = arith.constant 8 : i32
    %195 = arith.muli %c2_i32, %c8_i32_82 : i32
    %196 = tpu.assume_multiple %195, 8 : i32
    %c0_83 = arith.constant 0 : index
    %197 = arith.index_cast %196 : i32 to index
    %c0_84 = arith.constant 0 : index
    %198 = vector.load %arg8[%c0_83, %197, %c0_84] : memref<2x64x384xf32, #tpu.memory_space<vmem>>, vector<1x8x384xf32>
    %199 = vector.shape_cast %198 : vector<1x8x384xf32> to vector<8x384xf32>
    %c1_85 = arith.constant 1 : index
    %200 = arith.index_cast %196 : i32 to index
    %c0_86 = arith.constant 0 : index
    %201 = vector.load %arg8[%c1_85, %200, %c0_86] : memref<2x64x384xf32, #tpu.memory_space<vmem>>, vector<1x8x384xf32>
    %202 = vector.shape_cast %201 : vector<1x8x384xf32> to vector<8x384xf32>
    %c0_87 = arith.constant 0 : index
    %c0_88 = arith.constant 0 : index
    %c0_89 = arith.constant 0 : index
    %203 = vector.load %arg3[%c0_87, %c0_88, %c0_89] : memref<2x128x384xf32, #tpu.memory_space<vmem>>, vector<1x128x384xf32>
    %204 = vector.shape_cast %203 : vector<1x128x384xf32> to vector<128x384xf32>
    %cst_90 = arith.constant dense<0.000000e+00> : vector<8x384xf32>
    %205 = tpu.matmul %157, %204, %cst_90 {dimension_numbers = #tpu.dot_dimension_numbers<[1], [0], [0], [1], [0, 0, 1, 1], [], []>} : vector<8x128xf32>, vector<128x384xf32>, vector<8x384xf32> -> vector<8x384xf32>
    %c1_91 = arith.constant 1 : index
    %c0_92 = arith.constant 0 : index
    %c0_93 = arith.constant 0 : index
    %206 = vector.load %arg3[%c1_91, %c0_92, %c0_93] : memref<2x128x384xf32, #tpu.memory_space<vmem>>, vector<1x128x384xf32>
    %207 = vector.shape_cast %206 : vector<1x128x384xf32> to vector<128x384xf32>
    %cst_94 = arith.constant dense<0.000000e+00> : vector<8x384xf32>
    %208 = tpu.matmul %184, %207, %cst_94 {dimension_numbers = #tpu.dot_dimension_numbers<[1], [0], [0], [1], [0, 0, 1, 1], [], []>} : vector<8x128xf32>, vector<128x384xf32>, vector<8x384xf32> -> vector<8x384xf32>
    %209 = vector.extract_strided_slice %199 {offsets = [0, 0], sizes = [8, 128], strides = [1, 1]} : vector<8x384xf32> to vector<8x128xf32>
    %210 = vector.extract_strided_slice %205 {offsets = [0, 0], sizes = [8, 128], strides = [1, 1]} : vector<8x384xf32> to vector<8x128xf32>
    %211 = arith.addf %209, %210 : vector<8x128xf32>
    %212 = arith.negf %211 : vector<8x128xf32>
    %213 = math.exp %212 : vector<8x128xf32>
    %cst_95 = arith.constant 1.000000e+00 : f32
    %214 = vector.broadcast %cst_95 : f32 to vector<8x128xf32>
    %215 = arith.addf %214, %213 : vector<8x128xf32>
    %216 = arith.divf %214, %215 : vector<8x128xf32>
    %217 = vector.extract_strided_slice %199 {offsets = [0, 128], sizes = [8, 128], strides = [1, 1]} : vector<8x384xf32> to vector<8x128xf32>
    %218 = vector.extract_strided_slice %205 {offsets = [0, 128], sizes = [8, 128], strides = [1, 1]} : vector<8x384xf32> to vector<8x128xf32>
    %219 = arith.addf %217, %218 : vector<8x128xf32>
    %220 = arith.negf %219 : vector<8x128xf32>
    %221 = math.exp %220 : vector<8x128xf32>
    %cst_96 = arith.constant 1.000000e+00 : f32
    %222 = vector.broadcast %cst_96 : f32 to vector<8x128xf32>
    %223 = arith.addf %222, %221 : vector<8x128xf32>
    %224 = arith.divf %222, %223 : vector<8x128xf32>
    %225 = vector.extract_strided_slice %199 {offsets = [0, 256], sizes = [8, 128], strides = [1, 1]} : vector<8x384xf32> to vector<8x128xf32>
    %226 = vector.extract_strided_slice %205 {offsets = [0, 256], sizes = [8, 128], strides = [1, 1]} : vector<8x384xf32> to vector<8x128xf32>
    %227 = arith.addf %226, %30 : vector<8x128xf32>
    %228 = arith.mulf %216, %227 : vector<8x128xf32>
    %229 = arith.addf %225, %228 : vector<8x128xf32>
    %230 = math.tanh %229 : vector<8x128xf32>
    %cst_97 = arith.constant 1.000000e+00 : f32
    %231 = vector.broadcast %cst_97 : f32 to vector<8x128xf32>
    %232 = arith.subf %231, %224 : vector<8x128xf32>
    %233 = arith.mulf %232, %230 : vector<8x128xf32>
    %234 = arith.mulf %224, %157 : vector<8x128xf32>
    %235 = arith.addf %233, %234 : vector<8x128xf32>
    %236 = vector.extract_strided_slice %202 {offsets = [0, 0], sizes = [8, 128], strides = [1, 1]} : vector<8x384xf32> to vector<8x128xf32>
    %237 = vector.extract_strided_slice %208 {offsets = [0, 0], sizes = [8, 128], strides = [1, 1]} : vector<8x384xf32> to vector<8x128xf32>
    %238 = arith.addf %236, %237 : vector<8x128xf32>
    %239 = arith.negf %238 : vector<8x128xf32>
    %240 = math.exp %239 : vector<8x128xf32>
    %cst_98 = arith.constant 1.000000e+00 : f32
    %241 = vector.broadcast %cst_98 : f32 to vector<8x128xf32>
    %242 = arith.addf %241, %240 : vector<8x128xf32>
    %243 = arith.divf %241, %242 : vector<8x128xf32>
    %244 = vector.extract_strided_slice %202 {offsets = [0, 128], sizes = [8, 128], strides = [1, 1]} : vector<8x384xf32> to vector<8x128xf32>
    %245 = vector.extract_strided_slice %208 {offsets = [0, 128], sizes = [8, 128], strides = [1, 1]} : vector<8x384xf32> to vector<8x128xf32>
    %246 = arith.addf %244, %245 : vector<8x128xf32>
    %247 = arith.negf %246 : vector<8x128xf32>
    %248 = math.exp %247 : vector<8x128xf32>
    %cst_99 = arith.constant 1.000000e+00 : f32
    %249 = vector.broadcast %cst_99 : f32 to vector<8x128xf32>
    %250 = arith.addf %249, %248 : vector<8x128xf32>
    %251 = arith.divf %249, %250 : vector<8x128xf32>
    %252 = vector.extract_strided_slice %202 {offsets = [0, 256], sizes = [8, 128], strides = [1, 1]} : vector<8x384xf32> to vector<8x128xf32>
    %253 = vector.extract_strided_slice %208 {offsets = [0, 256], sizes = [8, 128], strides = [1, 1]} : vector<8x384xf32> to vector<8x128xf32>
    %254 = arith.addf %253, %34 : vector<8x128xf32>
    %255 = arith.mulf %243, %254 : vector<8x128xf32>
    %256 = arith.addf %252, %255 : vector<8x128xf32>
    %257 = math.tanh %256 : vector<8x128xf32>
    %cst_100 = arith.constant 1.000000e+00 : f32
    %258 = vector.broadcast %cst_100 : f32 to vector<8x128xf32>
    %259 = arith.subf %258, %251 : vector<8x128xf32>
    %260 = arith.mulf %259, %257 : vector<8x128xf32>
    %261 = arith.mulf %251, %184 : vector<8x128xf32>
    %262 = arith.addf %260, %261 : vector<8x128xf32>
    %263 = arith.truncf %235 : vector<8x128xf32> to vector<8x128xbf16>
    %c0_101 = arith.constant 0 : index
    %264 = arith.index_cast %196 : i32 to index
    %c0_102 = arith.constant 0 : index
    %265 = vector.load %arg6[%c0_101, %264, %c0_102] : memref<2x64x128xbf16, #tpu.memory_space<vmem>>, vector<1x8x128xbf16>
    %266 = vector.shape_cast %265 : vector<1x8x128xbf16> to vector<8x128xbf16>
    %267 = vector.shape_cast %263 : vector<8x128xbf16> to vector<1x8x128xbf16>
    tpu.vector_store %arg6[%c0_101, %264, %c0_102], %267 {strides = array<i32>} : memref<2x64x128xbf16, #tpu.memory_space<vmem>>, vector<1x8x128xbf16>,
    %268 = arith.truncf %262 : vector<8x128xf32> to vector<8x128xbf16>
    %c1_103 = arith.constant 1 : index
    %269 = arith.index_cast %196 : i32 to index
    %c0_104 = arith.constant 0 : index
    %270 = vector.load %arg6[%c1_103, %269, %c0_104] : memref<2x64x128xbf16, #tpu.memory_space<vmem>>, vector<1x8x128xbf16>
    %271 = vector.shape_cast %270 : vector<1x8x128xbf16> to vector<8x128xbf16>
    %272 = vector.shape_cast %268 : vector<8x128xbf16> to vector<1x8x128xbf16>
    tpu.vector_store %arg6[%c1_103, %269, %c0_104], %272 {strides = array<i32>} : memref<2x64x128xbf16, #tpu.memory_space<vmem>>, vector<1x8x128xbf16>,
    %c3_i32 = arith.constant 3 : i32
    %c8_i32_105 = arith.constant 8 : i32
    %273 = arith.muli %c3_i32, %c8_i32_105 : i32
    %274 = tpu.assume_multiple %273, 8 : i32
    %c0_106 = arith.constant 0 : index
    %275 = arith.index_cast %274 : i32 to index
    %c0_107 = arith.constant 0 : index
    %276 = vector.load %arg8[%c0_106, %275, %c0_107] : memref<2x64x384xf32, #tpu.memory_space<vmem>>, vector<1x8x384xf32>
    %277 = vector.shape_cast %276 : vector<1x8x384xf32> to vector<8x384xf32>
    %c1_108 = arith.constant 1 : index
    %278 = arith.index_cast %274 : i32 to index
    %c0_109 = arith.constant 0 : index
    %279 = vector.load %arg8[%c1_108, %278, %c0_109] : memref<2x64x384xf32, #tpu.memory_space<vmem>>, vector<1x8x384xf32>
    %280 = vector.shape_cast %279 : vector<1x8x384xf32> to vector<8x384xf32>
    %c0_110 = arith.constant 0 : index
    %c0_111 = arith.constant 0 : index
    %c0_112 = arith.constant 0 : index
    %281 = vector.load %arg3[%c0_110, %c0_111, %c0_112] : memref<2x128x384xf32, #tpu.memory_space<vmem>>, vector<1x128x384xf32>
    %282 = vector.shape_cast %281 : vector<1x128x384xf32> to vector<128x384xf32>
    %cst_113 = arith.constant dense<0.000000e+00> : vector<8x384xf32>
    %283 = tpu.matmul %235, %282, %cst_113 {dimension_numbers = #tpu.dot_dimension_numbers<[1], [0], [0], [1], [0, 0, 1, 1], [], []>} : vector<8x128xf32>, vector<128x384xf32>, vector<8x384xf32> -> vector<8x384xf32>
    %c1_114 = arith.constant 1 : index
    %c0_115 = arith.constant 0 : index
    %c0_116 = arith.constant 0 : index
    %284 = vector.load %arg3[%c1_114, %c0_115, %c0_116] : memref<2x128x384xf32, #tpu.memory_space<vmem>>, vector<1x128x384xf32>
    %285 = vector.shape_cast %284 : vector<1x128x384xf32> to vector<128x384xf32>
    %cst_117 = arith.constant dense<0.000000e+00> : vector<8x384xf32>
    %286 = tpu.matmul %262, %285, %cst_117 {dimension_numbers = #tpu.dot_dimension_numbers<[1], [0], [0], [1], [0, 0, 1, 1], [], []>} : vector<8x128xf32>, vector<128x384xf32>, vector<8x384xf32> -> vector<8x384xf32>
    %287 = vector.extract_strided_slice %277 {offsets = [0, 0], sizes = [8, 128], strides = [1, 1]} : vector<8x384xf32> to vector<8x128xf32>
    %288 = vector.extract_strided_slice %283 {offsets = [0, 0], sizes = [8, 128], strides = [1, 1]} : vector<8x384xf32> to vector<8x128xf32>
    %289 = arith.addf %287, %288 : vector<8x128xf32>
    %290 = arith.negf %289 : vector<8x128xf32>
    %291 = math.exp %290 : vector<8x128xf32>
    %cst_118 = arith.constant 1.000000e+00 : f32
    %292 = vector.broadcast %cst_118 : f32 to vector<8x128xf32>
    %293 = arith.addf %292, %291 : vector<8x128xf32>
    %294 = arith.divf %292, %293 : vector<8x128xf32>
    %295 = vector.extract_strided_slice %277 {offsets = [0, 128], sizes = [8, 128], strides = [1, 1]} : vector<8x384xf32> to vector<8x128xf32>
    %296 = vector.extract_strided_slice %283 {offsets = [0, 128], sizes = [8, 128], strides = [1, 1]} : vector<8x384xf32> to vector<8x128xf32>
    %297 = arith.addf %295, %296 : vector<8x128xf32>
    %298 = arith.negf %297 : vector<8x128xf32>
    %299 = math.exp %298 : vector<8x128xf32>
    %cst_119 = arith.constant 1.000000e+00 : f32
    %300 = vector.broadcast %cst_119 : f32 to vector<8x128xf32>
    %301 = arith.addf %300, %299 : vector<8x128xf32>
    %302 = arith.divf %300, %301 : vector<8x128xf32>
    %303 = vector.extract_strided_slice %277 {offsets = [0, 256], sizes = [8, 128], strides = [1, 1]} : vector<8x384xf32> to vector<8x128xf32>
    %304 = vector.extract_strided_slice %283 {offsets = [0, 256], sizes = [8, 128], strides = [1, 1]} : vector<8x384xf32> to vector<8x128xf32>
    %305 = arith.addf %304, %30 : vector<8x128xf32>
    %306 = arith.mulf %294, %305 : vector<8x128xf32>
    %307 = arith.addf %303, %306 : vector<8x128xf32>
    %308 = math.tanh %307 : vector<8x128xf32>
    %cst_120 = arith.constant 1.000000e+00 : f32
    %309 = vector.broadcast %cst_120 : f32 to vector<8x128xf32>
    %310 = arith.subf %309, %302 : vector<8x128xf32>
    %311 = arith.mulf %310, %308 : vector<8x128xf32>
    %312 = arith.mulf %302, %235 : vector<8x128xf32>
    %313 = arith.addf %311, %312 : vector<8x128xf32>
    %314 = vector.extract_strided_slice %280 {offsets = [0, 0], sizes = [8, 128], strides = [1, 1]} : vector<8x384xf32> to vector<8x128xf32>
    %315 = vector.extract_strided_slice %286 {offsets = [0, 0], sizes = [8, 128], strides = [1, 1]} : vector<8x384xf32> to vector<8x128xf32>
    %316 = arith.addf %314, %315 : vector<8x128xf32>
    %317 = arith.negf %316 : vector<8x128xf32>
    %318 = math.exp %317 : vector<8x128xf32>
    %cst_121 = arith.constant 1.000000e+00 : f32
    %319 = vector.broadcast %cst_121 : f32 to vector<8x128xf32>
    %320 = arith.addf %319, %318 : vector<8x128xf32>
    %321 = arith.divf %319, %320 : vector<8x128xf32>
    %322 = vector.extract_strided_slice %280 {offsets = [0, 128], sizes = [8, 128], strides = [1, 1]} : vector<8x384xf32> to vector<8x128xf32>
    %323 = vector.extract_strided_slice %286 {offsets = [0, 128], sizes = [8, 128], strides = [1, 1]} : vector<8x384xf32> to vector<8x128xf32>
    %324 = arith.addf %322, %323 : vector<8x128xf32>
    %325 = arith.negf %324 : vector<8x128xf32>
    %326 = math.exp %325 : vector<8x128xf32>
    %cst_122 = arith.constant 1.000000e+00 : f32
    %327 = vector.broadcast %cst_122 : f32 to vector<8x128xf32>
    %328 = arith.addf %327, %326 : vector<8x128xf32>
    %329 = arith.divf %327, %328 : vector<8x128xf32>
    %330 = vector.extract_strided_slice %280 {offsets = [0, 256], sizes = [8, 128], strides = [1, 1]} : vector<8x384xf32> to vector<8x128xf32>
    %331 = vector.extract_strided_slice %286 {offsets = [0, 256], sizes = [8, 128], strides = [1, 1]} : vector<8x384xf32> to vector<8x128xf32>
    %332 = arith.addf %331, %34 : vector<8x128xf32>
    %333 = arith.mulf %321, %332 : vector<8x128xf32>
    %334 = arith.addf %330, %333 : vector<8x128xf32>
    %335 = math.tanh %334 : vector<8x128xf32>
    %cst_123 = arith.constant 1.000000e+00 : f32
    %336 = vector.broadcast %cst_123 : f32 to vector<8x128xf32>
    %337 = arith.subf %336, %329 : vector<8x128xf32>
    %338 = arith.mulf %337, %335 : vector<8x128xf32>
    %339 = arith.mulf %329, %262 : vector<8x128xf32>
    %340 = arith.addf %338, %339 : vector<8x128xf32>
    %341 = arith.truncf %313 : vector<8x128xf32> to vector<8x128xbf16>
    %c0_124 = arith.constant 0 : index
    %342 = arith.index_cast %274 : i32 to index
    %c0_125 = arith.constant 0 : index
    %343 = vector.load %arg6[%c0_124, %342, %c0_125] : memref<2x64x128xbf16, #tpu.memory_space<vmem>>, vector<1x8x128xbf16>
    %344 = vector.shape_cast %343 : vector<1x8x128xbf16> to vector<8x128xbf16>
    %345 = vector.shape_cast %341 : vector<8x128xbf16> to vector<1x8x128xbf16>
    tpu.vector_store %arg6[%c0_124, %342, %c0_125], %345 {strides = array<i32>} : memref<2x64x128xbf16, #tpu.memory_space<vmem>>, vector<1x8x128xbf16>,
    %346 = arith.truncf %340 : vector<8x128xf32> to vector<8x128xbf16>
    %c1_126 = arith.constant 1 : index
    %347 = arith.index_cast %274 : i32 to index
    %c0_127 = arith.constant 0 : index
    %348 = vector.load %arg6[%c1_126, %347, %c0_127] : memref<2x64x128xbf16, #tpu.memory_space<vmem>>, vector<1x8x128xbf16>
    %349 = vector.shape_cast %348 : vector<1x8x128xbf16> to vector<8x128xbf16>
    %350 = vector.shape_cast %346 : vector<8x128xbf16> to vector<1x8x128xbf16>
    tpu.vector_store %arg6[%c1_126, %347, %c0_127], %350 {strides = array<i32>} : memref<2x64x128xbf16, #tpu.memory_space<vmem>>, vector<1x8x128xbf16>,
    %c4_i32 = arith.constant 4 : i32
    %c8_i32_128 = arith.constant 8 : i32
    %351 = arith.muli %c4_i32, %c8_i32_128 : i32
    %352 = tpu.assume_multiple %351, 8 : i32
    %c0_129 = arith.constant 0 : index
    %353 = arith.index_cast %352 : i32 to index
    %c0_130 = arith.constant 0 : index
    %354 = vector.load %arg8[%c0_129, %353, %c0_130] : memref<2x64x384xf32, #tpu.memory_space<vmem>>, vector<1x8x384xf32>
    %355 = vector.shape_cast %354 : vector<1x8x384xf32> to vector<8x384xf32>
    %c1_131 = arith.constant 1 : index
    %356 = arith.index_cast %352 : i32 to index
    %c0_132 = arith.constant 0 : index
    %357 = vector.load %arg8[%c1_131, %356, %c0_132] : memref<2x64x384xf32, #tpu.memory_space<vmem>>, vector<1x8x384xf32>
    %358 = vector.shape_cast %357 : vector<1x8x384xf32> to vector<8x384xf32>
    %c0_133 = arith.constant 0 : index
    %c0_134 = arith.constant 0 : index
    %c0_135 = arith.constant 0 : index
    %359 = vector.load %arg3[%c0_133, %c0_134, %c0_135] : memref<2x128x384xf32, #tpu.memory_space<vmem>>, vector<1x128x384xf32>
    %360 = vector.shape_cast %359 : vector<1x128x384xf32> to vector<128x384xf32>
    %cst_136 = arith.constant dense<0.000000e+00> : vector<8x384xf32>
    %361 = tpu.matmul %313, %360, %cst_136 {dimension_numbers = #tpu.dot_dimension_numbers<[1], [0], [0], [1], [0, 0, 1, 1], [], []>} : vector<8x128xf32>, vector<128x384xf32>, vector<8x384xf32> -> vector<8x384xf32>
    %c1_137 = arith.constant 1 : index
    %c0_138 = arith.constant 0 : index
    %c0_139 = arith.constant 0 : index
    %362 = vector.load %arg3[%c1_137, %c0_138, %c0_139] : memref<2x128x384xf32, #tpu.memory_space<vmem>>, vector<1x128x384xf32>
    %363 = vector.shape_cast %362 : vector<1x128x384xf32> to vector<128x384xf32>
    %cst_140 = arith.constant dense<0.000000e+00> : vector<8x384xf32>
    %364 = tpu.matmul %340, %363, %cst_140 {dimension_numbers = #tpu.dot_dimension_numbers<[1], [0], [0], [1], [0, 0, 1, 1], [], []>} : vector<8x128xf32>, vector<128x384xf32>, vector<8x384xf32> -> vector<8x384xf32>
    %365 = vector.extract_strided_slice %355 {offsets = [0, 0], sizes = [8, 128], strides = [1, 1]} : vector<8x384xf32> to vector<8x128xf32>
    %366 = vector.extract_strided_slice %361 {offsets = [0, 0], sizes = [8, 128], strides = [1, 1]} : vector<8x384xf32> to vector<8x128xf32>
    %367 = arith.addf %365, %366 : vector<8x128xf32>
    %368 = arith.negf %367 : vector<8x128xf32>
    %369 = math.exp %368 : vector<8x128xf32>
    %cst_141 = arith.constant 1.000000e+00 : f32
    %370 = vector.broadcast %cst_141 : f32 to vector<8x128xf32>
    %371 = arith.addf %370, %369 : vector<8x128xf32>
    %372 = arith.divf %370, %371 : vector<8x128xf32>
    %373 = vector.extract_strided_slice %355 {offsets = [0, 128], sizes = [8, 128], strides = [1, 1]} : vector<8x384xf32> to vector<8x128xf32>
    %374 = vector.extract_strided_slice %361 {offsets = [0, 128], sizes = [8, 128], strides = [1, 1]} : vector<8x384xf32> to vector<8x128xf32>
    %375 = arith.addf %373, %374 : vector<8x128xf32>
    %376 = arith.negf %375 : vector<8x128xf32>
    %377 = math.exp %376 : vector<8x128xf32>
    %cst_142 = arith.constant 1.000000e+00 : f32
    %378 = vector.broadcast %cst_142 : f32 to vector<8x128xf32>
    %379 = arith.addf %378, %377 : vector<8x128xf32>
    %380 = arith.divf %378, %379 : vector<8x128xf32>
    %381 = vector.extract_strided_slice %355 {offsets = [0, 256], sizes = [8, 128], strides = [1, 1]} : vector<8x384xf32> to vector<8x128xf32>
    %382 = vector.extract_strided_slice %361 {offsets = [0, 256], sizes = [8, 128], strides = [1, 1]} : vector<8x384xf32> to vector<8x128xf32>
    %383 = arith.addf %382, %30 : vector<8x128xf32>
    %384 = arith.mulf %372, %383 : vector<8x128xf32>
    %385 = arith.addf %381, %384 : vector<8x128xf32>
    %386 = math.tanh %385 : vector<8x128xf32>
    %cst_143 = arith.constant 1.000000e+00 : f32
    %387 = vector.broadcast %cst_143 : f32 to vector<8x128xf32>
    %388 = arith.subf %387, %380 : vector<8x128xf32>
    %389 = arith.mulf %388, %386 : vector<8x128xf32>
    %390 = arith.mulf %380, %313 : vector<8x128xf32>
    %391 = arith.addf %389, %390 : vector<8x128xf32>
    %392 = vector.extract_strided_slice %358 {offsets = [0, 0], sizes = [8, 128], strides = [1, 1]} : vector<8x384xf32> to vector<8x128xf32>
    %393 = vector.extract_strided_slice %364 {offsets = [0, 0], sizes = [8, 128], strides = [1, 1]} : vector<8x384xf32> to vector<8x128xf32>
    %394 = arith.addf %392, %393 : vector<8x128xf32>
    %395 = arith.negf %394 : vector<8x128xf32>
    %396 = math.exp %395 : vector<8x128xf32>
    %cst_144 = arith.constant 1.000000e+00 : f32
    %397 = vector.broadcast %cst_144 : f32 to vector<8x128xf32>
    %398 = arith.addf %397, %396 : vector<8x128xf32>
    %399 = arith.divf %397, %398 : vector<8x128xf32>
    %400 = vector.extract_strided_slice %358 {offsets = [0, 128], sizes = [8, 128], strides = [1, 1]} : vector<8x384xf32> to vector<8x128xf32>
    %401 = vector.extract_strided_slice %364 {offsets = [0, 128], sizes = [8, 128], strides = [1, 1]} : vector<8x384xf32> to vector<8x128xf32>
    %402 = arith.addf %400, %401 : vector<8x128xf32>
    %403 = arith.negf %402 : vector<8x128xf32>
    %404 = math.exp %403 : vector<8x128xf32>
    %cst_145 = arith.constant 1.000000e+00 : f32
    %405 = vector.broadcast %cst_145 : f32 to vector<8x128xf32>
    %406 = arith.addf %405, %404 : vector<8x128xf32>
    %407 = arith.divf %405, %406 : vector<8x128xf32>
    %408 = vector.extract_strided_slice %358 {offsets = [0, 256], sizes = [8, 128], strides = [1, 1]} : vector<8x384xf32> to vector<8x128xf32>
    %409 = vector.extract_strided_slice %364 {offsets = [0, 256], sizes = [8, 128], strides = [1, 1]} : vector<8x384xf32> to vector<8x128xf32>
    %410 = arith.addf %409, %34 : vector<8x128xf32>
    %411 = arith.mulf %399, %410 : vector<8x128xf32>
    %412 = arith.addf %408, %411 : vector<8x128xf32>
    %413 = math.tanh %412 : vector<8x128xf32>
    %cst_146 = arith.constant 1.000000e+00 : f32
    %414 = vector.broadcast %cst_146 : f32 to vector<8x128xf32>
    %415 = arith.subf %414, %407 : vector<8x128xf32>
    %416 = arith.mulf %415, %413 : vector<8x128xf32>
    %417 = arith.mulf %407, %340 : vector<8x128xf32>
    %418 = arith.addf %416, %417 : vector<8x128xf32>
    %419 = arith.truncf %391 : vector<8x128xf32> to vector<8x128xbf16>
    %c0_147 = arith.constant 0 : index
    %420 = arith.index_cast %352 : i32 to index
    %c0_148 = arith.constant 0 : index
    %421 = vector.load %arg6[%c0_147, %420, %c0_148] : memref<2x64x128xbf16, #tpu.memory_space<vmem>>, vector<1x8x128xbf16>
    %422 = vector.shape_cast %421 : vector<1x8x128xbf16> to vector<8x128xbf16>
    %423 = vector.shape_cast %419 : vector<8x128xbf16> to vector<1x8x128xbf16>
    tpu.vector_store %arg6[%c0_147, %420, %c0_148], %423 {strides = array<i32>} : memref<2x64x128xbf16, #tpu.memory_space<vmem>>, vector<1x8x128xbf16>,
    %424 = arith.truncf %418 : vector<8x128xf32> to vector<8x128xbf16>
    %c1_149 = arith.constant 1 : index
    %425 = arith.index_cast %352 : i32 to index
    %c0_150 = arith.constant 0 : index
    %426 = vector.load %arg6[%c1_149, %425, %c0_150] : memref<2x64x128xbf16, #tpu.memory_space<vmem>>, vector<1x8x128xbf16>
    %427 = vector.shape_cast %426 : vector<1x8x128xbf16> to vector<8x128xbf16>
    %428 = vector.shape_cast %424 : vector<8x128xbf16> to vector<1x8x128xbf16>
    tpu.vector_store %arg6[%c1_149, %425, %c0_150], %428 {strides = array<i32>} : memref<2x64x128xbf16, #tpu.memory_space<vmem>>, vector<1x8x128xbf16>,
    %c5_i32 = arith.constant 5 : i32
    %c8_i32_151 = arith.constant 8 : i32
    %429 = arith.muli %c5_i32, %c8_i32_151 : i32
    %430 = tpu.assume_multiple %429, 8 : i32
    %c0_152 = arith.constant 0 : index
    %431 = arith.index_cast %430 : i32 to index
    %c0_153 = arith.constant 0 : index
    %432 = vector.load %arg8[%c0_152, %431, %c0_153] : memref<2x64x384xf32, #tpu.memory_space<vmem>>, vector<1x8x384xf32>
    %433 = vector.shape_cast %432 : vector<1x8x384xf32> to vector<8x384xf32>
    %c1_154 = arith.constant 1 : index
    %434 = arith.index_cast %430 : i32 to index
    %c0_155 = arith.constant 0 : index
    %435 = vector.load %arg8[%c1_154, %434, %c0_155] : memref<2x64x384xf32, #tpu.memory_space<vmem>>, vector<1x8x384xf32>
    %436 = vector.shape_cast %435 : vector<1x8x384xf32> to vector<8x384xf32>
    %c0_156 = arith.constant 0 : index
    %c0_157 = arith.constant 0 : index
    %c0_158 = arith.constant 0 : index
    %437 = vector.load %arg3[%c0_156, %c0_157, %c0_158] : memref<2x128x384xf32, #tpu.memory_space<vmem>>, vector<1x128x384xf32>
    %438 = vector.shape_cast %437 : vector<1x128x384xf32> to vector<128x384xf32>
    %cst_159 = arith.constant dense<0.000000e+00> : vector<8x384xf32>
    %439 = tpu.matmul %391, %438, %cst_159 {dimension_numbers = #tpu.dot_dimension_numbers<[1], [0], [0], [1], [0, 0, 1, 1], [], []>} : vector<8x128xf32>, vector<128x384xf32>, vector<8x384xf32> -> vector<8x384xf32>
    %c1_160 = arith.constant 1 : index
    %c0_161 = arith.constant 0 : index
    %c0_162 = arith.constant 0 : index
    %440 = vector.load %arg3[%c1_160, %c0_161, %c0_162] : memref<2x128x384xf32, #tpu.memory_space<vmem>>, vector<1x128x384xf32>
    %441 = vector.shape_cast %440 : vector<1x128x384xf32> to vector<128x384xf32>
    %cst_163 = arith.constant dense<0.000000e+00> : vector<8x384xf32>
    %442 = tpu.matmul %418, %441, %cst_163 {dimension_numbers = #tpu.dot_dimension_numbers<[1], [0], [0], [1], [0, 0, 1, 1], [], []>} : vector<8x128xf32>, vector<128x384xf32>, vector<8x384xf32> -> vector<8x384xf32>
    %443 = vector.extract_strided_slice %433 {offsets = [0, 0], sizes = [8, 128], strides = [1, 1]} : vector<8x384xf32> to vector<8x128xf32>
    %444 = vector.extract_strided_slice %439 {offsets = [0, 0], sizes = [8, 128], strides = [1, 1]} : vector<8x384xf32> to vector<8x128xf32>
    %445 = arith.addf %443, %444 : vector<8x128xf32>
    %446 = arith.negf %445 : vector<8x128xf32>
    %447 = math.exp %446 : vector<8x128xf32>
    %cst_164 = arith.constant 1.000000e+00 : f32
    %448 = vector.broadcast %cst_164 : f32 to vector<8x128xf32>
    %449 = arith.addf %448, %447 : vector<8x128xf32>
    %450 = arith.divf %448, %449 : vector<8x128xf32>
    %451 = vector.extract_strided_slice %433 {offsets = [0, 128], sizes = [8, 128], strides = [1, 1]} : vector<8x384xf32> to vector<8x128xf32>
    %452 = vector.extract_strided_slice %439 {offsets = [0, 128], sizes = [8, 128], strides = [1, 1]} : vector<8x384xf32> to vector<8x128xf32>
    %453 = arith.addf %451, %452 : vector<8x128xf32>
    %454 = arith.negf %453 : vector<8x128xf32>
    %455 = math.exp %454 : vector<8x128xf32>
    %cst_165 = arith.constant 1.000000e+00 : f32
    %456 = vector.broadcast %cst_165 : f32 to vector<8x128xf32>
    %457 = arith.addf %456, %455 : vector<8x128xf32>
    %458 = arith.divf %456, %457 : vector<8x128xf32>
    %459 = vector.extract_strided_slice %433 {offsets = [0, 256], sizes = [8, 128], strides = [1, 1]} : vector<8x384xf32> to vector<8x128xf32>
    %460 = vector.extract_strided_slice %439 {offsets = [0, 256], sizes = [8, 128], strides = [1, 1]} : vector<8x384xf32> to vector<8x128xf32>
    %461 = arith.addf %460, %30 : vector<8x128xf32>
    %462 = arith.mulf %450, %461 : vector<8x128xf32>
    %463 = arith.addf %459, %462 : vector<8x128xf32>
    %464 = math.tanh %463 : vector<8x128xf32>
    %cst_166 = arith.constant 1.000000e+00 : f32
    %465 = vector.broadcast %cst_166 : f32 to vector<8x128xf32>
    %466 = arith.subf %465, %458 : vector<8x128xf32>
    %467 = arith.mulf %466, %464 : vector<8x128xf32>
    %468 = arith.mulf %458, %391 : vector<8x128xf32>
    %469 = arith.addf %467, %468 : vector<8x128xf32>
    %470 = vector.extract_strided_slice %436 {offsets = [0, 0], sizes = [8, 128], strides = [1, 1]} : vector<8x384xf32> to vector<8x128xf32>
    %471 = vector.extract_strided_slice %442 {offsets = [0, 0], sizes = [8, 128], strides = [1, 1]} : vector<8x384xf32> to vector<8x128xf32>
    %472 = arith.addf %470, %471 : vector<8x128xf32>
    %473 = arith.negf %472 : vector<8x128xf32>
    %474 = math.exp %473 : vector<8x128xf32>
    %cst_167 = arith.constant 1.000000e+00 : f32
    %475 = vector.broadcast %cst_167 : f32 to vector<8x128xf32>
    %476 = arith.addf %475, %474 : vector<8x128xf32>
    %477 = arith.divf %475, %476 : vector<8x128xf32>
    %478 = vector.extract_strided_slice %436 {offsets = [0, 128], sizes = [8, 128], strides = [1, 1]} : vector<8x384xf32> to vector<8x128xf32>
    %479 = vector.extract_strided_slice %442 {offsets = [0, 128], sizes = [8, 128], strides = [1, 1]} : vector<8x384xf32> to vector<8x128xf32>
    %480 = arith.addf %478, %479 : vector<8x128xf32>
    %481 = arith.negf %480 : vector<8x128xf32>
    %482 = math.exp %481 : vector<8x128xf32>
    %cst_168 = arith.constant 1.000000e+00 : f32
    %483 = vector.broadcast %cst_168 : f32 to vector<8x128xf32>
    %484 = arith.addf %483, %482 : vector<8x128xf32>
    %485 = arith.divf %483, %484 : vector<8x128xf32>
    %486 = vector.extract_strided_slice %436 {offsets = [0, 256], sizes = [8, 128], strides = [1, 1]} : vector<8x384xf32> to vector<8x128xf32>
    %487 = vector.extract_strided_slice %442 {offsets = [0, 256], sizes = [8, 128], strides = [1, 1]} : vector<8x384xf32> to vector<8x128xf32>
    %488 = arith.addf %487, %34 : vector<8x128xf32>
    %489 = arith.mulf %477, %488 : vector<8x128xf32>
    %490 = arith.addf %486, %489 : vector<8x128xf32>
    %491 = math.tanh %490 : vector<8x128xf32>
    %cst_169 = arith.constant 1.000000e+00 : f32
    %492 = vector.broadcast %cst_169 : f32 to vector<8x128xf32>
    %493 = arith.subf %492, %485 : vector<8x128xf32>
    %494 = arith.mulf %493, %491 : vector<8x128xf32>
    %495 = arith.mulf %485, %418 : vector<8x128xf32>
    %496 = arith.addf %494, %495 : vector<8x128xf32>
    %497 = arith.truncf %469 : vector<8x128xf32> to vector<8x128xbf16>
    %c0_170 = arith.constant 0 : index
    %498 = arith.index_cast %430 : i32 to index
    %c0_171 = arith.constant 0 : index
    %499 = vector.load %arg6[%c0_170, %498, %c0_171] : memref<2x64x128xbf16, #tpu.memory_space<vmem>>, vector<1x8x128xbf16>
    %500 = vector.shape_cast %499 : vector<1x8x128xbf16> to vector<8x128xbf16>
    %501 = vector.shape_cast %497 : vector<8x128xbf16> to vector<1x8x128xbf16>
    tpu.vector_store %arg6[%c0_170, %498, %c0_171], %501 {strides = array<i32>} : memref<2x64x128xbf16, #tpu.memory_space<vmem>>, vector<1x8x128xbf16>,
    %502 = arith.truncf %496 : vector<8x128xf32> to vector<8x128xbf16>
    %c1_172 = arith.constant 1 : index
    %503 = arith.index_cast %430 : i32 to index
    %c0_173 = arith.constant 0 : index
    %504 = vector.load %arg6[%c1_172, %503, %c0_173] : memref<2x64x128xbf16, #tpu.memory_space<vmem>>, vector<1x8x128xbf16>
    %505 = vector.shape_cast %504 : vector<1x8x128xbf16> to vector<8x128xbf16>
    %506 = vector.shape_cast %502 : vector<8x128xbf16> to vector<1x8x128xbf16>
    tpu.vector_store %arg6[%c1_172, %503, %c0_173], %506 {strides = array<i32>} : memref<2x64x128xbf16, #tpu.memory_space<vmem>>, vector<1x8x128xbf16>,
    %c6_i32 = arith.constant 6 : i32
    %c8_i32_174 = arith.constant 8 : i32
    %507 = arith.muli %c6_i32, %c8_i32_174 : i32
    %508 = tpu.assume_multiple %507, 8 : i32
    %c0_175 = arith.constant 0 : index
    %509 = arith.index_cast %508 : i32 to index
    %c0_176 = arith.constant 0 : index
    %510 = vector.load %arg8[%c0_175, %509, %c0_176] : memref<2x64x384xf32, #tpu.memory_space<vmem>>, vector<1x8x384xf32>
    %511 = vector.shape_cast %510 : vector<1x8x384xf32> to vector<8x384xf32>
    %c1_177 = arith.constant 1 : index
    %512 = arith.index_cast %508 : i32 to index
    %c0_178 = arith.constant 0 : index
    %513 = vector.load %arg8[%c1_177, %512, %c0_178] : memref<2x64x384xf32, #tpu.memory_space<vmem>>, vector<1x8x384xf32>
    %514 = vector.shape_cast %513 : vector<1x8x384xf32> to vector<8x384xf32>
    %c0_179 = arith.constant 0 : index
    %c0_180 = arith.constant 0 : index
    %c0_181 = arith.constant 0 : index
    %515 = vector.load %arg3[%c0_179, %c0_180, %c0_181] : memref<2x128x384xf32, #tpu.memory_space<vmem>>, vector<1x128x384xf32>
    %516 = vector.shape_cast %515 : vector<1x128x384xf32> to vector<128x384xf32>
    %cst_182 = arith.constant dense<0.000000e+00> : vector<8x384xf32>
    %517 = tpu.matmul %469, %516, %cst_182 {dimension_numbers = #tpu.dot_dimension_numbers<[1], [0], [0], [1], [0, 0, 1, 1], [], []>} : vector<8x128xf32>, vector<128x384xf32>, vector<8x384xf32> -> vector<8x384xf32>
    %c1_183 = arith.constant 1 : index
    %c0_184 = arith.constant 0 : index
    %c0_185 = arith.constant 0 : index
    %518 = vector.load %arg3[%c1_183, %c0_184, %c0_185] : memref<2x128x384xf32, #tpu.memory_space<vmem>>, vector<1x128x384xf32>
    %519 = vector.shape_cast %518 : vector<1x128x384xf32> to vector<128x384xf32>
    %cst_186 = arith.constant dense<0.000000e+00> : vector<8x384xf32>
    %520 = tpu.matmul %496, %519, %cst_186 {dimension_numbers = #tpu.dot_dimension_numbers<[1], [0], [0], [1], [0, 0, 1, 1], [], []>} : vector<8x128xf32>, vector<128x384xf32>, vector<8x384xf32> -> vector<8x384xf32>
    %521 = vector.extract_strided_slice %511 {offsets = [0, 0], sizes = [8, 128], strides = [1, 1]} : vector<8x384xf32> to vector<8x128xf32>
    %522 = vector.extract_strided_slice %517 {offsets = [0, 0], sizes = [8, 128], strides = [1, 1]} : vector<8x384xf32> to vector<8x128xf32>
    %523 = arith.addf %521, %522 : vector<8x128xf32>
    %524 = arith.negf %523 : vector<8x128xf32>
    %525 = math.exp %524 : vector<8x128xf32>
    %cst_187 = arith.constant 1.000000e+00 : f32
    %526 = vector.broadcast %cst_187 : f32 to vector<8x128xf32>
    %527 = arith.addf %526, %525 : vector<8x128xf32>
    %528 = arith.divf %526, %527 : vector<8x128xf32>
    %529 = vector.extract_strided_slice %511 {offsets = [0, 128], sizes = [8, 128], strides = [1, 1]} : vector<8x384xf32> to vector<8x128xf32>
    %530 = vector.extract_strided_slice %517 {offsets = [0, 128], sizes = [8, 128], strides = [1, 1]} : vector<8x384xf32> to vector<8x128xf32>
    %531 = arith.addf %529, %530 : vector<8x128xf32>
    %532 = arith.negf %531 : vector<8x128xf32>
    %533 = math.exp %532 : vector<8x128xf32>
    %cst_188 = arith.constant 1.000000e+00 : f32
    %534 = vector.broadcast %cst_188 : f32 to vector<8x128xf32>
    %535 = arith.addf %534, %533 : vector<8x128xf32>
    %536 = arith.divf %534, %535 : vector<8x128xf32>
    %537 = vector.extract_strided_slice %511 {offsets = [0, 256], sizes = [8, 128], strides = [1, 1]} : vector<8x384xf32> to vector<8x128xf32>
    %538 = vector.extract_strided_slice %517 {offsets = [0, 256], sizes = [8, 128], strides = [1, 1]} : vector<8x384xf32> to vector<8x128xf32>
    %539 = arith.addf %538, %30 : vector<8x128xf32>
    %540 = arith.mulf %528, %539 : vector<8x128xf32>
    %541 = arith.addf %537, %540 : vector<8x128xf32>
    %542 = math.tanh %541 : vector<8x128xf32>
    %cst_189 = arith.constant 1.000000e+00 : f32
    %543 = vector.broadcast %cst_189 : f32 to vector<8x128xf32>
    %544 = arith.subf %543, %536 : vector<8x128xf32>
    %545 = arith.mulf %544, %542 : vector<8x128xf32>
    %546 = arith.mulf %536, %469 : vector<8x128xf32>
    %547 = arith.addf %545, %546 : vector<8x128xf32>
    %548 = vector.extract_strided_slice %514 {offsets = [0, 0], sizes = [8, 128], strides = [1, 1]} : vector<8x384xf32> to vector<8x128xf32>
    %549 = vector.extract_strided_slice %520 {offsets = [0, 0], sizes = [8, 128], strides = [1, 1]} : vector<8x384xf32> to vector<8x128xf32>
    %550 = arith.addf %548, %549 : vector<8x128xf32>
    %551 = arith.negf %550 : vector<8x128xf32>
    %552 = math.exp %551 : vector<8x128xf32>
    %cst_190 = arith.constant 1.000000e+00 : f32
    %553 = vector.broadcast %cst_190 : f32 to vector<8x128xf32>
    %554 = arith.addf %553, %552 : vector<8x128xf32>
    %555 = arith.divf %553, %554 : vector<8x128xf32>
    %556 = vector.extract_strided_slice %514 {offsets = [0, 128], sizes = [8, 128], strides = [1, 1]} : vector<8x384xf32> to vector<8x128xf32>
    %557 = vector.extract_strided_slice %520 {offsets = [0, 128], sizes = [8, 128], strides = [1, 1]} : vector<8x384xf32> to vector<8x128xf32>
    %558 = arith.addf %556, %557 : vector<8x128xf32>
    %559 = arith.negf %558 : vector<8x128xf32>
    %560 = math.exp %559 : vector<8x128xf32>
    %cst_191 = arith.constant 1.000000e+00 : f32
    %561 = vector.broadcast %cst_191 : f32 to vector<8x128xf32>
    %562 = arith.addf %561, %560 : vector<8x128xf32>
    %563 = arith.divf %561, %562 : vector<8x128xf32>
    %564 = vector.extract_strided_slice %514 {offsets = [0, 256], sizes = [8, 128], strides = [1, 1]} : vector<8x384xf32> to vector<8x128xf32>
    %565 = vector.extract_strided_slice %520 {offsets = [0, 256], sizes = [8, 128], strides = [1, 1]} : vector<8x384xf32> to vector<8x128xf32>
    %566 = arith.addf %565, %34 : vector<8x128xf32>
    %567 = arith.mulf %555, %566 : vector<8x128xf32>
    %568 = arith.addf %564, %567 : vector<8x128xf32>
    %569 = math.tanh %568 : vector<8x128xf32>
    %cst_192 = arith.constant 1.000000e+00 : f32
    %570 = vector.broadcast %cst_192 : f32 to vector<8x128xf32>
    %571 = arith.subf %570, %563 : vector<8x128xf32>
    %572 = arith.mulf %571, %569 : vector<8x128xf32>
    %573 = arith.mulf %563, %496 : vector<8x128xf32>
    %574 = arith.addf %572, %573 : vector<8x128xf32>
    %575 = arith.truncf %547 : vector<8x128xf32> to vector<8x128xbf16>
    %c0_193 = arith.constant 0 : index
    %576 = arith.index_cast %508 : i32 to index
    %c0_194 = arith.constant 0 : index
    %577 = vector.load %arg6[%c0_193, %576, %c0_194] : memref<2x64x128xbf16, #tpu.memory_space<vmem>>, vector<1x8x128xbf16>
    %578 = vector.shape_cast %577 : vector<1x8x128xbf16> to vector<8x128xbf16>
    %579 = vector.shape_cast %575 : vector<8x128xbf16> to vector<1x8x128xbf16>
    tpu.vector_store %arg6[%c0_193, %576, %c0_194], %579 {strides = array<i32>} : memref<2x64x128xbf16, #tpu.memory_space<vmem>>, vector<1x8x128xbf16>,
    %580 = arith.truncf %574 : vector<8x128xf32> to vector<8x128xbf16>
    %c1_195 = arith.constant 1 : index
    %581 = arith.index_cast %508 : i32 to index
    %c0_196 = arith.constant 0 : index
    %582 = vector.load %arg6[%c1_195, %581, %c0_196] : memref<2x64x128xbf16, #tpu.memory_space<vmem>>, vector<1x8x128xbf16>
    %583 = vector.shape_cast %582 : vector<1x8x128xbf16> to vector<8x128xbf16>
    %584 = vector.shape_cast %580 : vector<8x128xbf16> to vector<1x8x128xbf16>
    tpu.vector_store %arg6[%c1_195, %581, %c0_196], %584 {strides = array<i32>} : memref<2x64x128xbf16, #tpu.memory_space<vmem>>, vector<1x8x128xbf16>,
    %c7_i32 = arith.constant 7 : i32
    %c8_i32_197 = arith.constant 8 : i32
    %585 = arith.muli %c7_i32, %c8_i32_197 : i32
    %586 = tpu.assume_multiple %585, 8 : i32
    %c0_198 = arith.constant 0 : index
    %587 = arith.index_cast %586 : i32 to index
    %c0_199 = arith.constant 0 : index
    %588 = vector.load %arg8[%c0_198, %587, %c0_199] : memref<2x64x384xf32, #tpu.memory_space<vmem>>, vector<1x8x384xf32>
    %589 = vector.shape_cast %588 : vector<1x8x384xf32> to vector<8x384xf32>
    %c1_200 = arith.constant 1 : index
    %590 = arith.index_cast %586 : i32 to index
    %c0_201 = arith.constant 0 : index
    %591 = vector.load %arg8[%c1_200, %590, %c0_201] : memref<2x64x384xf32, #tpu.memory_space<vmem>>, vector<1x8x384xf32>
    %592 = vector.shape_cast %591 : vector<1x8x384xf32> to vector<8x384xf32>
    %c0_202 = arith.constant 0 : index
    %c0_203 = arith.constant 0 : index
    %c0_204 = arith.constant 0 : index
    %593 = vector.load %arg3[%c0_202, %c0_203, %c0_204] : memref<2x128x384xf32, #tpu.memory_space<vmem>>, vector<1x128x384xf32>
    %594 = vector.shape_cast %593 : vector<1x128x384xf32> to vector<128x384xf32>
    %cst_205 = arith.constant dense<0.000000e+00> : vector<8x384xf32>
    %595 = tpu.matmul %547, %594, %cst_205 {dimension_numbers = #tpu.dot_dimension_numbers<[1], [0], [0], [1], [0, 0, 1, 1], [], []>} : vector<8x128xf32>, vector<128x384xf32>, vector<8x384xf32> -> vector<8x384xf32>
    %c1_206 = arith.constant 1 : index
    %c0_207 = arith.constant 0 : index
    %c0_208 = arith.constant 0 : index
    %596 = vector.load %arg3[%c1_206, %c0_207, %c0_208] : memref<2x128x384xf32, #tpu.memory_space<vmem>>, vector<1x128x384xf32>
    %597 = vector.shape_cast %596 : vector<1x128x384xf32> to vector<128x384xf32>
    %cst_209 = arith.constant dense<0.000000e+00> : vector<8x384xf32>
    %598 = tpu.matmul %574, %597, %cst_209 {dimension_numbers = #tpu.dot_dimension_numbers<[1], [0], [0], [1], [0, 0, 1, 1], [], []>} : vector<8x128xf32>, vector<128x384xf32>, vector<8x384xf32> -> vector<8x384xf32>
    %599 = vector.extract_strided_slice %589 {offsets = [0, 0], sizes = [8, 128], strides = [1, 1]} : vector<8x384xf32> to vector<8x128xf32>
    %600 = vector.extract_strided_slice %595 {offsets = [0, 0], sizes = [8, 128], strides = [1, 1]} : vector<8x384xf32> to vector<8x128xf32>
    %601 = arith.addf %599, %600 : vector<8x128xf32>
    %602 = arith.negf %601 : vector<8x128xf32>
    %603 = math.exp %602 : vector<8x128xf32>
    %cst_210 = arith.constant 1.000000e+00 : f32
    %604 = vector.broadcast %cst_210 : f32 to vector<8x128xf32>
    %605 = arith.addf %604, %603 : vector<8x128xf32>
    %606 = arith.divf %604, %605 : vector<8x128xf32>
    %607 = vector.extract_strided_slice %589 {offsets = [0, 128], sizes = [8, 128], strides = [1, 1]} : vector<8x384xf32> to vector<8x128xf32>
    %608 = vector.extract_strided_slice %595 {offsets = [0, 128], sizes = [8, 128], strides = [1, 1]} : vector<8x384xf32> to vector<8x128xf32>
    %609 = arith.addf %607, %608 : vector<8x128xf32>
    %610 = arith.negf %609 : vector<8x128xf32>
    %611 = math.exp %610 : vector<8x128xf32>
    %cst_211 = arith.constant 1.000000e+00 : f32
    %612 = vector.broadcast %cst_211 : f32 to vector<8x128xf32>
    %613 = arith.addf %612, %611 : vector<8x128xf32>
    %614 = arith.divf %612, %613 : vector<8x128xf32>
    %615 = vector.extract_strided_slice %589 {offsets = [0, 256], sizes = [8, 128], strides = [1, 1]} : vector<8x384xf32> to vector<8x128xf32>
    %616 = vector.extract_strided_slice %595 {offsets = [0, 256], sizes = [8, 128], strides = [1, 1]} : vector<8x384xf32> to vector<8x128xf32>
    %617 = arith.addf %616, %30 : vector<8x128xf32>
    %618 = arith.mulf %606, %617 : vector<8x128xf32>
    %619 = arith.addf %615, %618 : vector<8x128xf32>
    %620 = math.tanh %619 : vector<8x128xf32>
    %cst_212 = arith.constant 1.000000e+00 : f32
    %621 = vector.broadcast %cst_212 : f32 to vector<8x128xf32>
    %622 = arith.subf %621, %614 : vector<8x128xf32>
    %623 = arith.mulf %622, %620 : vector<8x128xf32>
    %624 = arith.mulf %614, %547 : vector<8x128xf32>
    %625 = arith.addf %623, %624 : vector<8x128xf32>
    %626 = vector.extract_strided_slice %592 {offsets = [0, 0], sizes = [8, 128], strides = [1, 1]} : vector<8x384xf32> to vector<8x128xf32>
    %627 = vector.extract_strided_slice %598 {offsets = [0, 0], sizes = [8, 128], strides = [1, 1]} : vector<8x384xf32> to vector<8x128xf32>
    %628 = arith.addf %626, %627 : vector<8x128xf32>
    %629 = arith.negf %628 : vector<8x128xf32>
    %630 = math.exp %629 : vector<8x128xf32>
    %cst_213 = arith.constant 1.000000e+00 : f32
    %631 = vector.broadcast %cst_213 : f32 to vector<8x128xf32>
    %632 = arith.addf %631, %630 : vector<8x128xf32>
    %633 = arith.divf %631, %632 : vector<8x128xf32>
    %634 = vector.extract_strided_slice %592 {offsets = [0, 128], sizes = [8, 128], strides = [1, 1]} : vector<8x384xf32> to vector<8x128xf32>
    %635 = vector.extract_strided_slice %598 {offsets = [0, 128], sizes = [8, 128], strides = [1, 1]} : vector<8x384xf32> to vector<8x128xf32>
    %636 = arith.addf %634, %635 : vector<8x128xf32>
    %637 = arith.negf %636 : vector<8x128xf32>
    %638 = math.exp %637 : vector<8x128xf32>
    %cst_214 = arith.constant 1.000000e+00 : f32
    %639 = vector.broadcast %cst_214 : f32 to vector<8x128xf32>
    %640 = arith.addf %639, %638 : vector<8x128xf32>
    %641 = arith.divf %639, %640 : vector<8x128xf32>
    %642 = vector.extract_strided_slice %592 {offsets = [0, 256], sizes = [8, 128], strides = [1, 1]} : vector<8x384xf32> to vector<8x128xf32>
    %643 = vector.extract_strided_slice %598 {offsets = [0, 256], sizes = [8, 128], strides = [1, 1]} : vector<8x384xf32> to vector<8x128xf32>
    %644 = arith.addf %643, %34 : vector<8x128xf32>
    %645 = arith.mulf %633, %644 : vector<8x128xf32>
    %646 = arith.addf %642, %645 : vector<8x128xf32>
    %647 = math.tanh %646 : vector<8x128xf32>
    %cst_215 = arith.constant 1.000000e+00 : f32
    %648 = vector.broadcast %cst_215 : f32 to vector<8x128xf32>
    %649 = arith.subf %648, %641 : vector<8x128xf32>
    %650 = arith.mulf %649, %647 : vector<8x128xf32>
    %651 = arith.mulf %641, %574 : vector<8x128xf32>
    %652 = arith.addf %650, %651 : vector<8x128xf32>
    %653 = arith.truncf %625 : vector<8x128xf32> to vector<8x128xbf16>
    %c0_216 = arith.constant 0 : index
    %654 = arith.index_cast %586 : i32 to index
    %c0_217 = arith.constant 0 : index
    %655 = vector.load %arg6[%c0_216, %654, %c0_217] : memref<2x64x128xbf16, #tpu.memory_space<vmem>>, vector<1x8x128xbf16>
    %656 = vector.shape_cast %655 : vector<1x8x128xbf16> to vector<8x128xbf16>
    %657 = vector.shape_cast %653 : vector<8x128xbf16> to vector<1x8x128xbf16>
    tpu.vector_store %arg6[%c0_216, %654, %c0_217], %657 {strides = array<i32>} : memref<2x64x128xbf16, #tpu.memory_space<vmem>>, vector<1x8x128xbf16>,
    %658 = arith.truncf %652 : vector<8x128xf32> to vector<8x128xbf16>
    %c1_218 = arith.constant 1 : index
    %659 = arith.index_cast %586 : i32 to index
    %c0_219 = arith.constant 0 : index
    %660 = vector.load %arg6[%c1_218, %659, %c0_219] : memref<2x64x128xbf16, #tpu.memory_space<vmem>>, vector<1x8x128xbf16>
    %661 = vector.shape_cast %660 : vector<1x8x128xbf16> to vector<8x128xbf16>
    %662 = vector.shape_cast %658 : vector<8x128xbf16> to vector<1x8x128xbf16>
    tpu.vector_store %arg6[%c1_218, %659, %c0_219], %662 {strides = array<i32>} : memref<2x64x128xbf16, #tpu.memory_space<vmem>>, vector<1x8x128xbf16>,
    %c8_i32_220 = arith.constant 8 : i32
    %c0_221 = arith.constant 0 : index
    %c0_222 = arith.constant 0 : index
    %c0_223 = arith.constant 0 : index
    %663 = vector.load %arg7[%c0_221, %c0_222, %c0_223] : memref<2x8x128xf32, #tpu.memory_space<vmem>>, vector<1x8x128xf32>
    %664 = vector.shape_cast %663 : vector<1x8x128xf32> to vector<8x128xf32>
    %665 = vector.shape_cast %625 : vector<8x128xf32> to vector<1x8x128xf32>
    tpu.vector_store %arg7[%c0_221, %c0_222, %c0_223], %665 {strides = array<i32>} : memref<2x8x128xf32, #tpu.memory_space<vmem>>, vector<1x8x128xf32>,
    %c1_224 = arith.constant 1 : index
    %c0_225 = arith.constant 0 : index
    %c0_226 = arith.constant 0 : index
    %666 = vector.load %arg7[%c1_224, %c0_225, %c0_226] : memref<2x8x128xf32, #tpu.memory_space<vmem>>, vector<1x8x128xf32>
    %667 = vector.shape_cast %666 : vector<1x8x128xf32> to vector<8x128xf32>
    %668 = vector.shape_cast %652 : vector<8x128xf32> to vector<1x8x128xf32>
    tpu.vector_store %arg7[%c1_224, %c0_225, %c0_226], %668 {strides = array<i32>} : memref<2x8x128xf32, #tpu.memory_space<vmem>>, vector<1x8x128xf32>,
    return
  }
  func.func @transform_0(%arg0: i32) -> (i32, i32, i32) {
    %c0_i32 = arith.constant 0 : i32
    %c0_i32_0 = arith.constant 0 : i32
    %c0_i32_1 = arith.constant 0 : i32
    return %c0_i32, %arg0, %c0_i32_0 : i32, i32, i32
  }
  func.func @transform_1(%arg0: i32) -> (i32, i32, i32) {
    %c0_i32 = arith.constant 0 : i32
    %c0_i32_0 = arith.constant 0 : i32
    %c0_i32_1 = arith.constant 0 : i32
    %c0_i32_2 = arith.constant 0 : i32
    return %c0_i32, %c0_i32_0, %c0_i32_1 : i32, i32, i32
  }
  func.func @transform_2(%arg0: i32) -> (i32, i32, i32) {
    %c0_i32 = arith.constant 0 : i32
    %c0_i32_0 = arith.constant 0 : i32
    %c0_i32_1 = arith.constant 0 : i32
    %c0_i32_2 = arith.constant 0 : i32
    return %c0_i32, %c0_i32_0, %c0_i32_1 : i32, i32, i32
  }
  func.func @transform_3(%arg0: i32) -> (i32, i32, i32) {
    %c0_i32 = arith.constant 0 : i32
    %c0_i32_0 = arith.constant 0 : i32
    %c0_i32_1 = arith.constant 0 : i32
    %c0_i32_2 = arith.constant 0 : i32
    return %c0_i32, %c0_i32_0, %c0_i32_1 : i32, i32, i32
  }
  func.func @transform_4(%arg0: i32) -> (i32, i32, i32) {
    %c0_i32 = arith.constant 0 : i32
    %c0_i32_0 = arith.constant 0 : i32
    %c0_i32_1 = arith.constant 0 : i32
    %c0_i32_2 = arith.constant 0 : i32
    return %c0_i32, %c0_i32_0, %c0_i32_1 : i32, i32, i32
  }
  func.func @transform_5(%arg0: i32) -> (i32, i32, i32) {
    %c0_i32 = arith.constant 0 : i32
    %c0_i32_0 = arith.constant 0 : i32
    %c0_i32_1 = arith.constant 0 : i32
    return %c0_i32, %arg0, %c0_i32_0 : i32, i32, i32
  }
  func.func @transform_6(%arg0: i32) -> (i32, i32, i32) {
    %c0_i32 = arith.constant 0 : i32
    %c0_i32_0 = arith.constant 0 : i32
    %c0_i32_1 = arith.constant 0 : i32
    %c0_i32_2 = arith.constant 0 : i32
    return %c0_i32, %c0_i32_0, %c0_i32_1 : i32, i32, i32
  }
}

</mosaic_0001>

<bundles_post_ra>
// kernel: bidirectional_gru_encoder.2
= control target key start
LH: loop header
LB: loop body
LE: loop exit
PB: predicated region body
PF: predicated region fallthrough
CT: control target
= control target key end

     0   :  { %12 = vsyncpa [#allocation4], 0  ;;  %s6470_s0 = inlined_call_operand.vmem [shape: bf16[2,64,128], index: 0, kind: input, shape index: {}]   ;;  %s6471_s1 = inlined_call_operand.vmem [shape: bf16[2,128,384], index: 1, kind: input, shape index: {}]   ;;  %s6472_s2 = inlined_call_operand.hbm [shape: f32[2,128,384], index: 2, kind: input, shape index: {}]   ;;  %s6473_s3 = inlined_call_operand.hbm [shape: f32[2,1,384], index: 3, kind: input, shape index: {}]   ;;  %s6474_s4 = inlined_call_operand.hbm [shape: f32[2,1,128], index: 4, kind: input, shape index: {}]   ;;  %s6475_s5 = inlined_call_operand.vmem [shape: bf16[2,64,128], index: 5, kind: output, shape index: {0}]   ;;  %s6476_s6 = inlined_call_operand.vmem [shape: f32[2,8,128], index: 6, kind: output, shape index: {1}]  }
   0x1   :  { %13 = vsyncpa [#allocation6], 0  ;;  %s35_s23 = sshll.u32 %s6473_s3, 4  ;;  %s4027_s24 = smov [#allocation5]   ;;  %s36_s23 = int_to_ptr.hbm [resolvable:$true] %s35_s23 }
   0x2   :  { %s37_s25 = sshll.u32 %s4027_s24, 4  ;;  %s22_s28 = sshll.u32 %s6472_s2, 4  ;;  %s38_s25 = int_to_ptr.vmem [resolvable:$true] %s37_s25  ;;  %s23_s28 = int_to_ptr.hbm [resolvable:$true] %s22_s28 }
   0x3   :  { %s4028_s29 = smov 48   ;;  %s4029_s30 = smov 3  }
   0x4   :  { %43 = dma.hbm_to_vmem [thread:$0]  %s36_s23, 96, %s38_s25, [#allocation6], %s4028_s29, %s4028_s29, %s4029_s30  }
   0x5   :  { %s4030_s7 = smov [#allocation3]   ;;  %s4031_s9 = smov 384  }
   0x6   :  { %s24_s8 = sshll.u32 %s4030_s7, 4  ;;  %s4032_s10 = smov 24   ;;  %s25_s8 = int_to_ptr.vmem [resolvable:$true] %s24_s8 }
   0x7   :  { %30 = dma.hbm_to_vmem [thread:$0]  %s23_s28, 12288, %s25_s8, [#allocation4], %s4031_s9, %s4031_s9, %s4032_s10  }
   0x8   :  { %s48_s12 = sshll.u32 %s6474_s4, 4  ;;  %s4033_s13 = smov [#allocation7]   ;;  %s49_s12 = int_to_ptr.hbm [resolvable:$true] %s48_s12 }
   0x9   :  { %s50_s14 = sshll.u32 %s4033_s13, 4  ;;  %s4034_s15 = smov 16   ;;  %s51_s14 = int_to_ptr.vmem [resolvable:$true] %s50_s14 }
   0xa   :  { %s4035_s2 = smov 1  }
   0xb   :  { %56 = dma.hbm_to_vmem [thread:$0]  %s49_s12, 32, %s51_s14, [#allocation6], %s4034_s15, %s4034_s15, %s4035_s2  }
   0xc   :  { %4023 = dma.done.wait [#allocation4], 12288  }
   0xd   :  { %4024 = vsyncadd [#allocation4], 4294955008 }
   0xe   :  { %4025 = dma.done.wait [#allocation6], 128  }
   0xf   :  { %4026 = vsyncadd [#allocation6], 4294967168  ;;  %v3506_v0 = vld [vmem:[%s6471_s1 + $0xa8] sm:$0xf]  ;;  %v3743_v1 = vld [vmem:[%s6471_s1 + $0xb0] sm:$0xf0] }
  0x10   :  { %v3742_v2 = vld [vmem:[%s6471_s1 + $0xac] sm:$0xf]  ;;  %v3507_v3 = vor.u32 %v3743_v1, %v3506_v0  ;;  %v3508_v4 = vld [vmem:[%s6471_s1 + $0xb4] sm:$0xf0]  ;;  %v3514_v5 = vld [vmem:[%s6471_s1 + $0xb0] sm:$0xf] }
  0x11   :  { %v3744_v6 = vld [vmem:[%s6471_s1 + $0xb8] sm:$0xf0]  ;;  %v3511_v7 = vor.u32 %v3742_v2, %v3508_v4  ;;  %v3658_v9 = vld [vmem:[%s6471_s1 + $0x168] sm:$0xf]  ;;  %v3771_v10 = vld [vmem:[%s6471_s1 + $0x170] sm:$0xf0] }
  0x12   :  { %v3515_v8 = vor.u32 %v3744_v6, %v3514_v5  ;;  %v3494_v11 = vld [vmem:[%s6471_s1 + $0x90] sm:$0xf]  ;;  %275 = vmatpush.bf16.msra.mxu0 %v3507_v3  ;;  %v3659_v12 = vor.u32 %v3771_v10, %v3658_v9  ;;  %v3740_v13 = vld [vmem:[%s6471_s1 + $0x98] sm:$0xf0]  ;;  %v3739_v14 = vld [vmem:[%s6471_s1 + $0x94] sm:$0xf] }
  0x13   :  { %v3496_v15 = vld [vmem:[%s6471_s1 + $0x9c] sm:$0xf0]  ;;  %304 = vmatpush.bf16.msra.mxu1 %v3511_v7  ;;  %v3495_v16 = vor.u32 %v3740_v13, %v3494_v11  ;;  %v3502_v18 = vld [vmem:[%s6471_s1 + $0x98] sm:$0xf]  ;;  %v3741_v19 = vld [vmem:[%s6471_s1 + $0xa0] sm:$0xf0] }
  0x14   :  { %333 = vmatpush.bf16.msra.mxu2 %v3515_v8  ;;  %v3499_v17 = vor.u32 %v3739_v14, %v3496_v15  ;;  %v3646_v20 = vld [vmem:[%s6471_s1 + $0x150] sm:$0xf]  ;;  %589 = vmatpush.bf16.msra.mxu3 %v3659_v12  ;;  %v3503_v21 = vor.u32 %v3741_v19, %v3502_v18  ;;  %v3768_v22 = vld [vmem:[%s6471_s1 + $0x158] sm:$0xf0]  ;;  %v3482_v23 = vld [vmem:[%s6471_s1 + $0x78] sm:$0xf] }
  0x15   :  { %v3737_v24 = vld [vmem:[%s6471_s1 + $0x80] sm:$0xf0]  ;;  %v3647_v25 = vor.u32 %v3768_v22, %v3646_v20  ;;  %v3736_v26 = vld [vmem:[%s6471_s1 + $0x7c] sm:$0xf]  ;;  %v3484_v27 = vld [vmem:[%s6471_s1 + $0x84] sm:$0xf0] }
  0x16   :  { %v3490_v28 = vld [vmem:[%s6471_s1 + $0x80] sm:$0xf]  ;;  %276 = vmatpush.bf16.msra.mxu0 %v3495_v16  ;;  %v3483_v29 = vor.u32 %v3737_v24, %v3482_v23  ;;  %v3738_v30 = vld [vmem:[%s6471_s1 + $0x88] sm:$0xf0]  ;;  %v3634_v31 = vld [vmem:[%s6471_s1 + $0x138] sm:$0xf]  ;;  %v3487_v33 = vor.u32 %v3736_v26, %v3484_v27 }
  0x17   :  { %v3765_v32 = vld [vmem:[%s6471_s1 + $0x140] sm:$0xf0]  ;;  %305 = vmatpush.bf16.msra.mxu1 %v3499_v17  ;;  %v3491_v34 = vor.u32 %v3738_v30, %v3490_v28  ;;  %v3470_v35 = vld [vmem:[%s6471_s1 + $0x60] sm:$0xf]  ;;  %v3734_v36 = vld [vmem:[%s6471_s1 + $0x68] sm:$0xf0] }
  0x18   :  { %334 = vmatpush.bf16.msra.mxu2 %v3503_v21  ;;  %v3733_v37 = vld [vmem:[%s6471_s1 + $0x64] sm:$0xf]  ;;  %590 = vmatpush.bf16.msra.mxu3 %v3647_v25  ;;  %v3635_v38 = vor.u32 %v3765_v32, %v3634_v31  ;;  %v3472_v39 = vld [vmem:[%s6471_s1 + $0x6c] sm:$0xf0]  ;;  %v3478_v40 = vld [vmem:[%s6471_s1 + $0x68] sm:$0xf]  ;;  %v3471_v44 = vor.u32 %v3734_v36, %v3470_v35 }
  0x19   :  { %v3735_v41 = vld [vmem:[%s6471_s1 + $0x70] sm:$0xf0]  ;;  %v3622_v42 = vld [vmem:[%s6471_s1 + $0x120] sm:$0xf]  ;;  %v3762_v43 = vld [vmem:[%s6471_s1 + $0x128] sm:$0xf0]  ;;  %v3475_v45 = vor.u32 %v3733_v37, %v3472_v39 }
  0x1a   :  { %277 = vmatpush.bf16.msra.mxu0 %v3483_v29  ;;  %v3479_v46 = vor.u32 %v3735_v41, %v3478_v40  ;;  %v3458_v47 = vld [vmem:[%s6471_s1 + $0x48] sm:$0xf]  ;;  %v3731_v48 = vld [vmem:[%s6471_s1 + $0x50] sm:$0xf0]  ;;  %v3730_v49 = vld [vmem:[%s6471_s1 + $0x4c] sm:$0xf]  ;;  %v3623_v50 = vor.u32 %v3762_v43, %v3622_v42 }
  0x1b   :  { %306 = vmatpush.bf16.msra.mxu1 %v3487_v33  ;;  %v3460_v51 = vld [vmem:[%s6471_s1 + $0x54] sm:$0xf0]  ;;  %v3466_v52 = vld [vmem:[%s6471_s1 + $0x50] sm:$0xf]  ;;  %v3732_v53 = vld [vmem:[%s6471_s1 + $0x58] sm:$0xf0]  ;;  %v3459_v56 = vor.u32 %v3731_v48, %v3458_v47 }
  0x1c   :  { %335 = vmatpush.bf16.msra.mxu2 %v3491_v34  ;;  %591 = vmatpush.bf16.msra.mxu3 %v3635_v38  ;;  %v3610_v54 = vld [vmem:[%s6471_s1 + $0x108] sm:$0xf]  ;;  %v3759_v55 = vld [vmem:[%s6471_s1 + $0x110] sm:$0xf0]  ;;  %v3463_v57 = vor.u32 %v3730_v49, %v3460_v51  ;;  %v3467_v58 = vor.u32 %v3732_v53, %v3466_v52  ;;  %v3446_v59 = vld [vmem:[%s6471_s1 + $0x30] sm:$0xf] }
  0x1d   :  { %v3728_v60 = vld [vmem:[%s6471_s1 + $0x38] sm:$0xf0]  ;;  %v3727_v61 = vld [vmem:[%s6471_s1 + $0x34] sm:$0xf]  ;;  %v3611_v62 = vor.u32 %v3759_v55, %v3610_v54  ;;  %v3448_v63 = vld [vmem:[%s6471_s1 + $0x3c] sm:$0xf0] }
  0x1e   :  { %278 = vmatpush.bf16.msra.mxu0 %v3471_v44  ;;  %v3454_v0 = vld [vmem:[%s6471_s1 + $0x38] sm:$0xf]  ;;  %v3729_v1 = vld [vmem:[%s6471_s1 + $0x40] sm:$0xf0]  ;;  %v3598_v2 = vld [vmem:[%s6471_s1 + $0xf0] sm:$0xf]  ;;  %v3447_v4 = vor.u32 %v3728_v60, %v3446_v59  ;;  %v3451_v5 = vor.u32 %v3727_v61, %v3448_v63 }
  0x1f   :  { %307 = vmatpush.bf16.msra.mxu1 %v3475_v45  ;;  %v3756_v3 = vld [vmem:[%s6471_s1 + $0xf8] sm:$0xf0]  ;;  %v3455_v6 = vor.u32 %v3729_v1, %v3454_v0  ;;  %v3434_v7 = vld [vmem:[%s6471_s1 + $0x18] sm:$0xf]  ;;  %v3725_v8 = vld [vmem:[%s6471_s1 + $0x20] sm:$0xf0] }
  0x20   :  { %336 = vmatpush.bf16.msra.mxu2 %v3479_v46  ;;  %592 = vmatpush.bf16.msra.mxu3 %v3623_v50  ;;  %v3724_v9 = vld [vmem:[%s6471_s1 + $0x1c] sm:$0xf]  ;;  %v3599_v10 = vor.u32 %v3756_v3, %v3598_v2  ;;  %v3436_v11 = vld [vmem:[%s6471_s1 + $0x24] sm:$0xf0]  ;;  %v3442_v12 = vld [vmem:[%s6471_s1 + $0x20] sm:$0xf]  ;;  %v3435_v16 = vor.u32 %v3725_v8, %v3434_v7 }
  0x21   :  { %v3726_v13 = vld [vmem:[%s6471_s1 + $0x28] sm:$0xf0]  ;;  %v3586_v14 = vld [vmem:[%s6471_s1 + $0xd8] sm:$0xf]  ;;  %v3753_v15 = vld [vmem:[%s6471_s1 + $0xe0] sm:$0xf0]  ;;  %v3439_v18 = vor.u32 %v3724_v9, %v3436_v11 }
  0x22   :  { %279 = vmatpush.bf16.msra.mxu0 %v3459_v56  ;;  %v3422_v17 = vld [vmem:[%s6471_s1] sm:$0xf]  ;;  %v3443_v19 = vor.u32 %v3726_v13, %v3442_v12  ;;  %v3722_v20 = vld [vmem:[%s6471_s1 + $0x8] sm:$0xf0]  ;;  %v3721_v21 = vld [vmem:[%s6471_s1 + $0x4] sm:$0xf]  ;;  %v3587_v23 = vor.u32 %v3753_v15, %v3586_v14 }
  0x23   :  { %308 = vmatpush.bf16.msra.mxu1 %v3463_v57  ;;  %v3424_v22 = vld [vmem:[%s6471_s1 + $0xc] sm:$0xf0]  ;;  %v3430_v24 = vld [vmem:[%s6471_s1 + $0x8] sm:$0xf]  ;;  %v3723_v25 = vld [vmem:[%s6471_s1 + $0x10] sm:$0xf0]  ;;  %v3423_v30 = vor.u32 %v3722_v20, %v3422_v17 }
  0x24   :  { %337 = vmatpush.bf16.msra.mxu2 %v3467_v58  ;;  %593 = vmatpush.bf16.msra.mxu3 %v3611_v62  ;;  %v3574_v26 = vld [vmem:[%s6471_s1 + $0xc0] sm:$0xf]  ;;  %v3750_v27 = vld [vmem:[%s6471_s1 + $0xc8] sm:$0xf0]  ;;  %v3660_v29 = vld [vmem:[%s6471_s1 + $0x174] sm:$0xf0]  ;;  %v3427_v31 = vor.u32 %v3721_v21, %v3424_v22  ;;  %v3431_v32 = vor.u32 %v3723_v25, %v3430_v24 }
  0x25   :  { %v3770_v28 = vld [vmem:[%s6471_s1 + $0x16c] sm:$0xf]  ;;  %v3575_v33 = vor.u32 %v3750_v27, %v3574_v26  ;;  %v3666_v35 = vld [vmem:[%s6471_s1 + $0x170] sm:$0xf]  ;;  %v3772_v36 = vld [vmem:[%s6471_s1 + $0x178] sm:$0xf0] }
  0x26   :  { %280 = vmatpush.bf16.msra.mxu0 %v3447_v4  ;;  %v3663_v34 = vor.u32 %v3770_v28, %v3660_v29  ;;  %v3717_v37 = vld [vmem:[%s6470_s0] sm:$0xff]  ;;  %v3767_v38 = vld [vmem:[%s6471_s1 + $0x154] sm:$0xf]  ;;  %v3667_v42 = vor.u32 %v3772_v36, %v3666_v35  ;;  %v3654_v44 = vld [vmem:[%s6471_s1 + $0x158] sm:$0xf] }
  0x27   :  { %309 = vmatpush.bf16.msra.mxu1 %v3451_v5  ;;  %v3648_v39 = vld [vmem:[%s6471_s1 + $0x15c] sm:$0xf0]  ;;  %v4294_v40 = vld [vmem:[#allocation3 + $0x170] sm:$0xff]  ;;  %v3769_v45 = vld [vmem:[%s6471_s1 + $0x160] sm:$0xf0] }
  0x28   :  { %338 = vmatpush.bf16.msra.mxu2 %v3455_v6  ;;  %594 = vmatpush.bf16.msra.mxu3 %v3599_v10  ;;  %v4299_v41 = vld [vmem:[%s6470_s0 + $0x20] sm:$0xff]  ;;  %v3651_v43 = vor.u32 %v3767_v38, %v3648_v39  ;;  %v4308_v46 = vld [vmem:[#allocation3 + $0x158] sm:$0xff]  ;;  %v3636_v48 = vld [vmem:[%s6471_s1 + $0x144] sm:$0xf0]  ;;  %v3655_v51 = vor.u32 %v3769_v45, %v3654_v44 }
  0x29   :  { %v3764_v47 = vld [vmem:[%s6471_s1 + $0x13c] sm:$0xf]  ;;  %v4316_v49 = vld [vmem:[#allocation3 + $0x168] sm:$0xff]  ;;  %v4319_v50 = vld [vmem:[#allocation3 + $0x140] sm:$0xff] }
  0x2a   :  { %281 = vmatpush.bf16.msra.mxu0 %v3435_v16  ;;  %v3639_v52 = vor.u32 %v3764_v47, %v3636_v48  ;;  %v4322_v53 = vld [vmem:[#allocation3 + $0x150] sm:$0xff]  ;;  %v3642_v54 = vld [vmem:[%s6471_s1 + $0x140] sm:$0xf]  ;;  %v3766_v55 = vld [vmem:[%s6471_s1 + $0x148] sm:$0xf0] }
  0x2b   :  { %310 = vmatpush.bf16.msra.mxu1 %v3439_v18  ;;  %v4330_v56 = vld [vmem:[#allocation3 + $0x128] sm:$0xff]  ;;  %v3761_v57 = vld [vmem:[%s6471_s1 + $0x124] sm:$0xf]  ;;  %v3624_v58 = vld [vmem:[%s6471_s1 + $0x12c] sm:$0xf0]  ;;  %v3643_v61 = vor.u32 %v3766_v55, %v3642_v54 }
  0x2c   :  { %339 = vmatpush.bf16.msra.mxu2 %v3443_v19  ;;  %595 = vmatpush.bf16.msra.mxu3 %v3587_v23  ;;  %v4340_v59 = vld [vmem:[#allocation3 + $0x138] sm:$0xff]  ;;  %v4342_v60 = vld [vmem:[#allocation3 + $0x110] sm:$0xff]  ;;  %v3627_v62 = vor.u32 %v3761_v57, %v3624_v58  ;;  %v4346_v63 = vld [vmem:[#allocation3 + $0x120] sm:$0xff] }
  0x2d   :  { %v3630_v0 = vld [vmem:[%s6471_s1 + $0x128] sm:$0xf]  ;;  %v3763_v1 = vld [vmem:[%s6471_s1 + $0x130] sm:$0xf0]  ;;  %v4354_v2 = vld [vmem:[#allocation3 + $0xf8] sm:$0xff] }
  0x2e   :  { %282 = vmatpush.bf16.msra.mxu0 %v3423_v30  ;;  %v3758_v3 = vld [vmem:[%s6471_s1 + $0x10c] sm:$0xf]  ;;  %v3612_v4 = vld [vmem:[%s6471_s1 + $0x114] sm:$0xf0]  ;;  %v4366_v6 = vld [vmem:[#allocation3 + $0xe0] sm:$0xff]  ;;  %v3631_v7 = vor.u32 %v3763_v1, %v3630_v0 }
  0x2f   :  { %311 = vmatpush.bf16.msra.mxu1 %v3427_v31  ;;  %v4364_v5 = vld [vmem:[#allocation3 + $0x108] sm:$0xff]  ;;  %v3615_v9 = vor.u32 %v3758_v3, %v3612_v4  ;;  %v4373_v10 = vld [vmem:[#allocation3 + $0xf0] sm:$0xff]  ;;  %v3600_v13 = vld [vmem:[%s6471_s1 + $0xfc] sm:$0xf0] }
  0x30   :  { %340 = vmatpush.bf16.msra.mxu2 %v3431_v32  ;;  %596 = vmatpush.bf16.msra.mxu3 %v3575_v33  ;;  %v3718_v8 = vld [vmem:[%s6470_s0 + $0x8] sm:$0xff]  ;;  %v3755_v12 = vld [vmem:[%s6471_s1 + $0xf4] sm:$0xf]  ;;  %v4385_v14 = vld [vmem:[#allocation3 + $0xd8] sm:$0xff] }
  0x31   :  { %283 = vmatmul.bf16.vlgmr.msra.gmra.mxu0 %v3717_v37  ;;  %v4375_v11 = vld [vmem:[#allocation3 + $0xc8] sm:$0xff]  ;;  %v3603_v16 = vor.u32 %v3755_v12, %v3600_v13  ;;  %v4394_v17 = vld [vmem:[#allocation3 + $0xc0] sm:$0xff]  ;;  %v4396_v18 = vld [vmem:[#allocation3 + $0xb0] sm:$0xff] }
  0x32   :  { %618 = vmatpush.bf16.msrb.mxu0 %v3663_v34  ;;  %312 = vmatmul.bf16.vlgmr.msra.gmra.mxu1 %v3717_v37  ;;  %v4390_v15 = vld [vmem:[%s6470_s0 + $0x28] sm:$0xff]  ;;  %v3618_v19 = vld [vmem:[%s6471_s1 + $0x110] sm:$0xf]  ;;  %v3760_v20 = vld [vmem:[%s6471_s1 + $0x118] sm:$0xf0] }
  0x33   :  { %341 = vmatmul.bf16.vlgmr.msra.gmra.mxu2 %v3717_v37  ;;  %597 = vmatmul.bf16.vlgmr.msra.gmra.mxu3 %v4299_v41  ;;  %v4405_v21 = vld [vmem:[#allocation3 + $0xa8] sm:$0xff]  ;;  %v3619_v22 = vor.u32 %v3760_v20, %v3618_v19  ;;  %v4408_v23 = vld [vmem:[#allocation3 + $0x98] sm:$0xff]  ;;  %v4418_v27 = vld [vmem:[#allocation3 + $0x90] sm:$0xff] }
  0x34   :  { %793 = vmatpush.msrb.mxu3 %v4294_v40  ;;  %647 = vmatpush.bf16.msrb.mxu1 %v3667_v42  ;;  %v3752_v24 = vld [vmem:[%s6471_s1 + $0xdc] sm:$0xf]  ;;  %v3588_v25 = vld [vmem:[%s6471_s1 + $0xe4] sm:$0xf0]  ;;  %v4420_v28 = vld [vmem:[#allocation3 + $0x80] sm:$0xff] }
  0x35   :  { %773 = vmatpush.msrb.mxu2 %v4316_v49  ;;  %v3591_v26 = vor.u32 %v3752_v24, %v3588_v25  ;;  %v3606_v29 = vld [vmem:[%s6471_s1 + $0xf8] sm:$0xf]  ;;  %v3757_v30 = vld [vmem:[%s6471_s1 + $0x100] sm:$0xf0]  ;;  %v4435_v34 = vld [vmem:[#allocation3 + $0x68] sm:$0xff] }
  0x36   :  { %619 = vmatpush.bf16.msrb.mxu0 %v3651_v43  ;;  %794 = vmatpush.msrb.mxu3 %v4308_v46  ;;  %v4430_v31 = vld [vmem:[#allocation3 + $0x78] sm:$0xff]  ;;  %v3607_v32 = vor.u32 %v3757_v30, %v3606_v29  ;;  %v3749_v33 = vld [vmem:[%s6471_s1 + $0xc4] sm:$0xf]  ;;  %v3576_v35 = vld [vmem:[%s6471_s1 + $0xcc] sm:$0xf0] }
  0x37   :  { %774 = vmatpush.msrb.mxu2 %v4322_v53  ;;  %v3594_v36 = vld [vmem:[%s6471_s1 + $0xe0] sm:$0xf]  ;;  %v3579_v38 = vor.u32 %v3749_v33, %v3576_v35  ;;  %v3754_v39 = vld [vmem:[%s6471_s1 + $0xe8] sm:$0xf0]  ;;  %v4450_v42 = vld [vmem:[#allocation3 + $0x50] sm:$0xff] }
  0x38   :  { %795 = vmatpush.msrb.mxu3 %v4319_v50  ;;  %648 = vmatpush.bf16.msrb.mxu1 %v3655_v51  ;;  %v4445_v37 = vld [vmem:[#allocation3 + $0x60] sm:$0xff]  ;;  %v3595_v43 = vor.u32 %v3754_v39, %v3594_v36  ;;  %v4454_v44 = vld [vmem:[#allocation3 + $0x48] sm:$0xff]  ;;  %v4456_v45 = vld [vmem:[#allocation3 + $0x38] sm:$0xff] }
  0x39   :  { %775 = vmatpush.msrb.mxu2 %v4340_v59  ;;  %v3719_v47 = vld [vmem:[%s6470_s0 + $0x10] sm:$0xff]  ;;  %v4465_v51 = vld [vmem:[#allocation3 + $0x20] sm:$0xff]  ;;  %v4475_v55 = vld [vmem:[#allocation3 + $0x18] sm:$0xff] }
  0x3a   :  { %620 = vmatpush.bf16.msrb.mxu0 %v3639_v52  ;;  %796 = vmatpush.msrb.mxu3 %v4330_v56  ;;  %v4463_v48 = vld [vmem:[#allocation3 + $0x30] sm:$0xff]  ;;  %v3582_v52 = vld [vmem:[%s6471_s1 + $0xc8] sm:$0xf]  ;;  %v4484_v58 = vld [vmem:[#allocation3] sm:$0xff] }
  0x3b   :  { %776 = vmatpush.msrb.mxu2 %v4346_v63  ;;  %v3751_v54 = vld [vmem:[%s6471_s1 + $0xd0] sm:$0xf0]  ;;  %v4489_v0 = vld [vmem:[#allocation3 + $0x2e8] sm:$0xff]  ;;  %v4491_v1 = vld [vmem:[#allocation3 + $0x178] sm:$0xff] }
  0x3c   :  { %797 = vmatpush.msrb.mxu3 %v4342_v60  ;;  %649 = vmatpush.bf16.msrb.mxu1 %v3643_v61  ;;  %v4480_v57 = vld [vmem:[%s6470_s0 + $0x30] sm:$0xff]  ;;  %v3583_v61 = vor.u32 %v3751_v54, %v3582_v52  ;;  %v4509_v12 = vld [vmem:[#allocation3 + $0x148] sm:$0xff]  ;;  %v4513_v13 = vld [vmem:[#allocation3 + $0x2a0] sm:$0xff] }
  0x3d   :  { %777 = vmatpush.msrb.mxu2 %v4364_v5  ;;  %v4495_v3 = vld [vmem:[#allocation3 + $0x2f0] sm:$0xff]  ;;  %v4520_v19 = vld [vmem:[#allocation3 + $0x288] sm:$0xff]  ;;  %v4522_v20 = vld [vmem:[#allocation3 + $0x118] sm:$0xff] }
  0x3e   :  { %798 = vmatpush.msrb.mxu3 %v4354_v2  ;;  %621 = vmatpush.bf16.msrb.mxu0 %v3627_v62  ;;  %v4486_v62 = vld [vmem:[#allocation3 + $0x8] sm:$0xff]  ;;  %v4498_v4 = vld [vmem:[#allocation3 + $0x2d0] sm:$0xff]  ;;  %6570 = vst [vmem:[#allocation10_spill] sm:$0xff] %v4520_v19  ;;  %v4530_v25 = vld [vmem:[#allocation3 + $0x100] sm:$0xff] }
  0x3f   :  { %778 = vmatpush.msrb.mxu2 %v4373_v10  ;;  %v4528_v24 = vld [vmem:[#allocation3 + $0x270] sm:$0xff]  ;;  %v3720_v29 = vld [vmem:[%s6470_s0 + $0x18] sm:$0xff]  ;;  %v4550_v33 = vld [vmem:[#allocation3 + $0xe8] sm:$0xff] }
  0x40   :  { %799 = vmatpush.msrb.mxu3 %v4366_v6  ;;  %650 = vmatpush.bf16.msrb.mxu1 %v3631_v7  ;;  %v4500_v7 = vld [vmem:[#allocation3 + $0x160] sm:$0xff]  ;;  %6571 = vst [vmem:[#allocation11_spill] sm:$0xff] %v4528_v24  ;;  %v4540_v30 = vld [vmem:[#allocation3 + $0x258] sm:$0xff]  ;;  %v4555_v36 = vld [vmem:[#allocation3 + $0xd0] sm:$0xff] }
  0x41   :  { %288 = vmatmul.bf16.gmra.mxu0 %v3718_v8  ;;  %779 = vmatpush.msrb.mxu2 %v4385_v14  ;;  %6573 = vst [vmem:[#allocation13_spill] sm:$0xff] %v4540_v30  ;;  %v4553_v35 = vld [vmem:[#allocation3 + $0x240] sm:$0xff]  ;;  %v4560_v39 = vld [vmem:[#allocation3 + $0x228] sm:$0xff]  ;;  %v4568_v52 = vld [vmem:[#allocation3 + $0xb8] sm:$0xff] }
  0x42   :  { %800 = vmatpush.msrb.mxu3 %v4375_v11  ;;  %622 = vmatpush.bf16.msrb.mxu0 %v3615_v9  ;;  %v4506_v9 = vld [vmem:[#allocation3 + $0x2b8] sm:$0xff]  ;;  %6575 = vst [vmem:[#allocation15_spill] sm:$0xff] %v4553_v35  ;;  %v4571_v54 = vld [vmem:[#allocation3 + $0x2e0] sm:$0xff] }
  0x43   :  { %317 = vmatmul.bf16.gmra.mxu1 %v3718_v8  ;;  %346 = vmatmul.bf16.gmra.mxu2 %v3718_v8  ;;  %v4504_v8 = vld [vmem:[#allocation3 + $0x2d8] sm:$0xff]  ;;  %6577 = vst [vmem:[#allocation17_spill] sm:$0xff] %v4560_v39 }
  0x44   :  { %602 = vmatmul.bf16.gmra.mxu3 %v4390_v15  ;;  %780 = vmatpush.msrb.mxu2 %v4394_v17 }
  0x45   :  { %801 = vmatpush.msrb.mxu3 %v4396_v18  ;;  %651 = vmatpush.bf16.msrb.mxu1 %v3619_v22  ;;  %v4526_v22 = vld [vmem:[#allocation3 + $0x2c0] sm:$0xff] }
  0x46   :  { %623 = vmatpush.bf16.msrb.mxu0 %v3603_v16  ;;  %781 = vmatpush.msrb.mxu2 %v4405_v21  ;;  %v4515_v16 = vld [vmem:[#allocation3 + $0x130] sm:$0xff] }
  0x47   :  { %802 = vmatpush.msrb.mxu3 %v4408_v23 }
  0x48   :  { %782 = vmatpush.msrb.mxu2 %v4418_v27 }
  0x49   :  { %803 = vmatpush.msrb.mxu3 %v4420_v28  ;;  %652 = vmatpush.bf16.msrb.mxu1 %v3607_v32  ;;  %v4546_v32 = vld [vmem:[%s6470_s0 + $0x38] sm:$0xff] }
  0x4a   :  { %624 = vmatpush.bf16.msrb.mxu0 %v3591_v26  ;;  %783 = vmatpush.msrb.mxu2 %v4430_v31  ;;  %v4533_v26 = vld [vmem:[#allocation3 + $0x2a8] sm:$0xff]  ;;  %6574 = vst [vmem:[#allocation14_spill] sm:$0xff] %v4546_v32 }
  0x4b   :  { %804 = vmatpush.msrb.mxu3 %v4435_v34  ;;  %6572 = vst [vmem:[#allocation12_spill] sm:$0xff] %v4533_v26 }
  0x4c   :  { %784 = vmatpush.msrb.mxu2 %v4445_v37 }
  0x4d   :  { %805 = vmatpush.msrb.mxu3 %v4450_v42  ;;  %653 = vmatpush.bf16.msrb.mxu1 %v3595_v43  ;;  %v4563_v43 = vld [vmem:[#allocation3 + $0x2f8] sm:$0xff] }
  0x4e   :  { %625 = vmatpush.bf16.msrb.mxu0 %v3579_v38  ;;  %785 = vmatpush.msrb.mxu2 %v4454_v44  ;;  %v4557_v38 = vld [vmem:[#allocation3 + $0x290] sm:$0xff] }
  0x4f   :  { %806 = vmatpush.msrb.mxu3 %v4456_v45  ;;  %6576 = vst [vmem:[#allocation16_spill] sm:$0xff] %v4557_v38 }
  0x50   :  { %786 = vmatpush.msrb.mxu2 %v4463_v48 }
  0x51   :  { %807 = vmatpush.msrb.mxu3 %v4465_v51  ;;  %293 = vmatmul.bf16.gmra.mxu0 %v3719_v47 }
  0x52   :  { %787 = vmatpush.msrb.mxu2 %v4475_v55  ;;  %654 = vmatpush.bf16.msrb.mxu1 %v3583_v61  ;;  %v4573_v61 = vld [vmem:[#allocation3 + $0x210] sm:$0xff] }
  0x53   :  { %322 = vmatmul.bf16.gmra.mxu1 %v3719_v47  ;;  %351 = vmatmul.bf16.gmra.mxu2 %v3719_v47  ;;  %v4565_v47 = vld [vmem:[#allocation3 + $0x278] sm:$0xff]  ;;  %6579 = vst [vmem:[#allocation19_spill] sm:$0xff] %v4573_v61 }
  0x54   :  { %607 = vmatmul.bf16.gmra.mxu3 %v4480_v57  ;;  %788 = vmatpush.msrb.mxu2 %v4484_v58  ;;  %6578 = vst [vmem:[#allocation18_spill] sm:$0xff] %v4565_v47 }
  0x55   :  { %808 = vmatpush.msrb.mxu3 %v4486_v62  ;;  %902 = vmatpush.msra.mxu0 %v4495_v3 }
  0x56   :  { %813 = vmatpush.msra.mxu2 %v4491_v1  ;;  %922 = vmatpush.msra.mxu1 %v4563_v43 }
  0x57   :  { %882 = vmatpush.msra.mxu3 %v4489_v0  ;;  %903 = vmatpush.msra.mxu0 %v4504_v8 }
  0x58   :  { %814 = vmatpush.msra.mxu2 %v4500_v7  ;;  %923 = vmatpush.msra.mxu1 %v4571_v54 }
  0x59   :  { %883 = vmatpush.msra.mxu3 %v4498_v4  ;;  %904 = vmatpush.msra.mxu0 %v4526_v22 }
  0x5a   :  { %815 = vmatpush.msra.mxu2 %v4509_v12 }
  0x5b   :  { %884 = vmatpush.msra.mxu3 %v4506_v9  ;;  %905 = vmatpush.msra.mxu0 %v4533_v26  ;;  %v4592_v26 = vld [vmem:[#allocation3 + $0x88] sm:$0xff] }
  0x5c   :  { %816 = vmatpush.msra.mxu2 %v4515_v16 }
  0x5d   :  { %885 = vmatpush.msra.mxu3 %v4513_v13  ;;  %906 = vmatpush.msra.mxu0 %v4557_v38  ;;  %v4589_v38 = vld [vmem:[#allocation3 + $0x248] sm:$0xff] }
  0x5e   :  { %817 = vmatpush.msra.mxu2 %v4522_v20  ;;  %6583 = vst [vmem:[#allocation23_spill] sm:$0xff] %v4589_v38 }
  0x5f   :  { %886 = vmatpush.msra.mxu3 %v4520_v19  ;;  %907 = vmatpush.msra.mxu0 %v4565_v47  ;;  %v4602_v47 = vld [vmem:[#allocation3 + $0x70] sm:$0xff]  ;;  %v4605_v19 = vld [vmem:[#allocation3 + $0x1c8] sm:$0xff] }
  0x60   :  { %818 = vmatpush.msra.mxu2 %v4530_v25  ;;  %6586 = vst [vmem:[#allocation26_spill] sm:$0xff] %v4602_v47 }
  0x61   :  { %887 = vmatpush.msra.mxu3 %v4528_v24  ;;  %298 = vmatmul.bf16.gmra.mxu0 %v3720_v29  ;;  %v4585_v24 = vld [vmem:[#allocation3 + $0x1f8] sm:$0xff]  ;;  %6587 = vst [vmem:[#allocation27_spill] sm:$0xff] %v4605_v19 }
  0x62   :  { %819 = vmatpush.msra.mxu2 %v4550_v33  ;;  %6582 = vst [vmem:[#allocation22_spill] sm:$0xff] %v4585_v24 }
  0x63   :  { %888 = vmatpush.msra.mxu3 %v4540_v30  ;;  %327 = vmatmul.bf16.gmra.mxu1 %v3720_v29  ;;  %v4580_v30 = vld [vmem:[#allocation3 + $0xa0] sm:$0xff] }
  0x64   :  { %356 = vmatmul.bf16.gmra.mxu2 %v3720_v29  ;;  %612 = vmatmul.bf16.gmra.mxu3 %v4546_v32  ;;  %v4577_v29 = vld [vmem:[#allocation3 + $0x260] sm:$0xff] }
  0x65   :  { %889 = vmatpush.msra.mxu3 %v4553_v35  ;;  %820 = vmatpush.msra.mxu2 %v4555_v36  ;;  %6580 = vst [vmem:[#allocation20_spill] sm:$0xff] %v4577_v29  ;;  %v4583_v35 = vld [vmem:[#allocation3 + $0x2c8] sm:$0xff]  ;;  %v4597_v32 = vld [vmem:[#allocation3 + $0x1e0] sm:$0xff] }
  0x66   :  { %6581 = vst [vmem:[#allocation21_spill] sm:$0xff] %v4583_v35  ;;  %908 = vmatpush.msra.mxu0 %v4577_v29  ;;  %924 = vmatpush.msra.mxu1 %v4583_v35  ;;  %v4612_v29 = vld [vmem:[#allocation3 + $0x1b0] sm:$0xff] }
  0x67   :  { %890 = vmatpush.msra.mxu3 %v4560_v39  ;;  %821 = vmatpush.msra.mxu2 %v4568_v52  ;;  %v4595_v39 = vld [vmem:[#allocation3 + $0x2b0] sm:$0xff]  ;;  %6585 = vst [vmem:[#allocation25_spill] sm:$0xff] %v4597_v32 }
  0x68   :  { %6584 = vst [vmem:[#allocation24_spill] sm:$0xff] %v4595_v39  ;;  %909 = vmatpush.msra.mxu0 %v4589_v38  ;;  %925 = vmatpush.msra.mxu1 %v4595_v39  ;;  %v4620_v38 = vld [vmem:[#allocation3 + $0x28] sm:$0xff]  ;;  %v4623_v39 = vld [vmem:[#allocation3 + $0x198] sm:$0xff]  ;;  %v4630_v35 = vld [vmem:[#allocation3 + $0x230] sm:$0xff] }
  0x69   :  { %891 = vmatpush.msra.mxu3 %v4573_v61  ;;  %822 = vmatpush.msra.mxu2 %v4580_v30  ;;  %v4610_v61 = vld [vmem:[#allocation3 + $0x58] sm:$0xff]  ;;  %6589 = vst [vmem:[#allocation29_spill] sm:$0xff] %v4612_v29 }
  0x6a   :  { %6588 = vst [vmem:[#allocation28_spill] sm:$0xff] %v4610_v61  ;;  %910 = vmatpush.msra.mxu0 %v4630_v35 }
  0x6b   :  { %892 = vmatpush.msra.mxu3 %v4585_v24  ;;  %823 = vmatpush.msra.mxu2 %v4592_v26  ;;  %v4616_v24 = vld [vmem:[#allocation3 + $0x40] sm:$0xff]  ;;  %6591 = vst [vmem:[#allocation31_spill] sm:$0xff] %v4620_v38 }
  0x6c   :  { %6590 = vst [vmem:[#allocation30_spill] sm:$0xff] %v4616_v24 }
  0x6d   :  { %893 = vmatpush.msra.mxu3 %v4597_v32  ;;  %824 = vmatpush.msra.mxu2 %v4602_v47  ;;  %6592 = vst [vmem:[#allocation32_spill] sm:$0xff] %v4623_v39  ;;  %v6499_v32 = vmov 0.0   ;;  %v4638_v47 = vld [vmem:[#allocation3 + $0x218] sm:$0xff] }
  0x6e   :  { %911 = vmatpush.msra.mxu0 %v4638_v47 }
  0x6f   :  { %894 = vmatpush.msra.mxu3 %v4605_v19  ;;  %825 = vmatpush.msra.mxu2 %v4610_v61  ;;  %v4628_v19 = vld [vmem:[#allocation3 + $0x10] sm:$0xff]  ;;  %v4632_v61 = vld [vmem:[#allocation3 + $0x298] sm:$0xff] }
  0x70   :  { %926 = vmatpush.msra.mxu1 %v4632_v61 }
  0x71   :  { %895 = vmatpush.msra.mxu3 %v4612_v29  ;;  %626 = vmatmul.bf16.vlgmr.msrb.gmra.mxu0 %v4299_v41  ;;  %v4635_v29 = vld [vmem:[#allocation3 + $0x180] sm:$0xff] }
  0x72   :  { %826 = vmatpush.msra.mxu2 %v4616_v24  ;;  %6593 = vst [vmem:[#allocation33_spill] sm:$0xff] %v4635_v29  ;;  %v4646_v24 = vld [vmem:[#allocation3 + $0x200] sm:$0xff] }
  0x73   :  { %655 = vmatmul.bf16.vlgmr.msrb.gmra.mxu1 %v4299_v41  ;;  %896 = vmatpush.msra.mxu3 %v4623_v39  ;;  %v4642_v41 = vld [vmem:[#allocation3 + $0x280] sm:$0xff]  ;;  %v4657_v39 = vld [vmem:[#allocation3 + $0x250] sm:$0xff] }
  0x74   :  { %789 = vmatmul.f32.vlgmr.msrb.gmra.mxu2 %v6499_v32  ;;  %809 = vmatmul.f32.vlgmr.msrb.gmra.mxu3 %v6499_v32  ;;  %v4650_v32 = vld [vmem:[#allocation3 + $0x268] sm:$0xff] }
  0x75   :  { %827 = vmatpush.msra.mxu2 %v4620_v38  ;;  %897 = vmatpush.msra.mxu3 %v4635_v29  ;;  %v4653_v38 = vld [vmem:[#allocation3 + $0x1e8] sm:$0xff]  ;;  %v6594_v29 = vmov 0.0  }
  0x76   :  { %927 = vmatpush.msra.mxu1 %v4642_v41  ;;  %912 = vmatpush.msra.mxu0 %v4646_v24 }
  0x77   :  { %828 = vmatpush.msra.mxu2 %v4628_v19  ;;  %1125 = vmatpush.msrb.mxu3 %v4294_v40  ;;  %v4674_v40 = vld [vmem:[#allocation3 + $0x1d0] sm:$0xff] }
  0x78   :  { %928 = vmatpush.msra.mxu1 %v4650_v32  ;;  %913 = vmatpush.msra.mxu0 %v4653_v38 }
  0x79   :  { %1105 = vmatpush.msrb.mxu2 %v4316_v49  ;;  %1126 = vmatpush.msrb.mxu3 %v4308_v46  ;;  %v4676_v49 = vld [vmem:[#allocation3 + $0x238] sm:$0xff] }
  0x7a   :  { %929 = vmatpush.msra.mxu1 %v4657_v39  ;;  %914 = vmatpush.msra.mxu0 %v4674_v40  ;;  %v4683_v46 = vld [vmem:[#allocation3 + $0x1b8] sm:$0xff] }
  0x7b   :  { %1106 = vmatpush.msrb.mxu2 %v4322_v53  ;;  %1127 = vmatpush.msrb.mxu3 %v4319_v50  ;;  %v4678_v53 = vld [vmem:[#allocation3 + $0x220] sm:$0xff]  ;;  %v4685_v50 = vld [vmem:[#allocation3 + $0x208] sm:$0xff] }
  0x7c   :  { %829 = vmatmul.f32.vlgmr.msra.gmra.mxu2 %v6594_v29  ;;  %898 = vmatmul.f32.vlgmr.msra.gmra.mxu3 %v6594_v29 }
  0x7d   :  { %1107 = vmatpush.msrb.mxu2 %v4340_v59  ;;  %1128 = vmatpush.msrb.mxu3 %v4330_v56  ;;  %v4687_v56 = vld [vmem:[#allocation3 + $0x1a0] sm:$0xff]  ;;  %v4693_v59 = vld [vmem:[#allocation3 + $0x1f0] sm:$0xff] }
  0x7e   :  { %930 = vmatpush.msra.mxu1 %v4676_v49  ;;  %915 = vmatpush.msra.mxu0 %v4683_v46 }
  0x7f   :  { %1108 = vmatpush.msrb.mxu2 %v4346_v63  ;;  %1129 = vmatpush.msrb.mxu3 %v4342_v60  ;;  %v4695_v60 = vld [vmem:[#allocation3 + $0x188] sm:$0xff]  ;;  %v4701_v63 = vld [vmem:[#allocation3 + $0x1d8] sm:$0xff] }
  0x80   :  { %931 = vmatpush.msra.mxu1 %v4678_v53  ;;  %916 = vmatpush.msra.mxu0 %v4687_v56 }
  0x81   :  { %1109 = vmatpush.msrb.mxu2 %v4364_v5  ;;  %631 = vmatmul.bf16.gmra.mxu0 %v4390_v15  ;;  %v4719_v5 = vld [vmem:[#allocation3 + $0x1a8] sm:$0xff] }
  0x82   :  { %1130 = vmatpush.msrb.mxu3 %v4354_v2  ;;  %932 = vmatpush.msra.mxu1 %v4685_v50  ;;  %v4707_v2 = vld [vmem:[#allocation3 + $0x1c0] sm:$0xff] }
  0x83   :  { %660 = vmatmul.bf16.gmra.mxu1 %v4390_v15  ;;  %1110 = vmatpush.msrb.mxu2 %v4373_v10  ;;  %v6595_v10 = vld [vmem:[#allocation10_spill] sm:$0xff] }
  0x84   :  { %1131 = vmatpush.msrb.mxu3 %v4366_v6  ;;  %933 = vmatpush.msra.mxu1 %v4693_v59  ;;  %v4723_v6 = vld [vmem:[#allocation3 + $0x190] sm:$0xff]  ;;  %v6598_v15 = vld [vmem:[#allocation14_spill] sm:$0xff] }
  0x85   :  { %1111 = vmatpush.msrb.mxu2 %v4385_v14  ;;  %917 = vmatpush.msra.mxu0 %v4695_v60  ;;  %v6597_v14 = vld [vmem:[#allocation21_spill] sm:$0xff] }
  0x86   :  { %1132 = vmatpush.msrb.mxu3 %v4375_v11  ;;  %934 = vmatpush.msra.mxu1 %v4701_v63  ;;  %v6596_v11 = vld [vmem:[#allocation26_spill] sm:$0xff] }
  0x87   :  { %1112 = vmatpush.msrb.mxu2 %v4394_v17  ;;  %1145 = vmatpush.msrb.mxu0 %v4491_v1  ;;  %v6599_v17 = vld [vmem:[#allocation12_spill] sm:$0xff] }
  0x88   :  { %1133 = vmatpush.msrb.mxu3 %v4396_v18  ;;  %935 = vmatpush.msra.mxu1 %v4707_v2  ;;  %v6600_v18 = vld [vmem:[#allocation28_spill] sm:$0xff] }
  0x89   :  { %1113 = vmatpush.msrb.mxu2 %v4405_v21  ;;  %1146 = vmatpush.msrb.mxu0 %v4500_v7  ;;  %v6601_v21 = vld [vmem:[#allocation24_spill] sm:$0xff] }
  0x8a   :  { %1134 = vmatpush.msrb.mxu3 %v4408_v23  ;;  %936 = vmatpush.msra.mxu1 %v4719_v5  ;;  %v6602_v23 = vld [vmem:[#allocation16_spill] sm:$0xff] }
  0x8b   :  { %1114 = vmatpush.msrb.mxu2 %v4418_v27  ;;  %1147 = vmatpush.msrb.mxu0 %v4509_v12  ;;  %v6603_v27 = vld [vmem:[#allocation30_spill] sm:$0xff]  ;;  %v4810_v12 = vld [vmem:[#allocation5 + $0x3] sm:$0x7] }
  0x8c   :  { %1135 = vmatpush.msrb.mxu3 %v4420_v28  ;;  %937 = vmatpush.msra.mxu1 %v4723_v6  ;;  %v6604_v28 = vld [vmem:[#allocation11_spill] sm:$0xff] }
  0x8d   :  { %1115 = vmatpush.msrb.mxu2 %v4430_v31  ;;  %1148 = vmatpush.msrb.mxu0 %v4515_v16  ;;  %v6605_v31 = vld [vmem:[#allocation18_spill] sm:$0xff]  ;;  %v6618_v16 = vld [vmem:[#allocation33_spill] sm:$0xff] }
  0x8e   :  { %1136 = vmatpush.msrb.mxu3 %v4435_v34  ;;  %1213 = vmatpush.msrb.mxu1 %v4489_v0  ;;  %v6606_v34 = vld [vmem:[#allocation31_spill] sm:$0xff] }
  0x8f   :  { %1116 = vmatpush.msrb.mxu2 %v4445_v37  ;;  %1149 = vmatpush.msrb.mxu0 %v4522_v20  ;;  %v6607_v37 = vld [vmem:[#allocation13_spill] sm:$0xff]  ;;  %v6615_v0 = vld [vmem:[#allocation27_spill] sm:$0xff]  ;;  %v4819_v20 = vperm.slane %v4810_v12, 0 }
  0x90   :  { %1137 = vmatpush.msrb.mxu3 %v4450_v42  ;;  %1214 = vmatpush.msrb.mxu1 %v4498_v4  ;;  %v6608_v42 = vld [vmem:[#allocation20_spill] sm:$0xff] }
  0x91   :  { %636 = vmatmul.bf16.gmra.mxu0 %v4480_v57  ;;  %1117 = vmatpush.msrb.mxu2 %v4454_v44  ;;  %v6609_v44 = vld [vmem:[#allocation15_spill] sm:$0xff] }
  0x92   :  { %1150 = vmatpush.msrb.mxu0 %v4530_v25  ;;  %1138 = vmatpush.msrb.mxu3 %v4456_v45  ;;  %v6610_v45 = vld [vmem:[#allocation23_spill] sm:$0xff] }
  0x93   :  { %665 = vmatmul.bf16.gmra.mxu1 %v4480_v57  ;;  %1118 = vmatpush.msrb.mxu2 %v4463_v48  ;;  %v6611_v48 = vld [vmem:[#allocation17_spill] sm:$0xff]  ;;  %v6613_v57 = vld [vmem:[#allocation22_spill] sm:$0xff] }
  0x94   :  { %1151 = vmatpush.msrb.mxu0 %v4550_v33  ;;  %1139 = vmatpush.msrb.mxu3 %v4465_v51  ;;  %v6612_v51 = vld [vmem:[#allocation19_spill] sm:$0xff] }
  0x95   :  { %1119 = vmatpush.msrb.mxu2 %v4475_v55  ;;  %1215 = vmatpush.msrb.mxu1 %v4506_v9  ;;  %v6617_v9 = vld [vmem:[#allocation32_spill] sm:$0xff] }
  0x96   :  { %1152 = vmatpush.msrb.mxu0 %v4555_v36  ;;  %1140 = vmatpush.msrb.mxu3 %v4486_v62  ;;  %v6614_v62 = vld [vmem:[#allocation25_spill] sm:$0xff] }
  0x97   :  { %1120 = vmatpush.msrb.mxu2 %v4484_v58  ;;  %1216 = vmatpush.msrb.mxu1 %v4513_v13  ;;  %v115_v13 = vld [vmem:[#allocation5] sm:$0x7] }
  0x98   :  { %1153 = vmatpush.msrb.mxu0 %v4568_v52  ;;  %1253 = vmatpush.msra.mxu3 %v4563_v43  ;;  %v4832_v33 = vperm.slane %v115_v13, 0  ;;  %v4834_v36 = vperm.slane %v115_v13, 1 }
  0x99   :  { %1233 = vmatpush.msra.mxu2 %v4495_v3  ;;  %1217 = vmatpush.msrb.mxu1 %v6595_v10  ;;  %v6616_v3 = vld [vmem:[#allocation29_spill] sm:$0xff] }
  0x9a   :  { %1154 = vmatpush.msrb.mxu0 %v4580_v30  ;;  %1254 = vmatpush.msra.mxu3 %v4571_v54  ;;  %6621 = vst [vmem:[#allocation21_spill] sm:$0xff] %v4832_v33 }
  0x9b   :  { %1234 = vmatpush.msra.mxu2 %v4504_v8  ;;  %1218 = vmatpush.msrb.mxu1 %v6604_v28  ;;  %6622 = vst [vmem:[#allocation14_spill] sm:$0xff] %v4834_v36 }
  0x9c   :  { %1155 = vmatpush.msrb.mxu0 %v4592_v26  ;;  %1255 = vmatpush.msra.mxu3 %v6597_v14 }
  0x9d   :  { %1235 = vmatpush.msra.mxu2 %v4526_v22  ;;  %1219 = vmatpush.msrb.mxu1 %v6607_v37 }
  0x9e   :  { %1156 = vmatpush.msrb.mxu0 %v6596_v11  ;;  %1256 = vmatpush.msra.mxu3 %v6601_v21 }
  0x9f   :  { %1236 = vmatpush.msra.mxu2 %v6599_v17  ;;  %1220 = vmatpush.msrb.mxu1 %v6609_v44 }
  0xa0   :  { %1157 = vmatpush.msrb.mxu0 %v6600_v18  ;;  %1257 = vmatpush.msra.mxu3 %v4632_v61 }
  0xa1   :  { %641 = vmatmul.bf16.gmra.mxu0 %v6598_v15  ;;  %1237 = vmatpush.msra.mxu2 %v6602_v23 }
  0xa2   :  { %1158 = vmatpush.msrb.mxu0 %v6603_v27  ;;  %1258 = vmatpush.msra.mxu3 %v4642_v41 }
  0xa3   :  { %670 = vmatmul.bf16.gmra.mxu1 %v6598_v15  ;;  %1238 = vmatpush.msra.mxu2 %v6605_v31 }
  0xa4   :  { %1159 = vmatpush.msrb.mxu0 %v6606_v34  ;;  %1259 = vmatpush.msra.mxu3 %v4650_v32 }
  0xa5   :  { %1239 = vmatpush.msra.mxu2 %v6608_v42  ;;  %1221 = vmatpush.msrb.mxu1 %v6611_v48 }
  0xa6   :  { %1160 = vmatpush.msrb.mxu0 %v4628_v19  ;;  %1260 = vmatpush.msra.mxu3 %v4657_v39  ;;  %v4815_v19 = vperm.slane %v115_v13, 2 }
  0xa7   :  { %1240 = vmatpush.msra.mxu2 %v6610_v45  ;;  %1222 = vmatpush.msrb.mxu1 %v6612_v51 }
  0xa8   :  { %1261 = vmatpush.msra.mxu3 %v4676_v49 }
  0xa9   :  { %1241 = vmatpush.msra.mxu2 %v4630_v35  ;;  %1223 = vmatpush.msrb.mxu1 %v6613_v57 }
  0xaa   :  { %1262 = vmatpush.msra.mxu3 %v4678_v53 }
  0xab   :  { %1242 = vmatpush.msra.mxu2 %v4638_v47  ;;  %1224 = vmatpush.msrb.mxu1 %v6614_v62 }
  0xac   :  { %1263 = vmatpush.msra.mxu3 %v4685_v50 }
  0xad   :  { %1243 = vmatpush.msra.mxu2 %v4646_v24  ;;  %1225 = vmatpush.msrb.mxu1 %v6615_v0 }
  0xae   :  { %v4782_v55 = vpop.f32.mrf.mxu0  ;;  %1264 = vmatpush.msra.mxu3 %v4693_v59 }
  0xaf   :  { %v4785_v58 = vpop.f32.mrf.mxu1  ;;  %1244 = vmatpush.msra.mxu2 %v4653_v38  ;;  %1226 = vmatpush.msrb.mxu1 %v6616_v3 }
  0xb0   :  { %1265 = vmatpush.msra.mxu3 %v4701_v63 }
  0xb1   :  { %918 = vmatmul.f32.vlgmr.msra.gmra.mxu0 %v6594_v29  ;;  %1245 = vmatpush.msra.mxu2 %v4674_v40 }
  0xb2   :  { %1266 = vmatpush.msra.mxu3 %v4707_v2  ;;  %1227 = vmatpush.msrb.mxu1 %v6617_v9 }
  0xb3   :  { %938 = vmatmul.f32.vlgmr.msra.gmra.mxu1 %v6594_v29  ;;  %1246 = vmatpush.msra.mxu2 %v4683_v46 }
  0xb4   :  { %1267 = vmatpush.msra.mxu3 %v4719_v5  ;;  %1228 = vmatpush.msrb.mxu1 %v6618_v16  ;;  %v285_v16 = vadd.f32 %v4782_v55, %v4832_v33 }
  0xb5   :  { %1247 = vmatpush.msra.mxu2 %v4687_v56 }
  0xb6   :  { %v4797_v1 = vpop.f32.mrf.mxu2  ;;  %v4801_v4 = vpop.f32.mrf.mxu3  ;;  %1268 = vmatpush.msra.mxu3 %v4723_v6 }
  0xb7   :  { %v4803_v7 = vpop.f32.mrf.mxu0  ;;  %v4806_v8 = vpop.f32.mrf.mxu1  ;;  %1248 = vmatpush.msra.mxu2 %v4695_v60 }
  0xbe   :  { %v344_v22 = vpop.f32.mrf.mxu2  ;;  %v600_v25 = vpop.f32.mrf.mxu3 }
  0xbf   :  { %v4823_v24 = vadd.f32 %v344_v22, %v4815_v19  ;;  %v4825_v26 = vpop.f32.mrf.mxu0  ;;  %v4828_v30 = vadd.f32 %v600_v25, %v4819_v20  ;;  %v4909_v22 = vperm.slane %v4810_v12, 2  ;;  %v314_v25 = vadd.f32 %v4785_v58, %v4834_v36 }
  0xc0   :  { %6619 = vst [vmem:[#allocation10_spill] sm:$0xff] %v4825_v26  ;;  %v4830_v32 = vpop.f32.mrf.mxu1  ;;  %v599_v58 = vadd.f32 %v4801_v4, %v4819_v20 }
  0xc1   :  { %6620 = vst [vmem:[#allocation26_spill] sm:$0xff] %v4830_v32 }
  0xc6   :  { %v347_v35 = vpop.f32.mrf.mxu2 }
  0xc7   :  { %v4837_v38 = vadd.f32 %v347_v35, %v4815_v19  ;;  %v603_v39 = vpop.f32.mrf.mxu3  ;;  %v291_v43 = vpop.f32.mrf.mxu0  ;;  %v4914_v35 = vperm.slane %v4810_v12, 1 }
  0xc8   :  { %v4840_v47 = vadd.f32 %v603_v39, %v4819_v20  ;;  %v4843_v52 = vadd.f32 %v291_v43, %v4832_v33  ;;  %v320_v54 = vpop.f32.mrf.mxu1 }
  0xc9   :  { %6623 = vst [vmem:[#allocation12_spill] sm:$0xff] %v4837_v38  ;;  %v4846_v61 = vadd.f32 %v320_v54, %v4834_v36 }
  0xca   :  { %6624 = vst [vmem:[#allocation28_spill] sm:$0xff] %v4840_v47  ;;  %v5138_v47 = vld [vmem:[#allocation3 + $0x10] sm:$0xff] }
  0xcb   :  { %6625 = vst [vmem:[#allocation24_spill] sm:$0xff] %v4843_v52  ;;  %v5126_v52 = vld [vmem:[#allocation3 + $0x20] sm:$0xff] }
  0xcc   :  { %6626 = vst [vmem:[#allocation16_spill] sm:$0xff] %v4846_v61  ;;  %v5124_v61 = vld [vmem:[#allocation3 + $0x18] sm:$0xff] }
  0xcd   :  { %6659 = vst [vmem:[#allocation50_spill] sm:$0xff] %v5126_v52 }
  0xce   :  { %v349_v29 = vpop.f32.mrf.mxu2  ;;  %6662 = vst [vmem:[#allocation53_spill] sm:$0xff] %v5138_v47 }
  0xcf   :  { %v4849_v41 = vadd.f32 %v349_v29, %v4815_v19  ;;  %v605_v40 = vpop.f32.mrf.mxu3  ;;  %v294_v49 = vpop.f32.mrf.mxu0 }
  0xd0   :  { %v4852_v53 = vadd.f32 %v605_v40, %v4819_v20  ;;  %v4855_v46 = vadd.f32 %v294_v49, %v4832_v33  ;;  %v323_v50 = vpop.f32.mrf.mxu1 }
  0xd1   :  { %6627 = vst [vmem:[#allocation30_spill] sm:$0xff] %v4849_v41  ;;  %v4858_v56 = vadd.f32 %v323_v50, %v4834_v36 }
  0xd2   :  { %6628 = vst [vmem:[#allocation11_spill] sm:$0xff] %v4852_v53 }
  0xd3   :  { %6629 = vst [vmem:[#allocation18_spill] sm:$0xff] %v4855_v46 }
  0xd4   :  { %6630 = vst [vmem:[#allocation31_spill] sm:$0xff] %v4858_v56  ;;  %v5112_v56 = vld [vmem:[#allocation3 + $0x38] sm:$0xff] }
  0xd5   :  { %6657 = vst [vmem:[#allocation48_spill] sm:$0xff] %v5112_v56 }
  0xd6   :  { %v352_v59 = vpop.f32.mrf.mxu2 }
  0xd7   :  { %v4861_v60 = vadd.f32 %v352_v59, %v4815_v19  ;;  %v608_v63 = vpop.f32.mrf.mxu3  ;;  %v296_v2 = vpop.f32.mrf.mxu0 }
  0xd8   :  { %v4864_v5 = vadd.f32 %v608_v63, %v4819_v20  ;;  %v4867_v6 = vadd.f32 %v296_v2, %v4832_v33  ;;  %v325_v10 = vpop.f32.mrf.mxu1 }
  0xd9   :  { %6631 = vst [vmem:[#allocation13_spill] sm:$0xff] %v4861_v60  ;;  %v4870_v11 = vadd.f32 %v325_v10, %v4834_v36  ;;  %v5110_v60 = vld [vmem:[#allocation3 + $0x30] sm:$0xff] }
  0xda   :  { %6632 = vst [vmem:[#allocation20_spill] sm:$0xff] %v4864_v5  ;;  %v5098_v5 = vld [vmem:[#allocation3 + $0x70] sm:$0xff] }
  0xdb   :  { %6633 = vst [vmem:[#allocation15_spill] sm:$0xff] %v4867_v6 }
  0xdc   :  { %6634 = vst [vmem:[#allocation23_spill] sm:$0xff] %v4870_v11  ;;  %v5076_v11 = vld [vmem:[#allocation3 + $0x98] sm:$0xff] }
  0xde   :  { %v354_v14 = vpop.f32.mrf.mxu2 }
  0xdf   :  { %v4873_v15 = vadd.f32 %v354_v14, %v4815_v19  ;;  %v610_v17 = vpop.f32.mrf.mxu3  ;;  %v299_v18 = vpop.f32.mrf.mxu0 }
  0xe0   :  { %v4876_v21 = vadd.f32 %v610_v17, %v4819_v20  ;;  %v4879_v23 = vadd.f32 %v299_v18, %v4832_v33  ;;  %v328_v27 = vpop.f32.mrf.mxu1 }
  0xe1   :  { %6635 = vst [vmem:[#allocation17_spill] sm:$0xff] %v4873_v15  ;;  %v4882_v28 = vadd.f32 %v328_v27, %v4834_v36  ;;  %v5074_v15 = vld [vmem:[#allocation3 + $0x90] sm:$0xff] }
  0xe2   :  { %6636 = vst [vmem:[#allocation19_spill] sm:$0xff] %v4876_v21  ;;  %v5071_v21 = vld [vmem:[#allocation3 + $0xb8] sm:$0xff] }
  0xe3   :  { %6637 = vst [vmem:[#allocation22_spill] sm:$0xff] %v4879_v23 }
  0xe4   :  { %6638 = vst [vmem:[#allocation25_spill] sm:$0xff] %v4882_v28 }
  0xe7   :  { %v357_v31 = vpop.f32.mrf.mxu2  ;;  %v613_v37 = vpop.f32.mrf.mxu3 }
  0xe8   :  { %v4885_v34 = vadd.f32 %v357_v31, %v4815_v19  ;;  %v301_v42 = vpop.f32.mrf.mxu0  ;;  %v4888_v44 = vadd.f32 %v613_v37, %v4819_v20  ;;  %v330_v48 = vpop.f32.mrf.mxu1 }
  0xe9   :  { %v4891_v45 = vadd.f32 %v301_v42, %v4832_v33  ;;  %v4894_v51 = vadd.f32 %v330_v48, %v4834_v36 }
  0xea   :  { %6639 = vst [vmem:[#allocation27_spill] sm:$0xff] %v4885_v34  ;;  %v5062_v34 = vld [vmem:[#allocation3 + $0xd0] sm:$0xff] }
  0xeb   :  { %6640 = vst [vmem:[#allocation29_spill] sm:$0xff] %v4888_v44  ;;  %v5058_v44 = vld [vmem:[#allocation3 + $0xc0] sm:$0xff] }
  0xec   :  { %6641 = vst [vmem:[#allocation32_spill] sm:$0xff] %v4891_v45  ;;  %v287_v45 = vadd.f32 %v4803_v7, %v4832_v33  ;;  %v5067_v7 = vld [vmem:[#allocation3 + $0xb0] sm:$0xff] }
  0xed   :  { %6642 = vst [vmem:[#allocation33_spill] sm:$0xff] %v4894_v51 }
  0xef   :  { %v359_v57 = vpop.f32.mrf.mxu2  ;;  %v615_v0 = vpop.f32.mrf.mxu3 }
  0xf0   :  { %v4897_v62 = vadd.f32 %v359_v57, %v4815_v19  ;;  %v4899_v3 = vpop.f32.mrf.mxu0  ;;  %v4902_v9 = vadd.f32 %v615_v0, %v4819_v20  ;;  %v4904_v13 = vpop.f32.mrf.mxu1 }
  0xf2   :  { %6643 = vst [vmem:[#allocation34_spill] sm:$0xff] %v4897_v62 }
  0xf3   :  { %6644 = vst [vmem:[#allocation35_spill] sm:$0xff] %v4902_v9 }
  0xf7   :  { %v790_v39 = vpop.f32.mrf.mxu2  ;;  %v810_v54 = vpop.f32.mrf.mxu3 }
  0xf8   :  { %v942_v43 = vadd.f32 %v790_v39, %v285_v16  ;;  %v629_v29 = vpop.f32.mrf.mxu0  ;;  %v962_v40 = vadd.f32 %v810_v54, %v314_v25  ;;  %v658_v50 = vpop.f32.mrf.mxu1  ;;  %v4936_v54 = vld [vmem:[#allocation7] ss:$0 sm:$0xff] }
  0xf9   :  { %v4917_v49 = vadd.f32 %v629_v29, %v4914_v35  ;;  %v4920_v55 = vadd.f32 %v658_v50, %v4909_v22 }
  0xfa   :  { %v3669_v59 = vmul.f32 -1.442695, %v942_v43  ;;  %v3670_v63 = vmul.f32 -1.442695, %v962_v40 }
  0xfc   :  { %3785 = vpow2.f32 %v3669_v59 }
  0xfd   :  { %3787 = vpow2.f32 %v3670_v63 }
  0xff   :  { %v899_v12 = vpop.f32.mrf.mxu3  ;;  %v830_v50 = vpop.f32.mrf.mxu2 }
 0x100   :  { %v632_v2 = vpop.f32.mrf.mxu0  ;;  %v661_v14 = vpop.f32.mrf.mxu1  ;;  %v990_v18 = vadd.f32 %v899_v12, %v599_v58 }
 0x101   :  { %v4925_v10 = vadd.f32 %v632_v2, %v4914_v35  ;;  %v4928_v27 = vadd.f32 %v661_v14, %v4909_v22 }
 0x102   :  { %v3786_v17 = vpop.eup %3785  ;;  %v3671_v48 = vmul.f32 -1.442695, %v990_v18 }
 0x103   :  { %6645 = vst [vmem:[#allocation36_spill] sm:$0xff] %v4925_v10  ;;  %v3788_v31 = vpop.eup %3787  ;;  %v946_v37 = vadd.f32 1.0, %v3786_v17 }
 0x104   :  { %6646 = vst [vmem:[#allocation37_spill] sm:$0xff] %v4928_v27  ;;  %v966_v42 = vadd.f32 1.0, %v3788_v31  ;;  %v5128_v27 = vld [vmem:[#allocation3 + $0x28] sm:$0xff] }
 0x105   :  { %3789 = vrcp.f32 %v946_v37  ;;  %v958_v59 = vand.u32 2147483648, %v946_v37  ;;  %v956_v2 = vand.u32 2147483647, %v946_v37  ;;  %vm952_vm1 = vweird.f32 %v946_v37  ;;  %6660 = vst [vmem:[#allocation51_spill] sm:$0xff] %v5128_v27 }
 0x106   :  { %3791 = vrcp.f32 %v966_v42  ;;  %vm972_vm5 = vweird.f32 %v966_v42 }
 0x107   :  { %3793 = vpow2.f32 %v3671_v48  ;;  %vm957_vm3 = vcmp.eq.f32.partialorder %v956_v2, 8.507059e+37 }
 0x108   :  { %v634_v57 = vpop.f32.mrf.mxu0  ;;  %v663_v20 = vpop.f32.mrf.mxu1 }
 0x109   :  { %v4931_v4 = vadd.f32 %v634_v57, %v4914_v35  ;;  %v4934_v0 = vadd.f32 %v663_v20, %v4909_v22  ;;  %v982_v57 = vadd.f32 %v4936_v54, %v830_v50 }
 0x10b   :  { %6647 = vst [vmem:[#allocation38_spill] sm:$0xff] %v4931_v4  ;;  %v3790_v16 = vpop.eup %3789 }
 0x10c   :  { %6648 = vst [vmem:[#allocation39_spill] sm:$0xff] %v4934_v0  ;;  %v3792_v25 = vpop.eup %3791  ;;  %v948_v39 = vmul.f32 %v3790_v16, %v946_v37  ;;  %vm953_vm0 = vweird.f32 %v3790_v16  ;;  %v5116_v0 = vld [vmem:[#allocation3 + $0x40] sm:$0xff] }
 0x10d   :  { %v968_v43 = vmul.f32 %v3792_v25, %v966_v42  ;;  %v3794_v63 = vpop.eup %3793  ;;  %vm954_vm2 = vmor %vm952_vm1, %vm953_vm0  ;;  %vm973_vm4 = vweird.f32 %v3792_v25  ;;  %6658 = vst [vmem:[#allocation49_spill] sm:$0xff] %v5116_v0 }
 0x10e   :  { %v949_v29 = vsub.f32 1.0, %v948_v39  ;;  %v994_v20 = vadd.f32 1.0, %v3794_v63  ;;  %v959_v39 = vor.u32 1.1754944e-38, %v958_v59  ;;  %vm974_vm6 = vmor %vm972_vm5, %vm973_vm4 }
 0x10f   :  { %v969_v40 = vsub.f32 1.0, %v968_v43 }
 0x110   :  { %v637_v58 = vpop.f32.mrf.mxu0  ;;  %v950_v12 = vmul.f32 %v3790_v16, %v949_v29  ;;  %v666_v18 = vpop.f32.mrf.mxu1  ;;  %3795 = vrcp.f32 %v994_v20  ;;  %vm1000_vm9 = vweird.f32 %v994_v20 }
 0x111   :  { %v970_v14 = vmul.f32 %v3792_v25, %v969_v40  ;;  %v4939_v17 = vadd.f32 %v637_v58, %v4914_v35  ;;  %v4942_v31 = vadd.f32 %v666_v18, %v4909_v22  ;;  %v343_v40 = vadd.f32 %v4797_v1, %v4815_v19 }
 0x112   :  { %v951_v48 = vadd.f32 %v3790_v16, %v950_v12  ;;  %v978_v58 = vand.u32 2147483648, %v966_v42  ;;  %v976_v18 = vand.u32 2147483647, %v966_v42 }
 0x113   :  { %6649 = vst [vmem:[#allocation40_spill] sm:$0xff] %v4939_v17  ;;  %v971_v29 = vadd.f32 %v3792_v25, %v970_v14  ;;  %v5103_v17 = vld [vmem:[#allocation3 + $0x50] sm:$0xff] }
 0x114   :  { %6650 = vst [vmem:[#allocation41_spill] sm:$0xff] %v4942_v31  ;;  %v955_v43 = vsel %vm954_vm2, %v3790_v16, %v951_v48  ;;  %v979_v59 = vor.u32 1.1754944e-38, %v978_v58  ;;  %vm977_vm7 = vcmp.eq.f32.partialorder %v976_v18, 8.507059e+37 }
 0x115   :  { %v960_v9 = vsel %vm957_vm3, %v959_v39, %v955_v43  ;;  %v975_v50 = vsel %vm974_vm6, %v3792_v25, %v971_v29 }
 0x116   :  { %v983_v62 = vmul.f32 %v982_v57, %v960_v9  ;;  %v980_v1 = vsel %vm977_vm7, %v979_v59, %v975_v50  ;;  %v3796_v19 = vpop.eup %3795 }
 0x117   :  { %v986_v9 = vsub.f32 1.0, %v980_v1  ;;  %v996_v48 = vmul.f32 %v3796_v19, %v994_v20  ;;  %v988_v39 = vmul.f32 0.0, %v980_v1  ;;  %vm1001_vm8 = vweird.f32 %v3796_v19 }
 0x118   :  { %v984_v37 = vadd.f32 %v983_v62, %v343_v40  ;;  %v639_v12 = vpop.f32.mrf.mxu0  ;;  %v668_v16 = vpop.f32.mrf.mxu1  ;;  %v1006_v1 = vand.u32 2147483648, %v994_v20  ;;  %vm1002_vm10 = vmor %vm1000_vm9, %vm1001_vm8 }
 0x119   :  { %v4948_v63 = vadd.f32 %v639_v12, %v4914_v35  ;;  %v4951_v2 = vadd.f32 %v668_v16, %v4909_v22  ;;  %v997_v40 = vsub.f32 1.0, %v996_v48 }
 0x11a   :  { %3797 = vtanh.f32 %v984_v37 }
 0x11b   :  { %6651 = vst [vmem:[#allocation42_spill] sm:$0xff] %v4948_v63  ;;  %v998_v37 = vmul.f32 %v3796_v19, %v997_v40  ;;  %v1007_v40 = vor.u32 1.1754944e-38, %v1006_v1 }
 0x11c   :  { %6652 = vst [vmem:[#allocation43_spill] sm:$0xff] %v4951_v2  ;;  %v5065_v2 = vld [vmem:[#allocation3 + $0xa8] sm:$0xff] }
 0x11d   :  { %v999_v59 = vadd.f32 %v3796_v19, %v998_v37 }
 0x120   :  { %v3798_v14 = vpop.eup %3797  ;;  %v642_v42 = vpop.f32.mrf.mxu0 }
 0x121   :  { %v987_v57 = vmul.f32 %v3798_v14, %v986_v9  ;;  %v4954_v62 = vadd.f32 %v642_v42, %v4914_v35  ;;  %v671_v25 = vpop.f32.mrf.mxu1  ;;  %v4975_v9 = vld [vmem:[#allocation7 + $0x1] ss:$0 sm:$0xff]  ;;  %v1004_v14 = vand.u32 2147483647, %v994_v20  ;;  %v628_v42 = vadd.f32 %v4899_v3, %v4914_v35 }
 0x122   :  { %v4957_v43 = vadd.f32 %v671_v25, %v4909_v22 }
 0x123   :  { %6653 = vst [vmem:[#allocation44_spill] sm:$0xff] %v4954_v62  ;;  %v4959_v29 = vadd.f32 %v988_v39, %v987_v57  ;;  %v1003_v57 = vsel %vm1002_vm10, %v3796_v19, %v999_v59  ;;  %vm1005_vm11 = vcmp.eq.f32.partialorder %v1004_v14, 8.507059e+37  ;;  %v5060_v62 = vld [vmem:[#allocation3 + $0xc8] sm:$0xff] }
 0x124   :  { %6654 = vst [vmem:[#allocation45_spill] sm:$0xff] %v4957_v43  ;;  %v1008_v37 = vsel %vm1005_vm11, %v1007_v40, %v1003_v57  ;;  %v316_v43 = vadd.f32 %v4806_v8, %v4834_v36 }
 0x125   :  { %v1038_v58 = vpack.c.bf16 %v4959_v29, %v4959_v29  ;;  %1121 = vmatmul.f32.vlgmr.msrb.gmra.mxu2 %v4959_v29  ;;  %1141 = vmatmul.f32.vlgmr.msrb.gmra.mxu3 %v4959_v29 }
 0x126   :  { %1161 = vmatmul.f32.vlgmr.msrb.gmra.mxu0 %v4959_v29 }
 0x127   :  { %1039 = vst [vmem:[%s6475_s5] sm:$0xf] %v1038_v58 }
 0x128   :  { %v644_v18 = vpop.f32.mrf.mxu0 }
 0x129   :  { %v4970_v12 = vadd.f32 %v644_v18, %v4914_v35  ;;  %v673_v50 = vpop.f32.mrf.mxu1 }
 0x12a   :  { %v4973_v16 = vadd.f32 %v673_v50, %v4909_v22  ;;  %v657_v50 = vadd.f32 %v4904_v13, %v4909_v22 }
 0x12b   :  { %6655 = vst [vmem:[#allocation46_spill] sm:$0xff] %v4970_v12 }
 0x12c   :  { %6656 = vst [vmem:[#allocation47_spill] sm:$0xff] %v4973_v16 }
 0x130   :  { %v919_v48 = vpop.f32.mrf.mxu0 }
 0x131   :  { %v1010_v25 = vadd.f32 %v919_v48, %v628_v42  ;;  %v939_v39 = vpop.f32.mrf.mxu1 }
 0x132   :  { %v1030_v58 = vadd.f32 %v4975_v9, %v939_v39 }
 0x133   :  { %v3672_v18 = vmul.f32 -1.442695, %v1010_v25 }
 0x134   :  { %v1031_v16 = vmul.f32 %v1030_v58, %v1008_v37  ;;  %v4994_v58 = vld [vmem:[#allocation3 + $0x170] sm:$0xff] }
 0x135   :  { %3799 = vpow2.f32 %v3672_v18  ;;  %v4996_v18 = vld [vmem:[#allocation3 + $0x178] sm:$0xff]  ;;  %1457 = vmatpush.msra.mxu1 %v4994_v58  ;;  %v5001_v37 = vld [vmem:[#allocation3 + $0x150] sm:$0xff] }
 0x136   :  { %v1032_v20 = vadd.f32 %v1031_v16, %v657_v50  ;;  %1477 = vmatpush.msrb.mxu2 %v4996_v18  ;;  %v5003_v50 = vld [vmem:[#allocation3 + $0x158] sm:$0xff] }
 0x137   :  { %1458 = vmatpush.msra.mxu1 %v5003_v50 }
 0x13b   :  { %v3800_v12 = vpop.eup %3799 }
 0x13c   :  { %v1014_v51 = vadd.f32 1.0, %v3800_v12 }
 0x13e   :  { %3801 = vrcp.f32 %v1014_v51  ;;  %v1026_v59 = vand.u32 2147483648, %v1014_v51  ;;  %v1024_v1 = vand.u32 2147483647, %v1014_v51  ;;  %vm1020_vm13 = vweird.f32 %v1014_v51 }
 0x13f   :  { %3803 = vtanh.f32 %v1032_v20  ;;  %v5005_v20 = vld [vmem:[#allocation3 + $0x160] sm:$0xff] }
 0x140   :  { %v1027_v48 = vor.u32 1.1754944e-38, %v1026_v59  ;;  %vm1025_vm15 = vcmp.eq.f32.partialorder %v1024_v1, 8.507059e+37  ;;  %1478 = vmatpush.msrb.mxu2 %v5005_v20  ;;  %v5019_v59 = vld [vmem:[#allocation3 + $0x120] sm:$0xff]  ;;  %v5023_v1 = vld [vmem:[#allocation3 + $0x130] sm:$0xff] }
 0x144   :  { %v3802_v3 = vpop.eup %3801 }
 0x145   :  { %v1016_v35 = vmul.f32 %v3802_v3, %v1014_v51  ;;  %vm1021_vm12 = vweird.f32 %v3802_v3  ;;  %v3804_v16 = vpop.eup %3803  ;;  %v4992_v51 = vld [vmem:[#allocation3 + $0x168] sm:$0xff] }
 0x146   :  { %vm1022_vm14 = vmor %vm1020_vm13, %vm1021_vm12  ;;  %1437 = vmatpush.msra.mxu0 %v4992_v51 }
 0x147   :  { %v1017_v19 = vsub.f32 1.0, %v1016_v35  ;;  %v5012_v35 = vld [vmem:[#allocation3 + $0x140] sm:$0xff] }
 0x148   :  { %1438 = vmatpush.msra.mxu0 %v5001_v37  ;;  %1459 = vmatpush.msra.mxu1 %v5012_v35 }
 0x149   :  { %v1018_v42 = vmul.f32 %v3802_v3, %v1017_v19  ;;  %v5014_v19 = vld [vmem:[#allocation3 + $0x148] sm:$0xff] }
 0x14a   :  { %1479 = vmatpush.msrb.mxu2 %v5014_v19 }
 0x14b   :  { %v1019_v14 = vadd.f32 %v3802_v3, %v1018_v42  ;;  %v5021_v42 = vld [vmem:[#allocation3 + $0x128] sm:$0xff] }
 0x14c   :  { %1460 = vmatpush.msra.mxu1 %v5021_v42  ;;  %1480 = vmatpush.msrb.mxu2 %v5023_v1 }
 0x14d   :  { %v1023_v13 = vsel %vm1022_vm14, %v3802_v3, %v1019_v14  ;;  %v5010_v3 = vld [vmem:[#allocation3 + $0x138] sm:$0xff]  ;;  %v5028_v14 = vld [vmem:[#allocation3 + $0x108] sm:$0xff] }
 0x14e   :  { %v1028_v22 = vsel %vm1025_vm15, %v1027_v48, %v1023_v13  ;;  %1439 = vmatpush.msra.mxu0 %v5010_v3  ;;  %v5030_v48 = vld [vmem:[#allocation3 + $0x110] sm:$0xff]  ;;  %v5032_v13 = vld [vmem:[#allocation3 + $0x118] sm:$0xff] }
 0x14f   :  { %v1034_v57 = vsub.f32 1.0, %v1028_v22  ;;  %v1036_v12 = vmul.f32 0.0, %v1028_v22  ;;  %1461 = vmatpush.msra.mxu1 %v5030_v48  ;;  %1481 = vmatpush.msrb.mxu2 %v5032_v13  ;;  %v5037_v22 = vld [vmem:[#allocation3 + $0xf0] sm:$0xff] }
 0x150   :  { %1440 = vmatpush.msra.mxu0 %v5019_v59 }
 0x151   :  { %v1035_v25 = vmul.f32 %v3804_v16, %v1034_v57  ;;  %v5039_v57 = vld [vmem:[#allocation3 + $0xf8] sm:$0xff]  ;;  %v5041_v16 = vld [vmem:[#allocation3 + $0x100] sm:$0xff] }
 0x152   :  { %1441 = vmatpush.msra.mxu0 %v5028_v14  ;;  %1462 = vmatpush.msra.mxu1 %v5039_v57 }
 0x153   :  { %v4982_v39 = vadd.f32 %v1036_v12, %v1035_v25  ;;  %1482 = vmatpush.msrb.mxu2 %v5041_v16  ;;  %v5046_v25 = vld [vmem:[#allocation3 + $0xd8] sm:$0xff]  ;;  %v5048_v12 = vld [vmem:[#allocation3 + $0xe0] sm:$0xff] }
 0x154   :  { %1442 = vmatpush.msra.mxu0 %v5037_v22  ;;  %1463 = vmatpush.msra.mxu1 %v5048_v12 }
 0x155   :  { %v1040_v40 = vpack.c.bf16 %v4982_v39, %v4982_v39  ;;  %1229 = vmatmul.f32.vlgmr.msrb.gmra.mxu1 %v4982_v39  ;;  %1249 = vmatmul.f32.vlgmr.msra.gmra.mxu2 %v4982_v39 }
 0x156   :  { %1269 = vmatmul.f32.vlgmr.msra.gmra.mxu3 %v4982_v39  ;;  %1443 = vmatpush.msra.mxu0 %v5046_v25 }
 0x157   :  { %3673 = vst [vmem:[%s6475_s5 + $0x20] sm:$0xf] %v1040_v40  ;;  %v5050_v40 = vld [vmem:[#allocation3 + $0xe8] sm:$0xff]  ;;  %1464 = vmatpush.msra.mxu1 %v5060_v62 }
 0x158   :  { %1483 = vmatpush.msrb.mxu2 %v5050_v40  ;;  %1444 = vmatpush.msra.mxu0 %v5058_v44 }
 0x159   :  { %1465 = vmatpush.msra.mxu1 %v5067_v7 }
 0x15a   :  { %1484 = vmatpush.msrb.mxu2 %v5062_v34  ;;  %1445 = vmatpush.msra.mxu0 %v5065_v2 }
 0x15b   :  { %1466 = vmatpush.msra.mxu1 %v5076_v11 }
 0x15c   :  { %1485 = vmatpush.msrb.mxu2 %v5071_v21  ;;  %1446 = vmatpush.msra.mxu0 %v5074_v15 }
 0x1a8   :  { %v1122_v28 = vpop.f32.mrf.mxu2  ;;  %v1142_v23 = vpop.f32.mrf.mxu3 }
 0x1a9   :  { %v1273_v63 = vadd.f32 %v1122_v28, %v287_v45  ;;  %v1293_v8 = vadd.f32 %v1142_v23, %v316_v43  ;;  %v5080_v28 = vld [vmem:[#allocation3 + $0xa0] sm:$0xff]  ;;  %v5083_v23 = vld [vmem:[#allocation3 + $0x78] sm:$0xff]  ;;  %v5089_v43 = vld [vmem:[#allocation3 + $0x88] sm:$0xff] }
 0x1aa   :  { %v5085_v45 = vld [vmem:[#allocation3 + $0x80] sm:$0xff]  ;;  %1486 = vmatpush.msrb.mxu2 %v5080_v28  ;;  %1447 = vmatpush.msra.mxu0 %v5083_v23 }
 0x1ab   :  { %v3674_v6 = vmul.f32 -1.442695, %v1273_v63  ;;  %v3675_v31 = vmul.f32 -1.442695, %v1293_v8  ;;  %v5092_v63 = vld [vmem:[#allocation3 + $0x60] sm:$0xff]  ;;  %v5094_v8 = vld [vmem:[#allocation3 + $0x68] sm:$0xff]  ;;  %1467 = vmatpush.msra.mxu1 %v5085_v45 }
 0x1ac   :  { %1487 = vmatpush.msrb.mxu2 %v5089_v43  ;;  %1448 = vmatpush.msra.mxu0 %v5092_v63 }
 0x1ad   :  { %3805 = vpow2.f32 %v3674_v6  ;;  %v5101_v6 = vld [vmem:[#allocation3 + $0x48] sm:$0xff]  ;;  %1468 = vmatpush.msra.mxu1 %v5094_v8 }
 0x1ae   :  { %3807 = vpow2.f32 %v3675_v31  ;;  %v5107_v31 = vld [vmem:[#allocation3 + $0x58] sm:$0xff]  ;;  %1488 = vmatpush.msrb.mxu2 %v5098_v5  ;;  %1449 = vmatpush.msra.mxu0 %v5101_v6 }
 0x1af   :  { %1469 = vmatpush.msra.mxu1 %v5103_v17 }
 0x1b0   :  { %1489 = vmatpush.msrb.mxu2 %v5107_v31  ;;  %1450 = vmatpush.msra.mxu0 %v5110_v60 }
 0x1b1   :  { %1470 = vmatpush.msra.mxu1 %v5112_v56 }
 0x1b2   :  { %1490 = vmatpush.msrb.mxu2 %v5116_v0  ;;  %1451 = vmatpush.msra.mxu0 %v5124_v61 }
 0x1b3   :  { %v3806_v46 = vpop.eup %3805  ;;  %1471 = vmatpush.msra.mxu1 %v5126_v52 }
 0x1b4   :  { %v3808_v4 = vpop.eup %3807  ;;  %v1277_v53 = vadd.f32 1.0, %v3806_v46  ;;  %1491 = vmatpush.msrb.mxu2 %v5128_v27  ;;  %v5134_v46 = vld [vmem:[#allocation3] sm:$0xff] }
 0x1b5   :  { %v5119_v41 = vadd.f32 1.0, %v3808_v4  ;;  %v5136_v4 = vld [vmem:[#allocation3 + $0x8] sm:$0xff]  ;;  %1452 = vmatpush.msra.mxu0 %v5134_v46 }
 0x1b6   :  { %3809 = vrcp.f32 %v1277_v53  ;;  %6661 = vst [vmem:[#allocation52_spill] sm:$0xff] %v5136_v4  ;;  %1472 = vmatpush.msra.mxu1 %v5136_v4  ;;  %1492 = vmatpush.msrb.mxu2 %v5138_v47  ;;  %v1289_v33 = vand.u32 2147483648, %v1277_v53  ;;  %v1287_v4 = vand.u32 2147483647, %v1277_v53  ;;  %vm1283_vm1 = vweird.f32 %v1277_v53 }
 0x1b7   :  { %3811 = vrcp.f32 %v5119_v41  ;;  %vm1303_vm5 = vweird.f32 %v5119_v41 }
 0x1b8   :  { %1769 = vmatpush.msra.mxu2 %v4992_v51  ;;  %v1162_v51 = vpop.f32.mrf.mxu0  ;;  %vm1288_vm3 = vcmp.eq.f32.partialorder %v1287_v4, 8.507059e+37 }
 0x1ba   :  { %1770 = vmatpush.msra.mxu2 %v5001_v37  ;;  %v1290_v37 = vor.u32 1.1754944e-38, %v1289_v33 }
 0x1bc   :  { %v3810_v10 = vpop.eup %3809  ;;  %1771 = vmatpush.msra.mxu2 %v5010_v3  ;;  %v5159_v3 = vld [vmem:[#allocation3 + $0x2f8] sm:$0xff] }
 0x1bd   :  { %v5144_v38 = vpop.eup %3811  ;;  %v1279_v32 = vmul.f32 %v3810_v10, %v1277_v53  ;;  %vm1284_vm0 = vweird.f32 %v3810_v10  ;;  %6663 = vst [vmem:[#allocation54_spill] sm:$0xff] %v5159_v3  ;;  %1585 = vmatpush.msrb.mxu1 %v5159_v3  ;;  %v5336_v3 = vld [vmem:[#allocation3 + $0x190] sm:$0xff] }
 0x1be   :  { %v1299_v36 = vmul.f32 %v5144_v38, %v5119_v41  ;;  %1772 = vmatpush.msra.mxu2 %v5019_v59  ;;  %vm1285_vm2 = vmor %vm1283_vm1, %vm1284_vm0  ;;  %vm1304_vm4 = vweird.f32 %v5144_v38 }
 0x1bf   :  { %v1280_v26 = vsub.f32 1.0, %v1279_v32  ;;  %v1313_v32 = vadd.f32 %v4936_v54, %v1162_v51  ;;  %v5172_v54 = vld [vmem:[#allocation3 + $0x2e0] sm:$0xff]  ;;  %vm5177_vm6 = vmor %vm1303_vm5, %vm1304_vm4  ;;  %v5201_v51 = vld [vmem:[#allocation3 + $0x2a8] sm:$0xff] }
 0x1c0   :  { %v1300_v27 = vsub.f32 1.0, %v1299_v36  ;;  %1773 = vmatpush.msra.mxu2 %v5028_v14  ;;  %v5157_v36 = vld [vmem:[#allocation3 + $0x2f0] sm:$0xff]  ;;  %6664 = vst [vmem:[#allocation55_spill] sm:$0xff] %v5172_v54  ;;  %1586 = vmatpush.msrb.mxu1 %v5172_v54  ;;  %v5186_v14 = vld [vmem:[#allocation3 + $0x2b8] sm:$0xff] }
 0x1c1   :  { %v1281_v52 = vmul.f32 %v3810_v10, %v1280_v26  ;;  %v5155_v26 = vld [vmem:[#allocation3 + $0x2e8] sm:$0xff]  ;;  %1565 = vmatpush.msrb.mxu0 %v5157_v36 }
 0x1c2   :  { %v1301_v47 = vmul.f32 %v5144_v38, %v1300_v27  ;;  %1774 = vmatpush.msra.mxu2 %v5037_v22  ;;  %1545 = vmatpush.msrb.mxu3 %v5155_v26  ;;  %v5168_v27 = vld [vmem:[#allocation3 + $0x2d0] sm:$0xff]  ;;  %v5188_v22 = vld [vmem:[#allocation3 + $0x2c0] sm:$0xff] }
 0x1c3   :  { %v1282_v0 = vadd.f32 %v3810_v10, %v1281_v52 }
 0x1c4   :  { %v1302_v53 = vadd.f32 %v5144_v38, %v1301_v47  ;;  %1775 = vmatpush.msra.mxu2 %v5046_v25  ;;  %1546 = vmatpush.msrb.mxu3 %v5168_v27  ;;  %v5190_v25 = vld [vmem:[#allocation3 + $0x2c8] sm:$0xff]  ;;  %v5229_v47 = vld [vmem:[#allocation3 + $0x258] sm:$0xff] }
 0x1c5   :  { %v1286_v56 = vsel %vm1285_vm2, %v3810_v10, %v1282_v0  ;;  %v1309_v10 = vand.u32 2147483648, %v5119_v41  ;;  %v5170_v0 = vld [vmem:[#allocation3 + $0x2d8] sm:$0xff]  ;;  %6667 = vst [vmem:[#allocation56_spill] sm:$0xff] %v5190_v25  ;;  %1587 = vmatpush.msrb.mxu1 %v5190_v25  ;;  %v5245_v25 = vld [vmem:[#allocation3 + $0x250] sm:$0xff] }
 0x1c6   :  { %v1291_v52 = vsel %vm1288_vm3, %v1290_v37, %v1286_v56  ;;  %v1307_v56 = vand.u32 2147483647, %v5119_v41  ;;  %1566 = vmatpush.msrb.mxu0 %v5170_v0  ;;  %1776 = vmatpush.msra.mxu2 %v5058_v44  ;;  %v1306_v41 = vsel %vm5177_vm6, %v5144_v38, %v1302_v53  ;;  %v5203_v37 = vld [vmem:[#allocation3 + $0x2b0] sm:$0xff]  ;;  %v5209_v44 = vld [vmem:[#allocation3 + $0x288] sm:$0xff]  ;;  %v5221_v53 = vld [vmem:[#allocation3 + $0x278] sm:$0xff]  ;;  %6672 = vst [vmem:[#allocation61_spill] sm:$0xff] %v5245_v25 }
 0x1c7   :  { %v1314_v33 = vmul.f32 %v1313_v32, %v1291_v52  ;;  %1547 = vmatpush.msrb.mxu3 %v5186_v14  ;;  %v1310_v4 = vor.u32 1.1754944e-38, %v1309_v10  ;;  %6668 = vst [vmem:[#allocation57_spill] sm:$0xff] %v5203_v37  ;;  %1588 = vmatpush.msrb.mxu1 %v5203_v37  ;;  %v5211_v32 = vld [vmem:[#allocation3 + $0x290] sm:$0xff]  ;;  %v5213_v52 = vld [vmem:[#allocation3 + $0x298] sm:$0xff]  ;;  %v5243_v37 = vld [vmem:[#allocation3 + $0x248] sm:$0xff] }
 0x1c8   :  { %1567 = vmatpush.msrb.mxu0 %v5188_v22  ;;  %1777 = vmatpush.msra.mxu2 %v5065_v2  ;;  %vm1308_vm7 = vcmp.eq.f32.partialorder %v1307_v56, 8.507059e+37  ;;  %6669 = vst [vmem:[#allocation58_spill] sm:$0xff] %v5213_v52  ;;  %v5219_v2 = vld [vmem:[#allocation3 + $0x270] sm:$0xff]  ;;  %v5231_v56 = vld [vmem:[#allocation3 + $0x260] sm:$0xff] }
 0x1c9   :  { %v1315_v59 = vadd.f32 %v1314_v33, %v4823_v24  ;;  %v5199_v24 = vld [vmem:[#allocation3 + $0x2a0] sm:$0xff]  ;;  %v1311_v38 = vsel %vm1308_vm7, %v1310_v4, %v1306_v41  ;;  %1589 = vmatpush.msrb.mxu1 %v5213_v52 }
 0x1ca   :  { %1548 = vmatpush.msrb.mxu3 %v5199_v24  ;;  %1568 = vmatpush.msrb.mxu0 %v5201_v51  ;;  %v5223_v33 = vld [vmem:[#allocation3 + $0x280] sm:$0xff]  ;;  %v1317_v10 = vsub.f32 1.0, %v1311_v38 }
 0x1cb   :  { %3813 = vtanh.f32 %v1315_v59  ;;  %1778 = vmatpush.msra.mxu2 %v5074_v15  ;;  %6670 = vst [vmem:[#allocation59_spill] sm:$0xff] %v5223_v33  ;;  %1590 = vmatpush.msrb.mxu1 %v5223_v33  ;;  %v5233_v59 = vld [vmem:[#allocation3 + $0x268] sm:$0xff]  ;;  %v5241_v33 = vld [vmem:[#allocation3 + $0x240] sm:$0xff] }
 0x1cc   :  { %1549 = vmatpush.msrb.mxu3 %v5209_v44  ;;  %1569 = vmatpush.msrb.mxu0 %v5211_v32  ;;  %6671 = vst [vmem:[#allocation60_spill] sm:$0xff] %v5233_v59 }
 0x1cd   :  { %1779 = vmatpush.msra.mxu2 %v5083_v23  ;;  %v1319_v23 = vmul.f32 %v1311_v38, %v4959_v29  ;;  %1591 = vmatpush.msrb.mxu1 %v5233_v59  ;;  %v5255_v38 = vld [vmem:[#allocation3 + $0x230] sm:$0xff] }
 0x1ce   :  { %1550 = vmatpush.msrb.mxu3 %v5219_v2  ;;  %1570 = vmatpush.msrb.mxu0 %v5221_v53 }
 0x1cf   :  { %1780 = vmatpush.msra.mxu2 %v5092_v63  ;;  %1592 = vmatpush.msrb.mxu1 %v5245_v25 }
 0x1d0   :  { %1551 = vmatpush.msrb.mxu3 %v5229_v47  ;;  %1571 = vmatpush.msrb.mxu0 %v5231_v56 }
 0x1d1   :  { %v3814_v15 = vpop.eup %3813  ;;  %1781 = vmatpush.msra.mxu2 %v5101_v6 }
 0x1d2   :  { %v1230_v41 = vpop.f32.mrf.mxu1  ;;  %v1318_v4 = vmul.f32 %v3814_v15, %v1317_v10  ;;  %1552 = vmatpush.msrb.mxu3 %v5241_v33  ;;  %1572 = vmatpush.msrb.mxu0 %v5243_v37  ;;  %v5257_v10 = vld [vmem:[#allocation3 + $0x238] sm:$0xff] }
 0x1d3   :  { %v1321_v52 = vadd.f32 %v1230_v41, %v4828_v30  ;;  %v5253_v30 = vld [vmem:[#allocation3 + $0x228] sm:$0xff]  ;;  %6674 = vst [vmem:[#allocation63_spill] sm:$0xff] %v5257_v10  ;;  %1782 = vmatpush.msra.mxu2 %v5110_v60  ;;  %v5268_v15 = vld [vmem:[#allocation3 + $0x218] sm:$0xff]  ;;  %v5270_v41 = vld [vmem:[#allocation3 + $0x220] sm:$0xff]  ;;  %1593 = vmatpush.msrb.mxu1 %v5257_v10 }
 0x1d4   :  { %v5248_v63 = vadd.f32 %v1319_v23, %v1318_v4  ;;  %1553 = vmatpush.msrb.mxu3 %v5253_v30  ;;  %6675 = vst [vmem:[#allocation64_spill] sm:$0xff] %v5270_v41  ;;  %1573 = vmatpush.msrb.mxu0 %v5255_v38  ;;  %v5279_v23 = vld [vmem:[#allocation3 + $0x1f8] sm:$0xff]  ;;  %v5289_v10 = vld [vmem:[#allocation3 + $0x1e0] sm:$0xff] }
 0x1d5   :  { %v3676_v29 = vmul.f32 -1.442695, %v1321_v52  ;;  %v5266_v52 = vld [vmem:[#allocation3 + $0x210] sm:$0xff]  ;;  %1783 = vmatpush.msra.mxu2 %v5124_v61  ;;  %1594 = vmatpush.msrb.mxu1 %v5270_v41  ;;  %v5298_v61 = vld [vmem:[#allocation3 + $0x1c8] sm:$0xff]  ;;  %v5303_v41 = vld [vmem:[#allocation3 + $0x1d8] sm:$0xff] }
 0x1d6   :  { %6673 = vst [vmem:[#allocation62_spill] sm:$0xff] %v5248_v63  ;;  %v1369_v6 = vpack.c.bf16 %v5248_v63, %v5248_v63  ;;  %1453 = vmatmul.f32.vlgmr.msra.gmra.mxu0 %v5248_v63  ;;  %1473 = vmatmul.f32.vlgmr.msra.gmra.mxu1 %v5248_v63 }
 0x1d7   :  { %3815 = vpow2.f32 %v3676_v29  ;;  %1493 = vmatmul.f32.vlgmr.msrb.gmra.mxu2 %v5248_v63  ;;  %1554 = vmatpush.msrb.mxu3 %v5266_v52  ;;  %v5281_v29 = vld [vmem:[#allocation3 + $0x200] sm:$0xff]  ;;  %v5283_v63 = vld [vmem:[#allocation3 + $0x208] sm:$0xff]  ;;  %6678 = vst [vmem:[#allocation67_spill] sm:$0xff] %v5303_v41 }
 0x1d8   :  { %3678 = vst [vmem:[%s6475_s5 + $0x4] sm:$0xf] %v1369_v6  ;;  %v1250_v60 = vpop.f32.mrf.mxu2  ;;  %1574 = vmatpush.msrb.mxu0 %v5268_v15  ;;  %1784 = vmatpush.msra.mxu2 %v5134_v46  ;;  %v5310_v46 = vld [vmem:[#allocation3 + $0x1b0] sm:$0xff] }
 0x1d9   :  { %v1341_v4 = vadd.f32 %v1250_v60, %v4917_v49  ;;  %6676 = vst [vmem:[#allocation65_spill] sm:$0xff] %v5283_v63  ;;  %1555 = vmatpush.msrb.mxu3 %v5279_v23  ;;  %v5291_v49 = vld [vmem:[#allocation3 + $0x1e8] sm:$0xff]  ;;  %v5293_v60 = vld [vmem:[#allocation3 + $0x1f0] sm:$0xff]  ;;  %1595 = vmatpush.msrb.mxu1 %v5283_v63  ;;  %v5313_v63 = vld [vmem:[#allocation3 + $0x1b8] sm:$0xff] }
 0x1da   :  { %6677 = vst [vmem:[#allocation66_spill] sm:$0xff] %v5293_v60  ;;  %1575 = vmatpush.msrb.mxu0 %v5281_v29  ;;  %1897 = vmatpush.msrb.mxu2 %v5157_v36  ;;  %v5321_v36 = vld [vmem:[#allocation3 + $0x198] sm:$0xff] }
 0x1db   :  { %v3677_v6 = vmul.f32 -1.442695, %v1341_v4  ;;  %1556 = vmatpush.msrb.mxu3 %v5289_v10  ;;  %v5301_v4 = vld [vmem:[#allocation3 + $0x1d0] sm:$0xff]  ;;  %1596 = vmatpush.msrb.mxu1 %v5293_v60  ;;  %6679 = vst [vmem:[#allocation68_spill] sm:$0xff] %v5310_v46  ;;  %v5326_v60 = vld [vmem:[#allocation3 + $0x1a8] sm:$0xff] }
 0x1dc   :  { %1576 = vmatpush.msrb.mxu0 %v5291_v49  ;;  %1898 = vmatpush.msrb.mxu2 %v5170_v0  ;;  %v5331_v0 = vld [vmem:[#allocation3 + $0x180] sm:$0xff] }
 0x1dd   :  { %v3816_v25 = vpop.eup %3815  ;;  %3817 = vpow2.f32 %v3677_v6  ;;  %1557 = vmatpush.msrb.mxu3 %v5298_v61  ;;  %v5315_v6 = vld [vmem:[#allocation3 + $0x1c0] sm:$0xff]  ;;  %1597 = vmatpush.msrb.mxu1 %v5303_v41  ;;  %v5334_v41 = vld [vmem:[#allocation3 + $0x188] sm:$0xff] }
 0x1de   :  { %v5306_v59 = vadd.f32 1.0, %v3816_v25  ;;  %6680 = vst [vmem:[#allocation69_spill] sm:$0xff] %v5315_v6  ;;  %1577 = vmatpush.msrb.mxu0 %v5301_v4  ;;  %v5324_v25 = vld [vmem:[#allocation3 + $0x1a0] sm:$0xff]  ;;  %1899 = vmatpush.msrb.mxu2 %v5188_v22 }
 0x1df   :  { %1558 = vmatpush.msrb.mxu3 %v5310_v46  ;;  %1598 = vmatpush.msrb.mxu1 %v5315_v6 }
 0x1e0   :  { %3819 = vrcp.f32 %v5306_v59  ;;  %1578 = vmatpush.msrb.mxu0 %v5313_v63  ;;  %1900 = vmatpush.msrb.mxu2 %v5201_v51  ;;  %v1337_v51 = vand.u32 2147483648, %v5306_v59  ;;  %vm1331_vm9 = vweird.f32 %v5306_v59 }
 0x1e1   :  { %1559 = vmatpush.msrb.mxu3 %v5321_v36  ;;  %1599 = vmatpush.msrb.mxu1 %v5326_v60 }
 0x1e2   :  { %1579 = vmatpush.msrb.mxu0 %v5324_v25  ;;  %1901 = vmatpush.msrb.mxu2 %v5211_v32 }
 0x1e3   :  { %v3818_v54 = vpop.eup %3817  ;;  %1560 = vmatpush.msrb.mxu3 %v5331_v0  ;;  %1600 = vmatpush.msrb.mxu1 %v5336_v3 }
 0x1e4   :  { %v5339_v46 = vadd.f32 1.0, %v3818_v54  ;;  %1580 = vmatpush.msrb.mxu0 %v5334_v41  ;;  %1902 = vmatpush.msrb.mxu2 %v5221_v53  ;;  %v6692_v53 = vld [vmem:[#allocation58_spill] sm:$0xff] }
 0x1e5   :  { %1789 = vmatpush.msra.mxu3 %v4994_v58  ;;  %1877 = vmatpush.msra.mxu1 %v5155_v26  ;;  %v1335_v58 = vand.u32 2147483647, %v5306_v59  ;;  %v1270_v26 = vpop.f32.mrf.mxu3 }
 0x1e6   :  { %v3820_v22 = vpop.eup %3819  ;;  %3821 = vrcp.f32 %v5339_v46  ;;  %1809 = vmatpush.msra.mxu0 %v4996_v18  ;;  %1903 = vmatpush.msrb.mxu2 %v5231_v56  ;;  %vm1351_vm13 = vweird.f32 %v5339_v46  ;;  %v6695_v56 = vld [vmem:[#allocation61_spill] sm:$0xff] }
 0x1e7   :  { %v1327_v6 = vmul.f32 %v3820_v22, %v5306_v59  ;;  %1790 = vmatpush.msra.mxu3 %v5003_v50  ;;  %1878 = vmatpush.msra.mxu1 %v5168_v27  ;;  %vm1332_vm8 = vweird.f32 %v3820_v22  ;;  %v1338_v27 = vor.u32 1.1754944e-38, %v1337_v51  ;;  %vm1336_vm11 = vcmp.eq.f32.partialorder %v1335_v58, 8.507059e+37  ;;  %v6696_v59 = vld [vmem:[#allocation63_spill] sm:$0xff] }
 0x1e8   :  { %1810 = vmatpush.msra.mxu0 %v5005_v20  ;;  %1904 = vmatpush.msrb.mxu2 %v5243_v37  ;;  %vm1333_vm10 = vmor %vm1331_vm9, %vm1332_vm8 }
 0x1e9   :  { %v1328_v54 = vsub.f32 1.0, %v1327_v6  ;;  %1791 = vmatpush.msra.mxu3 %v5012_v35  ;;  %1879 = vmatpush.msra.mxu1 %v5186_v14  ;;  %v1361_v14 = vadd.f32 %v4975_v9, %v1270_v26  ;;  %v1355_v9 = vand.u32 2147483647, %v5339_v46 }
 0x1ea   :  { %1811 = vmatpush.msra.mxu0 %v5014_v19  ;;  %1905 = vmatpush.msrb.mxu2 %v5255_v38  ;;  %v6699_v38 = vld [vmem:[#allocation66_spill] sm:$0xff] }
 0x1eb   :  { %v1329_v32 = vmul.f32 %v3820_v22, %v1328_v54  ;;  %1792 = vmatpush.msra.mxu3 %v5021_v42  ;;  %1880 = vmatpush.msra.mxu1 %v5199_v24  ;;  %vm1356_vm15 = vcmp.eq.f32.partialorder %v1355_v9, 8.507059e+37 }
 0x1ec   :  { %v3822_v18 = vpop.eup %3821  ;;  %1812 = vmatpush.msra.mxu0 %v5023_v1  ;;  %1906 = vmatpush.msrb.mxu2 %v5268_v15  ;;  %v1357_v1 = vand.u32 2147483648, %v5339_v46  ;;  %v6702_v15 = vld [vmem:[#allocation21_spill] sm:$0xff] }
 0x1ed   :  { %v1347_v50 = vmul.f32 %v3822_v18, %v5339_v46  ;;  %v1330_v20 = vadd.f32 %v3820_v22, %v1329_v32  ;;  %1793 = vmatpush.msra.mxu3 %v5030_v48  ;;  %1881 = vmatpush.msra.mxu1 %v5209_v44  ;;  %vm1352_vm12 = vweird.f32 %v3822_v18  ;;  %v6690_v44 = vld [vmem:[#allocation56_spill] sm:$0xff] }
 0x1ee   :  { %1813 = vmatpush.msra.mxu0 %v5032_v13  ;;  %1907 = vmatpush.msrb.mxu2 %v5281_v29  ;;  %vm1353_vm14 = vmor %vm1351_vm13, %vm1352_vm12  ;;  %v6704_v29 = vld [vmem:[#allocation14_spill] sm:$0xff] }
 0x1ef   :  { %v1348_v35 = vsub.f32 1.0, %v1347_v50  ;;  %v1334_v19 = vsel %vm1333_vm10, %v3820_v22, %v1330_v20  ;;  %1794 = vmatpush.msra.mxu3 %v5039_v57  ;;  %1882 = vmatpush.msra.mxu1 %v5219_v2  ;;  %v1358_v57 = vor.u32 1.1754944e-38, %v1357_v1  ;;  %v6691_v2 = vld [vmem:[#allocation57_spill] sm:$0xff] }
 0x1f0   :  { %v1339_v37 = vsel %vm1336_vm11, %v1338_v27, %v1334_v19  ;;  %1814 = vmatpush.msra.mxu0 %v5041_v16  ;;  %1908 = vmatpush.msrb.mxu2 %v5291_v49  ;;  %v6705_v49 = vld [vmem:[#allocation26_spill] sm:$0xff] }
 0x1f1   :  { %v1349_v42 = vmul.f32 %v3822_v18, %v1348_v35  ;;  %v1362_v24 = vmul.f32 %v1361_v14, %v1339_v37  ;;  %1795 = vmatpush.msra.mxu3 %v5048_v12  ;;  %1883 = vmatpush.msra.mxu1 %v5229_v47  ;;  %v6694_v47 = vld [vmem:[#allocation60_spill] sm:$0xff] }
 0x1f2   :  { %1815 = vmatpush.msra.mxu0 %v5050_v40  ;;  %1909 = vmatpush.msrb.mxu2 %v5301_v4 }
 0x1f3   :  { %v1350_v48 = vadd.f32 %v3822_v18, %v1349_v42  ;;  %v1363_v13 = vadd.f32 %v1362_v24, %v4920_v55  ;;  %1796 = vmatpush.msra.mxu3 %v5060_v62  ;;  %1884 = vmatpush.msra.mxu1 %v5241_v33  ;;  %v6693_v33 = vld [vmem:[#allocation59_spill] sm:$0xff]  ;;  %v5448_v24 = vld [vmem:[#allocation7] ss:$0 sm:$0xff] }
 0x1f4   :  { %1816 = vmatpush.msra.mxu0 %v5062_v34  ;;  %1910 = vmatpush.msrb.mxu2 %v5313_v63  ;;  %v6697_v63 = vld [vmem:[#allocation64_spill] sm:$0xff] }
 0x1f5   :  { %v1354_v16 = vsel %vm1353_vm14, %v3822_v18, %v1350_v48  ;;  %3823 = vtanh.f32 %v1363_v13  ;;  %1797 = vmatpush.msra.mxu3 %v5067_v7  ;;  %1885 = vmatpush.msra.mxu1 %v5253_v30  ;;  %v6684_v7 = vld [vmem:[#allocation51_spill] sm:$0xff]  ;;  %v6698_v30 = vld [vmem:[#allocation65_spill] sm:$0xff] }
 0x1f6   :  { %v1359_v55 = vsel %vm1356_vm15, %v1358_v57, %v1354_v16  ;;  %1817 = vmatpush.msra.mxu0 %v5071_v21  ;;  %1911 = vmatpush.msrb.mxu2 %v5324_v25 }
 0x1f7   :  { %1798 = vmatpush.msra.mxu3 %v5076_v11  ;;  %v1365_v62 = vsub.f32 1.0, %v1359_v55  ;;  %1886 = vmatpush.msra.mxu1 %v5266_v52  ;;  %v1367_v21 = vmul.f32 %v1359_v55, %v4982_v39  ;;  %v6681_v39 = vld [vmem:[#allocation48_spill] sm:$0xff]  ;;  %v6701_v52 = vld [vmem:[#allocation69_spill] sm:$0xff] }
 0x1f8   :  { %1818 = vmatpush.msra.mxu0 %v5080_v28  ;;  %1912 = vmatpush.msrb.mxu2 %v5334_v41  ;;  %v6685_v28 = vld [vmem:[#allocation68_spill] sm:$0xff]  ;;  %v6703_v41 = vld [vmem:[#allocation10_spill] sm:$0xff] }
 0x1f9   :  { %1799 = vmatpush.msra.mxu3 %v5085_v45  ;;  %1887 = vmatpush.msra.mxu1 %v5279_v23  ;;  %v6686_v45 = vld [vmem:[#allocation52_spill] sm:$0xff]  ;;  %v290_v23 = vadd.f32 %v6703_v41, %v6702_v15 }
 0x1fa   :  { %1819 = vmatpush.msra.mxu0 %v5089_v43  ;;  %v6687_v43 = vld [vmem:[#allocation53_spill] sm:$0xff] }
 0x1fb   :  { %v3824_v34 = vpop.eup %3823  ;;  %1800 = vmatpush.msra.mxu3 %v5094_v8  ;;  %1888 = vmatpush.msra.mxu1 %v5289_v10  ;;  %v6688_v8 = vld [vmem:[#allocation54_spill] sm:$0xff]  ;;  %v6700_v10 = vld [vmem:[#allocation67_spill] sm:$0xff] }
 0x1fc   :  { %v1366_v12 = vmul.f32 %v3824_v34, %v1365_v62  ;;  %1820 = vmatpush.msra.mxu0 %v5098_v5  ;;  %v6682_v5 = vld [vmem:[#allocation49_spill] sm:$0xff]  ;;  %v6706_v62 = vld [vmem:[#allocation12_spill] sm:$0xff] }
 0x1fd   :  { %1801 = vmatpush.msra.mxu3 %v5103_v17  ;;  %1889 = vmatpush.msra.mxu1 %v5298_v61  ;;  %v6683_v17 = vld [vmem:[#allocation50_spill] sm:$0xff]  ;;  %v319_v61 = vadd.f32 %v6705_v49, %v6704_v29 }
 0x1fe   :  { %v5405_v11 = vadd.f32 %v1367_v21, %v1366_v12  ;;  %1821 = vmatpush.msra.mxu0 %v5107_v31  ;;  %v6689_v31 = vld [vmem:[#allocation55_spill] sm:$0xff] }
 0x1ff   :  { %1802 = vmatpush.msra.mxu3 %v6681_v39  ;;  %1890 = vmatpush.msra.mxu1 %v6685_v28  ;;  %v6707_v28 = vld [vmem:[#allocation62_spill] sm:$0xff] }
 0x200   :  { %v1372_v40 = vpack.c.bf16 %v5405_v11, %v5405_v11  ;;  %1561 = vmatmul.f32.vlgmr.msrb.gmra.mxu3 %v5405_v11  ;;  %1581 = vmatmul.f32.vlgmr.msrb.gmra.mxu0 %v5405_v11 }
 0x201   :  { %1601 = vmatmul.f32.vlgmr.msrb.gmra.mxu1 %v5405_v11  ;;  %1822 = vmatpush.msra.mxu0 %v6682_v5 }
 0x202   :  { %3679 = vst [vmem:[%s6475_s5 + $0x24] sm:$0xf] %v1372_v40  ;;  %1803 = vmatpush.msra.mxu3 %v6683_v17  ;;  %1891 = vmatpush.msra.mxu1 %v5321_v36 }
 0x203   :  { %1823 = vmatpush.msra.mxu0 %v6684_v7 }
 0x204   :  { %1804 = vmatpush.msra.mxu3 %v6686_v45  ;;  %1892 = vmatpush.msra.mxu1 %v5331_v0 }
 0x205   :  { %1824 = vmatpush.msra.mxu0 %v6687_v43  ;;  %v6708_v43 = vld [vmem:[#allocation36_spill] sm:$0xff] }
 0x206   :  { %1917 = vmatpush.msrb.mxu3 %v6688_v8 }
 0x208   :  { %1918 = vmatpush.msrb.mxu3 %v6689_v31 }
 0x20a   :  { %1919 = vmatpush.msrb.mxu3 %v6690_v44 }
 0x20c   :  { %1920 = vmatpush.msrb.mxu3 %v6691_v2 }
 0x20e   :  { %1921 = vmatpush.msrb.mxu3 %v6692_v53 }
 0x210   :  { %1922 = vmatpush.msrb.mxu3 %v6693_v33  ;;  %v6709_v33 = vld [vmem:[#allocation28_spill] sm:$0xff] }
 0x212   :  { %1923 = vmatpush.msrb.mxu3 %v6694_v47 }
 0x214   :  { %1924 = vmatpush.msrb.mxu3 %v6695_v56 }
 0x216   :  { %1925 = vmatpush.msrb.mxu3 %v6696_v59 }
 0x218   :  { %1926 = vmatpush.msrb.mxu3 %v6697_v63 }
 0x21a   :  { %1927 = vmatpush.msrb.mxu3 %v6698_v30 }
 0x21c   :  { %1928 = vmatpush.msrb.mxu3 %v6699_v38 }
 0x21e   :  { %1929 = vmatpush.msrb.mxu3 %v6700_v10 }
 0x220   :  { %1930 = vmatpush.msrb.mxu3 %v6701_v52 }
 0x222   :  { %1931 = vmatpush.msrb.mxu3 %v5326_v60 }
 0x224   :  { %1932 = vmatpush.msrb.mxu3 %v5336_v3 }
 0x253   :  { %v1454_v4 = vpop.f32.mrf.mxu0  ;;  %v1474_v46 = vpop.f32.mrf.mxu1 }
 0x254   :  { %v1605_v6 = vadd.f32 %v1454_v4, %v290_v23  ;;  %v1625_v36 = vadd.f32 %v1474_v46, %v319_v61 }
 0x256   :  { %v3680_v25 = vmul.f32 -1.442695, %v1605_v6  ;;  %v3681_v0 = vmul.f32 -1.442695, %v1625_v36 }
 0x258   :  { %3825 = vpow2.f32 %v3680_v25 }
 0x259   :  { %3827 = vpow2.f32 %v3681_v0  ;;  %v5465_v0 = vld [vmem:[#allocation7 + $0x1] ss:$0 sm:$0xff] }
 0x25a   :  { %v1494_v14 = vpop.f32.mrf.mxu2 }
 0x25b   :  { %v1645_v9 = vadd.f32 %v5448_v24, %v1494_v14 }
 0x25e   :  { %v3826_v22 = vpop.eup %3825 }
 0x25f   :  { %v3828_v54 = vpop.eup %3827  ;;  %v1609_v51 = vadd.f32 1.0, %v3826_v22 }
 0x260   :  { %v1629_v60 = vadd.f32 1.0, %v3828_v54 }
 0x261   :  { %3829 = vrcp.f32 %v1609_v51  ;;  %v1621_v20 = vand.u32 2147483648, %v1609_v51  ;;  %v1619_v35 = vand.u32 2147483647, %v1609_v51  ;;  %vm1615_vm1 = vweird.f32 %v1609_v51 }
 0x262   :  { %3831 = vrcp.f32 %v1629_v60  ;;  %v1641_v57 = vand.u32 2147483648, %v1629_v60  ;;  %vm1635_vm5 = vweird.f32 %v1629_v60  ;;  %v1639_v55 = vand.u32 2147483647, %v1629_v60 }
 0x263   :  { %v1622_v42 = vor.u32 1.1754944e-38, %v1621_v20  ;;  %vm1620_vm3 = vcmp.eq.f32.partialorder %v1619_v35, 8.507059e+37 }
 0x264   :  { %v1642_v21 = vor.u32 1.1754944e-38, %v1641_v57  ;;  %vm1640_vm7 = vcmp.eq.f32.partialorder %v1639_v55, 8.507059e+37  ;;  %v5491_v57 = vld [vmem:[#allocation3 + $0x158] sm:$0xff] }
 0x265   :  { %v5498_v55 = vld [vmem:[#allocation3 + $0x138] sm:$0xff] }
 0x267   :  { %v3830_v3 = vpop.eup %3829 }
 0x268   :  { %v3832_v32 = vpop.eup %3831  ;;  %v1611_v58 = vmul.f32 %v3830_v3, %v1609_v51  ;;  %vm1616_vm0 = vweird.f32 %v3830_v3 }
 0x269   :  { %v1631_v18 = vmul.f32 %v3832_v32, %v1629_v60  ;;  %vm1617_vm2 = vmor %vm1615_vm1, %vm1616_vm0  ;;  %vm1636_vm4 = vweird.f32 %v3832_v32 }
 0x26a   :  { %v1612_v26 = vsub.f32 1.0, %v1611_v58  ;;  %vm1637_vm6 = vmor %vm1635_vm5, %vm1636_vm4 }
 0x26b   :  { %v1632_v50 = vsub.f32 1.0, %v1631_v18  ;;  %v6710_v18 = vld [vmem:[#allocation37_spill] sm:$0xff] }
 0x26c   :  { %v1613_v27 = vmul.f32 %v3830_v3, %v1612_v26 }
 0x26d   :  { %v1633_v19 = vmul.f32 %v3832_v32, %v1632_v50 }
 0x26e   :  { %v1614_v37 = vadd.f32 %v3830_v3, %v1613_v27 }
 0x26f   :  { %v1634_v48 = vadd.f32 %v3832_v32, %v1633_v19 }
 0x270   :  { %v1618_v1 = vsel %vm1617_vm2, %v3830_v3, %v1614_v37 }
 0x271   :  { %v1623_v13 = vsel %vm1620_vm3, %v1622_v42, %v1618_v1  ;;  %v1638_v12 = vsel %vm1637_vm6, %v3832_v32, %v1634_v48  ;;  %v5482_v48 = vld [vmem:[#allocation3 + $0x170] sm:$0xff] }
 0x272   :  { %v1646_v16 = vmul.f32 %v1645_v9, %v1623_v13  ;;  %v1643_v40 = vsel %vm1640_vm7, %v1642_v21, %v1638_v12  ;;  %v5480_v9 = vld [vmem:[#allocation3 + $0x168] sm:$0xff]  ;;  %2121 = vmatpush.msrb.mxu1 %v5482_v48  ;;  %v5489_v13 = vld [vmem:[#allocation3 + $0x150] sm:$0xff]  ;;  %v5507_v12 = vld [vmem:[#allocation3 + $0x120] sm:$0xff] }
 0x273   :  { %v1649_v39 = vsub.f32 1.0, %v1643_v40  ;;  %v1651_v45 = vmul.f32 %v1643_v40, %v6707_v28  ;;  %2101 = vmatpush.msrb.mxu0 %v5480_v9  ;;  %v5509_v21 = vld [vmem:[#allocation3 + $0x128] sm:$0xff]  ;;  %v5511_v40 = vld [vmem:[#allocation3 + $0x130] sm:$0xff]  ;;  %v5527_v28 = vld [vmem:[#allocation3 + $0xf8] sm:$0xff] }
 0x274   :  { %v1647_v34 = vadd.f32 %v1646_v16, %v6706_v62  ;;  %v5493_v16 = vld [vmem:[#allocation3 + $0x160] sm:$0xff]  ;;  %2122 = vmatpush.msrb.mxu1 %v5491_v57 }
 0x275   :  { %2102 = vmatpush.msrb.mxu0 %v5489_v13  ;;  %v5500_v62 = vld [vmem:[#allocation3 + $0x140] sm:$0xff] }
 0x276   :  { %3833 = vtanh.f32 %v1647_v34  ;;  %v5502_v34 = vld [vmem:[#allocation3 + $0x148] sm:$0xff]  ;;  %2123 = vmatpush.msrb.mxu1 %v5500_v62 }
 0x277   :  { %2103 = vmatpush.msrb.mxu0 %v5498_v55 }
 0x278   :  { %2124 = vmatpush.msrb.mxu1 %v5509_v21 }
 0x279   :  { %2104 = vmatpush.msrb.mxu0 %v5507_v12 }
 0x27c   :  { %v3834_v5 = vpop.eup %3833 }
 0x27d   :  { %v1650_v17 = vmul.f32 %v3834_v5, %v1649_v39  ;;  %v1582_v7 = vpop.f32.mrf.mxu0  ;;  %v5516_v39 = vld [vmem:[#allocation3 + $0x108] sm:$0xff]  ;;  %v5518_v5 = vld [vmem:[#allocation3 + $0x110] sm:$0xff] }
 0x27e   :  { %v1673_v8 = vadd.f32 %v1582_v7, %v6708_v43  ;;  %v1602_v6 = vpop.f32.mrf.mxu1  ;;  %2105 = vmatpush.msrb.mxu0 %v5516_v39  ;;  %2125 = vmatpush.msrb.mxu1 %v5518_v5  ;;  %v5525_v7 = vld [vmem:[#allocation3 + $0xf0] sm:$0xff]  ;;  %v5534_v43 = vld [vmem:[#allocation3 + $0xd8] sm:$0xff] }
 0x27f   :  { %v5454_v31 = vadd.f32 %v1651_v45, %v1650_v17  ;;  %v1693_v22 = vadd.f32 %v5465_v0, %v1602_v6  ;;  %v5520_v17 = vld [vmem:[#allocation3 + $0x118] sm:$0xff]  ;;  %v5529_v45 = vld [vmem:[#allocation3 + $0x100] sm:$0xff]  ;;  %v5575_v6 = vld [vmem:[#allocation3 + $0x88] sm:$0xff] }
 0x280   :  { %v3683_v44 = vmul.f32 -1.442695, %v1673_v8  ;;  %2106 = vmatpush.msrb.mxu0 %v5525_v7  ;;  %2126 = vmatpush.msrb.mxu1 %v5527_v28  ;;  %v5536_v8 = vld [vmem:[#allocation3 + $0xe0] sm:$0xff] }
 0x281   :  { %v1701_v2 = vpack.c.bf16 %v5454_v31, %v5454_v31  ;;  %1785 = vmatmul.f32.vlgmr.msra.gmra.mxu2 %v5454_v31  ;;  %1805 = vmatmul.f32.vlgmr.msra.gmra.mxu3 %v5454_v31 }
 0x282   :  { %3835 = vpow2.f32 %v3683_v44  ;;  %1825 = vmatmul.f32.vlgmr.msra.gmra.mxu0 %v5454_v31  ;;  %v5538_v44 = vld [vmem:[#allocation3 + $0xe8] sm:$0xff]  ;;  %2127 = vmatpush.msrb.mxu1 %v5536_v8 }
 0x283   :  { %3684 = vst [vmem:[%s6475_s5 + $0x8] sm:$0xf] %v1701_v2  ;;  %v1562_v53 = vpop.f32.mrf.mxu3  ;;  %2107 = vmatpush.msrb.mxu0 %v5534_v43  ;;  %v5542_v2 = vld [vmem:[#allocation3 + $0xc0] sm:$0xff] }
 0x284   :  { %v1653_v47 = vadd.f32 %v1562_v53, %v6709_v33  ;;  %v5544_v53 = vld [vmem:[#allocation3 + $0xc8] sm:$0xff]  ;;  %v5546_v33 = vld [vmem:[#allocation3 + $0xd0] sm:$0xff] }
 0x285   :  { %2108 = vmatpush.msrb.mxu0 %v5542_v2  ;;  %2128 = vmatpush.msrb.mxu1 %v5544_v53 }
 0x286   :  { %v3682_v56 = vmul.f32 -1.442695, %v1653_v47 }
 0x288   :  { %v3836_v59 = vpop.eup %3835  ;;  %3837 = vpow2.f32 %v3682_v56 }
 0x289   :  { %v1677_v63 = vadd.f32 1.0, %v3836_v59  ;;  %v5549_v59 = vld [vmem:[#allocation3 + $0xa8] sm:$0xff] }
 0x28a   :  { %2109 = vmatpush.msrb.mxu0 %v5549_v59 }
 0x28b   :  { %3839 = vrcp.f32 %v1677_v63  ;;  %v1689_v3 = vand.u32 2147483648, %v1677_v63  ;;  %vm1683_vm13 = vweird.f32 %v1677_v63  ;;  %v1687_v58 = vand.u32 2147483647, %v1677_v63 }
 0x28d   :  { %v1690_v20 = vor.u32 1.1754944e-38, %v1689_v3  ;;  %vm1688_vm15 = vcmp.eq.f32.partialorder %v1687_v58, 8.507059e+37  ;;  %v5596_v3 = vld [vmem:[#allocation3 + $0x30] sm:$0xff] }
 0x28e   :  { %v3838_v30 = vpop.eup %3837 }
 0x28f   :  { %v1657_v38 = vadd.f32 1.0, %v3838_v30  ;;  %v6711_v30 = vld [vmem:[#allocation24_spill] sm:$0xff] }
 0x291   :  { %3841 = vrcp.f32 %v1657_v38  ;;  %v3840_v10 = vpop.eup %3839  ;;  %v1669_v49 = vand.u32 2147483648, %v1657_v38  ;;  %v1667_v4 = vand.u32 2147483647, %v1657_v38  ;;  %vm1663_vm9 = vweird.f32 %v1657_v38 }
 0x292   :  { %v1679_v52 = vmul.f32 %v3840_v10, %v1677_v63  ;;  %vm1684_vm12 = vweird.f32 %v3840_v10  ;;  %v5551_v63 = vld [vmem:[#allocation3 + $0xb0] sm:$0xff] }
 0x293   :  { %v1670_v25 = vor.u32 1.1754944e-38, %v1669_v49  ;;  %vm1668_vm11 = vcmp.eq.f32.partialorder %v1667_v4, 8.507059e+37  ;;  %vm1685_vm14 = vmor %vm1683_vm13, %vm1684_vm12  ;;  %2129 = vmatpush.msrb.mxu1 %v5551_v63  ;;  %v5569_v4 = vld [vmem:[#allocation3 + $0x78] sm:$0xff] }
 0x294   :  { %v1680_v23 = vsub.f32 1.0, %v1679_v52 }
 0x296   :  { %v1681_v46 = vmul.f32 %v3840_v10, %v1680_v23  ;;  %v5562_v23 = vld [vmem:[#allocation3 + $0x98] sm:$0xff] }
 0x297   :  { %v3842_v15 = vpop.eup %3841  ;;  %2130 = vmatpush.msrb.mxu1 %v5562_v23 }
 0x298   :  { %v1659_v41 = vmul.f32 %v3842_v15, %v1657_v38  ;;  %vm1664_vm8 = vweird.f32 %v3842_v15  ;;  %v1682_v51 = vadd.f32 %v3840_v10, %v1681_v46  ;;  %v5571_v46 = vld [vmem:[#allocation3 + $0x80] sm:$0xff] }
 0x299   :  { %vm1665_vm10 = vmor %vm1663_vm9, %vm1664_vm8  ;;  %2131 = vmatpush.msrb.mxu1 %v5571_v46 }
 0x29a   :  { %v1660_v29 = vsub.f32 1.0, %v1659_v41  ;;  %v1686_v50 = vsel %vm1685_vm14, %v3840_v10, %v1682_v51  ;;  %v6712_v10 = vld [vmem:[#allocation16_spill] sm:$0xff]  ;;  %v5560_v41 = vld [vmem:[#allocation3 + $0x90] sm:$0xff] }
 0x29b   :  { %v1691_v27 = vsel %vm1688_vm15, %v1690_v20, %v1686_v50  ;;  %2110 = vmatpush.msrb.mxu0 %v5560_v41  ;;  %v5589_v51 = vld [vmem:[#allocation3 + $0x50] sm:$0xff] }
 0x29c   :  { %v1661_v61 = vmul.f32 %v3842_v15, %v1660_v29  ;;  %v1697_v35 = vsub.f32 1.0, %v1691_v27  ;;  %v1699_v37 = vmul.f32 %v1691_v27, %v5405_v11  ;;  %v5484_v11 = vld [vmem:[#allocation3 + $0x178] sm:$0xff] }
 0x29d   :  { %2141 = vmatpush.msra.mxu2 %v5484_v11  ;;  %2111 = vmatpush.msrb.mxu0 %v5569_v4  ;;  %v5610_v27 = vld [vmem:[#allocation3 + $0x18] sm:$0xff] }
 0x29e   :  { %v1662_v36 = vadd.f32 %v3842_v15, %v1661_v61  ;;  %v5566_v61 = vld [vmem:[#allocation3 + $0xa0] sm:$0xff] }
 0x29f   :  { %2142 = vmatpush.msra.mxu2 %v5493_v16 }
 0x2a0   :  { %v1666_v54 = vsel %vm1665_vm10, %v3842_v15, %v1662_v36  ;;  %v5557_v15 = vld [vmem:[#allocation3 + $0xb8] sm:$0xff]  ;;  %v5578_v36 = vld [vmem:[#allocation3 + $0x60] sm:$0xff] }
 0x2a1   :  { %v1671_v60 = vsel %vm1668_vm11, %v1670_v25, %v1666_v54  ;;  %2143 = vmatpush.msra.mxu2 %v5502_v34  ;;  %v5580_v25 = vld [vmem:[#allocation3 + $0x68] sm:$0xff]  ;;  %2112 = vmatpush.msrb.mxu0 %v5578_v36 }
 0x2a2   :  { %v1694_v32 = vmul.f32 %v1693_v22, %v1671_v60  ;;  %v5584_v22 = vld [vmem:[#allocation3 + $0x70] sm:$0xff]  ;;  %v5587_v54 = vld [vmem:[#allocation3 + $0x48] sm:$0xff]  ;;  %2132 = vmatpush.msrb.mxu1 %v5580_v25  ;;  %v5593_v60 = vld [vmem:[#allocation3 + $0x58] sm:$0xff] }
 0x2a3   :  { %2144 = vmatpush.msra.mxu2 %v5511_v40  ;;  %2113 = vmatpush.msrb.mxu0 %v5587_v54 }
 0x2a4   :  { %v1695_v26 = vadd.f32 %v1694_v32, %v6710_v18  ;;  %v5598_v32 = vld [vmem:[#allocation3 + $0x38] sm:$0xff]  ;;  %2133 = vmatpush.msrb.mxu1 %v5589_v51  ;;  %v5602_v18 = vld [vmem:[#allocation3 + $0x40] sm:$0xff] }
 0x2a5   :  { %2145 = vmatpush.msra.mxu2 %v5520_v17  ;;  %2114 = vmatpush.msrb.mxu0 %v5596_v3 }
 0x2a6   :  { %3843 = vtanh.f32 %v1695_v26  ;;  %2134 = vmatpush.msrb.mxu1 %v5598_v32 }
 0x2a7   :  { %2146 = vmatpush.msra.mxu2 %v5529_v45  ;;  %2115 = vmatpush.msrb.mxu0 %v5610_v27 }
 0x2a9   :  { %2147 = vmatpush.msra.mxu2 %v5538_v44 }
 0x2ab   :  { %2148 = vmatpush.msra.mxu2 %v5546_v33 }
 0x2ac   :  { %v3844_v19 = vpop.eup %3843 }
 0x2ad   :  { %v1698_v14 = vmul.f32 %v3844_v19, %v1697_v35  ;;  %2149 = vmatpush.msra.mxu2 %v5557_v15  ;;  %v5612_v35 = vld [vmem:[#allocation3 + $0x20] sm:$0xff]  ;;  %v5614_v19 = vld [vmem:[#allocation3 + $0x28] sm:$0xff] }
 0x2ae   :  { %6713 = vst [vmem:[#allocation48_spill] sm:$0xff] %v5612_v35  ;;  %2135 = vmatpush.msrb.mxu1 %v5612_v35 }
 0x2af   :  { %v5470_v42 = vadd.f32 %v1699_v37, %v1698_v14  ;;  %2150 = vmatpush.msra.mxu2 %v5566_v61  ;;  %6714 = vst [vmem:[#allocation49_spill] sm:$0xff] %v5614_v19  ;;  %v5620_v14 = vld [vmem:[#allocation3] sm:$0xff]  ;;  %v5622_v37 = vld [vmem:[#allocation3 + $0x8] sm:$0xff] }
 0x2b0   :  { %6715 = vst [vmem:[#allocation50_spill] sm:$0xff] %v5622_v37  ;;  %2116 = vmatpush.msrb.mxu0 %v5620_v14  ;;  %2136 = vmatpush.msrb.mxu1 %v5622_v37 }
 0x2b1   :  { %v1704_v1 = vpack.c.bf16 %v5470_v42, %v5470_v42  ;;  %1893 = vmatmul.f32.vlgmr.msra.gmra.mxu1 %v5470_v42  ;;  %1913 = vmatmul.f32.vlgmr.msrb.gmra.mxu2 %v5470_v42 }
 0x2b2   :  { %1933 = vmatmul.f32.vlgmr.msrb.gmra.mxu3 %v5470_v42  ;;  %2151 = vmatpush.msra.mxu2 %v5575_v6 }
 0x2b3   :  { %3685 = vst [vmem:[%s6475_s5 + $0x28] sm:$0xf] %v1704_v1  ;;  %v5624_v1 = vld [vmem:[#allocation3 + $0x10] sm:$0xff] }
 0x2b4   :  { %2152 = vmatpush.msra.mxu2 %v5584_v22  ;;  %6716 = vst [vmem:[#allocation51_spill] sm:$0xff] %v5624_v1 }
 0x2b6   :  { %2153 = vmatpush.msra.mxu2 %v5593_v60 }
 0x2b8   :  { %2154 = vmatpush.msra.mxu2 %v5602_v18 }
 0x2ba   :  { %2155 = vmatpush.msra.mxu2 %v5614_v19 }
 0x2bc   :  { %2156 = vmatpush.msra.mxu2 %v5624_v1 }
 0x2be   :  { %2433 = vmatpush.msrb.mxu2 %v5480_v9 }
 0x2c0   :  { %2434 = vmatpush.msrb.mxu2 %v5489_v13 }
 0x2c2   :  { %2435 = vmatpush.msrb.mxu2 %v5498_v55  ;;  %v5641_v55 = vld [vmem:[#allocation3 + $0x2e8] sm:$0xff] }
 0x2c3   :  { %2209 = vmatpush.msra.mxu3 %v5641_v55 }
 0x2c4   :  { %2436 = vmatpush.msrb.mxu2 %v5507_v12  ;;  %v5645_v12 = vld [vmem:[#allocation3 + $0x2f8] sm:$0xff] }
 0x2c5   :  { %6717 = vst [vmem:[#allocation68_spill] sm:$0xff] %v5645_v12  ;;  %2249 = vmatpush.msra.mxu1 %v5645_v12  ;;  %v5731_v12 = vld [vmem:[#allocation3 + $0x250] sm:$0xff] }
 0x2c6   :  { %2437 = vmatpush.msrb.mxu2 %v5516_v39  ;;  %6728 = vst [vmem:[#allocation58_spill] sm:$0xff] %v5731_v12 }
 0x2c8   :  { %2438 = vmatpush.msrb.mxu2 %v5525_v7  ;;  %v5709_v7 = vld [vmem:[#allocation3 + $0x280] sm:$0xff] }
 0x2c9   :  { %6725 = vst [vmem:[#allocation56_spill] sm:$0xff] %v5709_v7 }
 0x2ca   :  { %2439 = vmatpush.msrb.mxu2 %v5534_v43  ;;  %v5676_v43 = vld [vmem:[#allocation3 + $0x2c8] sm:$0xff] }
 0x2cb   :  { %6722 = vst [vmem:[#allocation53_spill] sm:$0xff] %v5676_v43 }
 0x2cc   :  { %2440 = vmatpush.msrb.mxu2 %v5542_v2 }
 0x2ce   :  { %2441 = vmatpush.msrb.mxu2 %v5549_v59  ;;  %v5705_v59 = vld [vmem:[#allocation3 + $0x270] sm:$0xff] }
 0x2d0   :  { %2442 = vmatpush.msrb.mxu2 %v5560_v41 }
 0x2d2   :  { %2443 = vmatpush.msrb.mxu2 %v5569_v4 }
 0x2d4   :  { %2444 = vmatpush.msrb.mxu2 %v5578_v36 }
 0x2d6   :  { %2445 = vmatpush.msrb.mxu2 %v5587_v54 }
 0x2d8   :  { %2446 = vmatpush.msrb.mxu2 %v5596_v3 }
 0x2da   :  { %2447 = vmatpush.msrb.mxu2 %v5610_v27  ;;  %v5784_v27 = vld [vmem:[#allocation3 + $0x1c8] sm:$0xff] }
 0x2db   :  { %6735 = vst [vmem:[#allocation65_spill] sm:$0xff] %v5784_v27 }
 0x2dc   :  { %2448 = vmatpush.msrb.mxu2 %v5620_v14  ;;  %v5796_v14 = vld [vmem:[#allocation3 + $0x1b0] sm:$0xff] }
 0x2dd   :  { %6737 = vst [vmem:[#allocation67_spill] sm:$0xff] %v5796_v14 }
 0x2ff   :  { %v1826_v9 = vpop.f32.mrf.mxu0 }
 0x304   :  { %v1786_v47 = vpop.f32.mrf.mxu2  ;;  %v1806_v56 = vpop.f32.mrf.mxu3 }
 0x305   :  { %v1937_v38 = vadd.f32 %v1786_v47, %v6711_v30  ;;  %v1957_v52 = vadd.f32 %v1806_v56, %v6712_v10 }
 0x307   :  { %v3686_v29 = vmul.f32 -1.442695, %v1937_v38  ;;  %v3687_v49 = vmul.f32 -1.442695, %v1957_v52 }
 0x309   :  { %3845 = vpow2.f32 %v3686_v29 }
 0x30a   :  { %3847 = vpow2.f32 %v3687_v49 }
 0x30f   :  { %v3846_v58 = vpop.eup %3845 }
 0x310   :  { %v3848_v26 = vpop.eup %3847  ;;  %v1941_v50 = vadd.f32 1.0, %v3846_v58 }
 0x311   :  { %v5605_v20 = vadd.f32 1.0, %v3848_v26 }
 0x312   :  { %3849 = vrcp.f32 %v1941_v50  ;;  %v1953_v52 = vand.u32 2147483648, %v1941_v50  ;;  %v1951_v58 = vand.u32 2147483647, %v1941_v50  ;;  %vm1947_vm1 = vweird.f32 %v1941_v50 }
 0x313   :  { %3851 = vrcp.f32 %v5605_v20  ;;  %vm1967_vm5 = vweird.f32 %v5605_v20  ;;  %v1973_v39 = vand.u32 2147483648, %v5605_v20 }
 0x314   :  { %v1954_v13 = vor.u32 1.1754944e-38, %v1953_v52  ;;  %vm1952_vm3 = vcmp.eq.f32.partialorder %v1951_v58, 8.507059e+37  ;;  %v5658_v52 = vld [vmem:[#allocation3 + $0x2e0] sm:$0xff]  ;;  %v5672_v58 = vld [vmem:[#allocation3 + $0x2b8] sm:$0xff] }
 0x315   :  { %6718 = vst [vmem:[#allocation52_spill] sm:$0xff] %v5658_v52  ;;  %2250 = vmatpush.msra.mxu1 %v5658_v52  ;;  %v5729_v52 = vld [vmem:[#allocation3 + $0x248] sm:$0xff] }
 0x317   :  { %2251 = vmatpush.msra.mxu1 %v5676_v43 }
 0x318   :  { %v3850_v47 = vpop.eup %3849 }
 0x319   :  { %v5630_v56 = vpop.eup %3851  ;;  %v1943_v30 = vmul.f32 %v3850_v47, %v1941_v50  ;;  %vm1948_vm0 = vweird.f32 %v3850_v47 }
 0x31a   :  { %v1963_v38 = vmul.f32 %v5630_v56, %v5605_v20  ;;  %vm1949_vm2 = vmor %vm1947_vm1, %vm1948_vm0  ;;  %vm1968_vm4 = vweird.f32 %v5630_v56 }
 0x31b   :  { %v1944_v10 = vsub.f32 1.0, %v1943_v30  ;;  %v1977_v30 = vadd.f32 %v5448_v24, %v1826_v9  ;;  %vm5663_vm6 = vmor %vm1967_vm5, %vm1968_vm4  ;;  %v5674_v9 = vld [vmem:[#allocation3 + $0x2c0] sm:$0xff] }
 0x31c   :  { %v1964_v29 = vsub.f32 1.0, %v1963_v38  ;;  %v5643_v38 = vld [vmem:[#allocation3 + $0x2f0] sm:$0xff] }
 0x31d   :  { %v1945_v49 = vmul.f32 %v3850_v47, %v1944_v10  ;;  %2229 = vmatpush.msra.mxu0 %v5643_v38 }
 0x31e   :  { %v1965_v26 = vmul.f32 %v5630_v56, %v1964_v29  ;;  %v6721_v29 = vld [vmem:[#allocation30_spill] sm:$0xff] }
 0x31f   :  { %v1946_v1 = vadd.f32 %v3850_v47, %v1945_v49 }
 0x320   :  { %v1966_v50 = vadd.f32 %v5630_v56, %v1965_v26  ;;  %v1974_v26 = vor.u32 1.1754944e-38, %v1973_v39  ;;  %v5707_v39 = vld [vmem:[#allocation3 + $0x278] sm:$0xff] }
 0x321   :  { %v1950_v37 = vsel %vm1949_vm2, %v3850_v47, %v1946_v1  ;;  %v5654_v1 = vld [vmem:[#allocation3 + $0x2d0] sm:$0xff]  ;;  %v5656_v47 = vld [vmem:[#allocation3 + $0x2d8] sm:$0xff] }
 0x322   :  { %v1955_v10 = vsel %vm1952_vm3, %v1954_v13, %v1950_v37  ;;  %v1971_v37 = vand.u32 2147483647, %v5605_v20  ;;  %2210 = vmatpush.msra.mxu3 %v5654_v1  ;;  %2230 = vmatpush.msra.mxu0 %v5656_v47  ;;  %v1970_v20 = vsel %vm5663_vm6, %v5630_v56, %v1966_v50  ;;  %v5685_v13 = vld [vmem:[#allocation3 + $0x2a0] sm:$0xff]  ;;  %v5695_v56 = vld [vmem:[#allocation3 + $0x288] sm:$0xff]  ;;  %v5697_v50 = vld [vmem:[#allocation3 + $0x290] sm:$0xff] }
 0x323   :  { %v1978_v24 = vmul.f32 %v1977_v30, %v1955_v10  ;;  %v5687_v30 = vld [vmem:[#allocation3 + $0x2a8] sm:$0xff]  ;;  %v5689_v10 = vld [vmem:[#allocation3 + $0x2b0] sm:$0xff] }
 0x324   :  { %2211 = vmatpush.msra.mxu3 %v5672_v58  ;;  %2231 = vmatpush.msra.mxu0 %v5674_v9  ;;  %6723 = vst [vmem:[#allocation54_spill] sm:$0xff] %v5689_v10  ;;  %vm1972_vm7 = vcmp.eq.f32.partialorder %v1971_v37, 8.507059e+37 }
 0x325   :  { %v1979_v49 = vadd.f32 %v1978_v24, %v6721_v29  ;;  %v1975_v2 = vsel %vm1972_vm7, %v1974_v26, %v1970_v20  ;;  %2252 = vmatpush.msra.mxu1 %v5689_v10  ;;  %v5699_v24 = vld [vmem:[#allocation3 + $0x298] sm:$0xff]  ;;  %v5719_v20 = vld [vmem:[#allocation3 + $0x268] sm:$0xff]  ;;  %v6727_v10 = vld [vmem:[#allocation11_spill] sm:$0xff] }
 0x326   :  { %2212 = vmatpush.msra.mxu3 %v5685_v13  ;;  %2232 = vmatpush.msra.mxu0 %v5687_v30  ;;  %6724 = vst [vmem:[#allocation55_spill] sm:$0xff] %v5699_v24  ;;  %v1981_v37 = vsub.f32 1.0, %v1975_v2  ;;  %v5715_v29 = vld [vmem:[#allocation3 + $0x258] sm:$0xff]  ;;  %v1983_v4 = vmul.f32 %v1975_v2, %v5454_v31  ;;  %v5741_v2 = vld [vmem:[#allocation3 + $0x230] sm:$0xff] }
 0x327   :  { %3853 = vtanh.f32 %v1979_v49  ;;  %2253 = vmatpush.msra.mxu1 %v5699_v24  ;;  %v5717_v49 = vld [vmem:[#allocation3 + $0x260] sm:$0xff]  ;;  %6726 = vst [vmem:[#allocation57_spill] sm:$0xff] %v5719_v20 }
 0x328   :  { %2213 = vmatpush.msra.mxu3 %v5695_v56  ;;  %2233 = vmatpush.msra.mxu0 %v5697_v50 }
 0x329   :  { %2254 = vmatpush.msra.mxu1 %v5709_v7  ;;  %v5727_v7 = vld [vmem:[#allocation3 + $0x240] sm:$0xff] }
 0x32a   :  { %2214 = vmatpush.msra.mxu3 %v5705_v59  ;;  %2234 = vmatpush.msra.mxu0 %v5707_v39 }
 0x32b   :  { %2255 = vmatpush.msra.mxu1 %v5719_v20 }
 0x32c   :  { %2215 = vmatpush.msra.mxu3 %v5715_v29  ;;  %2235 = vmatpush.msra.mxu0 %v5717_v49 }
 0x32d   :  { %v3854_v41 = vpop.eup %3853  ;;  %2256 = vmatpush.msra.mxu1 %v5731_v12  ;;  %v5769_v12 = vld [vmem:[#allocation3 + $0x208] sm:$0xff] }
 0x32e   :  { %v1894_v26 = vpop.f32.mrf.mxu1  ;;  %v1982_v24 = vmul.f32 %v3854_v41, %v1981_v37  ;;  %2216 = vmatpush.msra.mxu3 %v5727_v7  ;;  %2236 = vmatpush.msra.mxu0 %v5729_v52  ;;  %v5743_v37 = vld [vmem:[#allocation3 + $0x238] sm:$0xff]  ;;  %v5756_v41 = vld [vmem:[#allocation3 + $0x220] sm:$0xff]  ;;  %6733 = vst [vmem:[#allocation63_spill] sm:$0xff] %v5769_v12 }
 0x32f   :  { %v1985_v43 = vadd.f32 %v1894_v26, %v6727_v10  ;;  %v5739_v10 = vld [vmem:[#allocation3 + $0x228] sm:$0xff]  ;;  %6730 = vst [vmem:[#allocation60_spill] sm:$0xff] %v5743_v37  ;;  %2257 = vmatpush.msra.mxu1 %v5743_v37  ;;  %v5775_v37 = vld [vmem:[#allocation3 + $0x1e0] sm:$0xff] }
 0x330   :  { %v5734_v36 = vadd.f32 %v1983_v4, %v1982_v24  ;;  %2217 = vmatpush.msra.mxu3 %v5739_v10  ;;  %v5754_v24 = vld [vmem:[#allocation3 + $0x218] sm:$0xff]  ;;  %6731 = vst [vmem:[#allocation61_spill] sm:$0xff] %v5756_v41  ;;  %2237 = vmatpush.msra.mxu0 %v5741_v2  ;;  %v6732_v26 = vld [vmem:[#allocation38_spill] sm:$0xff] }
 0x331   :  { %v3688_v31 = vmul.f32 -1.442695, %v1985_v43  ;;  %v5752_v43 = vld [vmem:[#allocation3 + $0x210] sm:$0xff]  ;;  %2258 = vmatpush.msra.mxu1 %v5756_v41  ;;  %v5789_v41 = vld [vmem:[#allocation3 + $0x1d8] sm:$0xff] }
 0x332   :  { %6729 = vst [vmem:[#allocation59_spill] sm:$0xff] %v5734_v36  ;;  %v2033_v54 = vpack.c.bf16 %v5734_v36, %v5734_v36  ;;  %2117 = vmatmul.f32.vlgmr.msrb.gmra.mxu0 %v5734_v36  ;;  %2137 = vmatmul.f32.vlgmr.msrb.gmra.mxu1 %v5734_v36 }
 0x333   :  { %3855 = vpow2.f32 %v3688_v31  ;;  %2157 = vmatmul.f32.vlgmr.msra.gmra.mxu2 %v5734_v36  ;;  %2218 = vmatpush.msra.mxu3 %v5752_v43  ;;  %v5765_v31 = vld [vmem:[#allocation3 + $0x1f8] sm:$0xff]  ;;  %v5767_v36 = vld [vmem:[#allocation3 + $0x200] sm:$0xff]  ;;  %6736 = vst [vmem:[#allocation66_spill] sm:$0xff] %v5789_v41 }
 0x334   :  { %3690 = vst [vmem:[%s6475_s5 + $0xc] sm:$0xf] %v2033_v54  ;;  %v1914_v3 = vpop.f32.mrf.mxu2  ;;  %2238 = vmatpush.msra.mxu0 %v5754_v24  ;;  %2259 = vmatpush.msra.mxu1 %v5769_v12  ;;  %v5799_v12 = vld [vmem:[#allocation3 + $0x1b8] sm:$0xff] }
 0x335   :  { %v2005_v4 = vadd.f32 %v1914_v3, %v6732_v26  ;;  %2219 = vmatpush.msra.mxu3 %v5765_v31  ;;  %v5777_v3 = vld [vmem:[#allocation3 + $0x1e8] sm:$0xff]  ;;  %v5779_v26 = vld [vmem:[#allocation3 + $0x1f0] sm:$0xff]  ;;  %2561 = vmatpush.msra.mxu2 %v5643_v38  ;;  %v5807_v38 = vld [vmem:[#allocation3 + $0x198] sm:$0xff] }
 0x336   :  { %6734 = vst [vmem:[#allocation64_spill] sm:$0xff] %v5779_v26  ;;  %2239 = vmatpush.msra.mxu0 %v5767_v36  ;;  %2260 = vmatpush.msra.mxu1 %v5779_v26  ;;  %v5812_v26 = vld [vmem:[#allocation3 + $0x1a8] sm:$0xff] }
 0x337   :  { %v3689_v54 = vmul.f32 -1.442695, %v2005_v4  ;;  %2220 = vmatpush.msra.mxu3 %v5775_v37  ;;  %v5787_v4 = vld [vmem:[#allocation3 + $0x1d0] sm:$0xff]  ;;  %2562 = vmatpush.msra.mxu2 %v5656_v47  ;;  %v5817_v47 = vld [vmem:[#allocation3 + $0x180] sm:$0xff] }
 0x338   :  { %2240 = vmatpush.msra.mxu0 %v5777_v3  ;;  %2261 = vmatpush.msra.mxu1 %v5789_v41  ;;  %v5820_v41 = vld [vmem:[#allocation3 + $0x188] sm:$0xff] }
 0x339   :  { %v3856_v20 = vpop.eup %3855  ;;  %3857 = vpow2.f32 %v3689_v54  ;;  %2221 = vmatpush.msra.mxu3 %v5784_v27  ;;  %v5801_v54 = vld [vmem:[#allocation3 + $0x1c0] sm:$0xff]  ;;  %2563 = vmatpush.msra.mxu2 %v5674_v9  ;;  %v5822_v27 = vld [vmem:[#allocation3 + $0x190] sm:$0xff] }
 0x33a   :  { %v5792_v19 = vadd.f32 1.0, %v3856_v20  ;;  %6738 = vst [vmem:[#allocation69_spill] sm:$0xff] %v5801_v54  ;;  %2241 = vmatpush.msra.mxu0 %v5787_v4  ;;  %v5810_v20 = vld [vmem:[#allocation3 + $0x1a0] sm:$0xff]  ;;  %2262 = vmatpush.msra.mxu1 %v5801_v54 }
 0x33b   :  { %2222 = vmatpush.msra.mxu3 %v5796_v14  ;;  %2564 = vmatpush.msra.mxu2 %v5687_v30 }
 0x33c   :  { %3859 = vrcp.f32 %v5792_v19  ;;  %2242 = vmatpush.msra.mxu0 %v5799_v12  ;;  %2263 = vmatpush.msra.mxu1 %v5812_v26  ;;  %v2001_v30 = vand.u32 2147483648, %v5792_v19  ;;  %vm1995_vm9 = vweird.f32 %v5792_v19 }
 0x33d   :  { %2223 = vmatpush.msra.mxu3 %v5807_v38  ;;  %2565 = vmatpush.msra.mxu2 %v5697_v50 }
 0x33e   :  { %2243 = vmatpush.msra.mxu0 %v5810_v20  ;;  %2264 = vmatpush.msra.mxu1 %v5822_v27 }
 0x33f   :  { %v3858_v35 = vpop.eup %3857  ;;  %2224 = vmatpush.msra.mxu3 %v5817_v47  ;;  %2566 = vmatpush.msra.mxu2 %v5707_v39  ;;  %v6753_v39 = vld [vmem:[#allocation58_spill] sm:$0xff] }
 0x340   :  { %v5825_v14 = vadd.f32 1.0, %v3858_v35  ;;  %2244 = vmatpush.msra.mxu0 %v5820_v41  ;;  %2541 = vmatpush.msrb.mxu1 %v5641_v55  ;;  %v1934_v55 = vpop.f32.mrf.mxu3 }
 0x341   :  { %2453 = vmatpush.msrb.mxu3 %v5482_v48  ;;  %2567 = vmatpush.msra.mxu2 %v5717_v49  ;;  %v1999_v48 = vand.u32 2147483647, %v5792_v19  ;;  %v6756_v49 = vld [vmem:[#allocation63_spill] sm:$0xff] }
 0x342   :  { %v3860_v9 = vpop.eup %3859  ;;  %3861 = vrcp.f32 %v5825_v14  ;;  %2473 = vmatpush.msrb.mxu0 %v5484_v11  ;;  %2542 = vmatpush.msrb.mxu1 %v5654_v1  ;;  %v2002_v1 = vor.u32 1.1754944e-38, %v2001_v30  ;;  %vm2015_vm13 = vweird.f32 %v5825_v14 }
 0x343   :  { %v1991_v54 = vmul.f32 %v3860_v9, %v5792_v19  ;;  %2454 = vmatpush.msrb.mxu3 %v5491_v57  ;;  %vm1996_vm8 = vweird.f32 %v3860_v9  ;;  %2568 = vmatpush.msra.mxu2 %v5729_v52  ;;  %vm2000_vm11 = vcmp.eq.f32.partialorder %v1999_v48, 8.507059e+37  ;;  %v2025_v52 = vadd.f32 %v5465_v0, %v1934_v55 }
 0x344   :  { %2474 = vmatpush.msrb.mxu0 %v5493_v16  ;;  %2543 = vmatpush.msrb.mxu1 %v5672_v58  ;;  %vm1997_vm10 = vmor %vm1995_vm9, %vm1996_vm8  ;;  %v2019_v0 = vand.u32 2147483647, %v5825_v14 }
 0x345   :  { %v1992_v35 = vsub.f32 1.0, %v1991_v54  ;;  %2455 = vmatpush.msrb.mxu3 %v5500_v62  ;;  %2569 = vmatpush.msra.mxu2 %v5741_v2  ;;  %v6759_v2 = vld [vmem:[#allocation69_spill] sm:$0xff] }
 0x346   :  { %2475 = vmatpush.msrb.mxu0 %v5502_v34  ;;  %2544 = vmatpush.msrb.mxu1 %v5685_v13  ;;  %vm2020_vm15 = vcmp.eq.f32.partialorder %v2019_v0, 8.507059e+37 }
 0x347   :  { %v1993_v50 = vmul.f32 %v3860_v9, %v1992_v35  ;;  %2456 = vmatpush.msrb.mxu3 %v5509_v21  ;;  %2570 = vmatpush.msra.mxu2 %v5754_v24  ;;  %v6760_v24 = vld [vmem:[#allocation18_spill] sm:$0xff] }
 0x348   :  { %v3862_v11 = vpop.eup %3861  ;;  %2476 = vmatpush.msrb.mxu0 %v5511_v40  ;;  %2545 = vmatpush.msrb.mxu1 %v5695_v56  ;;  %v2021_v40 = vand.u32 2147483648, %v5825_v14  ;;  %v6751_v56 = vld [vmem:[#allocation56_spill] sm:$0xff] }
 0x349   :  { %v2011_v57 = vmul.f32 %v3862_v11, %v5825_v14  ;;  %v1994_v16 = vadd.f32 %v3860_v9, %v1993_v50  ;;  %2457 = vmatpush.msrb.mxu3 %v5518_v5  ;;  %vm2016_vm12 = vweird.f32 %v3862_v11  ;;  %2571 = vmatpush.msra.mxu2 %v5767_v36  ;;  %v6757_v36 = vld [vmem:[#allocation64_spill] sm:$0xff] }
 0x34a   :  { %2477 = vmatpush.msrb.mxu0 %v5520_v17  ;;  %2546 = vmatpush.msrb.mxu1 %v5705_v59  ;;  %v6739_v17 = vld [vmem:[#allocation39_spill] sm:$0xff]  ;;  %vm2017_vm14 = vmor %vm2015_vm13, %vm2016_vm12  ;;  %v6752_v59 = vld [vmem:[#allocation57_spill] sm:$0xff] }
 0x34b   :  { %v2012_v62 = vsub.f32 1.0, %v2011_v57  ;;  %v1998_v34 = vsel %vm1997_vm10, %v3860_v9, %v1994_v16  ;;  %2458 = vmatpush.msrb.mxu3 %v5527_v28  ;;  %2572 = vmatpush.msra.mxu2 %v5777_v3  ;;  %v2022_v28 = vor.u32 1.1754944e-38, %v2021_v40 }
 0x34c   :  { %v2003_v19 = vsel %vm2000_vm11, %v2002_v1, %v1998_v34  ;;  %2478 = vmatpush.msrb.mxu0 %v5529_v45  ;;  %2547 = vmatpush.msrb.mxu1 %v5715_v29  ;;  %v6755_v29 = vld [vmem:[#allocation61_spill] sm:$0xff] }
 0x34d   :  { %v2013_v21 = vmul.f32 %v3862_v11, %v2012_v62  ;;  %v2026_v58 = vmul.f32 %v2025_v52, %v2003_v19  ;;  %2459 = vmatpush.msrb.mxu3 %v5536_v8  ;;  %2573 = vmatpush.msra.mxu2 %v5787_v4  ;;  %v5932_v52 = vld [vmem:[#allocation7] ss:$0 sm:$0xff] }
 0x34e   :  { %2479 = vmatpush.msrb.mxu0 %v5538_v44  ;;  %2548 = vmatpush.msrb.mxu1 %v5727_v7  ;;  %v6754_v7 = vld [vmem:[#allocation60_spill] sm:$0xff] }
 0x34f   :  { %v2014_v5 = vadd.f32 %v3862_v11, %v2013_v21  ;;  %v2027_v13 = vadd.f32 %v2026_v58, %v6739_v17  ;;  %2460 = vmatpush.msrb.mxu3 %v5544_v53  ;;  %2574 = vmatpush.msra.mxu2 %v5799_v12  ;;  %v6750_v12 = vld [vmem:[#allocation55_spill] sm:$0xff]  ;;  %v6762_v17 = vld [vmem:[#allocation13_spill] sm:$0xff] }
 0x350   :  { %2480 = vmatpush.msrb.mxu0 %v5546_v33  ;;  %2549 = vmatpush.msrb.mxu1 %v5739_v10  ;;  %v6758_v10 = vld [vmem:[#allocation66_spill] sm:$0xff] }
 0x351   :  { %v2018_v45 = vsel %vm2017_vm14, %v3862_v11, %v2014_v5  ;;  %3863 = vtanh.f32 %v2027_v13  ;;  %2461 = vmatpush.msrb.mxu3 %v5551_v63  ;;  %2575 = vmatpush.msra.mxu2 %v5810_v20 }
 0x352   :  { %v2023_v8 = vsel %vm2020_vm15, %v2022_v28, %v2018_v45  ;;  %2481 = vmatpush.msrb.mxu0 %v5557_v15  ;;  %2550 = vmatpush.msrb.mxu1 %v5752_v43 }
 0x353   :  { %2462 = vmatpush.msrb.mxu3 %v5562_v23  ;;  %v2029_v44 = vsub.f32 1.0, %v2023_v8  ;;  %v2031_v63 = vmul.f32 %v2023_v8, %v5470_v42  ;;  %2576 = vmatpush.msra.mxu2 %v5820_v41  ;;  %v6740_v42 = vld [vmem:[#allocation65_spill] sm:$0xff] }
 0x354   :  { %2482 = vmatpush.msrb.mxu0 %v5566_v61  ;;  %2551 = vmatpush.msrb.mxu1 %v5765_v31  ;;  %v6741_v61 = vld [vmem:[#allocation48_spill] sm:$0xff]  ;;  %v6761_v31 = vld [vmem:[#allocation31_spill] sm:$0xff] }
 0x355   :  { %2463 = vmatpush.msrb.mxu3 %v5571_v46  ;;  %v6742_v46 = vld [vmem:[#allocation49_spill] sm:$0xff] }
 0x356   :  { %2483 = vmatpush.msrb.mxu0 %v5575_v6  ;;  %2552 = vmatpush.msrb.mxu1 %v5775_v37  ;;  %v6743_v6 = vld [vmem:[#allocation67_spill] sm:$0xff] }
 0x357   :  { %v3864_v53 = vpop.eup %3863  ;;  %2464 = vmatpush.msrb.mxu3 %v5580_v25  ;;  %v6744_v25 = vld [vmem:[#allocation50_spill] sm:$0xff] }
 0x358   :  { %v2030_v33 = vmul.f32 %v3864_v53, %v2029_v44  ;;  %2484 = vmatpush.msrb.mxu0 %v5584_v22  ;;  %2553 = vmatpush.msrb.mxu1 %v6740_v42  ;;  %v6745_v22 = vld [vmem:[#allocation51_spill] sm:$0xff] }
 0x359   :  { %2465 = vmatpush.msrb.mxu3 %v5589_v51  ;;  %v6746_v51 = vld [vmem:[#allocation68_spill] sm:$0xff] }
 0x35a   :  { %v5891_v15 = vadd.f32 %v2031_v63, %v2030_v33  ;;  %2485 = vmatpush.msrb.mxu0 %v5593_v60  ;;  %2554 = vmatpush.msrb.mxu1 %v6743_v6  ;;  %v6747_v60 = vld [vmem:[#allocation52_spill] sm:$0xff] }
 0x35b   :  { %2466 = vmatpush.msrb.mxu3 %v5598_v32  ;;  %v6748_v32 = vld [vmem:[#allocation53_spill] sm:$0xff] }
 0x35c   :  { %v2036_v23 = vpack.c.bf16 %v5891_v15, %v5891_v15  ;;  %2225 = vmatmul.f32.vlgmr.msra.gmra.mxu3 %v5891_v15  ;;  %2245 = vmatmul.f32.vlgmr.msra.gmra.mxu0 %v5891_v15 }
 0x35d   :  { %2265 = vmatmul.f32.vlgmr.msra.gmra.mxu1 %v5891_v15  ;;  %2486 = vmatpush.msrb.mxu0 %v5602_v18  ;;  %v6749_v18 = vld [vmem:[#allocation54_spill] sm:$0xff] }
 0x35e   :  { %3691 = vst [vmem:[%s6475_s5 + $0x2c] sm:$0xf] %v2036_v23  ;;  %2467 = vmatpush.msrb.mxu3 %v6741_v61  ;;  %2555 = vmatpush.msrb.mxu1 %v5807_v38  ;;  %v6763_v23 = vld [vmem:[#allocation59_spill] sm:$0xff]  ;;  %v6764_v61 = vld [vmem:[#allocation40_spill] sm:$0xff] }
 0x35f   :  { %2487 = vmatpush.msrb.mxu0 %v6742_v46 }
 0x360   :  { %2468 = vmatpush.msrb.mxu3 %v6744_v25  ;;  %2556 = vmatpush.msrb.mxu1 %v5817_v47 }
 0x361   :  { %2488 = vmatpush.msrb.mxu0 %v6745_v22 }
 0x362   :  { %2581 = vmatpush.msra.mxu3 %v6746_v51 }
 0x364   :  { %2582 = vmatpush.msra.mxu3 %v6747_v60  ;;  %v6765_v60 = vld [vmem:[#allocation20_spill] sm:$0xff] }
 0x366   :  { %2583 = vmatpush.msra.mxu3 %v6748_v32 }
 0x368   :  { %2584 = vmatpush.msra.mxu3 %v6749_v18 }
 0x36a   :  { %2585 = vmatpush.msra.mxu3 %v6750_v12 }
 0x36c   :  { %2586 = vmatpush.msra.mxu3 %v6751_v56 }
 0x36e   :  { %2587 = vmatpush.msra.mxu3 %v6752_v59 }
 0x370   :  { %2588 = vmatpush.msra.mxu3 %v6753_v39 }
 0x372   :  { %2589 = vmatpush.msra.mxu3 %v6754_v7 }
 0x374   :  { %2590 = vmatpush.msra.mxu3 %v6755_v29 }
 0x376   :  { %2591 = vmatpush.msra.mxu3 %v6756_v49 }
 0x378   :  { %2592 = vmatpush.msra.mxu3 %v6757_v36 }
 0x37a   :  { %2593 = vmatpush.msra.mxu3 %v6758_v10 }
 0x37c   :  { %2594 = vmatpush.msra.mxu3 %v6759_v2 }
 0x37e   :  { %2595 = vmatpush.msra.mxu3 %v5812_v26 }
 0x380   :  { %2596 = vmatpush.msra.mxu3 %v5822_v27 }
 0x3af   :  { %v2118_v37 = vpop.f32.mrf.mxu0  ;;  %v2138_v43 = vpop.f32.mrf.mxu1 }
 0x3b0   :  { %v2269_v41 = vadd.f32 %v2118_v37, %v6760_v24  ;;  %v2289_v3 = vadd.f32 %v2138_v43, %v6761_v31 }
 0x3b2   :  { %v3692_v4 = vmul.f32 -1.442695, %v2269_v41  ;;  %v3693_v14 = vmul.f32 -1.442695, %v2289_v3 }
 0x3b4   :  { %3865 = vpow2.f32 %v3692_v4 }
 0x3b5   :  { %3867 = vpow2.f32 %v3693_v14  ;;  %v5949_v14 = vld [vmem:[#allocation7 + $0x1] ss:$0 sm:$0xff] }
 0x3b6   :  { %v2158_v16 = vpop.f32.mrf.mxu2 }
 0x3b7   :  { %v2309_v19 = vadd.f32 %v5932_v52, %v2158_v16 }
 0x3ba   :  { %v3866_v54 = vpop.eup %3865 }
 0x3bb   :  { %v3868_v38 = vpop.eup %3867  ;;  %v2273_v20 = vadd.f32 1.0, %v3866_v54 }
 0x3bc   :  { %v2293_v47 = vadd.f32 1.0, %v3868_v38 }
 0x3bd   :  { %3869 = vrcp.f32 %v2273_v20  ;;  %v2285_v48 = vand.u32 2147483648, %v2273_v20  ;;  %v2283_v55 = vand.u32 2147483647, %v2273_v20  ;;  %vm2279_vm1 = vweird.f32 %v2273_v20 }
 0x3be   :  { %3871 = vrcp.f32 %v2293_v47  ;;  %v2305_v58 = vand.u32 2147483648, %v2293_v47  ;;  %vm2299_vm5 = vweird.f32 %v2293_v47  ;;  %v2303_v5 = vand.u32 2147483647, %v2293_v47 }
 0x3bf   :  { %v2286_v62 = vor.u32 1.1754944e-38, %v2285_v48  ;;  %vm2284_vm3 = vcmp.eq.f32.partialorder %v2283_v55, 8.507059e+37 }
 0x3c0   :  { %v2306_v45 = vor.u32 1.1754944e-38, %v2305_v58  ;;  %vm2304_vm7 = vcmp.eq.f32.partialorder %v2303_v5, 8.507059e+37  ;;  %v5975_v58 = vld [vmem:[#allocation3 + $0x158] sm:$0xff] }
 0x3c1   :  { %v5982_v5 = vld [vmem:[#allocation3 + $0x138] sm:$0xff] }
 0x3c3   :  { %v3870_v9 = vpop.eup %3869 }
 0x3c4   :  { %v3872_v26 = vpop.eup %3871  ;;  %v2275_v35 = vmul.f32 %v3870_v9, %v2273_v20  ;;  %vm2280_vm0 = vweird.f32 %v3870_v9 }
 0x3c5   :  { %v2295_v27 = vmul.f32 %v3872_v26, %v2293_v47  ;;  %vm2281_vm2 = vmor %vm2279_vm1, %vm2280_vm0  ;;  %vm2300_vm4 = vweird.f32 %v3872_v26 }
 0x3c6   :  { %v2276_v30 = vsub.f32 1.0, %v2275_v35  ;;  %vm2301_vm6 = vmor %vm2299_vm5, %vm2300_vm4 }
 0x3c7   :  { %v2296_v50 = vsub.f32 1.0, %v2295_v27  ;;  %v6766_v27 = vld [vmem:[#allocation41_spill] sm:$0xff] }
 0x3c8   :  { %v2277_v11 = vmul.f32 %v3870_v9, %v2276_v30 }
 0x3c9   :  { %v2297_v57 = vmul.f32 %v3872_v26, %v2296_v50 }
 0x3ca   :  { %v2278_v1 = vadd.f32 %v3870_v9, %v2277_v11 }
 0x3cb   :  { %v2298_v21 = vadd.f32 %v3872_v26, %v2297_v57 }
 0x3cc   :  { %v2282_v34 = vsel %vm2281_vm2, %v3870_v9, %v2278_v1 }
 0x3cd   :  { %v2287_v40 = vsel %vm2284_vm3, %v2286_v62, %v2282_v34  ;;  %v2302_v28 = vsel %vm2301_vm6, %v3872_v26, %v2298_v21  ;;  %v5966_v21 = vld [vmem:[#allocation3 + $0x170] sm:$0xff] }
 0x3ce   :  { %v2310_v0 = vmul.f32 %v2309_v19, %v2287_v40  ;;  %v2307_v8 = vsel %vm2304_vm7, %v2306_v45, %v2302_v28  ;;  %v5964_v19 = vld [vmem:[#allocation3 + $0x168] sm:$0xff]  ;;  %2785 = vmatpush.msra.mxu1 %v5966_v21  ;;  %v5973_v40 = vld [vmem:[#allocation3 + $0x150] sm:$0xff]  ;;  %v5991_v28 = vld [vmem:[#allocation3 + $0x120] sm:$0xff] }
 0x3cf   :  { %v2313_v44 = vsub.f32 1.0, %v2307_v8  ;;  %v2315_v42 = vmul.f32 %v2307_v8, %v6763_v23  ;;  %2765 = vmatpush.msra.mxu0 %v5964_v19  ;;  %v5993_v45 = vld [vmem:[#allocation3 + $0x128] sm:$0xff]  ;;  %v5995_v8 = vld [vmem:[#allocation3 + $0x130] sm:$0xff]  ;;  %v6011_v23 = vld [vmem:[#allocation3 + $0xf8] sm:$0xff] }
 0x3d0   :  { %v2311_v13 = vadd.f32 %v2310_v0, %v6762_v17  ;;  %v5977_v0 = vld [vmem:[#allocation3 + $0x160] sm:$0xff]  ;;  %2786 = vmatpush.msra.mxu1 %v5975_v58 }
 0x3d1   :  { %2766 = vmatpush.msra.mxu0 %v5973_v40  ;;  %v5984_v17 = vld [vmem:[#allocation3 + $0x140] sm:$0xff] }
 0x3d2   :  { %3873 = vtanh.f32 %v2311_v13  ;;  %v5986_v13 = vld [vmem:[#allocation3 + $0x148] sm:$0xff]  ;;  %2787 = vmatpush.msra.mxu1 %v5984_v17 }
 0x3d3   :  { %2767 = vmatpush.msra.mxu0 %v5982_v5 }
 0x3d4   :  { %2788 = vmatpush.msra.mxu1 %v5993_v45 }
 0x3d5   :  { %2768 = vmatpush.msra.mxu0 %v5991_v28 }
 0x3d8   :  { %v3874_v53 = vpop.eup %3873 }
 0x3d9   :  { %v2314_v33 = vmul.f32 %v3874_v53, %v2313_v44  ;;  %v2246_v63 = vpop.f32.mrf.mxu0  ;;  %v6000_v44 = vld [vmem:[#allocation3 + $0x108] sm:$0xff]  ;;  %v6002_v53 = vld [vmem:[#allocation3 + $0x110] sm:$0xff] }
 0x3da   :  { %v2337_v46 = vadd.f32 %v2246_v63, %v6764_v61  ;;  %v2266_v31 = vpop.f32.mrf.mxu1  ;;  %2769 = vmatpush.msra.mxu0 %v6000_v44  ;;  %2789 = vmatpush.msra.mxu1 %v6002_v53  ;;  %v6009_v63 = vld [vmem:[#allocation3 + $0xf0] sm:$0xff]  ;;  %v6018_v61 = vld [vmem:[#allocation3 + $0xd8] sm:$0xff] }
 0x3db   :  { %v5938_v6 = vadd.f32 %v2315_v42, %v2314_v33  ;;  %v2357_v54 = vadd.f32 %v5949_v14, %v2266_v31  ;;  %v6004_v33 = vld [vmem:[#allocation3 + $0x118] sm:$0xff]  ;;  %v6013_v42 = vld [vmem:[#allocation3 + $0x100] sm:$0xff]  ;;  %v6059_v31 = vld [vmem:[#allocation3 + $0x88] sm:$0xff] }
 0x3dc   :  { %v3695_v25 = vmul.f32 -1.442695, %v2337_v46  ;;  %2770 = vmatpush.msra.mxu0 %v6009_v63  ;;  %2790 = vmatpush.msra.mxu1 %v6011_v23  ;;  %v6020_v46 = vld [vmem:[#allocation3 + $0xe0] sm:$0xff] }
 0x3dd   :  { %v2365_v22 = vpack.c.bf16 %v5938_v6, %v5938_v6  ;;  %2449 = vmatmul.f32.vlgmr.msrb.gmra.mxu2 %v5938_v6  ;;  %2469 = vmatmul.f32.vlgmr.msrb.gmra.mxu3 %v5938_v6 }
 0x3de   :  { %3875 = vpow2.f32 %v3695_v25  ;;  %2489 = vmatmul.f32.vlgmr.msrb.gmra.mxu0 %v5938_v6  ;;  %v6022_v25 = vld [vmem:[#allocation3 + $0xe8] sm:$0xff]  ;;  %2791 = vmatpush.msra.mxu1 %v6020_v46 }
 0x3df   :  { %3696 = vst [vmem:[%s6475_s5 + $0x10] sm:$0xf] %v2365_v22  ;;  %v2226_v51 = vpop.f32.mrf.mxu3  ;;  %2771 = vmatpush.msra.mxu0 %v6018_v61  ;;  %v6026_v22 = vld [vmem:[#allocation3 + $0xc0] sm:$0xff] }
 0x3e0   :  { %v2317_v32 = vadd.f32 %v2226_v51, %v6765_v60  ;;  %v6028_v51 = vld [vmem:[#allocation3 + $0xc8] sm:$0xff]  ;;  %v6030_v60 = vld [vmem:[#allocation3 + $0xd0] sm:$0xff] }
 0x3e1   :  { %2772 = vmatpush.msra.mxu0 %v6026_v22  ;;  %2792 = vmatpush.msra.mxu1 %v6028_v51 }
 0x3e2   :  { %v3694_v18 = vmul.f32 -1.442695, %v2317_v32 }
 0x3e4   :  { %v3876_v12 = vpop.eup %3875  ;;  %3877 = vpow2.f32 %v3694_v18 }
 0x3e5   :  { %v2341_v56 = vadd.f32 1.0, %v3876_v12  ;;  %v6033_v12 = vld [vmem:[#allocation3 + $0xa8] sm:$0xff] }
 0x3e6   :  { %2773 = vmatpush.msra.mxu0 %v6033_v12 }
 0x3e7   :  { %3879 = vrcp.f32 %v2341_v56  ;;  %v2353_v9 = vand.u32 2147483648, %v2341_v56  ;;  %vm2347_vm13 = vweird.f32 %v2341_v56  ;;  %v2351_v35 = vand.u32 2147483647, %v2341_v56 }
 0x3e9   :  { %v2354_v48 = vor.u32 1.1754944e-38, %v2353_v9  ;;  %vm2352_vm15 = vcmp.eq.f32.partialorder %v2351_v35, 8.507059e+37  ;;  %v6080_v9 = vld [vmem:[#allocation3 + $0x30] sm:$0xff] }
 0x3ea   :  { %v3878_v59 = vpop.eup %3877 }
 0x3eb   :  { %v2321_v39 = vadd.f32 1.0, %v3878_v59  ;;  %v6767_v59 = vld [vmem:[#allocation15_spill] sm:$0xff] }
 0x3ed   :  { %3881 = vrcp.f32 %v2321_v39  ;;  %v3880_v7 = vpop.eup %3879  ;;  %v2333_v37 = vand.u32 2147483648, %v2321_v39  ;;  %v2331_v24 = vand.u32 2147483647, %v2321_v39  ;;  %vm2327_vm9 = vweird.f32 %v2321_v39 }
 0x3ee   :  { %v2343_v29 = vmul.f32 %v3880_v7, %v2341_v56  ;;  %vm2348_vm12 = vweird.f32 %v3880_v7  ;;  %v6035_v56 = vld [vmem:[#allocation3 + $0xb0] sm:$0xff] }
 0x3ef   :  { %v2334_v4 = vor.u32 1.1754944e-38, %v2333_v37  ;;  %vm2332_vm11 = vcmp.eq.f32.partialorder %v2331_v24, 8.507059e+37  ;;  %vm2349_vm14 = vmor %vm2347_vm13, %vm2348_vm12  ;;  %2793 = vmatpush.msra.mxu1 %v6035_v56  ;;  %v6053_v24 = vld [vmem:[#allocation3 + $0x78] sm:$0xff] }
 0x3f0   :  { %v2344_v10 = vsub.f32 1.0, %v2343_v29 }
 0x3f2   :  { %v2345_v41 = vmul.f32 %v3880_v7, %v2344_v10  ;;  %v6046_v10 = vld [vmem:[#allocation3 + $0x98] sm:$0xff] }
 0x3f3   :  { %v3882_v49 = vpop.eup %3881  ;;  %2794 = vmatpush.msra.mxu1 %v6046_v10 }
 0x3f4   :  { %v2323_v36 = vmul.f32 %v3882_v49, %v2321_v39  ;;  %vm2328_vm8 = vweird.f32 %v3882_v49  ;;  %v2346_v20 = vadd.f32 %v3880_v7, %v2345_v41  ;;  %v6055_v41 = vld [vmem:[#allocation3 + $0x80] sm:$0xff] }
 0x3f5   :  { %vm2329_vm10 = vmor %vm2327_vm9, %vm2328_vm8  ;;  %2795 = vmatpush.msra.mxu1 %v6055_v41 }
 0x3f6   :  { %v2324_v2 = vsub.f32 1.0, %v2323_v36  ;;  %v2350_v50 = vsel %vm2349_vm14, %v3880_v7, %v2346_v20  ;;  %v6768_v7 = vld [vmem:[#allocation23_spill] sm:$0xff] }
 0x3f7   :  { %v2355_v11 = vsel %vm2352_vm15, %v2354_v48, %v2350_v50  ;;  %v6044_v36 = vld [vmem:[#allocation3 + $0x90] sm:$0xff] }
 0x3f8   :  { %v2325_v43 = vmul.f32 %v3882_v49, %v2324_v2  ;;  %v2361_v55 = vsub.f32 1.0, %v2355_v11  ;;  %v2363_v1 = vmul.f32 %v2355_v11, %v5891_v15  ;;  %v5968_v15 = vld [vmem:[#allocation3 + $0x178] sm:$0xff]  ;;  %2774 = vmatpush.msra.mxu0 %v6044_v36  ;;  %v6073_v20 = vld [vmem:[#allocation3 + $0x50] sm:$0xff] }
 0x3f9   :  { %2805 = vmatpush.msrb.mxu2 %v5968_v15  ;;  %v6094_v11 = vld [vmem:[#allocation3 + $0x18] sm:$0xff] }
 0x3fa   :  { %v2326_v3 = vadd.f32 %v3882_v49, %v2325_v43  ;;  %v6050_v43 = vld [vmem:[#allocation3 + $0xa0] sm:$0xff]  ;;  %2775 = vmatpush.msra.mxu0 %v6053_v24 }
 0x3fb   :  { %2806 = vmatpush.msrb.mxu2 %v5977_v0 }
 0x3fc   :  { %v2330_v38 = vsel %vm2329_vm10, %v3882_v49, %v2326_v3  ;;  %v6041_v49 = vld [vmem:[#allocation3 + $0xb8] sm:$0xff]  ;;  %v6062_v3 = vld [vmem:[#allocation3 + $0x60] sm:$0xff] }
 0x3fd   :  { %v2335_v47 = vsel %vm2332_vm11, %v2334_v4, %v2330_v38  ;;  %2807 = vmatpush.msrb.mxu2 %v5986_v13  ;;  %v6064_v4 = vld [vmem:[#allocation3 + $0x68] sm:$0xff]  ;;  %2776 = vmatpush.msra.mxu0 %v6062_v3 }
 0x3fe   :  { %v2358_v26 = vmul.f32 %v2357_v54, %v2335_v47  ;;  %v6068_v54 = vld [vmem:[#allocation3 + $0x70] sm:$0xff]  ;;  %v6071_v38 = vld [vmem:[#allocation3 + $0x48] sm:$0xff]  ;;  %2796 = vmatpush.msra.mxu1 %v6064_v4  ;;  %v6077_v47 = vld [vmem:[#allocation3 + $0x58] sm:$0xff] }
 0x3ff   :  { %2808 = vmatpush.msrb.mxu2 %v5995_v8  ;;  %2777 = vmatpush.msra.mxu0 %v6071_v38 }
 0x400   :  { %v2359_v30 = vadd.f32 %v2358_v26, %v6766_v27  ;;  %v6082_v26 = vld [vmem:[#allocation3 + $0x38] sm:$0xff]  ;;  %2797 = vmatpush.msra.mxu1 %v6073_v20  ;;  %v6086_v27 = vld [vmem:[#allocation3 + $0x40] sm:$0xff] }
 0x401   :  { %2809 = vmatpush.msrb.mxu2 %v6004_v33  ;;  %2778 = vmatpush.msra.mxu0 %v6080_v9 }
 0x402   :  { %3883 = vtanh.f32 %v2359_v30  ;;  %2798 = vmatpush.msra.mxu1 %v6082_v26 }
 0x403   :  { %2810 = vmatpush.msrb.mxu2 %v6013_v42  ;;  %2779 = vmatpush.msra.mxu0 %v6094_v11 }
 0x405   :  { %2811 = vmatpush.msrb.mxu2 %v6022_v25 }
 0x407   :  { %2812 = vmatpush.msrb.mxu2 %v6030_v60 }
 0x408   :  { %v3884_v57 = vpop.eup %3883 }
 0x409   :  { %v2362_v16 = vmul.f32 %v3884_v57, %v2361_v55  ;;  %2813 = vmatpush.msrb.mxu2 %v6041_v49  ;;  %v6096_v55 = vld [vmem:[#allocation3 + $0x20] sm:$0xff]  ;;  %v6098_v57 = vld [vmem:[#allocation3 + $0x28] sm:$0xff] }
 0x40a   :  { %6769 = vst [vmem:[#allocation21_spill] sm:$0xff] %v6096_v55  ;;  %2799 = vmatpush.msra.mxu1 %v6096_v55 }
 0x40b   :  { %v5954_v62 = vadd.f32 %v2363_v1, %v2362_v16  ;;  %2814 = vmatpush.msrb.mxu2 %v6050_v43  ;;  %6770 = vst [vmem:[#allocation10_spill] sm:$0xff] %v6098_v57  ;;  %v6104_v16 = vld [vmem:[#allocation3] sm:$0xff]  ;;  %v6106_v1 = vld [vmem:[#allocation3 + $0x8] sm:$0xff] }
 0x40c   :  { %6771 = vst [vmem:[#allocation14_spill] sm:$0xff] %v6106_v1  ;;  %2780 = vmatpush.msra.mxu0 %v6104_v16  ;;  %2800 = vmatpush.msra.mxu1 %v6106_v1 }
 0x40d   :  { %v2368_v34 = vpack.c.bf16 %v5954_v62, %v5954_v62  ;;  %2557 = vmatmul.f32.vlgmr.msrb.gmra.mxu1 %v5954_v62  ;;  %2577 = vmatmul.f32.vlgmr.msra.gmra.mxu2 %v5954_v62 }
 0x40e   :  { %2597 = vmatmul.f32.vlgmr.msra.gmra.mxu3 %v5954_v62  ;;  %2815 = vmatpush.msrb.mxu2 %v6059_v31 }
 0x40f   :  { %3697 = vst [vmem:[%s6475_s5 + $0x30] sm:$0xf] %v2368_v34  ;;  %v6108_v34 = vld [vmem:[#allocation3 + $0x10] sm:$0xff] }
 0x410   :  { %2816 = vmatpush.msrb.mxu2 %v6068_v54  ;;  %6772 = vst [vmem:[#allocation26_spill] sm:$0xff] %v6108_v34 }
 0x412   :  { %2817 = vmatpush.msrb.mxu2 %v6077_v47 }
 0x414   :  { %2818 = vmatpush.msrb.mxu2 %v6086_v27 }
 0x416   :  { %2819 = vmatpush.msrb.mxu2 %v6098_v57 }
 0x418   :  { %2820 = vmatpush.msrb.mxu2 %v6108_v34 }
 0x41a   :  { %3097 = vmatpush.msra.mxu2 %v5964_v19 }
 0x41c   :  { %3098 = vmatpush.msra.mxu2 %v5973_v40 }
 0x41e   :  { %3099 = vmatpush.msra.mxu2 %v5982_v5  ;;  %v6125_v5 = vld [vmem:[#allocation3 + $0x2e8] sm:$0xff] }
 0x41f   :  { %2873 = vmatpush.msrb.mxu3 %v6125_v5 }
 0x420   :  { %3100 = vmatpush.msra.mxu2 %v5991_v28  ;;  %v6129_v28 = vld [vmem:[#allocation3 + $0x2f8] sm:$0xff] }
 0x421   :  { %6773 = vst [vmem:[#allocation12_spill] sm:$0xff] %v6129_v28  ;;  %2913 = vmatpush.msrb.mxu1 %v6129_v28  ;;  %v6215_v28 = vld [vmem:[#allocation3 + $0x250] sm:$0xff] }
 0x422   :  { %3101 = vmatpush.msra.mxu2 %v6000_v44  ;;  %6784 = vst [vmem:[#allocation30_spill] sm:$0xff] %v6215_v28 }
 0x424   :  { %3102 = vmatpush.msra.mxu2 %v6009_v63  ;;  %v6193_v63 = vld [vmem:[#allocation3 + $0x280] sm:$0xff] }
 0x425   :  { %6781 = vst [vmem:[#allocation24_spill] sm:$0xff] %v6193_v63 }
 0x426   :  { %3103 = vmatpush.msra.mxu2 %v6018_v61  ;;  %v6160_v61 = vld [vmem:[#allocation3 + $0x2c8] sm:$0xff] }
 0x427   :  { %6778 = vst [vmem:[#allocation36_spill] sm:$0xff] %v6160_v61 }
 0x428   :  { %3104 = vmatpush.msra.mxu2 %v6026_v22 }
 0x42a   :  { %3105 = vmatpush.msra.mxu2 %v6033_v12  ;;  %v6189_v12 = vld [vmem:[#allocation3 + $0x270] sm:$0xff] }
 0x42c   :  { %3106 = vmatpush.msra.mxu2 %v6044_v36 }
 0x42e   :  { %3107 = vmatpush.msra.mxu2 %v6053_v24 }
 0x430   :  { %3108 = vmatpush.msra.mxu2 %v6062_v3 }
 0x432   :  { %3109 = vmatpush.msra.mxu2 %v6071_v38 }
 0x434   :  { %3110 = vmatpush.msra.mxu2 %v6080_v9 }
 0x436   :  { %3111 = vmatpush.msra.mxu2 %v6094_v11  ;;  %v6268_v11 = vld [vmem:[#allocation3 + $0x1c8] sm:$0xff] }
 0x437   :  { %6791 = vst [vmem:[#allocation49_spill] sm:$0xff] %v6268_v11 }
 0x438   :  { %3112 = vmatpush.msra.mxu2 %v6104_v16  ;;  %v6280_v16 = vld [vmem:[#allocation3 + $0x1b0] sm:$0xff] }
 0x439   :  { %6793 = vst [vmem:[#allocation50_spill] sm:$0xff] %v6280_v16 }
 0x45b   :  { %v2490_v19 = vpop.f32.mrf.mxu0 }
 0x460   :  { %v2450_v32 = vpop.f32.mrf.mxu2  ;;  %v2470_v18 = vpop.f32.mrf.mxu3 }
 0x461   :  { %v2601_v39 = vadd.f32 %v2450_v32, %v6767_v59  ;;  %v2621_v29 = vadd.f32 %v2470_v18, %v6768_v7 }
 0x463   :  { %v3698_v2 = vmul.f32 -1.442695, %v2601_v39  ;;  %v3699_v37 = vmul.f32 -1.442695, %v2621_v29 }
 0x465   :  { %3885 = vpow2.f32 %v3698_v2 }
 0x466   :  { %3887 = vpow2.f32 %v3699_v37 }
 0x46b   :  { %v3886_v35 = vpop.eup %3885 }
 0x46c   :  { %v3888_v30 = vpop.eup %3887  ;;  %v2605_v50 = vadd.f32 1.0, %v3886_v35 }
 0x46d   :  { %v6089_v48 = vadd.f32 1.0, %v3888_v30 }
 0x46e   :  { %3889 = vrcp.f32 %v2605_v50  ;;  %v2617_v29 = vand.u32 2147483648, %v2605_v50  ;;  %v2615_v35 = vand.u32 2147483647, %v2605_v50  ;;  %vm2611_vm1 = vweird.f32 %v2605_v50 }
 0x46f   :  { %3891 = vrcp.f32 %v6089_v48  ;;  %vm2631_vm5 = vweird.f32 %v6089_v48  ;;  %v2637_v44 = vand.u32 2147483648, %v6089_v48 }
 0x470   :  { %v2618_v40 = vor.u32 1.1754944e-38, %v2617_v29  ;;  %vm2616_vm3 = vcmp.eq.f32.partialorder %v2615_v35, 8.507059e+37  ;;  %v6142_v29 = vld [vmem:[#allocation3 + $0x2e0] sm:$0xff]  ;;  %v6156_v35 = vld [vmem:[#allocation3 + $0x2b8] sm:$0xff] }
 0x471   :  { %6774 = vst [vmem:[#allocation62_spill] sm:$0xff] %v6142_v29  ;;  %2914 = vmatpush.msrb.mxu1 %v6142_v29  ;;  %v6213_v29 = vld [vmem:[#allocation3 + $0x248] sm:$0xff] }
 0x473   :  { %2915 = vmatpush.msrb.mxu1 %v6160_v61 }
 0x474   :  { %v3890_v32 = vpop.eup %3889 }
 0x475   :  { %v6114_v18 = vpop.eup %3891  ;;  %v2607_v59 = vmul.f32 %v3890_v32, %v2605_v50  ;;  %vm2612_vm0 = vweird.f32 %v3890_v32 }
 0x476   :  { %v2627_v39 = vmul.f32 %v6114_v18, %v6089_v48  ;;  %vm2613_vm2 = vmor %vm2611_vm1, %vm2612_vm0  ;;  %vm2632_vm4 = vweird.f32 %v6114_v18 }
 0x477   :  { %v2608_v7 = vsub.f32 1.0, %v2607_v59  ;;  %v2641_v59 = vadd.f32 %v5932_v52, %v2490_v19  ;;  %vm6147_vm6 = vmor %vm2631_vm5, %vm2632_vm4  ;;  %v6158_v19 = vld [vmem:[#allocation3 + $0x2c0] sm:$0xff] }
 0x478   :  { %v2628_v2 = vsub.f32 1.0, %v2627_v39  ;;  %v6127_v39 = vld [vmem:[#allocation3 + $0x2f0] sm:$0xff] }
 0x479   :  { %v2609_v37 = vmul.f32 %v3890_v32, %v2608_v7  ;;  %2893 = vmatpush.msrb.mxu0 %v6127_v39 }
 0x47a   :  { %v2629_v30 = vmul.f32 %v6114_v18, %v2628_v2  ;;  %v6777_v2 = vld [vmem:[#allocation17_spill] sm:$0xff] }
 0x47b   :  { %v2610_v34 = vadd.f32 %v3890_v32, %v2609_v37 }
 0x47c   :  { %v2630_v50 = vadd.f32 %v6114_v18, %v2629_v30  ;;  %v2638_v30 = vor.u32 1.1754944e-38, %v2637_v44  ;;  %v6191_v44 = vld [vmem:[#allocation3 + $0x278] sm:$0xff] }
 0x47d   :  { %v2614_v1 = vsel %vm2613_vm2, %v3890_v32, %v2610_v34  ;;  %v6138_v34 = vld [vmem:[#allocation3 + $0x2d0] sm:$0xff]  ;;  %v6140_v32 = vld [vmem:[#allocation3 + $0x2d8] sm:$0xff] }
 0x47e   :  { %v2619_v7 = vsel %vm2616_vm3, %v2618_v40, %v2614_v1  ;;  %v2635_v1 = vand.u32 2147483647, %v6089_v48  ;;  %2874 = vmatpush.msrb.mxu3 %v6138_v34  ;;  %2894 = vmatpush.msrb.mxu0 %v6140_v32  ;;  %v2634_v48 = vsel %vm6147_vm6, %v6114_v18, %v2630_v50  ;;  %v6169_v40 = vld [vmem:[#allocation3 + $0x2a0] sm:$0xff]  ;;  %v6179_v18 = vld [vmem:[#allocation3 + $0x288] sm:$0xff]  ;;  %v6181_v50 = vld [vmem:[#allocation3 + $0x290] sm:$0xff] }
 0x47f   :  { %v2642_v52 = vmul.f32 %v2641_v59, %v2619_v7  ;;  %v6171_v59 = vld [vmem:[#allocation3 + $0x2a8] sm:$0xff]  ;;  %v6173_v7 = vld [vmem:[#allocation3 + $0x2b0] sm:$0xff] }
 0x480   :  { %2875 = vmatpush.msrb.mxu3 %v6156_v35  ;;  %2895 = vmatpush.msrb.mxu0 %v6158_v19  ;;  %6779 = vst [vmem:[#allocation28_spill] sm:$0xff] %v6173_v7  ;;  %vm2636_vm7 = vcmp.eq.f32.partialorder %v2635_v1, 8.507059e+37 }
 0x481   :  { %v2643_v37 = vadd.f32 %v2642_v52, %v6777_v2  ;;  %v2639_v22 = vsel %vm2636_vm7, %v2638_v30, %v2634_v48  ;;  %2916 = vmatpush.msrb.mxu1 %v6173_v7  ;;  %v6183_v52 = vld [vmem:[#allocation3 + $0x298] sm:$0xff]  ;;  %v6203_v48 = vld [vmem:[#allocation3 + $0x268] sm:$0xff]  ;;  %v6783_v7 = vld [vmem:[#allocation19_spill] sm:$0xff] }
 0x482   :  { %2876 = vmatpush.msrb.mxu3 %v6169_v40  ;;  %2896 = vmatpush.msrb.mxu0 %v6171_v59  ;;  %6780 = vst [vmem:[#allocation37_spill] sm:$0xff] %v6183_v52  ;;  %v2645_v1 = vsub.f32 1.0, %v2639_v22  ;;  %v6199_v2 = vld [vmem:[#allocation3 + $0x258] sm:$0xff]  ;;  %v2647_v24 = vmul.f32 %v2639_v22, %v5938_v6  ;;  %v6225_v22 = vld [vmem:[#allocation3 + $0x230] sm:$0xff] }
 0x483   :  { %3893 = vtanh.f32 %v2643_v37  ;;  %2917 = vmatpush.msrb.mxu1 %v6183_v52  ;;  %v6201_v37 = vld [vmem:[#allocation3 + $0x260] sm:$0xff]  ;;  %6782 = vst [vmem:[#allocation16_spill] sm:$0xff] %v6203_v48 }
 0x484   :  { %2877 = vmatpush.msrb.mxu3 %v6179_v18  ;;  %2897 = vmatpush.msrb.mxu0 %v6181_v50 }
 0x485   :  { %2918 = vmatpush.msrb.mxu1 %v6193_v63  ;;  %v6211_v63 = vld [vmem:[#allocation3 + $0x240] sm:$0xff] }
 0x486   :  { %2878 = vmatpush.msrb.mxu3 %v6189_v12  ;;  %2898 = vmatpush.msrb.mxu0 %v6191_v44 }
 0x487   :  { %2919 = vmatpush.msrb.mxu1 %v6203_v48 }
 0x488   :  { %2879 = vmatpush.msrb.mxu3 %v6199_v2  ;;  %2899 = vmatpush.msrb.mxu0 %v6201_v37 }
 0x489   :  { %v3894_v36 = vpop.eup %3893  ;;  %2920 = vmatpush.msrb.mxu1 %v6215_v28  ;;  %v6253_v28 = vld [vmem:[#allocation3 + $0x208] sm:$0xff] }
 0x48a   :  { %v2558_v30 = vpop.f32.mrf.mxu1  ;;  %v2646_v52 = vmul.f32 %v3894_v36, %v2645_v1  ;;  %2880 = vmatpush.msrb.mxu3 %v6211_v63  ;;  %2900 = vmatpush.msrb.mxu0 %v6213_v29  ;;  %v6227_v1 = vld [vmem:[#allocation3 + $0x238] sm:$0xff]  ;;  %v6240_v36 = vld [vmem:[#allocation3 + $0x220] sm:$0xff]  ;;  %6789 = vst [vmem:[#allocation65_spill] sm:$0xff] %v6253_v28 }
 0x48b   :  { %v2649_v61 = vadd.f32 %v2558_v30, %v6783_v7  ;;  %v6223_v7 = vld [vmem:[#allocation3 + $0x228] sm:$0xff]  ;;  %6786 = vst [vmem:[#allocation38_spill] sm:$0xff] %v6227_v1  ;;  %2921 = vmatpush.msrb.mxu1 %v6227_v1  ;;  %v6259_v1 = vld [vmem:[#allocation3 + $0x1e0] sm:$0xff] }
 0x48c   :  { %v6218_v3 = vadd.f32 %v2647_v24, %v2646_v52  ;;  %2881 = vmatpush.msrb.mxu3 %v6223_v7  ;;  %v6238_v52 = vld [vmem:[#allocation3 + $0x218] sm:$0xff]  ;;  %6787 = vst [vmem:[#allocation39_spill] sm:$0xff] %v6240_v36  ;;  %2901 = vmatpush.msrb.mxu0 %v6225_v22  ;;  %v6788_v30 = vld [vmem:[#allocation42_spill] sm:$0xff] }
 0x48d   :  { %v3700_v6 = vmul.f32 -1.442695, %v2649_v61  ;;  %v6236_v61 = vld [vmem:[#allocation3 + $0x210] sm:$0xff]  ;;  %2922 = vmatpush.msrb.mxu1 %v6240_v36  ;;  %v6273_v36 = vld [vmem:[#allocation3 + $0x1d8] sm:$0xff] }
 0x48e   :  { %6785 = vst [vmem:[#allocation11_spill] sm:$0xff] %v6218_v3  ;;  %v2697_v38 = vpack.c.bf16 %v6218_v3, %v6218_v3  ;;  %2781 = vmatmul.f32.vlgmr.msra.gmra.mxu0 %v6218_v3  ;;  %2801 = vmatmul.f32.vlgmr.msra.gmra.mxu1 %v6218_v3 }
 0x48f   :  { %3895 = vpow2.f32 %v3700_v6  ;;  %2821 = vmatmul.f32.vlgmr.msrb.gmra.mxu2 %v6218_v3  ;;  %2882 = vmatpush.msrb.mxu3 %v6236_v61  ;;  %v6249_v6 = vld [vmem:[#allocation3 + $0x1f8] sm:$0xff]  ;;  %v6251_v3 = vld [vmem:[#allocation3 + $0x200] sm:$0xff]  ;;  %6792 = vst [vmem:[#allocation67_spill] sm:$0xff] %v6273_v36 }
 0x490   :  { %3702 = vst [vmem:[%s6475_s5 + $0x14] sm:$0xf] %v2697_v38  ;;  %v2578_v9 = vpop.f32.mrf.mxu2  ;;  %2902 = vmatpush.msrb.mxu0 %v6238_v52  ;;  %2923 = vmatpush.msrb.mxu1 %v6253_v28  ;;  %v6283_v28 = vld [vmem:[#allocation3 + $0x1b8] sm:$0xff] }
 0x491   :  { %v2669_v24 = vadd.f32 %v2578_v9, %v6788_v30  ;;  %2883 = vmatpush.msrb.mxu3 %v6249_v6  ;;  %v6261_v9 = vld [vmem:[#allocation3 + $0x1e8] sm:$0xff]  ;;  %v6263_v30 = vld [vmem:[#allocation3 + $0x1f0] sm:$0xff]  ;;  %3225 = vmatpush.msrb.mxu2 %v6127_v39  ;;  %v6291_v39 = vld [vmem:[#allocation3 + $0x198] sm:$0xff] }
 0x492   :  { %6790 = vst [vmem:[#allocation48_spill] sm:$0xff] %v6263_v30  ;;  %2903 = vmatpush.msrb.mxu0 %v6251_v3  ;;  %2924 = vmatpush.msrb.mxu1 %v6263_v30  ;;  %v6296_v30 = vld [vmem:[#allocation3 + $0x1a8] sm:$0xff] }
 0x493   :  { %v3701_v38 = vmul.f32 -1.442695, %v2669_v24  ;;  %2884 = vmatpush.msrb.mxu3 %v6259_v1  ;;  %v6271_v24 = vld [vmem:[#allocation3 + $0x1d0] sm:$0xff]  ;;  %3226 = vmatpush.msrb.mxu2 %v6140_v32  ;;  %v6301_v32 = vld [vmem:[#allocation3 + $0x180] sm:$0xff] }
 0x494   :  { %2904 = vmatpush.msrb.mxu0 %v6261_v9  ;;  %2925 = vmatpush.msrb.mxu1 %v6273_v36  ;;  %v6304_v36 = vld [vmem:[#allocation3 + $0x188] sm:$0xff] }
 0x495   :  { %v3896_v48 = vpop.eup %3895  ;;  %3897 = vpow2.f32 %v3701_v38  ;;  %2885 = vmatpush.msrb.mxu3 %v6268_v11  ;;  %v6285_v38 = vld [vmem:[#allocation3 + $0x1c0] sm:$0xff]  ;;  %3227 = vmatpush.msrb.mxu2 %v6158_v19  ;;  %v6306_v11 = vld [vmem:[#allocation3 + $0x190] sm:$0xff] }
 0x496   :  { %v6276_v57 = vadd.f32 1.0, %v3896_v48  ;;  %6794 = vst [vmem:[#allocation51_spill] sm:$0xff] %v6285_v38  ;;  %2905 = vmatpush.msrb.mxu0 %v6271_v24  ;;  %v6294_v48 = vld [vmem:[#allocation3 + $0x1a0] sm:$0xff]  ;;  %2926 = vmatpush.msrb.mxu1 %v6285_v38 }
 0x497   :  { %2886 = vmatpush.msrb.mxu3 %v6280_v16  ;;  %3228 = vmatpush.msrb.mxu2 %v6171_v59 }
 0x498   :  { %3899 = vrcp.f32 %v6276_v57  ;;  %2906 = vmatpush.msrb.mxu0 %v6283_v28  ;;  %2927 = vmatpush.msrb.mxu1 %v6296_v30  ;;  %v2665_v59 = vand.u32 2147483648, %v6276_v57  ;;  %vm2659_vm9 = vweird.f32 %v6276_v57 }
 0x499   :  { %2887 = vmatpush.msrb.mxu3 %v6291_v39  ;;  %3229 = vmatpush.msrb.mxu2 %v6181_v50 }
 0x49a   :  { %2907 = vmatpush.msrb.mxu0 %v6294_v48  ;;  %2928 = vmatpush.msrb.mxu1 %v6306_v11 }
 0x49b   :  { %v3898_v55 = vpop.eup %3897  ;;  %2888 = vmatpush.msrb.mxu3 %v6301_v32  ;;  %3230 = vmatpush.msrb.mxu2 %v6191_v44  ;;  %v6809_v44 = vld [vmem:[#allocation30_spill] sm:$0xff] }
 0x49c   :  { %v6309_v16 = vadd.f32 1.0, %v3898_v55  ;;  %2908 = vmatpush.msrb.mxu0 %v6304_v36  ;;  %3205 = vmatpush.msra.mxu1 %v6125_v5  ;;  %v2598_v5 = vpop.f32.mrf.mxu3 }
 0x49d   :  { %3117 = vmatpush.msra.mxu3 %v5966_v21  ;;  %3231 = vmatpush.msrb.mxu2 %v6201_v37  ;;  %v2663_v21 = vand.u32 2147483647, %v6276_v57  ;;  %v6812_v37 = vld [vmem:[#allocation65_spill] sm:$0xff] }
 0x49e   :  { %v3900_v19 = vpop.eup %3899  ;;  %3901 = vrcp.f32 %v6309_v16  ;;  %3137 = vmatpush.msra.mxu0 %v5968_v15  ;;  %3206 = vmatpush.msra.mxu1 %v6138_v34  ;;  %v2666_v34 = vor.u32 1.1754944e-38, %v2665_v59  ;;  %vm2679_vm13 = vweird.f32 %v6309_v16 }
 0x49f   :  { %v2655_v38 = vmul.f32 %v3900_v19, %v6276_v57  ;;  %3118 = vmatpush.msra.mxu3 %v5975_v58  ;;  %vm2660_vm8 = vweird.f32 %v3900_v19  ;;  %3232 = vmatpush.msrb.mxu2 %v6213_v29  ;;  %vm2664_vm11 = vcmp.eq.f32.partialorder %v2663_v21, 8.507059e+37  ;;  %v2689_v29 = vadd.f32 %v5949_v14, %v2598_v5 }
 0x4a0   :  { %3138 = vmatpush.msra.mxu0 %v5977_v0  ;;  %3207 = vmatpush.msra.mxu1 %v6156_v35  ;;  %vm2661_vm10 = vmor %vm2659_vm9, %vm2660_vm8  ;;  %v2683_v14 = vand.u32 2147483647, %v6309_v16 }
 0x4a1   :  { %v2656_v55 = vsub.f32 1.0, %v2655_v38  ;;  %3119 = vmatpush.msra.mxu3 %v5984_v17  ;;  %3233 = vmatpush.msrb.mxu2 %v6225_v22  ;;  %v6815_v22 = vld [vmem:[#allocation51_spill] sm:$0xff] }
 0x4a2   :  { %3139 = vmatpush.msra.mxu0 %v5986_v13  ;;  %3208 = vmatpush.msra.mxu1 %v6169_v40  ;;  %vm2684_vm15 = vcmp.eq.f32.partialorder %v2683_v14, 8.507059e+37 }
 0x4a3   :  { %v2657_v50 = vmul.f32 %v3900_v19, %v2656_v55  ;;  %3120 = vmatpush.msra.mxu3 %v5993_v45  ;;  %3234 = vmatpush.msrb.mxu2 %v6238_v52  ;;  %v6816_v52 = vld [vmem:[#allocation22_spill] sm:$0xff] }
 0x4a4   :  { %v3902_v15 = vpop.eup %3901  ;;  %3140 = vmatpush.msra.mxu0 %v5995_v8  ;;  %3209 = vmatpush.msra.mxu1 %v6179_v18  ;;  %v2685_v8 = vand.u32 2147483648, %v6309_v16  ;;  %v6807_v18 = vld [vmem:[#allocation24_spill] sm:$0xff] }
 0x4a5   :  { %v2675_v58 = vmul.f32 %v3902_v15, %v6309_v16  ;;  %v2658_v0 = vadd.f32 %v3900_v19, %v2657_v50  ;;  %3121 = vmatpush.msra.mxu3 %v6002_v53  ;;  %vm2680_vm12 = vweird.f32 %v3902_v15  ;;  %3235 = vmatpush.msrb.mxu2 %v6251_v3  ;;  %v6813_v3 = vld [vmem:[#allocation48_spill] sm:$0xff] }
 0x4a6   :  { %3141 = vmatpush.msra.mxu0 %v6004_v33  ;;  %3210 = vmatpush.msra.mxu1 %v6189_v12  ;;  %v6795_v33 = vld [vmem:[#allocation43_spill] sm:$0xff]  ;;  %vm2681_vm14 = vmor %vm2679_vm13, %vm2680_vm12  ;;  %v6808_v12 = vld [vmem:[#allocation16_spill] sm:$0xff] }
 0x4a7   :  { %v2676_v17 = vsub.f32 1.0, %v2675_v58  ;;  %v2662_v13 = vsel %vm2661_vm10, %v3900_v19, %v2658_v0  ;;  %3122 = vmatpush.msra.mxu3 %v6011_v23  ;;  %3236 = vmatpush.msrb.mxu2 %v6261_v9  ;;  %v2686_v23 = vor.u32 1.1754944e-38, %v2685_v8 }
 0x4a8   :  { %v2667_v57 = vsel %vm2664_vm11, %v2666_v34, %v2662_v13  ;;  %3142 = vmatpush.msra.mxu0 %v6013_v42  ;;  %3211 = vmatpush.msra.mxu1 %v6199_v2  ;;  %v6811_v2 = vld [vmem:[#allocation39_spill] sm:$0xff] }
 0x4a9   :  { %v2677_v45 = vmul.f32 %v3902_v15, %v2676_v17  ;;  %v2690_v35 = vmul.f32 %v2689_v29, %v2667_v57  ;;  %3123 = vmatpush.msra.mxu3 %v6020_v46  ;;  %3237 = vmatpush.msrb.mxu2 %v6271_v24  ;;  %v6416_v29 = vld [vmem:[#allocation7] ss:$0 sm:$0xff] }
 0x4aa   :  { %3143 = vmatpush.msra.mxu0 %v6022_v25  ;;  %3212 = vmatpush.msra.mxu1 %v6211_v63  ;;  %v6810_v63 = vld [vmem:[#allocation38_spill] sm:$0xff] }
 0x4ab   :  { %v2678_v53 = vadd.f32 %v3902_v15, %v2677_v45  ;;  %v2691_v40 = vadd.f32 %v2690_v35, %v6795_v33  ;;  %3124 = vmatpush.msra.mxu3 %v6028_v51  ;;  %3238 = vmatpush.msrb.mxu2 %v6283_v28  ;;  %v6806_v28 = vld [vmem:[#allocation37_spill] sm:$0xff]  ;;  %v6818_v33 = vld [vmem:[#allocation27_spill] sm:$0xff] }
 0x4ac   :  { %3144 = vmatpush.msra.mxu0 %v6030_v60  ;;  %3213 = vmatpush.msra.mxu1 %v6223_v7  ;;  %v6814_v7 = vld [vmem:[#allocation67_spill] sm:$0xff] }
 0x4ad   :  { %v2682_v42 = vsel %vm2681_vm14, %v3902_v15, %v2678_v53  ;;  %3903 = vtanh.f32 %v2691_v40  ;;  %3125 = vmatpush.msra.mxu3 %v6035_v56  ;;  %3239 = vmatpush.msrb.mxu2 %v6294_v48 }
 0x4ae   :  { %v2687_v46 = vsel %vm2684_vm15, %v2686_v23, %v2682_v42  ;;  %3145 = vmatpush.msra.mxu0 %v6041_v49  ;;  %3214 = vmatpush.msra.mxu1 %v6236_v61 }
 0x4af   :  { %3126 = vmatpush.msra.mxu3 %v6046_v10  ;;  %v2693_v25 = vsub.f32 1.0, %v2687_v46  ;;  %v2695_v56 = vmul.f32 %v2687_v46, %v5954_v62  ;;  %3240 = vmatpush.msrb.mxu2 %v6304_v36  ;;  %v6796_v62 = vld [vmem:[#allocation49_spill] sm:$0xff] }
 0x4b0   :  { %3146 = vmatpush.msra.mxu0 %v6050_v43  ;;  %3215 = vmatpush.msra.mxu1 %v6249_v6  ;;  %v6797_v43 = vld [vmem:[#allocation21_spill] sm:$0xff] }
 0x4b1   :  { %3127 = vmatpush.msra.mxu3 %v6055_v41  ;;  %v6798_v41 = vld [vmem:[#allocation10_spill] sm:$0xff]  ;;  %v6817_v6 = vld [vmem:[#allocation25_spill] sm:$0xff] }
 0x4b2   :  { %3147 = vmatpush.msra.mxu0 %v6059_v31  ;;  %3216 = vmatpush.msra.mxu1 %v6259_v1  ;;  %v6799_v31 = vld [vmem:[#allocation50_spill] sm:$0xff] }
 0x4b3   :  { %v3904_v51 = vpop.eup %3903  ;;  %3128 = vmatpush.msra.mxu3 %v6064_v4  ;;  %v6800_v4 = vld [vmem:[#allocation14_spill] sm:$0xff] }
 0x4b4   :  { %v2694_v60 = vmul.f32 %v3904_v51, %v2693_v25  ;;  %3148 = vmatpush.msra.mxu0 %v6068_v54  ;;  %3217 = vmatpush.msra.mxu1 %v6796_v62  ;;  %v6801_v54 = vld [vmem:[#allocation26_spill] sm:$0xff] }
 0x4b5   :  { %3129 = vmatpush.msra.mxu3 %v6073_v20  ;;  %v6802_v20 = vld [vmem:[#allocation12_spill] sm:$0xff] }
 0x4b6   :  { %v6375_v49 = vadd.f32 %v2695_v56, %v2694_v60  ;;  %3149 = vmatpush.msra.mxu0 %v6077_v47  ;;  %3218 = vmatpush.msra.mxu1 %v6799_v31  ;;  %v6803_v47 = vld [vmem:[#allocation62_spill] sm:$0xff] }
 0x4b7   :  { %3130 = vmatpush.msra.mxu3 %v6082_v26  ;;  %v6804_v26 = vld [vmem:[#allocation36_spill] sm:$0xff] }
 0x4b8   :  { %v2700_v10 = vpack.c.bf16 %v6375_v49, %v6375_v49  ;;  %2889 = vmatmul.f32.vlgmr.msrb.gmra.mxu3 %v6375_v49  ;;  %2909 = vmatmul.f32.vlgmr.msrb.gmra.mxu0 %v6375_v49 }
 0x4b9   :  { %2929 = vmatmul.f32.vlgmr.msrb.gmra.mxu1 %v6375_v49  ;;  %3150 = vmatpush.msra.mxu0 %v6086_v27  ;;  %v6805_v27 = vld [vmem:[#allocation28_spill] sm:$0xff] }
 0x4ba   :  { %3703 = vst [vmem:[%s6475_s5 + $0x34] sm:$0xf] %v2700_v10  ;;  %3131 = vmatpush.msra.mxu3 %v6797_v43  ;;  %3219 = vmatpush.msra.mxu1 %v6291_v39  ;;  %v6819_v10 = vld [vmem:[#allocation11_spill] sm:$0xff]  ;;  %v6820_v43 = vld [vmem:[#allocation44_spill] sm:$0xff] }
 0x4bb   :  { %3151 = vmatpush.msra.mxu0 %v6798_v41 }
 0x4bc   :  { %3132 = vmatpush.msra.mxu3 %v6800_v4  ;;  %3220 = vmatpush.msra.mxu1 %v6301_v32 }
 0x4bd   :  { %3152 = vmatpush.msra.mxu0 %v6801_v54 }
 0x4be   :  { %3245 = vmatpush.msrb.mxu3 %v6802_v20 }
 0x4c0   :  { %3246 = vmatpush.msrb.mxu3 %v6803_v47  ;;  %v6821_v47 = vld [vmem:[#allocation29_spill] sm:$0xff] }
 0x4c2   :  { %3247 = vmatpush.msrb.mxu3 %v6804_v26 }
 0x4c4   :  { %3248 = vmatpush.msrb.mxu3 %v6805_v27 }
 0x4c6   :  { %3249 = vmatpush.msrb.mxu3 %v6806_v28 }
 0x4c8   :  { %3250 = vmatpush.msrb.mxu3 %v6807_v18 }
 0x4ca   :  { %3251 = vmatpush.msrb.mxu3 %v6808_v12 }
 0x4cc   :  { %3252 = vmatpush.msrb.mxu3 %v6809_v44 }
 0x4ce   :  { %3253 = vmatpush.msrb.mxu3 %v6810_v63 }
 0x4d0   :  { %3254 = vmatpush.msrb.mxu3 %v6811_v2 }
 0x4d2   :  { %3255 = vmatpush.msrb.mxu3 %v6812_v37 }
 0x4d4   :  { %3256 = vmatpush.msrb.mxu3 %v6813_v3 }
 0x4d6   :  { %3257 = vmatpush.msrb.mxu3 %v6814_v7 }
 0x4d8   :  { %3258 = vmatpush.msrb.mxu3 %v6815_v22 }
 0x4da   :  { %3259 = vmatpush.msrb.mxu3 %v6296_v30 }
 0x4dc   :  { %3260 = vmatpush.msrb.mxu3 %v6306_v11 }
 0x50b   :  { %v2782_v1 = vpop.f32.mrf.mxu0  ;;  %v2802_v61 = vpop.f32.mrf.mxu1 }
 0x50c   :  { %v2933_v36 = vadd.f32 %v2782_v1, %v6816_v52  ;;  %v2953_v9 = vadd.f32 %v2802_v61, %v6817_v6 }
 0x50e   :  { %v3704_v24 = vmul.f32 -1.442695, %v2933_v36  ;;  %v3705_v16 = vmul.f32 -1.442695, %v2953_v9 }
 0x510   :  { %3905 = vpow2.f32 %v3704_v24 }
 0x511   :  { %3907 = vpow2.f32 %v3705_v16  ;;  %v6433_v16 = vld [vmem:[#allocation7 + $0x1] ss:$0 sm:$0xff] }
 0x512   :  { %v2822_v0 = vpop.f32.mrf.mxu2 }
 0x513   :  { %v2973_v57 = vadd.f32 %v6416_v29, %v2822_v0 }
 0x516   :  { %v3906_v38 = vpop.eup %3905 }
 0x517   :  { %v3908_v39 = vpop.eup %3907  ;;  %v2937_v48 = vadd.f32 1.0, %v3906_v38 }
 0x518   :  { %v2957_v32 = vadd.f32 1.0, %v3908_v39 }
 0x519   :  { %3909 = vrcp.f32 %v2937_v48  ;;  %v2949_v21 = vand.u32 2147483648, %v2937_v48  ;;  %v2947_v5 = vand.u32 2147483647, %v2937_v48  ;;  %vm2943_vm1 = vweird.f32 %v2937_v48 }
 0x51a   :  { %3911 = vrcp.f32 %v2957_v32  ;;  %v2969_v35 = vand.u32 2147483648, %v2957_v32  ;;  %vm2963_vm5 = vweird.f32 %v2957_v32  ;;  %v2967_v53 = vand.u32 2147483647, %v2957_v32 }
 0x51b   :  { %v2950_v17 = vor.u32 1.1754944e-38, %v2949_v21  ;;  %vm2948_vm3 = vcmp.eq.f32.partialorder %v2947_v5, 8.507059e+37 }
 0x51c   :  { %v2970_v42 = vor.u32 1.1754944e-38, %v2969_v35  ;;  %vm2968_vm7 = vcmp.eq.f32.partialorder %v2967_v53, 8.507059e+37 }
 0x51f   :  { %v3910_v19 = vpop.eup %3909 }
 0x520   :  { %v3912_v30 = vpop.eup %3911  ;;  %v2939_v55 = vmul.f32 %v3910_v19, %v2937_v48  ;;  %vm2944_vm0 = vweird.f32 %v3910_v19 }
 0x521   :  { %v2959_v11 = vmul.f32 %v3912_v30, %v2957_v32  ;;  %vm2945_vm2 = vmor %vm2943_vm1, %vm2944_vm0  ;;  %vm2964_vm4 = vweird.f32 %v3912_v30 }
 0x522   :  { %v2940_v59 = vsub.f32 1.0, %v2939_v55  ;;  %vm2965_vm6 = vmor %vm2963_vm5, %vm2964_vm4 }
 0x523   :  { %v2960_v50 = vsub.f32 1.0, %v2959_v11  ;;  %v6822_v11 = vld [vmem:[#allocation45_spill] sm:$0xff] }
 0x524   :  { %v2941_v15 = vmul.f32 %v3910_v19, %v2940_v59 }
 0x525   :  { %v2961_v58 = vmul.f32 %v3912_v30, %v2960_v50 }
 0x526   :  { %v2942_v34 = vadd.f32 %v3910_v19, %v2941_v15 }
 0x527   :  { %v2962_v45 = vadd.f32 %v3912_v30, %v2961_v58 }
 0x528   :  { %v2946_v13 = vsel %vm2945_vm2, %v3910_v19, %v2942_v34 }
 0x529   :  { %v2951_v8 = vsel %vm2948_vm3, %v2950_v17, %v2946_v13  ;;  %v2966_v23 = vsel %vm2965_vm6, %v3912_v30, %v2962_v45 }
 0x52a   :  { %v2974_v14 = vmul.f32 %v2973_v57, %v2951_v8  ;;  %v2971_v46 = vsel %vm2968_vm7, %v2970_v42, %v2966_v23  ;;  %v6823_v8 = vld [vmem:[#allocation32_spill] sm:$0xff] }
 0x52b   :  { %v2977_v25 = vsub.f32 1.0, %v2971_v46  ;;  %v2979_v62 = vmul.f32 %v2971_v46, %v6819_v10 }
 0x52c   :  { %v2975_v40 = vadd.f32 %v2974_v14, %v6818_v33 }
 0x52e   :  { %3913 = vtanh.f32 %v2975_v40 }
 0x534   :  { %v3914_v51 = vpop.eup %3913 }
 0x535   :  { %v2978_v60 = vmul.f32 %v3914_v51, %v2977_v25  ;;  %v2910_v56 = vpop.f32.mrf.mxu0 }
 0x536   :  { %v3001_v41 = vadd.f32 %v2910_v56, %v6820_v43  ;;  %v2930_v6 = vpop.f32.mrf.mxu1 }
 0x537   :  { %v6422_v31 = vadd.f32 %v2979_v62, %v2978_v60  ;;  %v3021_v38 = vadd.f32 %v6433_v16, %v2930_v6 }
 0x538   :  { %v3707_v4 = vmul.f32 -1.442695, %v3001_v41 }
 0x539   :  { %v3029_v54 = vpack.c.bf16 %v6422_v31, %v6422_v31  ;;  %3113 = vmatmul.f32.vlgmr.msra.gmra.mxu2 %v6422_v31  ;;  %3133 = vmatmul.f32.vlgmr.msra.gmra.mxu3 %v6422_v31 }
 0x53a   :  { %3915 = vpow2.f32 %v3707_v4  ;;  %3153 = vmatmul.f32.vlgmr.msra.gmra.mxu0 %v6422_v31 }
 0x53b   :  { %3708 = vst [vmem:[%s6475_s5 + $0x18] sm:$0xf] %v3029_v54  ;;  %v2890_v20 = vpop.f32.mrf.mxu3 }
 0x53c   :  { %v2981_v26 = vadd.f32 %v2890_v20, %v6821_v47 }
 0x53e   :  { %v3706_v27 = vmul.f32 -1.442695, %v2981_v26 }
 0x540   :  { %v3916_v28 = vpop.eup %3915  ;;  %3917 = vpow2.f32 %v3706_v27 }
 0x541   :  { %v3005_v18 = vadd.f32 1.0, %v3916_v28 }
 0x543   :  { %3919 = vrcp.f32 %v3005_v18  ;;  %v3017_v19 = vand.u32 2147483648, %v3005_v18  ;;  %vm3011_vm13 = vweird.f32 %v3005_v18  ;;  %v3015_v55 = vand.u32 2147483647, %v3005_v18 }
 0x545   :  { %v3018_v21 = vor.u32 1.1754944e-38, %v3017_v19  ;;  %vm3016_vm15 = vcmp.eq.f32.partialorder %v3015_v55, 8.507059e+37  ;;  %v6827_v19 = vld [vmem:[#allocation46_spill] sm:$0xff] }
 0x546   :  { %v3918_v12 = vpop.eup %3917 }
 0x547   :  { %v2985_v44 = vadd.f32 1.0, %v3918_v12 }
 0x549   :  { %3921 = vrcp.f32 %v2985_v44  ;;  %v3920_v63 = vpop.eup %3919  ;;  %v2997_v1 = vand.u32 2147483648, %v2985_v44  ;;  %v2995_v52 = vand.u32 2147483647, %v2985_v44  ;;  %vm2991_vm9 = vweird.f32 %v2985_v44 }
 0x54a   :  { %v3007_v2 = vmul.f32 %v3920_v63, %v3005_v18  ;;  %vm3012_vm12 = vweird.f32 %v3920_v63 }
 0x54b   :  { %v2998_v24 = vor.u32 1.1754944e-38, %v2997_v1  ;;  %vm2996_vm11 = vcmp.eq.f32.partialorder %v2995_v52, 8.507059e+37  ;;  %vm3013_vm14 = vmor %vm3011_vm13, %vm3012_vm12 }
 0x54c   :  { %v3008_v7 = vsub.f32 1.0, %v3007_v2 }
 0x54e   :  { %v3009_v36 = vmul.f32 %v3920_v63, %v3008_v7 }
 0x54f   :  { %v3922_v37 = vpop.eup %3921 }
 0x550   :  { %v2987_v3 = vmul.f32 %v3922_v37, %v2985_v44  ;;  %vm2992_vm8 = vweird.f32 %v3922_v37  ;;  %v3010_v48 = vadd.f32 %v3920_v63, %v3009_v36 }
 0x551   :  { %vm2993_vm10 = vmor %vm2991_vm9, %vm2992_vm8 }
 0x552   :  { %v2988_v22 = vsub.f32 1.0, %v2987_v3  ;;  %v3014_v50 = vsel %vm3013_vm14, %v3920_v63, %v3010_v48 }
 0x553   :  { %v3019_v15 = vsel %vm3016_vm15, %v3018_v21, %v3014_v50 }
 0x554   :  { %v2989_v61 = vmul.f32 %v3922_v37, %v2988_v22  ;;  %v3025_v5 = vsub.f32 1.0, %v3019_v15  ;;  %v3027_v34 = vmul.f32 %v3019_v15, %v6375_v49  ;;  %v6824_v49 = vld [vmem:[#allocation33_spill] sm:$0xff] }
 0x556   :  { %v2990_v9 = vadd.f32 %v3922_v37, %v2989_v61 }
 0x558   :  { %v2994_v39 = vsel %vm2993_vm10, %v3922_v37, %v2990_v9  ;;  %v6825_v37 = vld [vmem:[#allocation34_spill] sm:$0xff]  ;;  %v6826_v9 = vld [vmem:[#allocation35_spill] sm:$0xff] }
 0x559   :  { %v2999_v32 = vsel %vm2996_vm11, %v2998_v24, %v2994_v39 }
 0x55a   :  { %v3022_v30 = vmul.f32 %v3021_v38, %v2999_v32 }
 0x55c   :  { %v3023_v59 = vadd.f32 %v3022_v30, %v6822_v11 }
 0x55e   :  { %3923 = vtanh.f32 %v3023_v59 }
 0x564   :  { %v3924_v58 = vpop.eup %3923 }
 0x565   :  { %v3026_v0 = vmul.f32 %v3924_v58, %v3025_v5 }
 0x567   :  { %v6438_v17 = vadd.f32 %v3027_v34, %v3026_v0 }
 0x569   :  { %v3032_v13 = vpack.c.bf16 %v6438_v17, %v6438_v17  ;;  %3221 = vmatmul.f32.vlgmr.msra.gmra.mxu1 %v6438_v17  ;;  %3241 = vmatmul.f32.vlgmr.msrb.gmra.mxu2 %v6438_v17 }
 0x56a   :  { %3261 = vmatmul.f32.vlgmr.msrb.gmra.mxu3 %v6438_v17 }
 0x56b   :  { %3709 = vst [vmem:[%s6475_s5 + $0x38] sm:$0xf] %v3032_v13 }
 0x5b7   :  { %v3154_v54 = vpop.f32.mrf.mxu0 }
 0x5b8   :  { %v3305_v27 = vadd.f32 %v6416_v29, %v3154_v54 }
 0x5bc   :  { %v3114_v57 = vpop.f32.mrf.mxu2  ;;  %v3134_v45 = vpop.f32.mrf.mxu3 }
 0x5bd   :  { %v3265_v35 = vadd.f32 %v3114_v57, %v6823_v8  ;;  %v3285_v14 = vadd.f32 %v3134_v45, %v6824_v49 }
 0x5bf   :  { %v3710_v53 = vmul.f32 -1.442695, %v3265_v35  ;;  %v3711_v33 = vmul.f32 -1.442695, %v3285_v14 }
 0x5c1   :  { %3925 = vpow2.f32 %v3710_v53 }
 0x5c2   :  { %3927 = vpow2.f32 %v3711_v33 }
 0x5c7   :  { %v3926_v40 = vpop.eup %3925 }
 0x5c8   :  { %v3928_v23 = vpop.eup %3927  ;;  %v3269_v42 = vadd.f32 1.0, %v3926_v40 }
 0x5c9   :  { %v3289_v46 = vadd.f32 1.0, %v3928_v23 }
 0x5ca   :  { %3929 = vrcp.f32 %v3269_v42  ;;  %v3281_v62 = vand.u32 2147483648, %v3269_v42  ;;  %v3279_v4 = vand.u32 2147483647, %v3269_v42  ;;  %vm3275_vm1 = vweird.f32 %v3269_v42 }
 0x5cb   :  { %3931 = vrcp.f32 %v3289_v46  ;;  %v3301_v63 = vand.u32 2147483648, %v3289_v46  ;;  %vm3295_vm5 = vweird.f32 %v3289_v46  ;;  %v3299_v2 = vand.u32 2147483647, %v3289_v46 }
 0x5cc   :  { %v3282_v26 = vor.u32 1.1754944e-38, %v3281_v62  ;;  %vm3280_vm3 = vcmp.eq.f32.partialorder %v3279_v4, 8.507059e+37 }
 0x5cd   :  { %v3302_v22 = vor.u32 1.1754944e-38, %v3301_v63  ;;  %vm3300_vm7 = vcmp.eq.f32.partialorder %v3299_v2, 8.507059e+37 }
 0x5d0   :  { %v3930_v25 = vpop.eup %3929 }
 0x5d1   :  { %v3932_v51 = vpop.eup %3931  ;;  %v3271_v60 = vmul.f32 %v3930_v25, %v3269_v42  ;;  %vm3276_vm0 = vweird.f32 %v3930_v25 }
 0x5d2   :  { %v3291_v56 = vmul.f32 %v3932_v51, %v3289_v46  ;;  %vm3277_vm2 = vmor %vm3275_vm1, %vm3276_vm0  ;;  %vm3296_vm4 = vweird.f32 %v3932_v51 }
 0x5d3   :  { %v3272_v10 = vsub.f32 1.0, %v3271_v60  ;;  %vm3297_vm6 = vmor %vm3295_vm5, %vm3296_vm4 }
 0x5d4   :  { %v3292_v43 = vsub.f32 1.0, %v3291_v56 }
 0x5d5   :  { %v3273_v41 = vmul.f32 %v3930_v25, %v3272_v10 }
 0x5d6   :  { %v3293_v20 = vmul.f32 %v3932_v51, %v3292_v43 }
 0x5d7   :  { %v3274_v47 = vadd.f32 %v3930_v25, %v3273_v41 }
 0x5d8   :  { %v3294_v12 = vadd.f32 %v3932_v51, %v3293_v20 }
 0x5d9   :  { %v3278_v28 = vsel %vm3277_vm2, %v3930_v25, %v3274_v47 }
 0x5da   :  { %v3283_v18 = vsel %vm3280_vm3, %v3282_v26, %v3278_v28  ;;  %v3298_v7 = vsel %vm3297_vm6, %v3932_v51, %v3294_v12  ;;  %v6828_v51 = vld [vmem:[#allocation47_spill] sm:$0xff] }
 0x5db   :  { %v3306_v44 = vmul.f32 %v3305_v27, %v3283_v18  ;;  %v3303_v1 = vsel %vm3300_vm7, %v3302_v22, %v3298_v7 }
 0x5dc   :  { %v3309_v61 = vsub.f32 1.0, %v3303_v1  ;;  %v3311_v36 = vmul.f32 %v3303_v1, %v6422_v31 }
 0x5dd   :  { %v3307_v3 = vadd.f32 %v3306_v44, %v6825_v37 }
 0x5df   :  { %3933 = vtanh.f32 %v3307_v3 }
 0x5e5   :  { %v3934_v52 = vpop.eup %3933 }
 0x5e6   :  { %v3310_v29 = vmul.f32 %v3934_v52, %v3309_v61  ;;  %v3222_v6 = vpop.f32.mrf.mxu1 }
 0x5e7   :  { %v3313_v24 = vadd.f32 %v3222_v6, %v6826_v9 }
 0x5e8   :  { %v3312_v38 = vadd.f32 %v3311_v36, %v3310_v29 }
 0x5e9   :  { %v3712_v39 = vmul.f32 -1.442695, %v3313_v24 }
 0x5ea   :  { %v3361_v48 = vpack.c.bf16 %v3312_v38, %v3312_v38  ;;  %3369 = vst [vmem:[%s6476_s6] sm:$0xff] %v3312_v38 }
 0x5eb   :  { %3935 = vpow2.f32 %v3712_v39 }
 0x5ec   :  { %3714 = vst [vmem:[%s6475_s5 + $0x1c] sm:$0xf] %v3361_v48  ;;  %v3242_v32 = vpop.f32.mrf.mxu2 }
 0x5ed   :  { %v3333_v30 = vadd.f32 %v3242_v32, %v6827_v19  ;;  %v3262_v57 = vpop.f32.mrf.mxu3 }
 0x5ee   :  { %v3353_v53 = vadd.f32 %v6433_v16, %v3262_v57 }
 0x5ef   :  { %v3713_v55 = vmul.f32 -1.442695, %v3333_v30 }
 0x5f1   :  { %v3936_v31 = vpop.eup %3935  ;;  %3937 = vpow2.f32 %v3713_v55 }
 0x5f2   :  { %v3317_v11 = vadd.f32 1.0, %v3936_v31 }
 0x5f4   :  { %3939 = vrcp.f32 %v3317_v11  ;;  %v3329_v58 = vand.u32 2147483648, %v3317_v11  ;;  %v3327_v34 = vand.u32 2147483647, %v3317_v11  ;;  %vm3323_vm9 = vweird.f32 %v3317_v11 }
 0x5f6   :  { %v3330_v35 = vor.u32 1.1754944e-38, %v3329_v58  ;;  %vm3328_vm11 = vcmp.eq.f32.partialorder %v3327_v34, 8.507059e+37 }
 0x5f7   :  { %v3938_v59 = vpop.eup %3937 }
 0x5f8   :  { %v3337_v50 = vadd.f32 1.0, %v3938_v59 }
 0x5fa   :  { %v3940_v21 = vpop.eup %3939  ;;  %3941 = vrcp.f32 %v3337_v50  ;;  %v3349_v23 = vand.u32 2147483648, %v3337_v50  ;;  %v3347_v46 = vand.u32 2147483647, %v3337_v50  ;;  %vm3343_vm13 = vweird.f32 %v3337_v50 }
 0x5fb   :  { %v3319_v15 = vmul.f32 %v3940_v21, %v3317_v11  ;;  %vm3324_vm8 = vweird.f32 %v3940_v21 }
 0x5fc   :  { %vm3325_vm10 = vmor %vm3323_vm9, %vm3324_vm8  ;;  %v3350_v56 = vor.u32 1.1754944e-38, %v3349_v23  ;;  %vm3348_vm15 = vcmp.eq.f32.partialorder %v3347_v46, 8.507059e+37 }
 0x5fd   :  { %v3320_v5 = vsub.f32 1.0, %v3319_v15 }
 0x5ff   :  { %v3321_v0 = vmul.f32 %v3940_v21, %v3320_v5 }
 0x600   :  { %v3942_v13 = vpop.eup %3941 }
 0x601   :  { %v3339_v45 = vmul.f32 %v3942_v13, %v3337_v50  ;;  %v3322_v8 = vadd.f32 %v3940_v21, %v3321_v0  ;;  %vm3344_vm12 = vweird.f32 %v3942_v13 }
 0x602   :  { %vm3345_vm14 = vmor %vm3343_vm13, %vm3344_vm12 }
 0x603   :  { %v3340_v49 = vsub.f32 1.0, %v3339_v45  ;;  %v3326_v14 = vsel %vm3325_vm10, %v3940_v21, %v3322_v8 }
 0x604   :  { %v3331_v33 = vsel %vm3328_vm11, %v3330_v35, %v3326_v14 }
 0x605   :  { %v3341_v40 = vmul.f32 %v3942_v13, %v3340_v49  ;;  %v3354_v42 = vmul.f32 %v3353_v53, %v3331_v33 }
 0x607   :  { %v3342_v25 = vadd.f32 %v3942_v13, %v3341_v40  ;;  %v3355_v60 = vadd.f32 %v3354_v42, %v6828_v51 }
 0x609   :  { %v3346_v10 = vsel %vm3345_vm14, %v3942_v13, %v3342_v25  ;;  %3943 = vtanh.f32 %v3355_v60 }
 0x60a   :  { %v3351_v62 = vsel %vm3348_vm15, %v3350_v56, %v3346_v10 }
 0x60b   :  { %v3357_v43 = vsub.f32 1.0, %v3351_v62  ;;  %v3359_v16 = vmul.f32 %v3351_v62, %v6438_v17 }
 0x60f   :  { %v3944_v41 = vpop.eup %3943 }
 0x610   :  { %v3358_v4 = vmul.f32 %v3944_v41, %v3357_v43 }
 0x612   :  { %v3360_v54 = vadd.f32 %v3359_v16, %v3358_v4 }
 0x614   :  { %v3364_v20 = vpack.c.bf16 %v3360_v54, %v3360_v54  ;;  %3716 = vst [vmem:[%s6476_s6 + $0x8] sm:$0xff] %v3360_v54 }
 0x616   :  { %3715 = vst [vmem:[%s6475_s5 + $0x3c] sm:$0xf] %v3364_v20 }
 0x617   :  { %3379 = vsyncpa [#allocation4], 1 }
 0x618   :  { %3380 = vsyncpa [#allocation6], 1 }

// kernel: bidirectional_gru_encoder.3
= control target key start
LH: loop header
LB: loop body
LE: loop exit
PB: predicated region body
PF: predicated region fallthrough
CT: control target
= control target key end

     0   :  { %12 = vsyncpa [#allocation4], 0  ;;  %s6134_s0 = inlined_call_operand.vmem [shape: bf16[2,64,128], index: 0, kind: input, shape index: {}]   ;;  %s6135_s1 = inlined_call_operand.hbm [shape: bf16[2,128,384], index: 1, kind: input, shape index: {}]   ;;  %s6136_s2 = inlined_call_operand.hbm [shape: f32[2,128,384], index: 2, kind: input, shape index: {}]   ;;  %s6137_s3 = inlined_call_operand.vmem [shape: f32[2,1,384], index: 3, kind: input, shape index: {}]   ;;  %s6138_s4 = inlined_call_operand.vmem [shape: f32[2,1,128], index: 4, kind: input, shape index: {}]   ;;  %s6139_s5 = inlined_call_operand.vmem [shape: bf16[2,64,128], index: 5, kind: output, shape index: {0}]   ;;  %s6140_s6 = inlined_call_operand.vmem [shape: f32[2,8,128], index: 6, kind: output, shape index: {1}]  }
   0x1   :  { %s20_s23 = sshll.u32 %s6135_s1, 4  ;;  %s21_s23 = int_to_ptr.hbm [resolvable:$true] %s20_s23 }
   0x2   :  { %13 = vsyncpa [#allocation6], 0  ;;  %s3955_s24 = smov [#allocation3]   ;;  %s33_s28 = sshll.u32 %s6136_s2, 4  ;;  %s34_s28 = int_to_ptr.hbm [resolvable:$true] %s33_s28 }
   0x3   :  { %s22_s25 = sshll.u32 %s3955_s24, 4  ;;  %s3956_s29 = smov 192   ;;  %s23_s25 = int_to_ptr.vmem [resolvable:$true] %s22_s25 }
   0x4   :  { %s3957_s30 = smov 12   ;;  %s3958_s7 = smov [#allocation5]  }
   0x5   :  { %28 = dma.hbm_to_vmem [thread:$0]  %s21_s23, 6144, %s23_s25, [#allocation4], %s3956_s29, %s3956_s29, %s3957_s30  }
   0x6   :  { %s35_s8 = sshll.u32 %s3958_s7, 4  ;;  %s3959_s9 = smov 384   ;;  %s36_s8 = int_to_ptr.vmem [resolvable:$true] %s35_s8 }
   0x7   :  { %s3960_s10 = smov 24  }
   0x8   :  { %41 = dma.hbm_to_vmem [thread:$0]  %s34_s28, 12288, %s36_s8, [#allocation6], %s3959_s9, %s3959_s9, %s3960_s10  }
   0x9   :  { %3951 = dma.done.wait [#allocation4], 6144  }
   0xa   :  { %3952 = vsyncadd [#allocation4], 4294961152 }
   0xb   :  { %3953 = dma.done.wait [#allocation6], 12288  }
   0xc   :  { %3954 = vsyncadd [#allocation6], 4294955008  ;;  %v3491_v0 = vld [vmem:[#allocation3 + $0xa8] sm:$0xf]  ;;  %v3698_v1 = vld [vmem:[#allocation3 + $0xb0] sm:$0xf0] }
   0xd   :  { %v3697_v2 = vld [vmem:[#allocation3 + $0xac] sm:$0xf]  ;;  %v3492_v3 = vor.u32 %v3698_v1, %v3491_v0  ;;  %v3493_v4 = vld [vmem:[#allocation3 + $0xb4] sm:$0xf0]  ;;  %v3499_v5 = vld [vmem:[#allocation3 + $0xb0] sm:$0xf] }
   0xe   :  { %v3699_v6 = vld [vmem:[#allocation3 + $0xb8] sm:$0xf0]  ;;  %v3496_v7 = vor.u32 %v3697_v2, %v3493_v4  ;;  %v3612_v9 = vld [vmem:[#allocation3 + $0x168] sm:$0xf]  ;;  %v3726_v10 = vld [vmem:[#allocation3 + $0x170] sm:$0xf0] }
   0xf   :  { %v3500_v8 = vor.u32 %v3699_v6, %v3499_v5  ;;  %v3479_v11 = vld [vmem:[#allocation3 + $0x90] sm:$0xf]  ;;  %260 = vmatpush.bf16.msra.mxu0 %v3492_v3  ;;  %v3613_v12 = vor.u32 %v3726_v10, %v3612_v9  ;;  %v3695_v13 = vld [vmem:[#allocation3 + $0x98] sm:$0xf0]  ;;  %v3694_v14 = vld [vmem:[#allocation3 + $0x94] sm:$0xf] }
  0x10   :  { %v3481_v15 = vld [vmem:[#allocation3 + $0x9c] sm:$0xf0]  ;;  %289 = vmatpush.bf16.msra.mxu1 %v3496_v7  ;;  %v3480_v16 = vor.u32 %v3695_v13, %v3479_v11  ;;  %v3487_v18 = vld [vmem:[#allocation3 + $0x98] sm:$0xf]  ;;  %v3696_v19 = vld [vmem:[#allocation3 + $0xa0] sm:$0xf0] }
  0x11   :  { %318 = vmatpush.bf16.msra.mxu2 %v3500_v8  ;;  %v3484_v17 = vor.u32 %v3694_v14, %v3481_v15  ;;  %v3600_v20 = vld [vmem:[#allocation3 + $0x150] sm:$0xf]  ;;  %574 = vmatpush.bf16.msra.mxu3 %v3613_v12  ;;  %v3488_v21 = vor.u32 %v3696_v19, %v3487_v18  ;;  %v3723_v22 = vld [vmem:[#allocation3 + $0x158] sm:$0xf0]  ;;  %v3467_v23 = vld [vmem:[#allocation3 + $0x78] sm:$0xf] }
  0x12   :  { %v3692_v24 = vld [vmem:[#allocation3 + $0x80] sm:$0xf0]  ;;  %v3601_v25 = vor.u32 %v3723_v22, %v3600_v20  ;;  %v3691_v26 = vld [vmem:[#allocation3 + $0x7c] sm:$0xf]  ;;  %v3469_v27 = vld [vmem:[#allocation3 + $0x84] sm:$0xf0] }
  0x13   :  { %v3475_v28 = vld [vmem:[#allocation3 + $0x80] sm:$0xf]  ;;  %261 = vmatpush.bf16.msra.mxu0 %v3480_v16  ;;  %v3468_v29 = vor.u32 %v3692_v24, %v3467_v23  ;;  %v3693_v30 = vld [vmem:[#allocation3 + $0x88] sm:$0xf0]  ;;  %v3588_v31 = vld [vmem:[#allocation3 + $0x138] sm:$0xf]  ;;  %v3472_v33 = vor.u32 %v3691_v26, %v3469_v27 }
  0x14   :  { %v3720_v32 = vld [vmem:[#allocation3 + $0x140] sm:$0xf0]  ;;  %290 = vmatpush.bf16.msra.mxu1 %v3484_v17  ;;  %v3476_v34 = vor.u32 %v3693_v30, %v3475_v28  ;;  %v3455_v35 = vld [vmem:[#allocation3 + $0x60] sm:$0xf]  ;;  %v3689_v36 = vld [vmem:[#allocation3 + $0x68] sm:$0xf0] }
  0x15   :  { %319 = vmatpush.bf16.msra.mxu2 %v3488_v21  ;;  %v3688_v37 = vld [vmem:[#allocation3 + $0x64] sm:$0xf]  ;;  %575 = vmatpush.bf16.msra.mxu3 %v3601_v25  ;;  %v3589_v38 = vor.u32 %v3720_v32, %v3588_v31  ;;  %v3457_v39 = vld [vmem:[#allocation3 + $0x6c] sm:$0xf0]  ;;  %v3463_v40 = vld [vmem:[#allocation3 + $0x68] sm:$0xf]  ;;  %v3456_v44 = vor.u32 %v3689_v36, %v3455_v35 }
  0x16   :  { %v3690_v41 = vld [vmem:[#allocation3 + $0x70] sm:$0xf0]  ;;  %v3576_v42 = vld [vmem:[#allocation3 + $0x120] sm:$0xf]  ;;  %v3717_v43 = vld [vmem:[#allocation3 + $0x128] sm:$0xf0]  ;;  %v3460_v45 = vor.u32 %v3688_v37, %v3457_v39 }
  0x17   :  { %262 = vmatpush.bf16.msra.mxu0 %v3468_v29  ;;  %v3464_v46 = vor.u32 %v3690_v41, %v3463_v40  ;;  %v3443_v47 = vld [vmem:[#allocation3 + $0x48] sm:$0xf]  ;;  %v3686_v48 = vld [vmem:[#allocation3 + $0x50] sm:$0xf0]  ;;  %v3685_v49 = vld [vmem:[#allocation3 + $0x4c] sm:$0xf]  ;;  %v3577_v50 = vor.u32 %v3717_v43, %v3576_v42 }
  0x18   :  { %291 = vmatpush.bf16.msra.mxu1 %v3472_v33  ;;  %v3445_v51 = vld [vmem:[#allocation3 + $0x54] sm:$0xf0]  ;;  %v3451_v52 = vld [vmem:[#allocation3 + $0x50] sm:$0xf]  ;;  %v3687_v53 = vld [vmem:[#allocation3 + $0x58] sm:$0xf0]  ;;  %v3444_v56 = vor.u32 %v3686_v48, %v3443_v47 }
  0x19   :  { %320 = vmatpush.bf16.msra.mxu2 %v3476_v34  ;;  %576 = vmatpush.bf16.msra.mxu3 %v3589_v38  ;;  %v3564_v54 = vld [vmem:[#allocation3 + $0x108] sm:$0xf]  ;;  %v3714_v55 = vld [vmem:[#allocation3 + $0x110] sm:$0xf0]  ;;  %v3448_v57 = vor.u32 %v3685_v49, %v3445_v51  ;;  %v3452_v58 = vor.u32 %v3687_v53, %v3451_v52  ;;  %v3431_v59 = vld [vmem:[#allocation3 + $0x30] sm:$0xf] }
  0x1a   :  { %v3683_v60 = vld [vmem:[#allocation3 + $0x38] sm:$0xf0]  ;;  %v3682_v61 = vld [vmem:[#allocation3 + $0x34] sm:$0xf]  ;;  %v3565_v62 = vor.u32 %v3714_v55, %v3564_v54  ;;  %v3433_v63 = vld [vmem:[#allocation3 + $0x3c] sm:$0xf0] }
  0x1b   :  { %263 = vmatpush.bf16.msra.mxu0 %v3456_v44  ;;  %v3439_v0 = vld [vmem:[#allocation3 + $0x38] sm:$0xf]  ;;  %v3684_v1 = vld [vmem:[#allocation3 + $0x40] sm:$0xf0]  ;;  %v3552_v2 = vld [vmem:[#allocation3 + $0xf0] sm:$0xf]  ;;  %v3432_v4 = vor.u32 %v3683_v60, %v3431_v59  ;;  %v3436_v5 = vor.u32 %v3682_v61, %v3433_v63 }
  0x1c   :  { %292 = vmatpush.bf16.msra.mxu1 %v3460_v45  ;;  %v3711_v3 = vld [vmem:[#allocation3 + $0xf8] sm:$0xf0]  ;;  %v3440_v6 = vor.u32 %v3684_v1, %v3439_v0  ;;  %v3419_v7 = vld [vmem:[#allocation3 + $0x18] sm:$0xf]  ;;  %v3680_v8 = vld [vmem:[#allocation3 + $0x20] sm:$0xf0] }
  0x1d   :  { %321 = vmatpush.bf16.msra.mxu2 %v3464_v46  ;;  %577 = vmatpush.bf16.msra.mxu3 %v3577_v50  ;;  %v3679_v9 = vld [vmem:[#allocation3 + $0x1c] sm:$0xf]  ;;  %v3553_v10 = vor.u32 %v3711_v3, %v3552_v2  ;;  %v3421_v11 = vld [vmem:[#allocation3 + $0x24] sm:$0xf0]  ;;  %v3427_v12 = vld [vmem:[#allocation3 + $0x20] sm:$0xf]  ;;  %v3420_v16 = vor.u32 %v3680_v8, %v3419_v7 }
  0x1e   :  { %v3681_v13 = vld [vmem:[#allocation3 + $0x28] sm:$0xf0]  ;;  %v3540_v14 = vld [vmem:[#allocation3 + $0xd8] sm:$0xf]  ;;  %v3708_v15 = vld [vmem:[#allocation3 + $0xe0] sm:$0xf0]  ;;  %v3424_v18 = vor.u32 %v3679_v9, %v3421_v11 }
  0x1f   :  { %264 = vmatpush.bf16.msra.mxu0 %v3444_v56  ;;  %v3407_v17 = vld [vmem:[#allocation3] sm:$0xf]  ;;  %v3428_v19 = vor.u32 %v3681_v13, %v3427_v12  ;;  %v3677_v20 = vld [vmem:[#allocation3 + $0x8] sm:$0xf0]  ;;  %v3676_v21 = vld [vmem:[#allocation3 + $0x4] sm:$0xf]  ;;  %v3541_v23 = vor.u32 %v3708_v15, %v3540_v14 }
  0x20   :  { %293 = vmatpush.bf16.msra.mxu1 %v3448_v57  ;;  %v3409_v22 = vld [vmem:[#allocation3 + $0xc] sm:$0xf0]  ;;  %v3415_v24 = vld [vmem:[#allocation3 + $0x8] sm:$0xf]  ;;  %v3678_v25 = vld [vmem:[#allocation3 + $0x10] sm:$0xf0]  ;;  %v3408_v30 = vor.u32 %v3677_v20, %v3407_v17 }
  0x21   :  { %322 = vmatpush.bf16.msra.mxu2 %v3452_v58  ;;  %578 = vmatpush.bf16.msra.mxu3 %v3565_v62  ;;  %v3528_v26 = vld [vmem:[#allocation3 + $0xc0] sm:$0xf]  ;;  %v3705_v27 = vld [vmem:[#allocation3 + $0xc8] sm:$0xf0]  ;;  %v3614_v29 = vld [vmem:[#allocation3 + $0x174] sm:$0xf0]  ;;  %v3412_v31 = vor.u32 %v3676_v21, %v3409_v22  ;;  %v3416_v32 = vor.u32 %v3678_v25, %v3415_v24 }
  0x22   :  { %v3725_v28 = vld [vmem:[#allocation3 + $0x16c] sm:$0xf]  ;;  %v3529_v33 = vor.u32 %v3705_v27, %v3528_v26  ;;  %v3620_v35 = vld [vmem:[#allocation3 + $0x170] sm:$0xf]  ;;  %v3727_v36 = vld [vmem:[#allocation3 + $0x178] sm:$0xf0] }
  0x23   :  { %265 = vmatpush.bf16.msra.mxu0 %v3432_v4  ;;  %v3617_v34 = vor.u32 %v3725_v28, %v3614_v29  ;;  %v3672_v37 = vld [vmem:[%s6134_s0] sm:$0xff]  ;;  %v3722_v38 = vld [vmem:[#allocation3 + $0x154] sm:$0xf]  ;;  %v3621_v42 = vor.u32 %v3727_v36, %v3620_v35  ;;  %v3608_v44 = vld [vmem:[#allocation3 + $0x158] sm:$0xf] }
  0x24   :  { %294 = vmatpush.bf16.msra.mxu1 %v3436_v5  ;;  %v3602_v39 = vld [vmem:[#allocation3 + $0x15c] sm:$0xf0]  ;;  %v4006_v40 = vld [vmem:[#allocation5 + $0x170] sm:$0xff]  ;;  %v3724_v45 = vld [vmem:[#allocation3 + $0x160] sm:$0xf0] }
  0x25   :  { %323 = vmatpush.bf16.msra.mxu2 %v3440_v6  ;;  %579 = vmatpush.bf16.msra.mxu3 %v3553_v10  ;;  %v4011_v41 = vld [vmem:[%s6134_s0 + $0x20] sm:$0xff]  ;;  %v3605_v43 = vor.u32 %v3722_v38, %v3602_v39  ;;  %v4014_v46 = vld [vmem:[#allocation5 + $0x158] sm:$0xff]  ;;  %v3590_v48 = vld [vmem:[#allocation3 + $0x144] sm:$0xf0]  ;;  %v3609_v51 = vor.u32 %v3724_v45, %v3608_v44 }
  0x26   :  { %v3719_v47 = vld [vmem:[#allocation3 + $0x13c] sm:$0xf]  ;;  %v4016_v49 = vld [vmem:[#allocation5 + $0x168] sm:$0xff]  ;;  %v4019_v50 = vld [vmem:[#allocation5 + $0x140] sm:$0xff] }
  0x27   :  { %266 = vmatpush.bf16.msra.mxu0 %v3420_v16  ;;  %v3593_v52 = vor.u32 %v3719_v47, %v3590_v48  ;;  %v4022_v53 = vld [vmem:[#allocation5 + $0x150] sm:$0xff]  ;;  %v3596_v54 = vld [vmem:[#allocation3 + $0x140] sm:$0xf]  ;;  %v3721_v55 = vld [vmem:[#allocation3 + $0x148] sm:$0xf0] }
  0x28   :  { %295 = vmatpush.bf16.msra.mxu1 %v3424_v18  ;;  %v4024_v56 = vld [vmem:[#allocation5 + $0x128] sm:$0xff]  ;;  %v3716_v57 = vld [vmem:[#allocation3 + $0x124] sm:$0xf]  ;;  %v3578_v58 = vld [vmem:[#allocation3 + $0x12c] sm:$0xf0]  ;;  %v3597_v61 = vor.u32 %v3721_v55, %v3596_v54 }
  0x29   :  { %324 = vmatpush.bf16.msra.mxu2 %v3428_v19  ;;  %580 = vmatpush.bf16.msra.mxu3 %v3541_v23  ;;  %v4028_v59 = vld [vmem:[#allocation5 + $0x138] sm:$0xff]  ;;  %v4030_v60 = vld [vmem:[#allocation5 + $0x110] sm:$0xff]  ;;  %v3581_v62 = vor.u32 %v3716_v57, %v3578_v58  ;;  %v4034_v63 = vld [vmem:[#allocation5 + $0x120] sm:$0xff] }
  0x2a   :  { %v3584_v0 = vld [vmem:[#allocation3 + $0x128] sm:$0xf]  ;;  %v3718_v1 = vld [vmem:[#allocation3 + $0x130] sm:$0xf0]  ;;  %v4036_v2 = vld [vmem:[#allocation5 + $0xf8] sm:$0xff] }
  0x2b   :  { %267 = vmatpush.bf16.msra.mxu0 %v3408_v30  ;;  %v3713_v3 = vld [vmem:[#allocation3 + $0x10c] sm:$0xf]  ;;  %v3566_v4 = vld [vmem:[#allocation3 + $0x114] sm:$0xf0]  ;;  %v4042_v6 = vld [vmem:[#allocation5 + $0xe0] sm:$0xff]  ;;  %v3585_v7 = vor.u32 %v3718_v1, %v3584_v0 }
  0x2c   :  { %296 = vmatpush.bf16.msra.mxu1 %v3412_v31  ;;  %v4040_v5 = vld [vmem:[#allocation5 + $0x108] sm:$0xff]  ;;  %v3569_v9 = vor.u32 %v3713_v3, %v3566_v4  ;;  %v4049_v10 = vld [vmem:[#allocation5 + $0xf0] sm:$0xff]  ;;  %v3554_v13 = vld [vmem:[#allocation3 + $0xfc] sm:$0xf0] }
  0x2d   :  { %325 = vmatpush.bf16.msra.mxu2 %v3416_v32  ;;  %581 = vmatpush.bf16.msra.mxu3 %v3529_v33  ;;  %v3673_v8 = vld [vmem:[%s6134_s0 + $0x8] sm:$0xff]  ;;  %v3710_v12 = vld [vmem:[#allocation3 + $0xf4] sm:$0xf]  ;;  %v4055_v14 = vld [vmem:[#allocation5 + $0xd8] sm:$0xff] }
  0x2e   :  { %268 = vmatmul.bf16.vlgmr.msra.gmra.mxu0 %v3672_v37  ;;  %v4051_v11 = vld [vmem:[#allocation5 + $0xc8] sm:$0xff]  ;;  %v3557_v16 = vor.u32 %v3710_v12, %v3554_v13  ;;  %v4064_v17 = vld [vmem:[#allocation5 + $0xc0] sm:$0xff]  ;;  %v4066_v18 = vld [vmem:[#allocation5 + $0xb0] sm:$0xff] }
  0x2f   :  { %603 = vmatpush.bf16.msrb.mxu0 %v3617_v34  ;;  %297 = vmatmul.bf16.vlgmr.msra.gmra.mxu1 %v3672_v37  ;;  %v4060_v15 = vld [vmem:[%s6134_s0 + $0x28] sm:$0xff]  ;;  %v3572_v19 = vld [vmem:[#allocation3 + $0x110] sm:$0xf]  ;;  %v3715_v20 = vld [vmem:[#allocation3 + $0x118] sm:$0xf0] }
  0x30   :  { %326 = vmatmul.bf16.vlgmr.msra.gmra.mxu2 %v3672_v37  ;;  %582 = vmatmul.bf16.vlgmr.msra.gmra.mxu3 %v4011_v41  ;;  %v4069_v21 = vld [vmem:[#allocation5 + $0xa8] sm:$0xff]  ;;  %v3573_v22 = vor.u32 %v3715_v20, %v3572_v19  ;;  %v4072_v23 = vld [vmem:[#allocation5 + $0x98] sm:$0xff]  ;;  %v4076_v27 = vld [vmem:[#allocation5 + $0x90] sm:$0xff] }
  0x31   :  { %778 = vmatpush.msrb.mxu3 %v4006_v40  ;;  %632 = vmatpush.bf16.msrb.mxu1 %v3621_v42  ;;  %v3707_v24 = vld [vmem:[#allocation3 + $0xdc] sm:$0xf]  ;;  %v3542_v25 = vld [vmem:[#allocation3 + $0xe4] sm:$0xf0]  ;;  %v4078_v28 = vld [vmem:[#allocation5 + $0x80] sm:$0xff] }
  0x32   :  { %758 = vmatpush.msrb.mxu2 %v4016_v49  ;;  %v3545_v26 = vor.u32 %v3707_v24, %v3542_v25  ;;  %v3560_v29 = vld [vmem:[#allocation3 + $0xf8] sm:$0xf]  ;;  %v3712_v30 = vld [vmem:[#allocation3 + $0x100] sm:$0xf0]  ;;  %v4084_v34 = vld [vmem:[#allocation5 + $0x68] sm:$0xff] }
  0x33   :  { %604 = vmatpush.bf16.msrb.mxu0 %v3605_v43  ;;  %779 = vmatpush.msrb.mxu3 %v4014_v46  ;;  %v4082_v31 = vld [vmem:[#allocation5 + $0x78] sm:$0xff]  ;;  %v3561_v32 = vor.u32 %v3712_v30, %v3560_v29  ;;  %v3704_v33 = vld [vmem:[#allocation3 + $0xc4] sm:$0xf]  ;;  %v3530_v35 = vld [vmem:[#allocation3 + $0xcc] sm:$0xf0] }
  0x34   :  { %759 = vmatpush.msrb.mxu2 %v4022_v53  ;;  %v3548_v36 = vld [vmem:[#allocation3 + $0xe0] sm:$0xf]  ;;  %v3533_v38 = vor.u32 %v3704_v33, %v3530_v35  ;;  %v3709_v39 = vld [vmem:[#allocation3 + $0xe8] sm:$0xf0]  ;;  %v4090_v42 = vld [vmem:[#allocation5 + $0x50] sm:$0xff] }
  0x35   :  { %780 = vmatpush.msrb.mxu3 %v4019_v50  ;;  %633 = vmatpush.bf16.msrb.mxu1 %v3609_v51  ;;  %v4088_v37 = vld [vmem:[#allocation5 + $0x60] sm:$0xff]  ;;  %v3549_v43 = vor.u32 %v3709_v39, %v3548_v36  ;;  %v4094_v44 = vld [vmem:[#allocation5 + $0x48] sm:$0xff]  ;;  %v4096_v45 = vld [vmem:[#allocation5 + $0x38] sm:$0xff] }
  0x36   :  { %760 = vmatpush.msrb.mxu2 %v4028_v59  ;;  %v3674_v47 = vld [vmem:[%s6134_s0 + $0x10] sm:$0xff]  ;;  %v4105_v51 = vld [vmem:[#allocation5 + $0x20] sm:$0xff]  ;;  %v4109_v55 = vld [vmem:[#allocation5 + $0x18] sm:$0xff] }
  0x37   :  { %605 = vmatpush.bf16.msrb.mxu0 %v3593_v52  ;;  %781 = vmatpush.msrb.mxu3 %v4024_v56  ;;  %v4103_v48 = vld [vmem:[#allocation5 + $0x30] sm:$0xff]  ;;  %v3536_v52 = vld [vmem:[#allocation3 + $0xc8] sm:$0xf]  ;;  %v4118_v58 = vld [vmem:[#allocation5] sm:$0xff] }
  0x38   :  { %761 = vmatpush.msrb.mxu2 %v4034_v63  ;;  %v3706_v54 = vld [vmem:[#allocation3 + $0xd0] sm:$0xf0]  ;;  %v4123_v0 = vld [vmem:[#allocation5 + $0x2e8] sm:$0xff]  ;;  %v4125_v1 = vld [vmem:[#allocation5 + $0x178] sm:$0xff] }
  0x39   :  { %782 = vmatpush.msrb.mxu3 %v4030_v60  ;;  %634 = vmatpush.bf16.msrb.mxu1 %v3597_v61  ;;  %v4114_v57 = vld [vmem:[%s6134_s0 + $0x30] sm:$0xff]  ;;  %v3537_v61 = vor.u32 %v3706_v54, %v3536_v52  ;;  %v4143_v12 = vld [vmem:[#allocation5 + $0x148] sm:$0xff]  ;;  %v4147_v13 = vld [vmem:[#allocation5 + $0x2a0] sm:$0xff] }
  0x3a   :  { %762 = vmatpush.msrb.mxu2 %v4040_v5  ;;  %v4129_v3 = vld [vmem:[#allocation5 + $0x2f0] sm:$0xff]  ;;  %v4154_v19 = vld [vmem:[#allocation5 + $0x288] sm:$0xff]  ;;  %v4156_v20 = vld [vmem:[#allocation5 + $0x118] sm:$0xff] }
  0x3b   :  { %783 = vmatpush.msrb.mxu3 %v4036_v2  ;;  %606 = vmatpush.bf16.msrb.mxu0 %v3581_v62  ;;  %v4120_v62 = vld [vmem:[#allocation5 + $0x8] sm:$0xff]  ;;  %v4132_v4 = vld [vmem:[#allocation5 + $0x2d0] sm:$0xff]  ;;  %6234 = vst [vmem:[#allocation9_spill] sm:$0xff] %v4154_v19  ;;  %v4164_v25 = vld [vmem:[#allocation5 + $0x100] sm:$0xff] }
  0x3c   :  { %763 = vmatpush.msrb.mxu2 %v4049_v10  ;;  %v4162_v24 = vld [vmem:[#allocation5 + $0x270] sm:$0xff]  ;;  %v3675_v29 = vld [vmem:[%s6134_s0 + $0x18] sm:$0xff]  ;;  %v4184_v33 = vld [vmem:[#allocation5 + $0xe8] sm:$0xff] }
  0x3d   :  { %784 = vmatpush.msrb.mxu3 %v4042_v6  ;;  %635 = vmatpush.bf16.msrb.mxu1 %v3585_v7  ;;  %v4134_v7 = vld [vmem:[#allocation5 + $0x160] sm:$0xff]  ;;  %6235 = vst [vmem:[#allocation10_spill] sm:$0xff] %v4162_v24  ;;  %v4174_v30 = vld [vmem:[#allocation5 + $0x258] sm:$0xff]  ;;  %v4189_v36 = vld [vmem:[#allocation5 + $0xd0] sm:$0xff] }
  0x3e   :  { %273 = vmatmul.bf16.gmra.mxu0 %v3673_v8  ;;  %764 = vmatpush.msrb.mxu2 %v4055_v14  ;;  %6237 = vst [vmem:[#allocation12_spill] sm:$0xff] %v4174_v30  ;;  %v4187_v35 = vld [vmem:[#allocation5 + $0x240] sm:$0xff]  ;;  %v4194_v39 = vld [vmem:[#allocation5 + $0x228] sm:$0xff]  ;;  %v4202_v52 = vld [vmem:[#allocation5 + $0xb8] sm:$0xff] }
  0x3f   :  { %785 = vmatpush.msrb.mxu3 %v4051_v11  ;;  %607 = vmatpush.bf16.msrb.mxu0 %v3569_v9  ;;  %v4140_v9 = vld [vmem:[#allocation5 + $0x2b8] sm:$0xff]  ;;  %6239 = vst [vmem:[#allocation14_spill] sm:$0xff] %v4187_v35  ;;  %v4205_v54 = vld [vmem:[#allocation5 + $0x2e0] sm:$0xff] }
  0x40   :  { %302 = vmatmul.bf16.gmra.mxu1 %v3673_v8  ;;  %331 = vmatmul.bf16.gmra.mxu2 %v3673_v8  ;;  %v4138_v8 = vld [vmem:[#allocation5 + $0x2d8] sm:$0xff]  ;;  %6241 = vst [vmem:[#allocation16_spill] sm:$0xff] %v4194_v39 }
  0x41   :  { %587 = vmatmul.bf16.gmra.mxu3 %v4060_v15  ;;  %765 = vmatpush.msrb.mxu2 %v4064_v17 }
  0x42   :  { %786 = vmatpush.msrb.mxu3 %v4066_v18  ;;  %636 = vmatpush.bf16.msrb.mxu1 %v3573_v22  ;;  %v4160_v22 = vld [vmem:[#allocation5 + $0x2c0] sm:$0xff] }
  0x43   :  { %608 = vmatpush.bf16.msrb.mxu0 %v3557_v16  ;;  %766 = vmatpush.msrb.mxu2 %v4069_v21  ;;  %v4149_v16 = vld [vmem:[#allocation5 + $0x130] sm:$0xff] }
  0x44   :  { %787 = vmatpush.msrb.mxu3 %v4072_v23 }
  0x45   :  { %767 = vmatpush.msrb.mxu2 %v4076_v27 }
  0x46   :  { %788 = vmatpush.msrb.mxu3 %v4078_v28  ;;  %637 = vmatpush.bf16.msrb.mxu1 %v3561_v32  ;;  %v4180_v32 = vld [vmem:[%s6134_s0 + $0x38] sm:$0xff] }
  0x47   :  { %609 = vmatpush.bf16.msrb.mxu0 %v3545_v26  ;;  %768 = vmatpush.msrb.mxu2 %v4082_v31  ;;  %v4167_v26 = vld [vmem:[#allocation5 + $0x2a8] sm:$0xff]  ;;  %6238 = vst [vmem:[#allocation13_spill] sm:$0xff] %v4180_v32 }
  0x48   :  { %789 = vmatpush.msrb.mxu3 %v4084_v34  ;;  %6236 = vst [vmem:[#allocation11_spill] sm:$0xff] %v4167_v26 }
  0x49   :  { %769 = vmatpush.msrb.mxu2 %v4088_v37 }
  0x4a   :  { %790 = vmatpush.msrb.mxu3 %v4090_v42  ;;  %638 = vmatpush.bf16.msrb.mxu1 %v3549_v43  ;;  %v4197_v43 = vld [vmem:[#allocation5 + $0x2f8] sm:$0xff] }
  0x4b   :  { %610 = vmatpush.bf16.msrb.mxu0 %v3533_v38  ;;  %770 = vmatpush.msrb.mxu2 %v4094_v44  ;;  %v4191_v38 = vld [vmem:[#allocation5 + $0x290] sm:$0xff] }
  0x4c   :  { %791 = vmatpush.msrb.mxu3 %v4096_v45  ;;  %6240 = vst [vmem:[#allocation15_spill] sm:$0xff] %v4191_v38 }
  0x4d   :  { %771 = vmatpush.msrb.mxu2 %v4103_v48 }
  0x4e   :  { %792 = vmatpush.msrb.mxu3 %v4105_v51  ;;  %278 = vmatmul.bf16.gmra.mxu0 %v3674_v47 }
  0x4f   :  { %772 = vmatpush.msrb.mxu2 %v4109_v55  ;;  %639 = vmatpush.bf16.msrb.mxu1 %v3537_v61  ;;  %v4207_v61 = vld [vmem:[#allocation5 + $0x210] sm:$0xff] }
  0x50   :  { %307 = vmatmul.bf16.gmra.mxu1 %v3674_v47  ;;  %336 = vmatmul.bf16.gmra.mxu2 %v3674_v47  ;;  %v4199_v47 = vld [vmem:[#allocation5 + $0x278] sm:$0xff]  ;;  %6243 = vst [vmem:[#allocation18_spill] sm:$0xff] %v4207_v61 }
  0x51   :  { %592 = vmatmul.bf16.gmra.mxu3 %v4114_v57  ;;  %773 = vmatpush.msrb.mxu2 %v4118_v58  ;;  %6242 = vst [vmem:[#allocation17_spill] sm:$0xff] %v4199_v47 }
  0x52   :  { %793 = vmatpush.msrb.mxu3 %v4120_v62  ;;  %887 = vmatpush.msra.mxu0 %v4129_v3 }
  0x53   :  { %798 = vmatpush.msra.mxu2 %v4125_v1  ;;  %907 = vmatpush.msra.mxu1 %v4197_v43 }
  0x54   :  { %867 = vmatpush.msra.mxu3 %v4123_v0  ;;  %888 = vmatpush.msra.mxu0 %v4138_v8 }
  0x55   :  { %799 = vmatpush.msra.mxu2 %v4134_v7  ;;  %908 = vmatpush.msra.mxu1 %v4205_v54 }
  0x56   :  { %868 = vmatpush.msra.mxu3 %v4132_v4  ;;  %889 = vmatpush.msra.mxu0 %v4160_v22 }
  0x57   :  { %800 = vmatpush.msra.mxu2 %v4143_v12 }
  0x58   :  { %869 = vmatpush.msra.mxu3 %v4140_v9  ;;  %890 = vmatpush.msra.mxu0 %v4167_v26  ;;  %v4226_v26 = vld [vmem:[#allocation5 + $0x88] sm:$0xff] }
  0x59   :  { %801 = vmatpush.msra.mxu2 %v4149_v16 }
  0x5a   :  { %870 = vmatpush.msra.mxu3 %v4147_v13  ;;  %891 = vmatpush.msra.mxu0 %v4191_v38  ;;  %v4223_v38 = vld [vmem:[#allocation5 + $0x248] sm:$0xff] }
  0x5b   :  { %802 = vmatpush.msra.mxu2 %v4156_v20  ;;  %6247 = vst [vmem:[#allocation22_spill] sm:$0xff] %v4223_v38 }
  0x5c   :  { %871 = vmatpush.msra.mxu3 %v4154_v19  ;;  %892 = vmatpush.msra.mxu0 %v4199_v47  ;;  %v4236_v47 = vld [vmem:[#allocation5 + $0x70] sm:$0xff]  ;;  %v4239_v19 = vld [vmem:[#allocation5 + $0x1c8] sm:$0xff] }
  0x5d   :  { %803 = vmatpush.msra.mxu2 %v4164_v25  ;;  %6250 = vst [vmem:[#allocation25_spill] sm:$0xff] %v4236_v47 }
  0x5e   :  { %872 = vmatpush.msra.mxu3 %v4162_v24  ;;  %283 = vmatmul.bf16.gmra.mxu0 %v3675_v29  ;;  %v4219_v24 = vld [vmem:[#allocation5 + $0x1f8] sm:$0xff]  ;;  %6251 = vst [vmem:[#allocation26_spill] sm:$0xff] %v4239_v19 }
  0x5f   :  { %804 = vmatpush.msra.mxu2 %v4184_v33  ;;  %6246 = vst [vmem:[#allocation21_spill] sm:$0xff] %v4219_v24 }
  0x60   :  { %873 = vmatpush.msra.mxu3 %v4174_v30  ;;  %312 = vmatmul.bf16.gmra.mxu1 %v3675_v29  ;;  %v4214_v30 = vld [vmem:[#allocation5 + $0xa0] sm:$0xff] }
  0x61   :  { %341 = vmatmul.bf16.gmra.mxu2 %v3675_v29  ;;  %597 = vmatmul.bf16.gmra.mxu3 %v4180_v32  ;;  %v4211_v29 = vld [vmem:[#allocation5 + $0x260] sm:$0xff] }
  0x62   :  { %874 = vmatpush.msra.mxu3 %v4187_v35  ;;  %805 = vmatpush.msra.mxu2 %v4189_v36  ;;  %6244 = vst [vmem:[#allocation19_spill] sm:$0xff] %v4211_v29  ;;  %v4217_v35 = vld [vmem:[#allocation5 + $0x2c8] sm:$0xff]  ;;  %v4231_v32 = vld [vmem:[#allocation5 + $0x1e0] sm:$0xff] }
  0x63   :  { %6245 = vst [vmem:[#allocation20_spill] sm:$0xff] %v4217_v35  ;;  %893 = vmatpush.msra.mxu0 %v4211_v29  ;;  %909 = vmatpush.msra.mxu1 %v4217_v35  ;;  %v4246_v29 = vld [vmem:[#allocation5 + $0x1b0] sm:$0xff] }
  0x64   :  { %875 = vmatpush.msra.mxu3 %v4194_v39  ;;  %806 = vmatpush.msra.mxu2 %v4202_v52  ;;  %v4229_v39 = vld [vmem:[#allocation5 + $0x2b0] sm:$0xff]  ;;  %6249 = vst [vmem:[#allocation24_spill] sm:$0xff] %v4231_v32 }
  0x65   :  { %6248 = vst [vmem:[#allocation23_spill] sm:$0xff] %v4229_v39  ;;  %894 = vmatpush.msra.mxu0 %v4223_v38  ;;  %910 = vmatpush.msra.mxu1 %v4229_v39  ;;  %v4254_v38 = vld [vmem:[#allocation5 + $0x28] sm:$0xff]  ;;  %v4257_v39 = vld [vmem:[#allocation5 + $0x198] sm:$0xff]  ;;  %v4264_v35 = vld [vmem:[#allocation5 + $0x230] sm:$0xff] }
  0x66   :  { %876 = vmatpush.msra.mxu3 %v4207_v61  ;;  %807 = vmatpush.msra.mxu2 %v4214_v30  ;;  %v4244_v61 = vld [vmem:[#allocation5 + $0x58] sm:$0xff]  ;;  %6253 = vst [vmem:[#allocation28_spill] sm:$0xff] %v4246_v29 }
  0x67   :  { %6252 = vst [vmem:[#allocation27_spill] sm:$0xff] %v4244_v61  ;;  %895 = vmatpush.msra.mxu0 %v4264_v35 }
  0x68   :  { %877 = vmatpush.msra.mxu3 %v4219_v24  ;;  %808 = vmatpush.msra.mxu2 %v4226_v26  ;;  %v4250_v24 = vld [vmem:[#allocation5 + $0x40] sm:$0xff]  ;;  %6255 = vst [vmem:[#allocation30_spill] sm:$0xff] %v4254_v38 }
  0x69   :  { %6254 = vst [vmem:[#allocation29_spill] sm:$0xff] %v4250_v24 }
  0x6a   :  { %878 = vmatpush.msra.mxu3 %v4231_v32  ;;  %809 = vmatpush.msra.mxu2 %v4236_v47  ;;  %6256 = vst [vmem:[#allocation31_spill] sm:$0xff] %v4257_v39  ;;  %v6163_v32 = vmov 0.0   ;;  %v4272_v47 = vld [vmem:[#allocation5 + $0x218] sm:$0xff] }
  0x6b   :  { %896 = vmatpush.msra.mxu0 %v4272_v47 }
  0x6c   :  { %879 = vmatpush.msra.mxu3 %v4239_v19  ;;  %810 = vmatpush.msra.mxu2 %v4244_v61  ;;  %v4262_v19 = vld [vmem:[#allocation5 + $0x10] sm:$0xff]  ;;  %v4266_v61 = vld [vmem:[#allocation5 + $0x298] sm:$0xff] }
  0x6d   :  { %911 = vmatpush.msra.mxu1 %v4266_v61 }
  0x6e   :  { %880 = vmatpush.msra.mxu3 %v4246_v29  ;;  %611 = vmatmul.bf16.vlgmr.msrb.gmra.mxu0 %v4011_v41  ;;  %v4269_v29 = vld [vmem:[#allocation5 + $0x180] sm:$0xff] }
  0x6f   :  { %811 = vmatpush.msra.mxu2 %v4250_v24  ;;  %6257 = vst [vmem:[#allocation32_spill] sm:$0xff] %v4269_v29  ;;  %v4280_v24 = vld [vmem:[#allocation5 + $0x200] sm:$0xff] }
  0x70   :  { %640 = vmatmul.bf16.vlgmr.msrb.gmra.mxu1 %v4011_v41  ;;  %881 = vmatpush.msra.mxu3 %v4257_v39  ;;  %v4276_v41 = vld [vmem:[#allocation5 + $0x280] sm:$0xff]  ;;  %v4291_v39 = vld [vmem:[#allocation5 + $0x250] sm:$0xff] }
  0x71   :  { %774 = vmatmul.f32.vlgmr.msrb.gmra.mxu2 %v6163_v32  ;;  %794 = vmatmul.f32.vlgmr.msrb.gmra.mxu3 %v6163_v32  ;;  %v4284_v32 = vld [vmem:[#allocation5 + $0x268] sm:$0xff] }
  0x72   :  { %812 = vmatpush.msra.mxu2 %v4254_v38  ;;  %882 = vmatpush.msra.mxu3 %v4269_v29  ;;  %v4287_v38 = vld [vmem:[#allocation5 + $0x1e8] sm:$0xff]  ;;  %v6258_v29 = vmov 0.0  }
  0x73   :  { %912 = vmatpush.msra.mxu1 %v4276_v41  ;;  %897 = vmatpush.msra.mxu0 %v4280_v24 }
  0x74   :  { %813 = vmatpush.msra.mxu2 %v4262_v19  ;;  %1110 = vmatpush.msrb.mxu3 %v4006_v40  ;;  %v4308_v40 = vld [vmem:[#allocation5 + $0x1d0] sm:$0xff] }
  0x75   :  { %913 = vmatpush.msra.mxu1 %v4284_v32  ;;  %898 = vmatpush.msra.mxu0 %v4287_v38 }
  0x76   :  { %1090 = vmatpush.msrb.mxu2 %v4016_v49  ;;  %1111 = vmatpush.msrb.mxu3 %v4014_v46  ;;  %v4310_v49 = vld [vmem:[#allocation5 + $0x238] sm:$0xff] }
  0x77   :  { %914 = vmatpush.msra.mxu1 %v4291_v39  ;;  %899 = vmatpush.msra.mxu0 %v4308_v40  ;;  %v4317_v46 = vld [vmem:[#allocation5 + $0x1b8] sm:$0xff] }
  0x78   :  { %1091 = vmatpush.msrb.mxu2 %v4022_v53  ;;  %1112 = vmatpush.msrb.mxu3 %v4019_v50  ;;  %v4312_v53 = vld [vmem:[#allocation5 + $0x220] sm:$0xff]  ;;  %v4319_v50 = vld [vmem:[#allocation5 + $0x208] sm:$0xff] }
  0x79   :  { %814 = vmatmul.f32.vlgmr.msra.gmra.mxu2 %v6258_v29  ;;  %883 = vmatmul.f32.vlgmr.msra.gmra.mxu3 %v6258_v29 }
  0x7a   :  { %1092 = vmatpush.msrb.mxu2 %v4028_v59  ;;  %1113 = vmatpush.msrb.mxu3 %v4024_v56  ;;  %v4321_v56 = vld [vmem:[#allocation5 + $0x1a0] sm:$0xff]  ;;  %v4327_v59 = vld [vmem:[#allocation5 + $0x1f0] sm:$0xff] }
  0x7b   :  { %915 = vmatpush.msra.mxu1 %v4310_v49  ;;  %900 = vmatpush.msra.mxu0 %v4317_v46 }
  0x7c   :  { %1093 = vmatpush.msrb.mxu2 %v4034_v63  ;;  %1114 = vmatpush.msrb.mxu3 %v4030_v60  ;;  %v4329_v60 = vld [vmem:[#allocation5 + $0x188] sm:$0xff]  ;;  %v4335_v63 = vld [vmem:[#allocation5 + $0x1d8] sm:$0xff] }
  0x7d   :  { %916 = vmatpush.msra.mxu1 %v4312_v53  ;;  %901 = vmatpush.msra.mxu0 %v4321_v56 }
  0x7e   :  { %1094 = vmatpush.msrb.mxu2 %v4040_v5  ;;  %616 = vmatmul.bf16.gmra.mxu0 %v4060_v15  ;;  %v4353_v5 = vld [vmem:[#allocation5 + $0x1a8] sm:$0xff] }
  0x7f   :  { %1115 = vmatpush.msrb.mxu3 %v4036_v2  ;;  %917 = vmatpush.msra.mxu1 %v4319_v50  ;;  %v4341_v2 = vld [vmem:[#allocation5 + $0x1c0] sm:$0xff] }
  0x80   :  { %645 = vmatmul.bf16.gmra.mxu1 %v4060_v15  ;;  %1095 = vmatpush.msrb.mxu2 %v4049_v10  ;;  %v6259_v10 = vld [vmem:[#allocation9_spill] sm:$0xff] }
  0x81   :  { %1116 = vmatpush.msrb.mxu3 %v4042_v6  ;;  %918 = vmatpush.msra.mxu1 %v4327_v59  ;;  %v4357_v6 = vld [vmem:[#allocation5 + $0x190] sm:$0xff]  ;;  %v6262_v15 = vld [vmem:[#allocation13_spill] sm:$0xff] }
  0x82   :  { %1096 = vmatpush.msrb.mxu2 %v4055_v14  ;;  %902 = vmatpush.msra.mxu0 %v4329_v60  ;;  %v6261_v14 = vld [vmem:[#allocation20_spill] sm:$0xff] }
  0x83   :  { %1117 = vmatpush.msrb.mxu3 %v4051_v11  ;;  %919 = vmatpush.msra.mxu1 %v4335_v63  ;;  %v6260_v11 = vld [vmem:[#allocation25_spill] sm:$0xff] }
  0x84   :  { %1097 = vmatpush.msrb.mxu2 %v4064_v17  ;;  %1130 = vmatpush.msrb.mxu0 %v4125_v1  ;;  %v6263_v17 = vld [vmem:[#allocation11_spill] sm:$0xff] }
  0x85   :  { %1118 = vmatpush.msrb.mxu3 %v4066_v18  ;;  %920 = vmatpush.msra.mxu1 %v4341_v2  ;;  %v6264_v18 = vld [vmem:[#allocation27_spill] sm:$0xff] }
  0x86   :  { %1098 = vmatpush.msrb.mxu2 %v4069_v21  ;;  %1131 = vmatpush.msrb.mxu0 %v4134_v7  ;;  %v6265_v21 = vld [vmem:[#allocation23_spill] sm:$0xff] }
  0x87   :  { %1119 = vmatpush.msrb.mxu3 %v4072_v23  ;;  %921 = vmatpush.msra.mxu1 %v4353_v5  ;;  %v6266_v23 = vld [vmem:[#allocation15_spill] sm:$0xff] }
  0x88   :  { %1099 = vmatpush.msrb.mxu2 %v4076_v27  ;;  %1132 = vmatpush.msrb.mxu0 %v4143_v12  ;;  %v6267_v27 = vld [vmem:[#allocation29_spill] sm:$0xff] }
  0x89   :  { %1120 = vmatpush.msrb.mxu3 %v4078_v28  ;;  %922 = vmatpush.msra.mxu1 %v4357_v6  ;;  %v6268_v28 = vld [vmem:[#allocation10_spill] sm:$0xff]  ;;  %v4447_v12 = vld [vmem:[%s6137_s3 + $0x3] sm:$0x7] }
  0x8a   :  { %1100 = vmatpush.msrb.mxu2 %v4082_v31  ;;  %1133 = vmatpush.msrb.mxu0 %v4149_v16  ;;  %v6269_v31 = vld [vmem:[#allocation17_spill] sm:$0xff]  ;;  %v6282_v16 = vld [vmem:[#allocation32_spill] sm:$0xff] }
  0x8b   :  { %1121 = vmatpush.msrb.mxu3 %v4084_v34  ;;  %1198 = vmatpush.msrb.mxu1 %v4123_v0  ;;  %v6270_v34 = vld [vmem:[#allocation30_spill] sm:$0xff] }
  0x8c   :  { %1101 = vmatpush.msrb.mxu2 %v4088_v37  ;;  %1134 = vmatpush.msrb.mxu0 %v4156_v20  ;;  %v6271_v37 = vld [vmem:[#allocation12_spill] sm:$0xff]  ;;  %v6279_v0 = vld [vmem:[#allocation26_spill] sm:$0xff]  ;;  %v4459_v20 = vperm.slane %v4447_v12, 0 }
  0x8d   :  { %1122 = vmatpush.msrb.mxu3 %v4090_v42  ;;  %1199 = vmatpush.msrb.mxu1 %v4132_v4  ;;  %v6272_v42 = vld [vmem:[#allocation19_spill] sm:$0xff] }
  0x8e   :  { %621 = vmatmul.bf16.gmra.mxu0 %v4114_v57  ;;  %1102 = vmatpush.msrb.mxu2 %v4094_v44  ;;  %v6273_v44 = vld [vmem:[#allocation14_spill] sm:$0xff] }
  0x8f   :  { %1135 = vmatpush.msrb.mxu0 %v4164_v25  ;;  %1123 = vmatpush.msrb.mxu3 %v4096_v45  ;;  %v6274_v45 = vld [vmem:[#allocation22_spill] sm:$0xff] }
  0x90   :  { %650 = vmatmul.bf16.gmra.mxu1 %v4114_v57  ;;  %1103 = vmatpush.msrb.mxu2 %v4103_v48  ;;  %v6275_v48 = vld [vmem:[#allocation16_spill] sm:$0xff]  ;;  %v6277_v57 = vld [vmem:[#allocation21_spill] sm:$0xff] }
  0x91   :  { %1136 = vmatpush.msrb.mxu0 %v4184_v33  ;;  %1124 = vmatpush.msrb.mxu3 %v4105_v51  ;;  %v6276_v51 = vld [vmem:[#allocation18_spill] sm:$0xff] }
  0x92   :  { %1104 = vmatpush.msrb.mxu2 %v4109_v55  ;;  %1200 = vmatpush.msrb.mxu1 %v4140_v9  ;;  %v6281_v9 = vld [vmem:[#allocation31_spill] sm:$0xff] }
  0x93   :  { %1137 = vmatpush.msrb.mxu0 %v4189_v36  ;;  %1125 = vmatpush.msrb.mxu3 %v4120_v62  ;;  %v6278_v62 = vld [vmem:[#allocation24_spill] sm:$0xff] }
  0x94   :  { %1105 = vmatpush.msrb.mxu2 %v4118_v58  ;;  %1201 = vmatpush.msrb.mxu1 %v4147_v13  ;;  %v100_v13 = vld [vmem:[%s6137_s3] sm:$0x7] }
  0x95   :  { %1138 = vmatpush.msrb.mxu0 %v4202_v52  ;;  %1238 = vmatpush.msra.mxu3 %v4197_v43  ;;  %v4472_v33 = vperm.slane %v100_v13, 0  ;;  %v4474_v36 = vperm.slane %v100_v13, 1 }
  0x96   :  { %1218 = vmatpush.msra.mxu2 %v4129_v3  ;;  %1202 = vmatpush.msrb.mxu1 %v6259_v10  ;;  %v6280_v3 = vld [vmem:[#allocation28_spill] sm:$0xff] }
  0x97   :  { %1139 = vmatpush.msrb.mxu0 %v4214_v30  ;;  %1239 = vmatpush.msra.mxu3 %v4205_v54  ;;  %6285 = vst [vmem:[#allocation20_spill] sm:$0xff] %v4472_v33 }
  0x98   :  { %1219 = vmatpush.msra.mxu2 %v4138_v8  ;;  %1203 = vmatpush.msrb.mxu1 %v6268_v28  ;;  %6286 = vst [vmem:[#allocation13_spill] sm:$0xff] %v4474_v36 }
  0x99   :  { %1140 = vmatpush.msrb.mxu0 %v4226_v26  ;;  %1240 = vmatpush.msra.mxu3 %v6261_v14 }
  0x9a   :  { %1220 = vmatpush.msra.mxu2 %v4160_v22  ;;  %1204 = vmatpush.msrb.mxu1 %v6271_v37 }
  0x9b   :  { %1141 = vmatpush.msrb.mxu0 %v6260_v11  ;;  %1241 = vmatpush.msra.mxu3 %v6265_v21 }
  0x9c   :  { %1221 = vmatpush.msra.mxu2 %v6263_v17  ;;  %1205 = vmatpush.msrb.mxu1 %v6273_v44 }
  0x9d   :  { %1142 = vmatpush.msrb.mxu0 %v6264_v18  ;;  %1242 = vmatpush.msra.mxu3 %v4266_v61 }
  0x9e   :  { %626 = vmatmul.bf16.gmra.mxu0 %v6262_v15  ;;  %1222 = vmatpush.msra.mxu2 %v6266_v23 }
  0x9f   :  { %1143 = vmatpush.msrb.mxu0 %v6267_v27  ;;  %1243 = vmatpush.msra.mxu3 %v4276_v41 }
  0xa0   :  { %655 = vmatmul.bf16.gmra.mxu1 %v6262_v15  ;;  %1223 = vmatpush.msra.mxu2 %v6269_v31 }
  0xa1   :  { %1144 = vmatpush.msrb.mxu0 %v6270_v34  ;;  %1244 = vmatpush.msra.mxu3 %v4284_v32 }
  0xa2   :  { %1224 = vmatpush.msra.mxu2 %v6272_v42  ;;  %1206 = vmatpush.msrb.mxu1 %v6275_v48 }
  0xa3   :  { %1145 = vmatpush.msrb.mxu0 %v4262_v19  ;;  %1245 = vmatpush.msra.mxu3 %v4291_v39  ;;  %v4455_v19 = vperm.slane %v100_v13, 2 }
  0xa4   :  { %1225 = vmatpush.msra.mxu2 %v6274_v45  ;;  %1207 = vmatpush.msrb.mxu1 %v6276_v51 }
  0xa5   :  { %1246 = vmatpush.msra.mxu3 %v4310_v49 }
  0xa6   :  { %1226 = vmatpush.msra.mxu2 %v4264_v35  ;;  %1208 = vmatpush.msrb.mxu1 %v6277_v57 }
  0xa7   :  { %1247 = vmatpush.msra.mxu3 %v4312_v53 }
  0xa8   :  { %1227 = vmatpush.msra.mxu2 %v4272_v47  ;;  %1209 = vmatpush.msrb.mxu1 %v6278_v62 }
  0xa9   :  { %1248 = vmatpush.msra.mxu3 %v4319_v50 }
  0xaa   :  { %1228 = vmatpush.msra.mxu2 %v4280_v24  ;;  %1210 = vmatpush.msrb.mxu1 %v6279_v0 }
  0xab   :  { %v4416_v55 = vpop.f32.mrf.mxu0  ;;  %1249 = vmatpush.msra.mxu3 %v4327_v59 }
  0xac   :  { %v4419_v58 = vpop.f32.mrf.mxu1  ;;  %1229 = vmatpush.msra.mxu2 %v4287_v38  ;;  %1211 = vmatpush.msrb.mxu1 %v6280_v3 }
  0xad   :  { %1250 = vmatpush.msra.mxu3 %v4335_v63 }
  0xae   :  { %903 = vmatmul.f32.vlgmr.msra.gmra.mxu0 %v6258_v29  ;;  %1230 = vmatpush.msra.mxu2 %v4308_v40 }
  0xaf   :  { %1251 = vmatpush.msra.mxu3 %v4341_v2  ;;  %1212 = vmatpush.msrb.mxu1 %v6281_v9 }
  0xb0   :  { %923 = vmatmul.f32.vlgmr.msra.gmra.mxu1 %v6258_v29  ;;  %1231 = vmatpush.msra.mxu2 %v4317_v46 }
  0xb1   :  { %1252 = vmatpush.msra.mxu3 %v4353_v5  ;;  %1213 = vmatpush.msrb.mxu1 %v6282_v16  ;;  %v270_v16 = vadd.f32 %v4416_v55, %v4472_v33 }
  0xb2   :  { %1232 = vmatpush.msra.mxu2 %v4321_v56 }
  0xb3   :  { %v4431_v1 = vpop.f32.mrf.mxu2  ;;  %v4435_v4 = vpop.f32.mrf.mxu3  ;;  %1253 = vmatpush.msra.mxu3 %v4357_v6 }
  0xb4   :  { %v4437_v7 = vpop.f32.mrf.mxu0  ;;  %v4440_v8 = vpop.f32.mrf.mxu1  ;;  %1233 = vmatpush.msra.mxu2 %v4329_v60 }
  0xbb   :  { %v329_v22 = vpop.f32.mrf.mxu2  ;;  %v585_v25 = vpop.f32.mrf.mxu3 }
  0xbc   :  { %v4463_v24 = vadd.f32 %v329_v22, %v4455_v19  ;;  %v4465_v26 = vpop.f32.mrf.mxu0  ;;  %v4468_v30 = vadd.f32 %v585_v25, %v4459_v20  ;;  %v4549_v22 = vperm.slane %v4447_v12, 2  ;;  %v299_v25 = vadd.f32 %v4419_v58, %v4474_v36 }
  0xbd   :  { %6283 = vst [vmem:[#allocation9_spill] sm:$0xff] %v4465_v26  ;;  %v4470_v32 = vpop.f32.mrf.mxu1  ;;  %v584_v58 = vadd.f32 %v4435_v4, %v4459_v20 }
  0xbe   :  { %6284 = vst [vmem:[#allocation25_spill] sm:$0xff] %v4470_v32 }
  0xc3   :  { %v332_v35 = vpop.f32.mrf.mxu2 }
  0xc4   :  { %v4477_v38 = vadd.f32 %v332_v35, %v4455_v19  ;;  %v588_v39 = vpop.f32.mrf.mxu3  ;;  %v276_v43 = vpop.f32.mrf.mxu0  ;;  %v4554_v35 = vperm.slane %v4447_v12, 1 }
  0xc5   :  { %v4480_v47 = vadd.f32 %v588_v39, %v4459_v20  ;;  %v4483_v52 = vadd.f32 %v276_v43, %v4472_v33  ;;  %v305_v54 = vpop.f32.mrf.mxu1 }
  0xc6   :  { %6287 = vst [vmem:[#allocation11_spill] sm:$0xff] %v4477_v38  ;;  %v4486_v61 = vadd.f32 %v305_v54, %v4474_v36 }
  0xc7   :  { %6288 = vst [vmem:[#allocation27_spill] sm:$0xff] %v4480_v47  ;;  %v4784_v47 = vld [vmem:[#allocation5 + $0x10] sm:$0xff] }
  0xc8   :  { %6289 = vst [vmem:[#allocation23_spill] sm:$0xff] %v4483_v52  ;;  %v4772_v52 = vld [vmem:[#allocation5 + $0x20] sm:$0xff] }
  0xc9   :  { %6290 = vst [vmem:[#allocation15_spill] sm:$0xff] %v4486_v61  ;;  %v4770_v61 = vld [vmem:[#allocation5 + $0x18] sm:$0xff] }
  0xca   :  { %6323 = vst [vmem:[#allocation49_spill] sm:$0xff] %v4772_v52 }
  0xcb   :  { %v334_v29 = vpop.f32.mrf.mxu2  ;;  %6326 = vst [vmem:[#allocation52_spill] sm:$0xff] %v4784_v47 }
  0xcc   :  { %v4489_v41 = vadd.f32 %v334_v29, %v4455_v19  ;;  %v590_v40 = vpop.f32.mrf.mxu3  ;;  %v279_v49 = vpop.f32.mrf.mxu0 }
  0xcd   :  { %v4492_v53 = vadd.f32 %v590_v40, %v4459_v20  ;;  %v4495_v46 = vadd.f32 %v279_v49, %v4472_v33  ;;  %v308_v50 = vpop.f32.mrf.mxu1 }
  0xce   :  { %6291 = vst [vmem:[#allocation29_spill] sm:$0xff] %v4489_v41  ;;  %v4498_v56 = vadd.f32 %v308_v50, %v4474_v36 }
  0xcf   :  { %6292 = vst [vmem:[#allocation10_spill] sm:$0xff] %v4492_v53 }
  0xd0   :  { %6293 = vst [vmem:[#allocation17_spill] sm:$0xff] %v4495_v46 }
  0xd1   :  { %6294 = vst [vmem:[#allocation30_spill] sm:$0xff] %v4498_v56  ;;  %v4758_v56 = vld [vmem:[#allocation5 + $0x38] sm:$0xff] }
  0xd2   :  { %6321 = vst [vmem:[#allocation47_spill] sm:$0xff] %v4758_v56 }
  0xd3   :  { %v337_v59 = vpop.f32.mrf.mxu2 }
  0xd4   :  { %v4501_v60 = vadd.f32 %v337_v59, %v4455_v19  ;;  %v593_v63 = vpop.f32.mrf.mxu3  ;;  %v281_v2 = vpop.f32.mrf.mxu0 }
  0xd5   :  { %v4504_v5 = vadd.f32 %v593_v63, %v4459_v20  ;;  %v4507_v6 = vadd.f32 %v281_v2, %v4472_v33  ;;  %v310_v10 = vpop.f32.mrf.mxu1 }
  0xd6   :  { %6295 = vst [vmem:[#allocation12_spill] sm:$0xff] %v4501_v60  ;;  %v4510_v11 = vadd.f32 %v310_v10, %v4474_v36  ;;  %v4756_v60 = vld [vmem:[#allocation5 + $0x30] sm:$0xff] }
  0xd7   :  { %6296 = vst [vmem:[#allocation19_spill] sm:$0xff] %v4504_v5  ;;  %v4744_v5 = vld [vmem:[#allocation5 + $0x70] sm:$0xff] }
  0xd8   :  { %6297 = vst [vmem:[#allocation14_spill] sm:$0xff] %v4507_v6 }
  0xd9   :  { %6298 = vst [vmem:[#allocation22_spill] sm:$0xff] %v4510_v11  ;;  %v4722_v11 = vld [vmem:[#allocation5 + $0x98] sm:$0xff] }
  0xdb   :  { %v339_v14 = vpop.f32.mrf.mxu2 }
  0xdc   :  { %v4513_v15 = vadd.f32 %v339_v14, %v4455_v19  ;;  %v595_v17 = vpop.f32.mrf.mxu3  ;;  %v284_v18 = vpop.f32.mrf.mxu0 }
  0xdd   :  { %v4516_v21 = vadd.f32 %v595_v17, %v4459_v20  ;;  %v4519_v23 = vadd.f32 %v284_v18, %v4472_v33  ;;  %v313_v27 = vpop.f32.mrf.mxu1 }
  0xde   :  { %6299 = vst [vmem:[#allocation16_spill] sm:$0xff] %v4513_v15  ;;  %v4522_v28 = vadd.f32 %v313_v27, %v4474_v36  ;;  %v4720_v15 = vld [vmem:[#allocation5 + $0x90] sm:$0xff] }
  0xdf   :  { %6300 = vst [vmem:[#allocation18_spill] sm:$0xff] %v4516_v21  ;;  %v4717_v21 = vld [vmem:[#allocation5 + $0xb8] sm:$0xff] }
  0xe0   :  { %6301 = vst [vmem:[#allocation21_spill] sm:$0xff] %v4519_v23 }
  0xe1   :  { %6302 = vst [vmem:[#allocation24_spill] sm:$0xff] %v4522_v28 }
  0xe4   :  { %v342_v31 = vpop.f32.mrf.mxu2  ;;  %v598_v37 = vpop.f32.mrf.mxu3 }
  0xe5   :  { %v4525_v34 = vadd.f32 %v342_v31, %v4455_v19  ;;  %v286_v42 = vpop.f32.mrf.mxu0  ;;  %v4528_v44 = vadd.f32 %v598_v37, %v4459_v20  ;;  %v315_v48 = vpop.f32.mrf.mxu1 }
  0xe6   :  { %v4531_v45 = vadd.f32 %v286_v42, %v4472_v33  ;;  %v4534_v51 = vadd.f32 %v315_v48, %v4474_v36 }
  0xe7   :  { %6303 = vst [vmem:[#allocation26_spill] sm:$0xff] %v4525_v34  ;;  %v4708_v34 = vld [vmem:[#allocation5 + $0xd0] sm:$0xff] }
  0xe8   :  { %6304 = vst [vmem:[#allocation28_spill] sm:$0xff] %v4528_v44  ;;  %v4704_v44 = vld [vmem:[#allocation5 + $0xc0] sm:$0xff] }
  0xe9   :  { %6305 = vst [vmem:[#allocation31_spill] sm:$0xff] %v4531_v45  ;;  %v272_v45 = vadd.f32 %v4437_v7, %v4472_v33  ;;  %v4713_v7 = vld [vmem:[#allocation5 + $0xb0] sm:$0xff] }
  0xea   :  { %6306 = vst [vmem:[#allocation32_spill] sm:$0xff] %v4534_v51 }
  0xec   :  { %v344_v57 = vpop.f32.mrf.mxu2  ;;  %v600_v0 = vpop.f32.mrf.mxu3 }
  0xed   :  { %v4537_v62 = vadd.f32 %v344_v57, %v4455_v19  ;;  %v4539_v3 = vpop.f32.mrf.mxu0  ;;  %v4542_v9 = vadd.f32 %v600_v0, %v4459_v20  ;;  %v4544_v13 = vpop.f32.mrf.mxu1 }
  0xef   :  { %6307 = vst [vmem:[#allocation33_spill] sm:$0xff] %v4537_v62 }
  0xf0   :  { %6308 = vst [vmem:[#allocation34_spill] sm:$0xff] %v4542_v9 }
  0xf4   :  { %v775_v39 = vpop.f32.mrf.mxu2  ;;  %v795_v54 = vpop.f32.mrf.mxu3 }
  0xf5   :  { %v927_v43 = vadd.f32 %v775_v39, %v270_v16  ;;  %v614_v29 = vpop.f32.mrf.mxu0  ;;  %v947_v40 = vadd.f32 %v795_v54, %v299_v25  ;;  %v643_v50 = vpop.f32.mrf.mxu1  ;;  %v4579_v54 = vld [vmem:[%s6138_s4] ss:$0 sm:$0xff] }
  0xf6   :  { %v4557_v49 = vadd.f32 %v614_v29, %v4554_v35  ;;  %v4560_v55 = vadd.f32 %v643_v50, %v4549_v22 }
  0xf7   :  { %v3624_v59 = vmul.f32 -1.442695, %v927_v43  ;;  %v3625_v63 = vmul.f32 -1.442695, %v947_v40 }
  0xf9   :  { %3737 = vpow2.f32 %v3624_v59 }
  0xfa   :  { %3739 = vpow2.f32 %v3625_v63 }
  0xfc   :  { %v884_v12 = vpop.f32.mrf.mxu3  ;;  %v815_v50 = vpop.f32.mrf.mxu2 }
  0xfd   :  { %v617_v2 = vpop.f32.mrf.mxu0  ;;  %v646_v14 = vpop.f32.mrf.mxu1  ;;  %v975_v18 = vadd.f32 %v884_v12, %v584_v58 }
  0xfe   :  { %v4565_v10 = vadd.f32 %v617_v2, %v4554_v35  ;;  %v4568_v27 = vadd.f32 %v646_v14, %v4549_v22 }
  0xff   :  { %v3738_v17 = vpop.eup %3737  ;;  %v3626_v48 = vmul.f32 -1.442695, %v975_v18 }
 0x100   :  { %6309 = vst [vmem:[#allocation35_spill] sm:$0xff] %v4565_v10  ;;  %v3740_v31 = vpop.eup %3739  ;;  %v931_v37 = vadd.f32 1.0, %v3738_v17 }
 0x101   :  { %6310 = vst [vmem:[#allocation36_spill] sm:$0xff] %v4568_v27  ;;  %v951_v42 = vadd.f32 1.0, %v3740_v31  ;;  %v4774_v27 = vld [vmem:[#allocation5 + $0x28] sm:$0xff] }
 0x102   :  { %3741 = vrcp.f32 %v931_v37  ;;  %v943_v59 = vand.u32 2147483648, %v931_v37  ;;  %v941_v2 = vand.u32 2147483647, %v931_v37  ;;  %vm937_vm1 = vweird.f32 %v931_v37  ;;  %6324 = vst [vmem:[#allocation50_spill] sm:$0xff] %v4774_v27 }
 0x103   :  { %3743 = vrcp.f32 %v951_v42  ;;  %vm957_vm5 = vweird.f32 %v951_v42 }
 0x104   :  { %3745 = vpow2.f32 %v3626_v48  ;;  %vm942_vm3 = vcmp.eq.f32.partialorder %v941_v2, 8.507059e+37 }
 0x105   :  { %v619_v57 = vpop.f32.mrf.mxu0  ;;  %v648_v20 = vpop.f32.mrf.mxu1 }
 0x106   :  { %v4571_v4 = vadd.f32 %v619_v57, %v4554_v35  ;;  %v4574_v0 = vadd.f32 %v648_v20, %v4549_v22  ;;  %v967_v57 = vadd.f32 %v4579_v54, %v815_v50 }
 0x108   :  { %6311 = vst [vmem:[#allocation37_spill] sm:$0xff] %v4571_v4  ;;  %v3742_v16 = vpop.eup %3741 }
 0x109   :  { %6312 = vst [vmem:[#allocation38_spill] sm:$0xff] %v4574_v0  ;;  %v3744_v25 = vpop.eup %3743  ;;  %v933_v39 = vmul.f32 %v3742_v16, %v931_v37  ;;  %vm938_vm0 = vweird.f32 %v3742_v16  ;;  %v4762_v0 = vld [vmem:[#allocation5 + $0x40] sm:$0xff] }
 0x10a   :  { %v953_v43 = vmul.f32 %v3744_v25, %v951_v42  ;;  %v3746_v63 = vpop.eup %3745  ;;  %vm939_vm2 = vmor %vm937_vm1, %vm938_vm0  ;;  %vm958_vm4 = vweird.f32 %v3744_v25  ;;  %6322 = vst [vmem:[#allocation48_spill] sm:$0xff] %v4762_v0 }
 0x10b   :  { %v934_v29 = vsub.f32 1.0, %v933_v39  ;;  %v979_v20 = vadd.f32 1.0, %v3746_v63  ;;  %v944_v39 = vor.u32 1.1754944e-38, %v943_v59  ;;  %vm959_vm6 = vmor %vm957_vm5, %vm958_vm4 }
 0x10c   :  { %v954_v40 = vsub.f32 1.0, %v953_v43 }
 0x10d   :  { %v622_v58 = vpop.f32.mrf.mxu0  ;;  %v935_v12 = vmul.f32 %v3742_v16, %v934_v29  ;;  %v651_v18 = vpop.f32.mrf.mxu1  ;;  %3747 = vrcp.f32 %v979_v20  ;;  %vm985_vm9 = vweird.f32 %v979_v20 }
 0x10e   :  { %v955_v14 = vmul.f32 %v3744_v25, %v954_v40  ;;  %v4582_v17 = vadd.f32 %v622_v58, %v4554_v35  ;;  %v4585_v31 = vadd.f32 %v651_v18, %v4549_v22  ;;  %v328_v40 = vadd.f32 %v4431_v1, %v4455_v19 }
 0x10f   :  { %v936_v48 = vadd.f32 %v3742_v16, %v935_v12  ;;  %v963_v58 = vand.u32 2147483648, %v951_v42  ;;  %v961_v18 = vand.u32 2147483647, %v951_v42 }
 0x110   :  { %6313 = vst [vmem:[#allocation39_spill] sm:$0xff] %v4582_v17  ;;  %v956_v29 = vadd.f32 %v3744_v25, %v955_v14  ;;  %v4749_v17 = vld [vmem:[#allocation5 + $0x50] sm:$0xff] }
 0x111   :  { %6314 = vst [vmem:[#allocation40_spill] sm:$0xff] %v4585_v31  ;;  %v940_v43 = vsel %vm939_vm2, %v3742_v16, %v936_v48  ;;  %v964_v59 = vor.u32 1.1754944e-38, %v963_v58  ;;  %vm962_vm7 = vcmp.eq.f32.partialorder %v961_v18, 8.507059e+37 }
 0x112   :  { %v945_v9 = vsel %vm942_vm3, %v944_v39, %v940_v43  ;;  %v960_v50 = vsel %vm959_vm6, %v3744_v25, %v956_v29 }
 0x113   :  { %v968_v62 = vmul.f32 %v967_v57, %v945_v9  ;;  %v965_v1 = vsel %vm962_vm7, %v964_v59, %v960_v50  ;;  %v3748_v19 = vpop.eup %3747 }
 0x114   :  { %v971_v9 = vsub.f32 1.0, %v965_v1  ;;  %v981_v48 = vmul.f32 %v3748_v19, %v979_v20  ;;  %v973_v39 = vmul.f32 0.0, %v965_v1  ;;  %vm986_vm8 = vweird.f32 %v3748_v19 }
 0x115   :  { %v969_v37 = vadd.f32 %v968_v62, %v328_v40  ;;  %v624_v12 = vpop.f32.mrf.mxu0  ;;  %v653_v16 = vpop.f32.mrf.mxu1  ;;  %v991_v1 = vand.u32 2147483648, %v979_v20  ;;  %vm987_vm10 = vmor %vm985_vm9, %vm986_vm8 }
 0x116   :  { %v4591_v63 = vadd.f32 %v624_v12, %v4554_v35  ;;  %v4594_v2 = vadd.f32 %v653_v16, %v4549_v22  ;;  %v982_v40 = vsub.f32 1.0, %v981_v48 }
 0x117   :  { %3749 = vtanh.f32 %v969_v37 }
 0x118   :  { %6315 = vst [vmem:[#allocation41_spill] sm:$0xff] %v4591_v63  ;;  %v983_v37 = vmul.f32 %v3748_v19, %v982_v40  ;;  %v992_v40 = vor.u32 1.1754944e-38, %v991_v1 }
 0x119   :  { %6316 = vst [vmem:[#allocation42_spill] sm:$0xff] %v4594_v2  ;;  %v4711_v2 = vld [vmem:[#allocation5 + $0xa8] sm:$0xff] }
 0x11a   :  { %v984_v59 = vadd.f32 %v3748_v19, %v983_v37 }
 0x11d   :  { %v3750_v14 = vpop.eup %3749  ;;  %v627_v42 = vpop.f32.mrf.mxu0 }
 0x11e   :  { %v972_v57 = vmul.f32 %v3750_v14, %v971_v9  ;;  %v4597_v62 = vadd.f32 %v627_v42, %v4554_v35  ;;  %v656_v25 = vpop.f32.mrf.mxu1  ;;  %v4621_v9 = vld [vmem:[%s6138_s4 + $0x1] ss:$0 sm:$0xff]  ;;  %v989_v14 = vand.u32 2147483647, %v979_v20  ;;  %v613_v42 = vadd.f32 %v4539_v3, %v4554_v35 }
 0x11f   :  { %v4600_v43 = vadd.f32 %v656_v25, %v4549_v22 }
 0x120   :  { %6317 = vst [vmem:[#allocation43_spill] sm:$0xff] %v4597_v62  ;;  %v4602_v29 = vadd.f32 %v973_v39, %v972_v57  ;;  %v988_v57 = vsel %vm987_vm10, %v3748_v19, %v984_v59  ;;  %vm990_vm11 = vcmp.eq.f32.partialorder %v989_v14, 8.507059e+37  ;;  %v4706_v62 = vld [vmem:[#allocation5 + $0xc8] sm:$0xff] }
 0x121   :  { %6318 = vst [vmem:[#allocation44_spill] sm:$0xff] %v4600_v43  ;;  %v993_v37 = vsel %vm990_vm11, %v992_v40, %v988_v57  ;;  %v301_v43 = vadd.f32 %v4440_v8, %v4474_v36 }
 0x122   :  { %v1023_v58 = vpack.c.bf16 %v4602_v29, %v4602_v29  ;;  %1106 = vmatmul.f32.vlgmr.msrb.gmra.mxu2 %v4602_v29  ;;  %1126 = vmatmul.f32.vlgmr.msrb.gmra.mxu3 %v4602_v29 }
 0x123   :  { %1146 = vmatmul.f32.vlgmr.msrb.gmra.mxu0 %v4602_v29 }
 0x124   :  { %1024 = vst [vmem:[%s6139_s5] sm:$0xf] %v1023_v58 }
 0x125   :  { %v629_v18 = vpop.f32.mrf.mxu0 }
 0x126   :  { %v4613_v12 = vadd.f32 %v629_v18, %v4554_v35  ;;  %v658_v50 = vpop.f32.mrf.mxu1 }
 0x127   :  { %v4616_v16 = vadd.f32 %v658_v50, %v4549_v22  ;;  %v642_v50 = vadd.f32 %v4544_v13, %v4549_v22 }
 0x128   :  { %6319 = vst [vmem:[#allocation45_spill] sm:$0xff] %v4613_v12 }
 0x129   :  { %6320 = vst [vmem:[#allocation46_spill] sm:$0xff] %v4616_v16 }
 0x12d   :  { %v904_v48 = vpop.f32.mrf.mxu0 }
 0x12e   :  { %v995_v25 = vadd.f32 %v904_v48, %v613_v42  ;;  %v924_v39 = vpop.f32.mrf.mxu1 }
 0x12f   :  { %v1015_v58 = vadd.f32 %v4621_v9, %v924_v39 }
 0x130   :  { %v3627_v18 = vmul.f32 -1.442695, %v995_v25 }
 0x131   :  { %v1016_v16 = vmul.f32 %v1015_v58, %v993_v37  ;;  %v4640_v58 = vld [vmem:[#allocation5 + $0x170] sm:$0xff] }
 0x132   :  { %3751 = vpow2.f32 %v3627_v18  ;;  %v4642_v18 = vld [vmem:[#allocation5 + $0x178] sm:$0xff]  ;;  %1442 = vmatpush.msra.mxu1 %v4640_v58  ;;  %v4647_v37 = vld [vmem:[#allocation5 + $0x150] sm:$0xff] }
 0x133   :  { %v1017_v20 = vadd.f32 %v1016_v16, %v642_v50  ;;  %1462 = vmatpush.msrb.mxu2 %v4642_v18  ;;  %v4649_v50 = vld [vmem:[#allocation5 + $0x158] sm:$0xff] }
 0x134   :  { %1443 = vmatpush.msra.mxu1 %v4649_v50 }
 0x138   :  { %v3752_v12 = vpop.eup %3751 }
 0x139   :  { %v999_v51 = vadd.f32 1.0, %v3752_v12 }
 0x13b   :  { %3753 = vrcp.f32 %v999_v51  ;;  %v1011_v59 = vand.u32 2147483648, %v999_v51  ;;  %v1009_v1 = vand.u32 2147483647, %v999_v51  ;;  %vm1005_vm13 = vweird.f32 %v999_v51 }
 0x13c   :  { %3755 = vtanh.f32 %v1017_v20  ;;  %v4651_v20 = vld [vmem:[#allocation5 + $0x160] sm:$0xff] }
 0x13d   :  { %v1012_v48 = vor.u32 1.1754944e-38, %v1011_v59  ;;  %vm1010_vm15 = vcmp.eq.f32.partialorder %v1009_v1, 8.507059e+37  ;;  %1463 = vmatpush.msrb.mxu2 %v4651_v20  ;;  %v4665_v59 = vld [vmem:[#allocation5 + $0x120] sm:$0xff]  ;;  %v4669_v1 = vld [vmem:[#allocation5 + $0x130] sm:$0xff] }
 0x141   :  { %v3754_v3 = vpop.eup %3753 }
 0x142   :  { %v1001_v35 = vmul.f32 %v3754_v3, %v999_v51  ;;  %vm1006_vm12 = vweird.f32 %v3754_v3  ;;  %v3756_v16 = vpop.eup %3755  ;;  %v4638_v51 = vld [vmem:[#allocation5 + $0x168] sm:$0xff] }
 0x143   :  { %vm1007_vm14 = vmor %vm1005_vm13, %vm1006_vm12  ;;  %1422 = vmatpush.msra.mxu0 %v4638_v51 }
 0x144   :  { %v1002_v19 = vsub.f32 1.0, %v1001_v35  ;;  %v4658_v35 = vld [vmem:[#allocation5 + $0x140] sm:$0xff] }
 0x145   :  { %1423 = vmatpush.msra.mxu0 %v4647_v37  ;;  %1444 = vmatpush.msra.mxu1 %v4658_v35 }
 0x146   :  { %v1003_v42 = vmul.f32 %v3754_v3, %v1002_v19  ;;  %v4660_v19 = vld [vmem:[#allocation5 + $0x148] sm:$0xff] }
 0x147   :  { %1464 = vmatpush.msrb.mxu2 %v4660_v19 }
 0x148   :  { %v1004_v14 = vadd.f32 %v3754_v3, %v1003_v42  ;;  %v4667_v42 = vld [vmem:[#allocation5 + $0x128] sm:$0xff] }
 0x149   :  { %1445 = vmatpush.msra.mxu1 %v4667_v42  ;;  %1465 = vmatpush.msrb.mxu2 %v4669_v1 }
 0x14a   :  { %v1008_v13 = vsel %vm1007_vm14, %v3754_v3, %v1004_v14  ;;  %v4656_v3 = vld [vmem:[#allocation5 + $0x138] sm:$0xff]  ;;  %v4674_v14 = vld [vmem:[#allocation5 + $0x108] sm:$0xff] }
 0x14b   :  { %v1013_v22 = vsel %vm1010_vm15, %v1012_v48, %v1008_v13  ;;  %1424 = vmatpush.msra.mxu0 %v4656_v3  ;;  %v4676_v48 = vld [vmem:[#allocation5 + $0x110] sm:$0xff]  ;;  %v4678_v13 = vld [vmem:[#allocation5 + $0x118] sm:$0xff] }
 0x14c   :  { %v1019_v57 = vsub.f32 1.0, %v1013_v22  ;;  %v1021_v12 = vmul.f32 0.0, %v1013_v22  ;;  %1446 = vmatpush.msra.mxu1 %v4676_v48  ;;  %1466 = vmatpush.msrb.mxu2 %v4678_v13  ;;  %v4683_v22 = vld [vmem:[#allocation5 + $0xf0] sm:$0xff] }
 0x14d   :  { %1425 = vmatpush.msra.mxu0 %v4665_v59 }
 0x14e   :  { %v1020_v25 = vmul.f32 %v3756_v16, %v1019_v57  ;;  %v4685_v57 = vld [vmem:[#allocation5 + $0xf8] sm:$0xff]  ;;  %v4687_v16 = vld [vmem:[#allocation5 + $0x100] sm:$0xff] }
 0x14f   :  { %1426 = vmatpush.msra.mxu0 %v4674_v14  ;;  %1447 = vmatpush.msra.mxu1 %v4685_v57 }
 0x150   :  { %v4628_v39 = vadd.f32 %v1021_v12, %v1020_v25  ;;  %1467 = vmatpush.msrb.mxu2 %v4687_v16  ;;  %v4692_v25 = vld [vmem:[#allocation5 + $0xd8] sm:$0xff]  ;;  %v4694_v12 = vld [vmem:[#allocation5 + $0xe0] sm:$0xff] }
 0x151   :  { %1427 = vmatpush.msra.mxu0 %v4683_v22  ;;  %1448 = vmatpush.msra.mxu1 %v4694_v12 }
 0x152   :  { %v1025_v40 = vpack.c.bf16 %v4628_v39, %v4628_v39  ;;  %1214 = vmatmul.f32.vlgmr.msrb.gmra.mxu1 %v4628_v39  ;;  %1234 = vmatmul.f32.vlgmr.msra.gmra.mxu2 %v4628_v39 }
 0x153   :  { %1254 = vmatmul.f32.vlgmr.msra.gmra.mxu3 %v4628_v39  ;;  %1428 = vmatpush.msra.mxu0 %v4692_v25 }
 0x154   :  { %3628 = vst [vmem:[%s6139_s5 + $0x20] sm:$0xf] %v1025_v40  ;;  %v4696_v40 = vld [vmem:[#allocation5 + $0xe8] sm:$0xff]  ;;  %1449 = vmatpush.msra.mxu1 %v4706_v62 }
 0x155   :  { %1468 = vmatpush.msrb.mxu2 %v4696_v40  ;;  %1429 = vmatpush.msra.mxu0 %v4704_v44 }
 0x156   :  { %1450 = vmatpush.msra.mxu1 %v4713_v7 }
 0x157   :  { %1469 = vmatpush.msrb.mxu2 %v4708_v34  ;;  %1430 = vmatpush.msra.mxu0 %v4711_v2 }
 0x158   :  { %1451 = vmatpush.msra.mxu1 %v4722_v11 }
 0x159   :  { %1470 = vmatpush.msrb.mxu2 %v4717_v21  ;;  %1431 = vmatpush.msra.mxu0 %v4720_v15 }
 0x1a5   :  { %v1107_v28 = vpop.f32.mrf.mxu2  ;;  %v1127_v23 = vpop.f32.mrf.mxu3 }
 0x1a6   :  { %v1258_v63 = vadd.f32 %v1107_v28, %v272_v45  ;;  %v1278_v8 = vadd.f32 %v1127_v23, %v301_v43  ;;  %v4726_v28 = vld [vmem:[#allocation5 + $0xa0] sm:$0xff]  ;;  %v4729_v23 = vld [vmem:[#allocation5 + $0x78] sm:$0xff]  ;;  %v4735_v43 = vld [vmem:[#allocation5 + $0x88] sm:$0xff] }
 0x1a7   :  { %v4731_v45 = vld [vmem:[#allocation5 + $0x80] sm:$0xff]  ;;  %1471 = vmatpush.msrb.mxu2 %v4726_v28  ;;  %1432 = vmatpush.msra.mxu0 %v4729_v23 }
 0x1a8   :  { %v3629_v6 = vmul.f32 -1.442695, %v1258_v63  ;;  %v3630_v31 = vmul.f32 -1.442695, %v1278_v8  ;;  %v4738_v63 = vld [vmem:[#allocation5 + $0x60] sm:$0xff]  ;;  %v4740_v8 = vld [vmem:[#allocation5 + $0x68] sm:$0xff]  ;;  %1452 = vmatpush.msra.mxu1 %v4731_v45 }
 0x1a9   :  { %1472 = vmatpush.msrb.mxu2 %v4735_v43  ;;  %1433 = vmatpush.msra.mxu0 %v4738_v63 }
 0x1aa   :  { %3757 = vpow2.f32 %v3629_v6  ;;  %v4747_v6 = vld [vmem:[#allocation5 + $0x48] sm:$0xff]  ;;  %1453 = vmatpush.msra.mxu1 %v4740_v8 }
 0x1ab   :  { %3759 = vpow2.f32 %v3630_v31  ;;  %v4753_v31 = vld [vmem:[#allocation5 + $0x58] sm:$0xff]  ;;  %1473 = vmatpush.msrb.mxu2 %v4744_v5  ;;  %1434 = vmatpush.msra.mxu0 %v4747_v6 }
 0x1ac   :  { %1454 = vmatpush.msra.mxu1 %v4749_v17 }
 0x1ad   :  { %1474 = vmatpush.msrb.mxu2 %v4753_v31  ;;  %1435 = vmatpush.msra.mxu0 %v4756_v60 }
 0x1ae   :  { %1455 = vmatpush.msra.mxu1 %v4758_v56 }
 0x1af   :  { %1475 = vmatpush.msrb.mxu2 %v4762_v0  ;;  %1436 = vmatpush.msra.mxu0 %v4770_v61 }
 0x1b0   :  { %v3758_v46 = vpop.eup %3757  ;;  %1456 = vmatpush.msra.mxu1 %v4772_v52 }
 0x1b1   :  { %v3760_v4 = vpop.eup %3759  ;;  %v1262_v53 = vadd.f32 1.0, %v3758_v46  ;;  %1476 = vmatpush.msrb.mxu2 %v4774_v27  ;;  %v4780_v46 = vld [vmem:[#allocation5] sm:$0xff] }
 0x1b2   :  { %v4765_v41 = vadd.f32 1.0, %v3760_v4  ;;  %v4782_v4 = vld [vmem:[#allocation5 + $0x8] sm:$0xff]  ;;  %1437 = vmatpush.msra.mxu0 %v4780_v46 }
 0x1b3   :  { %3761 = vrcp.f32 %v1262_v53  ;;  %6325 = vst [vmem:[#allocation51_spill] sm:$0xff] %v4782_v4  ;;  %1457 = vmatpush.msra.mxu1 %v4782_v4  ;;  %1477 = vmatpush.msrb.mxu2 %v4784_v47  ;;  %v1274_v33 = vand.u32 2147483648, %v1262_v53  ;;  %v1272_v4 = vand.u32 2147483647, %v1262_v53  ;;  %vm1268_vm1 = vweird.f32 %v1262_v53 }
 0x1b4   :  { %3763 = vrcp.f32 %v4765_v41  ;;  %vm1288_vm5 = vweird.f32 %v4765_v41 }
 0x1b5   :  { %1754 = vmatpush.msra.mxu2 %v4638_v51  ;;  %v1147_v51 = vpop.f32.mrf.mxu0  ;;  %vm1273_vm3 = vcmp.eq.f32.partialorder %v1272_v4, 8.507059e+37 }
 0x1b7   :  { %1755 = vmatpush.msra.mxu2 %v4647_v37  ;;  %v1275_v37 = vor.u32 1.1754944e-38, %v1274_v33 }
 0x1b9   :  { %v3762_v10 = vpop.eup %3761  ;;  %1756 = vmatpush.msra.mxu2 %v4656_v3  ;;  %v4805_v3 = vld [vmem:[#allocation5 + $0x2f8] sm:$0xff] }
 0x1ba   :  { %v4790_v38 = vpop.eup %3763  ;;  %v1264_v32 = vmul.f32 %v3762_v10, %v1262_v53  ;;  %vm1269_vm0 = vweird.f32 %v3762_v10  ;;  %6327 = vst [vmem:[#allocation53_spill] sm:$0xff] %v4805_v3  ;;  %1570 = vmatpush.msrb.mxu1 %v4805_v3  ;;  %v4982_v3 = vld [vmem:[#allocation5 + $0x190] sm:$0xff] }
 0x1bb   :  { %v1284_v36 = vmul.f32 %v4790_v38, %v4765_v41  ;;  %1757 = vmatpush.msra.mxu2 %v4665_v59  ;;  %vm1270_vm2 = vmor %vm1268_vm1, %vm1269_vm0  ;;  %vm1289_vm4 = vweird.f32 %v4790_v38 }
 0x1bc   :  { %v1265_v26 = vsub.f32 1.0, %v1264_v32  ;;  %v1298_v32 = vadd.f32 %v4579_v54, %v1147_v51  ;;  %v4818_v54 = vld [vmem:[#allocation5 + $0x2e0] sm:$0xff]  ;;  %vm4823_vm6 = vmor %vm1288_vm5, %vm1289_vm4  ;;  %v4847_v51 = vld [vmem:[#allocation5 + $0x2a8] sm:$0xff] }
 0x1bd   :  { %v1285_v27 = vsub.f32 1.0, %v1284_v36  ;;  %1758 = vmatpush.msra.mxu2 %v4674_v14  ;;  %v4803_v36 = vld [vmem:[#allocation5 + $0x2f0] sm:$0xff]  ;;  %6328 = vst [vmem:[#allocation54_spill] sm:$0xff] %v4818_v54  ;;  %1571 = vmatpush.msrb.mxu1 %v4818_v54  ;;  %v4832_v14 = vld [vmem:[#allocation5 + $0x2b8] sm:$0xff] }
 0x1be   :  { %v1266_v52 = vmul.f32 %v3762_v10, %v1265_v26  ;;  %v4801_v26 = vld [vmem:[#allocation5 + $0x2e8] sm:$0xff]  ;;  %1550 = vmatpush.msrb.mxu0 %v4803_v36 }
 0x1bf   :  { %v1286_v47 = vmul.f32 %v4790_v38, %v1285_v27  ;;  %1759 = vmatpush.msra.mxu2 %v4683_v22  ;;  %1530 = vmatpush.msrb.mxu3 %v4801_v26  ;;  %v4814_v27 = vld [vmem:[#allocation5 + $0x2d0] sm:$0xff]  ;;  %v4834_v22 = vld [vmem:[#allocation5 + $0x2c0] sm:$0xff] }
 0x1c0   :  { %v1267_v0 = vadd.f32 %v3762_v10, %v1266_v52 }
 0x1c1   :  { %v1287_v53 = vadd.f32 %v4790_v38, %v1286_v47  ;;  %1760 = vmatpush.msra.mxu2 %v4692_v25  ;;  %1531 = vmatpush.msrb.mxu3 %v4814_v27  ;;  %v4836_v25 = vld [vmem:[#allocation5 + $0x2c8] sm:$0xff]  ;;  %v4875_v47 = vld [vmem:[#allocation5 + $0x258] sm:$0xff] }
 0x1c2   :  { %v1271_v56 = vsel %vm1270_vm2, %v3762_v10, %v1267_v0  ;;  %v1294_v10 = vand.u32 2147483648, %v4765_v41  ;;  %v4816_v0 = vld [vmem:[#allocation5 + $0x2d8] sm:$0xff]  ;;  %6331 = vst [vmem:[#allocation55_spill] sm:$0xff] %v4836_v25  ;;  %1572 = vmatpush.msrb.mxu1 %v4836_v25  ;;  %v4891_v25 = vld [vmem:[#allocation5 + $0x250] sm:$0xff] }
 0x1c3   :  { %v1276_v52 = vsel %vm1273_vm3, %v1275_v37, %v1271_v56  ;;  %v1292_v56 = vand.u32 2147483647, %v4765_v41  ;;  %1551 = vmatpush.msrb.mxu0 %v4816_v0  ;;  %1761 = vmatpush.msra.mxu2 %v4704_v44  ;;  %v1291_v41 = vsel %vm4823_vm6, %v4790_v38, %v1287_v53  ;;  %v4849_v37 = vld [vmem:[#allocation5 + $0x2b0] sm:$0xff]  ;;  %v4855_v44 = vld [vmem:[#allocation5 + $0x288] sm:$0xff]  ;;  %v4867_v53 = vld [vmem:[#allocation5 + $0x278] sm:$0xff]  ;;  %6336 = vst [vmem:[#allocation60_spill] sm:$0xff] %v4891_v25 }
 0x1c4   :  { %v1299_v33 = vmul.f32 %v1298_v32, %v1276_v52  ;;  %1532 = vmatpush.msrb.mxu3 %v4832_v14  ;;  %v1295_v4 = vor.u32 1.1754944e-38, %v1294_v10  ;;  %6332 = vst [vmem:[#allocation56_spill] sm:$0xff] %v4849_v37  ;;  %1573 = vmatpush.msrb.mxu1 %v4849_v37  ;;  %v4857_v32 = vld [vmem:[#allocation5 + $0x290] sm:$0xff]  ;;  %v4859_v52 = vld [vmem:[#allocation5 + $0x298] sm:$0xff]  ;;  %v4889_v37 = vld [vmem:[#allocation5 + $0x248] sm:$0xff] }
 0x1c5   :  { %1552 = vmatpush.msrb.mxu0 %v4834_v22  ;;  %1762 = vmatpush.msra.mxu2 %v4711_v2  ;;  %vm1293_vm7 = vcmp.eq.f32.partialorder %v1292_v56, 8.507059e+37  ;;  %6333 = vst [vmem:[#allocation57_spill] sm:$0xff] %v4859_v52  ;;  %v4865_v2 = vld [vmem:[#allocation5 + $0x270] sm:$0xff]  ;;  %v4877_v56 = vld [vmem:[#allocation5 + $0x260] sm:$0xff] }
 0x1c6   :  { %v1300_v59 = vadd.f32 %v1299_v33, %v4463_v24  ;;  %v4845_v24 = vld [vmem:[#allocation5 + $0x2a0] sm:$0xff]  ;;  %v1296_v38 = vsel %vm1293_vm7, %v1295_v4, %v1291_v41  ;;  %1574 = vmatpush.msrb.mxu1 %v4859_v52 }
 0x1c7   :  { %1533 = vmatpush.msrb.mxu3 %v4845_v24  ;;  %1553 = vmatpush.msrb.mxu0 %v4847_v51  ;;  %v4869_v33 = vld [vmem:[#allocation5 + $0x280] sm:$0xff]  ;;  %v1302_v10 = vsub.f32 1.0, %v1296_v38 }
 0x1c8   :  { %3765 = vtanh.f32 %v1300_v59  ;;  %1763 = vmatpush.msra.mxu2 %v4720_v15  ;;  %6334 = vst [vmem:[#allocation58_spill] sm:$0xff] %v4869_v33  ;;  %1575 = vmatpush.msrb.mxu1 %v4869_v33  ;;  %v4879_v59 = vld [vmem:[#allocation5 + $0x268] sm:$0xff]  ;;  %v4887_v33 = vld [vmem:[#allocation5 + $0x240] sm:$0xff] }
 0x1c9   :  { %1534 = vmatpush.msrb.mxu3 %v4855_v44  ;;  %1554 = vmatpush.msrb.mxu0 %v4857_v32  ;;  %6335 = vst [vmem:[#allocation59_spill] sm:$0xff] %v4879_v59 }
 0x1ca   :  { %1764 = vmatpush.msra.mxu2 %v4729_v23  ;;  %v1304_v23 = vmul.f32 %v1296_v38, %v4602_v29  ;;  %1576 = vmatpush.msrb.mxu1 %v4879_v59  ;;  %v4901_v38 = vld [vmem:[#allocation5 + $0x230] sm:$0xff] }
 0x1cb   :  { %1535 = vmatpush.msrb.mxu3 %v4865_v2  ;;  %1555 = vmatpush.msrb.mxu0 %v4867_v53 }
 0x1cc   :  { %1765 = vmatpush.msra.mxu2 %v4738_v63  ;;  %1577 = vmatpush.msrb.mxu1 %v4891_v25 }
 0x1cd   :  { %1536 = vmatpush.msrb.mxu3 %v4875_v47  ;;  %1556 = vmatpush.msrb.mxu0 %v4877_v56 }
 0x1ce   :  { %v3766_v15 = vpop.eup %3765  ;;  %1766 = vmatpush.msra.mxu2 %v4747_v6 }
 0x1cf   :  { %v1215_v41 = vpop.f32.mrf.mxu1  ;;  %v1303_v4 = vmul.f32 %v3766_v15, %v1302_v10  ;;  %1537 = vmatpush.msrb.mxu3 %v4887_v33  ;;  %1557 = vmatpush.msrb.mxu0 %v4889_v37  ;;  %v4903_v10 = vld [vmem:[#allocation5 + $0x238] sm:$0xff] }
 0x1d0   :  { %v1306_v52 = vadd.f32 %v1215_v41, %v4468_v30  ;;  %v4899_v30 = vld [vmem:[#allocation5 + $0x228] sm:$0xff]  ;;  %6338 = vst [vmem:[#allocation62_spill] sm:$0xff] %v4903_v10  ;;  %1767 = vmatpush.msra.mxu2 %v4756_v60  ;;  %v4914_v15 = vld [vmem:[#allocation5 + $0x218] sm:$0xff]  ;;  %v4916_v41 = vld [vmem:[#allocation5 + $0x220] sm:$0xff]  ;;  %1578 = vmatpush.msrb.mxu1 %v4903_v10 }
 0x1d1   :  { %v4894_v63 = vadd.f32 %v1304_v23, %v1303_v4  ;;  %1538 = vmatpush.msrb.mxu3 %v4899_v30  ;;  %6339 = vst [vmem:[#allocation63_spill] sm:$0xff] %v4916_v41  ;;  %1558 = vmatpush.msrb.mxu0 %v4901_v38  ;;  %v4925_v23 = vld [vmem:[#allocation5 + $0x1f8] sm:$0xff]  ;;  %v4935_v10 = vld [vmem:[#allocation5 + $0x1e0] sm:$0xff] }
 0x1d2   :  { %v3631_v29 = vmul.f32 -1.442695, %v1306_v52  ;;  %v4912_v52 = vld [vmem:[#allocation5 + $0x210] sm:$0xff]  ;;  %1768 = vmatpush.msra.mxu2 %v4770_v61  ;;  %1579 = vmatpush.msrb.mxu1 %v4916_v41  ;;  %v4944_v61 = vld [vmem:[#allocation5 + $0x1c8] sm:$0xff]  ;;  %v4949_v41 = vld [vmem:[#allocation5 + $0x1d8] sm:$0xff] }
 0x1d3   :  { %6337 = vst [vmem:[#allocation61_spill] sm:$0xff] %v4894_v63  ;;  %v1354_v6 = vpack.c.bf16 %v4894_v63, %v4894_v63  ;;  %1438 = vmatmul.f32.vlgmr.msra.gmra.mxu0 %v4894_v63  ;;  %1458 = vmatmul.f32.vlgmr.msra.gmra.mxu1 %v4894_v63 }
 0x1d4   :  { %3767 = vpow2.f32 %v3631_v29  ;;  %1478 = vmatmul.f32.vlgmr.msrb.gmra.mxu2 %v4894_v63  ;;  %1539 = vmatpush.msrb.mxu3 %v4912_v52  ;;  %v4927_v29 = vld [vmem:[#allocation5 + $0x200] sm:$0xff]  ;;  %v4929_v63 = vld [vmem:[#allocation5 + $0x208] sm:$0xff]  ;;  %6342 = vst [vmem:[#allocation66_spill] sm:$0xff] %v4949_v41 }
 0x1d5   :  { %3633 = vst [vmem:[%s6139_s5 + $0x4] sm:$0xf] %v1354_v6  ;;  %v1235_v60 = vpop.f32.mrf.mxu2  ;;  %1559 = vmatpush.msrb.mxu0 %v4914_v15  ;;  %1769 = vmatpush.msra.mxu2 %v4780_v46  ;;  %v4956_v46 = vld [vmem:[#allocation5 + $0x1b0] sm:$0xff] }
 0x1d6   :  { %v1326_v4 = vadd.f32 %v1235_v60, %v4557_v49  ;;  %6340 = vst [vmem:[#allocation64_spill] sm:$0xff] %v4929_v63  ;;  %1540 = vmatpush.msrb.mxu3 %v4925_v23  ;;  %v4937_v49 = vld [vmem:[#allocation5 + $0x1e8] sm:$0xff]  ;;  %v4939_v60 = vld [vmem:[#allocation5 + $0x1f0] sm:$0xff]  ;;  %1580 = vmatpush.msrb.mxu1 %v4929_v63  ;;  %v4959_v63 = vld [vmem:[#allocation5 + $0x1b8] sm:$0xff] }
 0x1d7   :  { %6341 = vst [vmem:[#allocation65_spill] sm:$0xff] %v4939_v60  ;;  %1560 = vmatpush.msrb.mxu0 %v4927_v29  ;;  %1882 = vmatpush.msrb.mxu2 %v4803_v36  ;;  %v4967_v36 = vld [vmem:[#allocation5 + $0x198] sm:$0xff] }
 0x1d8   :  { %v3632_v6 = vmul.f32 -1.442695, %v1326_v4  ;;  %1541 = vmatpush.msrb.mxu3 %v4935_v10  ;;  %v4947_v4 = vld [vmem:[#allocation5 + $0x1d0] sm:$0xff]  ;;  %1581 = vmatpush.msrb.mxu1 %v4939_v60  ;;  %6343 = vst [vmem:[#allocation67_spill] sm:$0xff] %v4956_v46  ;;  %v4972_v60 = vld [vmem:[#allocation5 + $0x1a8] sm:$0xff] }
 0x1d9   :  { %1561 = vmatpush.msrb.mxu0 %v4937_v49  ;;  %1883 = vmatpush.msrb.mxu2 %v4816_v0  ;;  %v4977_v0 = vld [vmem:[#allocation5 + $0x180] sm:$0xff] }
 0x1da   :  { %v3768_v25 = vpop.eup %3767  ;;  %3769 = vpow2.f32 %v3632_v6  ;;  %1542 = vmatpush.msrb.mxu3 %v4944_v61  ;;  %v4961_v6 = vld [vmem:[#allocation5 + $0x1c0] sm:$0xff]  ;;  %1582 = vmatpush.msrb.mxu1 %v4949_v41  ;;  %v4980_v41 = vld [vmem:[#allocation5 + $0x188] sm:$0xff] }
 0x1db   :  { %v4952_v59 = vadd.f32 1.0, %v3768_v25  ;;  %6344 = vst [vmem:[#allocation68_spill] sm:$0xff] %v4961_v6  ;;  %1562 = vmatpush.msrb.mxu0 %v4947_v4  ;;  %v4970_v25 = vld [vmem:[#allocation5 + $0x1a0] sm:$0xff]  ;;  %1884 = vmatpush.msrb.mxu2 %v4834_v22 }
 0x1dc   :  { %1543 = vmatpush.msrb.mxu3 %v4956_v46  ;;  %1583 = vmatpush.msrb.mxu1 %v4961_v6 }
 0x1dd   :  { %3771 = vrcp.f32 %v4952_v59  ;;  %1563 = vmatpush.msrb.mxu0 %v4959_v63  ;;  %1885 = vmatpush.msrb.mxu2 %v4847_v51  ;;  %v1322_v51 = vand.u32 2147483648, %v4952_v59  ;;  %vm1316_vm9 = vweird.f32 %v4952_v59 }
 0x1de   :  { %1544 = vmatpush.msrb.mxu3 %v4967_v36  ;;  %1584 = vmatpush.msrb.mxu1 %v4972_v60 }
 0x1df   :  { %1564 = vmatpush.msrb.mxu0 %v4970_v25  ;;  %1886 = vmatpush.msrb.mxu2 %v4857_v32 }
 0x1e0   :  { %v3770_v54 = vpop.eup %3769  ;;  %1545 = vmatpush.msrb.mxu3 %v4977_v0  ;;  %1585 = vmatpush.msrb.mxu1 %v4982_v3 }
 0x1e1   :  { %v4985_v46 = vadd.f32 1.0, %v3770_v54  ;;  %1565 = vmatpush.msrb.mxu0 %v4980_v41  ;;  %1887 = vmatpush.msrb.mxu2 %v4867_v53  ;;  %v6356_v53 = vld [vmem:[#allocation57_spill] sm:$0xff] }
 0x1e2   :  { %1774 = vmatpush.msra.mxu3 %v4640_v58  ;;  %1862 = vmatpush.msra.mxu1 %v4801_v26  ;;  %v1320_v58 = vand.u32 2147483647, %v4952_v59  ;;  %v1255_v26 = vpop.f32.mrf.mxu3 }
 0x1e3   :  { %v3772_v22 = vpop.eup %3771  ;;  %3773 = vrcp.f32 %v4985_v46  ;;  %1794 = vmatpush.msra.mxu0 %v4642_v18  ;;  %1888 = vmatpush.msrb.mxu2 %v4877_v56  ;;  %vm1336_vm13 = vweird.f32 %v4985_v46  ;;  %v6359_v56 = vld [vmem:[#allocation60_spill] sm:$0xff] }
 0x1e4   :  { %v1312_v6 = vmul.f32 %v3772_v22, %v4952_v59  ;;  %1775 = vmatpush.msra.mxu3 %v4649_v50  ;;  %1863 = vmatpush.msra.mxu1 %v4814_v27  ;;  %vm1317_vm8 = vweird.f32 %v3772_v22  ;;  %v1323_v27 = vor.u32 1.1754944e-38, %v1322_v51  ;;  %vm1321_vm11 = vcmp.eq.f32.partialorder %v1320_v58, 8.507059e+37  ;;  %v6360_v59 = vld [vmem:[#allocation62_spill] sm:$0xff] }
 0x1e5   :  { %1795 = vmatpush.msra.mxu0 %v4651_v20  ;;  %1889 = vmatpush.msrb.mxu2 %v4889_v37  ;;  %vm1318_vm10 = vmor %vm1316_vm9, %vm1317_vm8 }
 0x1e6   :  { %v1313_v54 = vsub.f32 1.0, %v1312_v6  ;;  %1776 = vmatpush.msra.mxu3 %v4658_v35  ;;  %1864 = vmatpush.msra.mxu1 %v4832_v14  ;;  %v1346_v14 = vadd.f32 %v4621_v9, %v1255_v26  ;;  %v1340_v9 = vand.u32 2147483647, %v4985_v46 }
 0x1e7   :  { %1796 = vmatpush.msra.mxu0 %v4660_v19  ;;  %1890 = vmatpush.msrb.mxu2 %v4901_v38  ;;  %v6363_v38 = vld [vmem:[#allocation65_spill] sm:$0xff] }
 0x1e8   :  { %v1314_v32 = vmul.f32 %v3772_v22, %v1313_v54  ;;  %1777 = vmatpush.msra.mxu3 %v4667_v42  ;;  %1865 = vmatpush.msra.mxu1 %v4845_v24  ;;  %vm1341_vm15 = vcmp.eq.f32.partialorder %v1340_v9, 8.507059e+37 }
 0x1e9   :  { %v3774_v18 = vpop.eup %3773  ;;  %1797 = vmatpush.msra.mxu0 %v4669_v1  ;;  %1891 = vmatpush.msrb.mxu2 %v4914_v15  ;;  %v1342_v1 = vand.u32 2147483648, %v4985_v46  ;;  %v6366_v15 = vld [vmem:[#allocation20_spill] sm:$0xff] }
 0x1ea   :  { %v1332_v50 = vmul.f32 %v3774_v18, %v4985_v46  ;;  %v1315_v20 = vadd.f32 %v3772_v22, %v1314_v32  ;;  %1778 = vmatpush.msra.mxu3 %v4676_v48  ;;  %1866 = vmatpush.msra.mxu1 %v4855_v44  ;;  %vm1337_vm12 = vweird.f32 %v3774_v18  ;;  %v6354_v44 = vld [vmem:[#allocation55_spill] sm:$0xff] }
 0x1eb   :  { %1798 = vmatpush.msra.mxu0 %v4678_v13  ;;  %1892 = vmatpush.msrb.mxu2 %v4927_v29  ;;  %vm1338_vm14 = vmor %vm1336_vm13, %vm1337_vm12  ;;  %v6368_v29 = vld [vmem:[#allocation13_spill] sm:$0xff] }
 0x1ec   :  { %v1333_v35 = vsub.f32 1.0, %v1332_v50  ;;  %v1319_v19 = vsel %vm1318_vm10, %v3772_v22, %v1315_v20  ;;  %1779 = vmatpush.msra.mxu3 %v4685_v57  ;;  %1867 = vmatpush.msra.mxu1 %v4865_v2  ;;  %v1343_v57 = vor.u32 1.1754944e-38, %v1342_v1  ;;  %v6355_v2 = vld [vmem:[#allocation56_spill] sm:$0xff] }
 0x1ed   :  { %v1324_v37 = vsel %vm1321_vm11, %v1323_v27, %v1319_v19  ;;  %1799 = vmatpush.msra.mxu0 %v4687_v16  ;;  %1893 = vmatpush.msrb.mxu2 %v4937_v49  ;;  %v6369_v49 = vld [vmem:[#allocation25_spill] sm:$0xff] }
 0x1ee   :  { %v1334_v42 = vmul.f32 %v3774_v18, %v1333_v35  ;;  %v1347_v24 = vmul.f32 %v1346_v14, %v1324_v37  ;;  %1780 = vmatpush.msra.mxu3 %v4694_v12  ;;  %1868 = vmatpush.msra.mxu1 %v4875_v47  ;;  %v6358_v47 = vld [vmem:[#allocation59_spill] sm:$0xff] }
 0x1ef   :  { %1800 = vmatpush.msra.mxu0 %v4696_v40  ;;  %1894 = vmatpush.msrb.mxu2 %v4947_v4 }
 0x1f0   :  { %v1335_v48 = vadd.f32 %v3774_v18, %v1334_v42  ;;  %v1348_v13 = vadd.f32 %v1347_v24, %v4560_v55  ;;  %1781 = vmatpush.msra.mxu3 %v4706_v62  ;;  %1869 = vmatpush.msra.mxu1 %v4887_v33  ;;  %v6357_v33 = vld [vmem:[#allocation58_spill] sm:$0xff]  ;;  %v5097_v24 = vld [vmem:[%s6138_s4] ss:$0 sm:$0xff] }
 0x1f1   :  { %1801 = vmatpush.msra.mxu0 %v4708_v34  ;;  %1895 = vmatpush.msrb.mxu2 %v4959_v63  ;;  %v6361_v63 = vld [vmem:[#allocation63_spill] sm:$0xff] }
 0x1f2   :  { %v1339_v16 = vsel %vm1338_vm14, %v3774_v18, %v1335_v48  ;;  %3775 = vtanh.f32 %v1348_v13  ;;  %1782 = vmatpush.msra.mxu3 %v4713_v7  ;;  %1870 = vmatpush.msra.mxu1 %v4899_v30  ;;  %v6348_v7 = vld [vmem:[#allocation50_spill] sm:$0xff]  ;;  %v6362_v30 = vld [vmem:[#allocation64_spill] sm:$0xff] }
 0x1f3   :  { %v1344_v55 = vsel %vm1341_vm15, %v1343_v57, %v1339_v16  ;;  %1802 = vmatpush.msra.mxu0 %v4717_v21  ;;  %1896 = vmatpush.msrb.mxu2 %v4970_v25 }
 0x1f4   :  { %1783 = vmatpush.msra.mxu3 %v4722_v11  ;;  %v1350_v62 = vsub.f32 1.0, %v1344_v55  ;;  %1871 = vmatpush.msra.mxu1 %v4912_v52  ;;  %v1352_v21 = vmul.f32 %v1344_v55, %v4628_v39  ;;  %v6345_v39 = vld [vmem:[#allocation47_spill] sm:$0xff]  ;;  %v6365_v52 = vld [vmem:[#allocation68_spill] sm:$0xff] }
 0x1f5   :  { %1803 = vmatpush.msra.mxu0 %v4726_v28  ;;  %1897 = vmatpush.msrb.mxu2 %v4980_v41  ;;  %v6349_v28 = vld [vmem:[#allocation67_spill] sm:$0xff]  ;;  %v6367_v41 = vld [vmem:[#allocation9_spill] sm:$0xff] }
 0x1f6   :  { %1784 = vmatpush.msra.mxu3 %v4731_v45  ;;  %1872 = vmatpush.msra.mxu1 %v4925_v23  ;;  %v6350_v45 = vld [vmem:[#allocation51_spill] sm:$0xff]  ;;  %v275_v23 = vadd.f32 %v6367_v41, %v6366_v15 }
 0x1f7   :  { %1804 = vmatpush.msra.mxu0 %v4735_v43  ;;  %v6351_v43 = vld [vmem:[#allocation52_spill] sm:$0xff] }
 0x1f8   :  { %v3776_v34 = vpop.eup %3775  ;;  %1785 = vmatpush.msra.mxu3 %v4740_v8  ;;  %1873 = vmatpush.msra.mxu1 %v4935_v10  ;;  %v6352_v8 = vld [vmem:[#allocation53_spill] sm:$0xff]  ;;  %v6364_v10 = vld [vmem:[#allocation66_spill] sm:$0xff] }
 0x1f9   :  { %v1351_v12 = vmul.f32 %v3776_v34, %v1350_v62  ;;  %1805 = vmatpush.msra.mxu0 %v4744_v5  ;;  %v6346_v5 = vld [vmem:[#allocation48_spill] sm:$0xff]  ;;  %v6370_v62 = vld [vmem:[#allocation11_spill] sm:$0xff] }
 0x1fa   :  { %1786 = vmatpush.msra.mxu3 %v4749_v17  ;;  %1874 = vmatpush.msra.mxu1 %v4944_v61  ;;  %v6347_v17 = vld [vmem:[#allocation49_spill] sm:$0xff]  ;;  %v304_v61 = vadd.f32 %v6369_v49, %v6368_v29 }
 0x1fb   :  { %v5051_v11 = vadd.f32 %v1352_v21, %v1351_v12  ;;  %1806 = vmatpush.msra.mxu0 %v4753_v31  ;;  %v6353_v31 = vld [vmem:[#allocation54_spill] sm:$0xff] }
 0x1fc   :  { %1787 = vmatpush.msra.mxu3 %v6345_v39  ;;  %1875 = vmatpush.msra.mxu1 %v6349_v28  ;;  %v6371_v28 = vld [vmem:[#allocation61_spill] sm:$0xff] }
 0x1fd   :  { %v1357_v40 = vpack.c.bf16 %v5051_v11, %v5051_v11  ;;  %1546 = vmatmul.f32.vlgmr.msrb.gmra.mxu3 %v5051_v11  ;;  %1566 = vmatmul.f32.vlgmr.msrb.gmra.mxu0 %v5051_v11 }
 0x1fe   :  { %1586 = vmatmul.f32.vlgmr.msrb.gmra.mxu1 %v5051_v11  ;;  %1807 = vmatpush.msra.mxu0 %v6346_v5 }
 0x1ff   :  { %3634 = vst [vmem:[%s6139_s5 + $0x24] sm:$0xf] %v1357_v40  ;;  %1788 = vmatpush.msra.mxu3 %v6347_v17  ;;  %1876 = vmatpush.msra.mxu1 %v4967_v36 }
 0x200   :  { %1808 = vmatpush.msra.mxu0 %v6348_v7 }
 0x201   :  { %1789 = vmatpush.msra.mxu3 %v6350_v45  ;;  %1877 = vmatpush.msra.mxu1 %v4977_v0 }
 0x202   :  { %1809 = vmatpush.msra.mxu0 %v6351_v43  ;;  %v6372_v43 = vld [vmem:[#allocation35_spill] sm:$0xff] }
 0x203   :  { %1902 = vmatpush.msrb.mxu3 %v6352_v8 }
 0x205   :  { %1903 = vmatpush.msrb.mxu3 %v6353_v31 }
 0x207   :  { %1904 = vmatpush.msrb.mxu3 %v6354_v44 }
 0x209   :  { %1905 = vmatpush.msrb.mxu3 %v6355_v2 }
 0x20b   :  { %1906 = vmatpush.msrb.mxu3 %v6356_v53 }
 0x20d   :  { %1907 = vmatpush.msrb.mxu3 %v6357_v33  ;;  %v6373_v33 = vld [vmem:[#allocation27_spill] sm:$0xff] }
 0x20f   :  { %1908 = vmatpush.msrb.mxu3 %v6358_v47 }
 0x211   :  { %1909 = vmatpush.msrb.mxu3 %v6359_v56 }
 0x213   :  { %1910 = vmatpush.msrb.mxu3 %v6360_v59 }
 0x215   :  { %1911 = vmatpush.msrb.mxu3 %v6361_v63 }
 0x217   :  { %1912 = vmatpush.msrb.mxu3 %v6362_v30 }
 0x219   :  { %1913 = vmatpush.msrb.mxu3 %v6363_v38 }
 0x21b   :  { %1914 = vmatpush.msrb.mxu3 %v6364_v10 }
 0x21d   :  { %1915 = vmatpush.msrb.mxu3 %v6365_v52 }
 0x21f   :  { %1916 = vmatpush.msrb.mxu3 %v4972_v60 }
 0x221   :  { %1917 = vmatpush.msrb.mxu3 %v4982_v3 }
 0x250   :  { %v1439_v4 = vpop.f32.mrf.mxu0  ;;  %v1459_v46 = vpop.f32.mrf.mxu1 }
 0x251   :  { %v1590_v6 = vadd.f32 %v1439_v4, %v275_v23  ;;  %v1610_v36 = vadd.f32 %v1459_v46, %v304_v61 }
 0x253   :  { %v3635_v25 = vmul.f32 -1.442695, %v1590_v6  ;;  %v3636_v0 = vmul.f32 -1.442695, %v1610_v36 }
 0x255   :  { %3777 = vpow2.f32 %v3635_v25 }
 0x256   :  { %3779 = vpow2.f32 %v3636_v0  ;;  %v5117_v0 = vld [vmem:[%s6138_s4 + $0x1] ss:$0 sm:$0xff] }
 0x257   :  { %v1479_v14 = vpop.f32.mrf.mxu2 }
 0x258   :  { %v1630_v9 = vadd.f32 %v5097_v24, %v1479_v14 }
 0x25b   :  { %v3778_v22 = vpop.eup %3777 }
 0x25c   :  { %v3780_v54 = vpop.eup %3779  ;;  %v1594_v51 = vadd.f32 1.0, %v3778_v22 }
 0x25d   :  { %v1614_v60 = vadd.f32 1.0, %v3780_v54 }
 0x25e   :  { %3781 = vrcp.f32 %v1594_v51  ;;  %v1606_v20 = vand.u32 2147483648, %v1594_v51  ;;  %v1604_v35 = vand.u32 2147483647, %v1594_v51  ;;  %vm1600_vm1 = vweird.f32 %v1594_v51 }
 0x25f   :  { %3783 = vrcp.f32 %v1614_v60  ;;  %v1626_v57 = vand.u32 2147483648, %v1614_v60  ;;  %vm1620_vm5 = vweird.f32 %v1614_v60  ;;  %v1624_v55 = vand.u32 2147483647, %v1614_v60 }
 0x260   :  { %v1607_v42 = vor.u32 1.1754944e-38, %v1606_v20  ;;  %vm1605_vm3 = vcmp.eq.f32.partialorder %v1604_v35, 8.507059e+37 }
 0x261   :  { %v1627_v21 = vor.u32 1.1754944e-38, %v1626_v57  ;;  %vm1625_vm7 = vcmp.eq.f32.partialorder %v1624_v55, 8.507059e+37  ;;  %v5143_v57 = vld [vmem:[#allocation5 + $0x158] sm:$0xff] }
 0x262   :  { %v5150_v55 = vld [vmem:[#allocation5 + $0x138] sm:$0xff] }
 0x264   :  { %v3782_v3 = vpop.eup %3781 }
 0x265   :  { %v3784_v32 = vpop.eup %3783  ;;  %v1596_v58 = vmul.f32 %v3782_v3, %v1594_v51  ;;  %vm1601_vm0 = vweird.f32 %v3782_v3 }
 0x266   :  { %v1616_v18 = vmul.f32 %v3784_v32, %v1614_v60  ;;  %vm1602_vm2 = vmor %vm1600_vm1, %vm1601_vm0  ;;  %vm1621_vm4 = vweird.f32 %v3784_v32 }
 0x267   :  { %v1597_v26 = vsub.f32 1.0, %v1596_v58  ;;  %vm1622_vm6 = vmor %vm1620_vm5, %vm1621_vm4 }
 0x268   :  { %v1617_v50 = vsub.f32 1.0, %v1616_v18  ;;  %v6374_v18 = vld [vmem:[#allocation36_spill] sm:$0xff] }
 0x269   :  { %v1598_v27 = vmul.f32 %v3782_v3, %v1597_v26 }
 0x26a   :  { %v1618_v19 = vmul.f32 %v3784_v32, %v1617_v50 }
 0x26b   :  { %v1599_v37 = vadd.f32 %v3782_v3, %v1598_v27 }
 0x26c   :  { %v1619_v48 = vadd.f32 %v3784_v32, %v1618_v19 }
 0x26d   :  { %v1603_v1 = vsel %vm1602_vm2, %v3782_v3, %v1599_v37 }
 0x26e   :  { %v1608_v13 = vsel %vm1605_vm3, %v1607_v42, %v1603_v1  ;;  %v1623_v12 = vsel %vm1622_vm6, %v3784_v32, %v1619_v48  ;;  %v5134_v48 = vld [vmem:[#allocation5 + $0x170] sm:$0xff] }
 0x26f   :  { %v1631_v16 = vmul.f32 %v1630_v9, %v1608_v13  ;;  %v1628_v40 = vsel %vm1625_vm7, %v1627_v21, %v1623_v12  ;;  %v5132_v9 = vld [vmem:[#allocation5 + $0x168] sm:$0xff]  ;;  %2106 = vmatpush.msrb.mxu1 %v5134_v48  ;;  %v5141_v13 = vld [vmem:[#allocation5 + $0x150] sm:$0xff]  ;;  %v5159_v12 = vld [vmem:[#allocation5 + $0x120] sm:$0xff] }
 0x270   :  { %v1634_v39 = vsub.f32 1.0, %v1628_v40  ;;  %v1636_v45 = vmul.f32 %v1628_v40, %v6371_v28  ;;  %2086 = vmatpush.msrb.mxu0 %v5132_v9  ;;  %v5161_v21 = vld [vmem:[#allocation5 + $0x128] sm:$0xff]  ;;  %v5163_v40 = vld [vmem:[#allocation5 + $0x130] sm:$0xff]  ;;  %v5179_v28 = vld [vmem:[#allocation5 + $0xf8] sm:$0xff] }
 0x271   :  { %v1632_v34 = vadd.f32 %v1631_v16, %v6370_v62  ;;  %v5145_v16 = vld [vmem:[#allocation5 + $0x160] sm:$0xff]  ;;  %2107 = vmatpush.msrb.mxu1 %v5143_v57 }
 0x272   :  { %2087 = vmatpush.msrb.mxu0 %v5141_v13  ;;  %v5152_v62 = vld [vmem:[#allocation5 + $0x140] sm:$0xff] }
 0x273   :  { %3785 = vtanh.f32 %v1632_v34  ;;  %v5154_v34 = vld [vmem:[#allocation5 + $0x148] sm:$0xff]  ;;  %2108 = vmatpush.msrb.mxu1 %v5152_v62 }
 0x274   :  { %2088 = vmatpush.msrb.mxu0 %v5150_v55 }
 0x275   :  { %2109 = vmatpush.msrb.mxu1 %v5161_v21 }
 0x276   :  { %2089 = vmatpush.msrb.mxu0 %v5159_v12 }
 0x279   :  { %v3786_v5 = vpop.eup %3785 }
 0x27a   :  { %v1635_v17 = vmul.f32 %v3786_v5, %v1634_v39  ;;  %v1567_v7 = vpop.f32.mrf.mxu0  ;;  %v5168_v39 = vld [vmem:[#allocation5 + $0x108] sm:$0xff]  ;;  %v5170_v5 = vld [vmem:[#allocation5 + $0x110] sm:$0xff] }
 0x27b   :  { %v1658_v8 = vadd.f32 %v1567_v7, %v6372_v43  ;;  %v1587_v6 = vpop.f32.mrf.mxu1  ;;  %2090 = vmatpush.msrb.mxu0 %v5168_v39  ;;  %2110 = vmatpush.msrb.mxu1 %v5170_v5  ;;  %v5177_v7 = vld [vmem:[#allocation5 + $0xf0] sm:$0xff]  ;;  %v5186_v43 = vld [vmem:[#allocation5 + $0xd8] sm:$0xff] }
 0x27c   :  { %v5103_v31 = vadd.f32 %v1636_v45, %v1635_v17  ;;  %v1678_v22 = vadd.f32 %v5117_v0, %v1587_v6  ;;  %v5172_v17 = vld [vmem:[#allocation5 + $0x118] sm:$0xff]  ;;  %v5181_v45 = vld [vmem:[#allocation5 + $0x100] sm:$0xff]  ;;  %v5227_v6 = vld [vmem:[#allocation5 + $0x88] sm:$0xff] }
 0x27d   :  { %v3638_v44 = vmul.f32 -1.442695, %v1658_v8  ;;  %2091 = vmatpush.msrb.mxu0 %v5177_v7  ;;  %2111 = vmatpush.msrb.mxu1 %v5179_v28  ;;  %v5188_v8 = vld [vmem:[#allocation5 + $0xe0] sm:$0xff] }
 0x27e   :  { %v1686_v2 = vpack.c.bf16 %v5103_v31, %v5103_v31  ;;  %1770 = vmatmul.f32.vlgmr.msra.gmra.mxu2 %v5103_v31  ;;  %1790 = vmatmul.f32.vlgmr.msra.gmra.mxu3 %v5103_v31 }
 0x27f   :  { %3787 = vpow2.f32 %v3638_v44  ;;  %1810 = vmatmul.f32.vlgmr.msra.gmra.mxu0 %v5103_v31  ;;  %v5190_v44 = vld [vmem:[#allocation5 + $0xe8] sm:$0xff]  ;;  %2112 = vmatpush.msrb.mxu1 %v5188_v8 }
 0x280   :  { %3639 = vst [vmem:[%s6139_s5 + $0x8] sm:$0xf] %v1686_v2  ;;  %v1547_v53 = vpop.f32.mrf.mxu3  ;;  %2092 = vmatpush.msrb.mxu0 %v5186_v43  ;;  %v5194_v2 = vld [vmem:[#allocation5 + $0xc0] sm:$0xff] }
 0x281   :  { %v1638_v47 = vadd.f32 %v1547_v53, %v6373_v33  ;;  %v5196_v53 = vld [vmem:[#allocation5 + $0xc8] sm:$0xff]  ;;  %v5198_v33 = vld [vmem:[#allocation5 + $0xd0] sm:$0xff] }
 0x282   :  { %2093 = vmatpush.msrb.mxu0 %v5194_v2  ;;  %2113 = vmatpush.msrb.mxu1 %v5196_v53 }
 0x283   :  { %v3637_v56 = vmul.f32 -1.442695, %v1638_v47 }
 0x285   :  { %v3788_v59 = vpop.eup %3787  ;;  %3789 = vpow2.f32 %v3637_v56 }
 0x286   :  { %v1662_v63 = vadd.f32 1.0, %v3788_v59  ;;  %v5201_v59 = vld [vmem:[#allocation5 + $0xa8] sm:$0xff] }
 0x287   :  { %2094 = vmatpush.msrb.mxu0 %v5201_v59 }
 0x288   :  { %3791 = vrcp.f32 %v1662_v63  ;;  %v1674_v3 = vand.u32 2147483648, %v1662_v63  ;;  %vm1668_vm13 = vweird.f32 %v1662_v63  ;;  %v1672_v58 = vand.u32 2147483647, %v1662_v63 }
 0x28a   :  { %v1675_v20 = vor.u32 1.1754944e-38, %v1674_v3  ;;  %vm1673_vm15 = vcmp.eq.f32.partialorder %v1672_v58, 8.507059e+37  ;;  %v5248_v3 = vld [vmem:[#allocation5 + $0x30] sm:$0xff] }
 0x28b   :  { %v3790_v30 = vpop.eup %3789 }
 0x28c   :  { %v1642_v38 = vadd.f32 1.0, %v3790_v30  ;;  %v6375_v30 = vld [vmem:[#allocation23_spill] sm:$0xff] }
 0x28e   :  { %3793 = vrcp.f32 %v1642_v38  ;;  %v3792_v10 = vpop.eup %3791  ;;  %v1654_v49 = vand.u32 2147483648, %v1642_v38  ;;  %v1652_v4 = vand.u32 2147483647, %v1642_v38  ;;  %vm1648_vm9 = vweird.f32 %v1642_v38 }
 0x28f   :  { %v1664_v52 = vmul.f32 %v3792_v10, %v1662_v63  ;;  %vm1669_vm12 = vweird.f32 %v3792_v10  ;;  %v5203_v63 = vld [vmem:[#allocation5 + $0xb0] sm:$0xff] }
 0x290   :  { %v1655_v25 = vor.u32 1.1754944e-38, %v1654_v49  ;;  %vm1653_vm11 = vcmp.eq.f32.partialorder %v1652_v4, 8.507059e+37  ;;  %vm1670_vm14 = vmor %vm1668_vm13, %vm1669_vm12  ;;  %2114 = vmatpush.msrb.mxu1 %v5203_v63  ;;  %v5221_v4 = vld [vmem:[#allocation5 + $0x78] sm:$0xff] }
 0x291   :  { %v1665_v23 = vsub.f32 1.0, %v1664_v52 }
 0x293   :  { %v1666_v46 = vmul.f32 %v3792_v10, %v1665_v23  ;;  %v5214_v23 = vld [vmem:[#allocation5 + $0x98] sm:$0xff] }
 0x294   :  { %v3794_v15 = vpop.eup %3793  ;;  %2115 = vmatpush.msrb.mxu1 %v5214_v23 }
 0x295   :  { %v1644_v41 = vmul.f32 %v3794_v15, %v1642_v38  ;;  %vm1649_vm8 = vweird.f32 %v3794_v15  ;;  %v1667_v51 = vadd.f32 %v3792_v10, %v1666_v46  ;;  %v5223_v46 = vld [vmem:[#allocation5 + $0x80] sm:$0xff] }
 0x296   :  { %vm1650_vm10 = vmor %vm1648_vm9, %vm1649_vm8  ;;  %2116 = vmatpush.msrb.mxu1 %v5223_v46 }
 0x297   :  { %v1645_v29 = vsub.f32 1.0, %v1644_v41  ;;  %v1671_v50 = vsel %vm1670_vm14, %v3792_v10, %v1667_v51  ;;  %v6376_v10 = vld [vmem:[#allocation15_spill] sm:$0xff] }
 0x298   :  { %v1676_v27 = vsel %vm1673_vm15, %v1675_v20, %v1671_v50  ;;  %v5212_v41 = vld [vmem:[#allocation5 + $0x90] sm:$0xff] }
 0x299   :  { %v1646_v61 = vmul.f32 %v3794_v15, %v1645_v29  ;;  %v1682_v35 = vsub.f32 1.0, %v1676_v27  ;;  %v1684_v37 = vmul.f32 %v1676_v27, %v5051_v11  ;;  %v5136_v11 = vld [vmem:[#allocation5 + $0x178] sm:$0xff]  ;;  %2095 = vmatpush.msrb.mxu0 %v5212_v41  ;;  %v5241_v51 = vld [vmem:[#allocation5 + $0x50] sm:$0xff] }
 0x29a   :  { %2126 = vmatpush.msra.mxu2 %v5136_v11  ;;  %v5262_v27 = vld [vmem:[#allocation5 + $0x18] sm:$0xff] }
 0x29b   :  { %v1647_v36 = vadd.f32 %v3794_v15, %v1646_v61  ;;  %v5218_v61 = vld [vmem:[#allocation5 + $0xa0] sm:$0xff]  ;;  %2096 = vmatpush.msrb.mxu0 %v5221_v4 }
 0x29c   :  { %2127 = vmatpush.msra.mxu2 %v5145_v16 }
 0x29d   :  { %v1651_v54 = vsel %vm1650_vm10, %v3794_v15, %v1647_v36  ;;  %v5209_v15 = vld [vmem:[#allocation5 + $0xb8] sm:$0xff]  ;;  %v5230_v36 = vld [vmem:[#allocation5 + $0x60] sm:$0xff] }
 0x29e   :  { %v1656_v60 = vsel %vm1653_vm11, %v1655_v25, %v1651_v54  ;;  %2128 = vmatpush.msra.mxu2 %v5154_v34  ;;  %v5232_v25 = vld [vmem:[#allocation5 + $0x68] sm:$0xff]  ;;  %2097 = vmatpush.msrb.mxu0 %v5230_v36 }
 0x29f   :  { %v1679_v32 = vmul.f32 %v1678_v22, %v1656_v60  ;;  %v5236_v22 = vld [vmem:[#allocation5 + $0x70] sm:$0xff]  ;;  %v5239_v54 = vld [vmem:[#allocation5 + $0x48] sm:$0xff]  ;;  %2117 = vmatpush.msrb.mxu1 %v5232_v25  ;;  %v5245_v60 = vld [vmem:[#allocation5 + $0x58] sm:$0xff] }
 0x2a0   :  { %2129 = vmatpush.msra.mxu2 %v5163_v40  ;;  %2098 = vmatpush.msrb.mxu0 %v5239_v54 }
 0x2a1   :  { %v1680_v26 = vadd.f32 %v1679_v32, %v6374_v18  ;;  %v5250_v32 = vld [vmem:[#allocation5 + $0x38] sm:$0xff]  ;;  %2118 = vmatpush.msrb.mxu1 %v5241_v51  ;;  %v5254_v18 = vld [vmem:[#allocation5 + $0x40] sm:$0xff] }
 0x2a2   :  { %2130 = vmatpush.msra.mxu2 %v5172_v17  ;;  %2099 = vmatpush.msrb.mxu0 %v5248_v3 }
 0x2a3   :  { %3795 = vtanh.f32 %v1680_v26  ;;  %2119 = vmatpush.msrb.mxu1 %v5250_v32 }
 0x2a4   :  { %2131 = vmatpush.msra.mxu2 %v5181_v45  ;;  %2100 = vmatpush.msrb.mxu0 %v5262_v27 }
 0x2a6   :  { %2132 = vmatpush.msra.mxu2 %v5190_v44 }
 0x2a8   :  { %2133 = vmatpush.msra.mxu2 %v5198_v33 }
 0x2a9   :  { %v3796_v19 = vpop.eup %3795 }
 0x2aa   :  { %v1683_v14 = vmul.f32 %v3796_v19, %v1682_v35  ;;  %2134 = vmatpush.msra.mxu2 %v5209_v15  ;;  %v5264_v35 = vld [vmem:[#allocation5 + $0x20] sm:$0xff]  ;;  %v5266_v19 = vld [vmem:[#allocation5 + $0x28] sm:$0xff] }
 0x2ab   :  { %6377 = vst [vmem:[#allocation47_spill] sm:$0xff] %v5264_v35  ;;  %2120 = vmatpush.msrb.mxu1 %v5264_v35 }
 0x2ac   :  { %v5122_v42 = vadd.f32 %v1684_v37, %v1683_v14  ;;  %2135 = vmatpush.msra.mxu2 %v5218_v61  ;;  %6378 = vst [vmem:[#allocation48_spill] sm:$0xff] %v5266_v19  ;;  %v5272_v14 = vld [vmem:[#allocation5] sm:$0xff]  ;;  %v5274_v37 = vld [vmem:[#allocation5 + $0x8] sm:$0xff] }
 0x2ad   :  { %6379 = vst [vmem:[#allocation49_spill] sm:$0xff] %v5274_v37  ;;  %2101 = vmatpush.msrb.mxu0 %v5272_v14  ;;  %2121 = vmatpush.msrb.mxu1 %v5274_v37 }
 0x2ae   :  { %v1689_v1 = vpack.c.bf16 %v5122_v42, %v5122_v42  ;;  %1878 = vmatmul.f32.vlgmr.msra.gmra.mxu1 %v5122_v42  ;;  %1898 = vmatmul.f32.vlgmr.msrb.gmra.mxu2 %v5122_v42 }
 0x2af   :  { %1918 = vmatmul.f32.vlgmr.msrb.gmra.mxu3 %v5122_v42  ;;  %2136 = vmatpush.msra.mxu2 %v5227_v6 }
 0x2b0   :  { %3640 = vst [vmem:[%s6139_s5 + $0x28] sm:$0xf] %v1689_v1  ;;  %v5276_v1 = vld [vmem:[#allocation5 + $0x10] sm:$0xff] }
 0x2b1   :  { %2137 = vmatpush.msra.mxu2 %v5236_v22  ;;  %6380 = vst [vmem:[#allocation50_spill] sm:$0xff] %v5276_v1 }
 0x2b3   :  { %2138 = vmatpush.msra.mxu2 %v5245_v60 }
 0x2b5   :  { %2139 = vmatpush.msra.mxu2 %v5254_v18 }
 0x2b7   :  { %2140 = vmatpush.msra.mxu2 %v5266_v19 }
 0x2b9   :  { %2141 = vmatpush.msra.mxu2 %v5276_v1 }
 0x2bb   :  { %2418 = vmatpush.msrb.mxu2 %v5132_v9 }
 0x2bd   :  { %2419 = vmatpush.msrb.mxu2 %v5141_v13 }
 0x2bf   :  { %2420 = vmatpush.msrb.mxu2 %v5150_v55  ;;  %v5293_v55 = vld [vmem:[#allocation5 + $0x2e8] sm:$0xff] }
 0x2c0   :  { %2194 = vmatpush.msra.mxu3 %v5293_v55 }
 0x2c1   :  { %2421 = vmatpush.msrb.mxu2 %v5159_v12  ;;  %v5297_v12 = vld [vmem:[#allocation5 + $0x2f8] sm:$0xff] }
 0x2c2   :  { %6381 = vst [vmem:[#allocation67_spill] sm:$0xff] %v5297_v12  ;;  %2234 = vmatpush.msra.mxu1 %v5297_v12  ;;  %v5383_v12 = vld [vmem:[#allocation5 + $0x250] sm:$0xff] }
 0x2c3   :  { %2422 = vmatpush.msrb.mxu2 %v5168_v39  ;;  %6392 = vst [vmem:[#allocation57_spill] sm:$0xff] %v5383_v12 }
 0x2c5   :  { %2423 = vmatpush.msrb.mxu2 %v5177_v7  ;;  %v5361_v7 = vld [vmem:[#allocation5 + $0x280] sm:$0xff] }
 0x2c6   :  { %6389 = vst [vmem:[#allocation55_spill] sm:$0xff] %v5361_v7 }
 0x2c7   :  { %2424 = vmatpush.msrb.mxu2 %v5186_v43  ;;  %v5328_v43 = vld [vmem:[#allocation5 + $0x2c8] sm:$0xff] }
 0x2c8   :  { %6386 = vst [vmem:[#allocation52_spill] sm:$0xff] %v5328_v43 }
 0x2c9   :  { %2425 = vmatpush.msrb.mxu2 %v5194_v2 }
 0x2cb   :  { %2426 = vmatpush.msrb.mxu2 %v5201_v59  ;;  %v5357_v59 = vld [vmem:[#allocation5 + $0x270] sm:$0xff] }
 0x2cd   :  { %2427 = vmatpush.msrb.mxu2 %v5212_v41 }
 0x2cf   :  { %2428 = vmatpush.msrb.mxu2 %v5221_v4 }
 0x2d1   :  { %2429 = vmatpush.msrb.mxu2 %v5230_v36 }
 0x2d3   :  { %2430 = vmatpush.msrb.mxu2 %v5239_v54 }
 0x2d5   :  { %2431 = vmatpush.msrb.mxu2 %v5248_v3 }
 0x2d7   :  { %2432 = vmatpush.msrb.mxu2 %v5262_v27  ;;  %v5436_v27 = vld [vmem:[#allocation5 + $0x1c8] sm:$0xff] }
 0x2d8   :  { %6399 = vst [vmem:[#allocation64_spill] sm:$0xff] %v5436_v27 }
 0x2d9   :  { %2433 = vmatpush.msrb.mxu2 %v5272_v14  ;;  %v5448_v14 = vld [vmem:[#allocation5 + $0x1b0] sm:$0xff] }
 0x2da   :  { %6401 = vst [vmem:[#allocation66_spill] sm:$0xff] %v5448_v14 }
 0x2fc   :  { %v1811_v9 = vpop.f32.mrf.mxu0 }
 0x301   :  { %v1771_v47 = vpop.f32.mrf.mxu2  ;;  %v1791_v56 = vpop.f32.mrf.mxu3 }
 0x302   :  { %v1922_v38 = vadd.f32 %v1771_v47, %v6375_v30  ;;  %v1942_v52 = vadd.f32 %v1791_v56, %v6376_v10 }
 0x304   :  { %v3641_v29 = vmul.f32 -1.442695, %v1922_v38  ;;  %v3642_v49 = vmul.f32 -1.442695, %v1942_v52 }
 0x306   :  { %3797 = vpow2.f32 %v3641_v29 }
 0x307   :  { %3799 = vpow2.f32 %v3642_v49 }
 0x30c   :  { %v3798_v58 = vpop.eup %3797 }
 0x30d   :  { %v3800_v26 = vpop.eup %3799  ;;  %v1926_v50 = vadd.f32 1.0, %v3798_v58 }
 0x30e   :  { %v5257_v20 = vadd.f32 1.0, %v3800_v26 }
 0x30f   :  { %3801 = vrcp.f32 %v1926_v50  ;;  %v1938_v52 = vand.u32 2147483648, %v1926_v50  ;;  %v1936_v58 = vand.u32 2147483647, %v1926_v50  ;;  %vm1932_vm1 = vweird.f32 %v1926_v50 }
 0x310   :  { %3803 = vrcp.f32 %v5257_v20  ;;  %vm1952_vm5 = vweird.f32 %v5257_v20  ;;  %v1958_v39 = vand.u32 2147483648, %v5257_v20 }
 0x311   :  { %v1939_v13 = vor.u32 1.1754944e-38, %v1938_v52  ;;  %vm1937_vm3 = vcmp.eq.f32.partialorder %v1936_v58, 8.507059e+37  ;;  %v5310_v52 = vld [vmem:[#allocation5 + $0x2e0] sm:$0xff]  ;;  %v5324_v58 = vld [vmem:[#allocation5 + $0x2b8] sm:$0xff] }
 0x312   :  { %6382 = vst [vmem:[#allocation51_spill] sm:$0xff] %v5310_v52  ;;  %2235 = vmatpush.msra.mxu1 %v5310_v52  ;;  %v5381_v52 = vld [vmem:[#allocation5 + $0x248] sm:$0xff] }
 0x314   :  { %2236 = vmatpush.msra.mxu1 %v5328_v43 }
 0x315   :  { %v3802_v47 = vpop.eup %3801 }
 0x316   :  { %v5282_v56 = vpop.eup %3803  ;;  %v1928_v30 = vmul.f32 %v3802_v47, %v1926_v50  ;;  %vm1933_vm0 = vweird.f32 %v3802_v47 }
 0x317   :  { %v1948_v38 = vmul.f32 %v5282_v56, %v5257_v20  ;;  %vm1934_vm2 = vmor %vm1932_vm1, %vm1933_vm0  ;;  %vm1953_vm4 = vweird.f32 %v5282_v56 }
 0x318   :  { %v1929_v10 = vsub.f32 1.0, %v1928_v30  ;;  %v1962_v30 = vadd.f32 %v5097_v24, %v1811_v9  ;;  %vm5315_vm6 = vmor %vm1952_vm5, %vm1953_vm4  ;;  %v5326_v9 = vld [vmem:[#allocation5 + $0x2c0] sm:$0xff] }
 0x319   :  { %v1949_v29 = vsub.f32 1.0, %v1948_v38  ;;  %v5295_v38 = vld [vmem:[#allocation5 + $0x2f0] sm:$0xff] }
 0x31a   :  { %v1930_v49 = vmul.f32 %v3802_v47, %v1929_v10  ;;  %2214 = vmatpush.msra.mxu0 %v5295_v38 }
 0x31b   :  { %v1950_v26 = vmul.f32 %v5282_v56, %v1949_v29  ;;  %v6385_v29 = vld [vmem:[#allocation29_spill] sm:$0xff] }
 0x31c   :  { %v1931_v1 = vadd.f32 %v3802_v47, %v1930_v49 }
 0x31d   :  { %v1951_v50 = vadd.f32 %v5282_v56, %v1950_v26  ;;  %v1959_v26 = vor.u32 1.1754944e-38, %v1958_v39  ;;  %v5359_v39 = vld [vmem:[#allocation5 + $0x278] sm:$0xff] }
 0x31e   :  { %v1935_v37 = vsel %vm1934_vm2, %v3802_v47, %v1931_v1  ;;  %v5306_v1 = vld [vmem:[#allocation5 + $0x2d0] sm:$0xff]  ;;  %v5308_v47 = vld [vmem:[#allocation5 + $0x2d8] sm:$0xff] }
 0x31f   :  { %v1940_v10 = vsel %vm1937_vm3, %v1939_v13, %v1935_v37  ;;  %v1956_v37 = vand.u32 2147483647, %v5257_v20  ;;  %2195 = vmatpush.msra.mxu3 %v5306_v1  ;;  %2215 = vmatpush.msra.mxu0 %v5308_v47  ;;  %v1955_v20 = vsel %vm5315_vm6, %v5282_v56, %v1951_v50  ;;  %v5337_v13 = vld [vmem:[#allocation5 + $0x2a0] sm:$0xff]  ;;  %v5347_v56 = vld [vmem:[#allocation5 + $0x288] sm:$0xff]  ;;  %v5349_v50 = vld [vmem:[#allocation5 + $0x290] sm:$0xff] }
 0x320   :  { %v1963_v24 = vmul.f32 %v1962_v30, %v1940_v10  ;;  %v5339_v30 = vld [vmem:[#allocation5 + $0x2a8] sm:$0xff]  ;;  %v5341_v10 = vld [vmem:[#allocation5 + $0x2b0] sm:$0xff] }
 0x321   :  { %2196 = vmatpush.msra.mxu3 %v5324_v58  ;;  %2216 = vmatpush.msra.mxu0 %v5326_v9  ;;  %6387 = vst [vmem:[#allocation53_spill] sm:$0xff] %v5341_v10  ;;  %vm1957_vm7 = vcmp.eq.f32.partialorder %v1956_v37, 8.507059e+37 }
 0x322   :  { %v1964_v49 = vadd.f32 %v1963_v24, %v6385_v29  ;;  %v1960_v2 = vsel %vm1957_vm7, %v1959_v26, %v1955_v20  ;;  %2237 = vmatpush.msra.mxu1 %v5341_v10  ;;  %v5351_v24 = vld [vmem:[#allocation5 + $0x298] sm:$0xff]  ;;  %v5371_v20 = vld [vmem:[#allocation5 + $0x268] sm:$0xff] }
 0x323   :  { %2197 = vmatpush.msra.mxu3 %v5337_v13  ;;  %2217 = vmatpush.msra.mxu0 %v5339_v30  ;;  %6388 = vst [vmem:[#allocation54_spill] sm:$0xff] %v5351_v24  ;;  %v1966_v37 = vsub.f32 1.0, %v1960_v2  ;;  %v5367_v29 = vld [vmem:[#allocation5 + $0x258] sm:$0xff]  ;;  %v1968_v4 = vmul.f32 %v1960_v2, %v5103_v31  ;;  %v6391_v10 = vld [vmem:[#allocation10_spill] sm:$0xff]  ;;  %v5393_v2 = vld [vmem:[#allocation5 + $0x230] sm:$0xff] }
 0x324   :  { %3805 = vtanh.f32 %v1964_v49  ;;  %2238 = vmatpush.msra.mxu1 %v5351_v24  ;;  %v5369_v49 = vld [vmem:[#allocation5 + $0x260] sm:$0xff]  ;;  %6390 = vst [vmem:[#allocation56_spill] sm:$0xff] %v5371_v20 }
 0x325   :  { %2198 = vmatpush.msra.mxu3 %v5347_v56  ;;  %2218 = vmatpush.msra.mxu0 %v5349_v50 }
 0x326   :  { %2239 = vmatpush.msra.mxu1 %v5361_v7  ;;  %v5379_v7 = vld [vmem:[#allocation5 + $0x240] sm:$0xff] }
 0x327   :  { %2199 = vmatpush.msra.mxu3 %v5357_v59  ;;  %2219 = vmatpush.msra.mxu0 %v5359_v39 }
 0x328   :  { %2240 = vmatpush.msra.mxu1 %v5371_v20 }
 0x329   :  { %2200 = vmatpush.msra.mxu3 %v5367_v29  ;;  %2220 = vmatpush.msra.mxu0 %v5369_v49 }
 0x32a   :  { %v3806_v41 = vpop.eup %3805  ;;  %2241 = vmatpush.msra.mxu1 %v5383_v12  ;;  %v5421_v12 = vld [vmem:[#allocation5 + $0x208] sm:$0xff] }
 0x32b   :  { %v1879_v26 = vpop.f32.mrf.mxu1  ;;  %v1967_v24 = vmul.f32 %v3806_v41, %v1966_v37  ;;  %2201 = vmatpush.msra.mxu3 %v5379_v7  ;;  %2221 = vmatpush.msra.mxu0 %v5381_v52  ;;  %v5395_v37 = vld [vmem:[#allocation5 + $0x238] sm:$0xff]  ;;  %v5408_v41 = vld [vmem:[#allocation5 + $0x220] sm:$0xff]  ;;  %6397 = vst [vmem:[#allocation62_spill] sm:$0xff] %v5421_v12 }
 0x32c   :  { %v1970_v43 = vadd.f32 %v1879_v26, %v6391_v10  ;;  %v5391_v10 = vld [vmem:[#allocation5 + $0x228] sm:$0xff]  ;;  %6394 = vst [vmem:[#allocation59_spill] sm:$0xff] %v5395_v37  ;;  %2242 = vmatpush.msra.mxu1 %v5395_v37  ;;  %v6396_v26 = vld [vmem:[#allocation37_spill] sm:$0xff] }
 0x32d   :  { %v5386_v36 = vadd.f32 %v1968_v4, %v1967_v24  ;;  %2202 = vmatpush.msra.mxu3 %v5391_v10  ;;  %v5406_v24 = vld [vmem:[#allocation5 + $0x218] sm:$0xff]  ;;  %6395 = vst [vmem:[#allocation60_spill] sm:$0xff] %v5408_v41  ;;  %2222 = vmatpush.msra.mxu0 %v5393_v2  ;;  %v5427_v37 = vld [vmem:[#allocation5 + $0x1e0] sm:$0xff] }
 0x32e   :  { %v3643_v31 = vmul.f32 -1.442695, %v1970_v43  ;;  %v5404_v43 = vld [vmem:[#allocation5 + $0x210] sm:$0xff]  ;;  %2243 = vmatpush.msra.mxu1 %v5408_v41  ;;  %v5441_v41 = vld [vmem:[#allocation5 + $0x1d8] sm:$0xff] }
 0x32f   :  { %6393 = vst [vmem:[#allocation58_spill] sm:$0xff] %v5386_v36  ;;  %v2018_v54 = vpack.c.bf16 %v5386_v36, %v5386_v36  ;;  %2102 = vmatmul.f32.vlgmr.msrb.gmra.mxu0 %v5386_v36  ;;  %2122 = vmatmul.f32.vlgmr.msrb.gmra.mxu1 %v5386_v36 }
 0x330   :  { %3807 = vpow2.f32 %v3643_v31  ;;  %2142 = vmatmul.f32.vlgmr.msra.gmra.mxu2 %v5386_v36  ;;  %2203 = vmatpush.msra.mxu3 %v5404_v43  ;;  %v5417_v31 = vld [vmem:[#allocation5 + $0x1f8] sm:$0xff]  ;;  %v5419_v36 = vld [vmem:[#allocation5 + $0x200] sm:$0xff]  ;;  %6400 = vst [vmem:[#allocation65_spill] sm:$0xff] %v5441_v41 }
 0x331   :  { %3645 = vst [vmem:[%s6139_s5 + $0xc] sm:$0xf] %v2018_v54  ;;  %v1899_v3 = vpop.f32.mrf.mxu2  ;;  %2223 = vmatpush.msra.mxu0 %v5406_v24  ;;  %2244 = vmatpush.msra.mxu1 %v5421_v12  ;;  %v5451_v12 = vld [vmem:[#allocation5 + $0x1b8] sm:$0xff] }
 0x332   :  { %v1990_v4 = vadd.f32 %v1899_v3, %v6396_v26  ;;  %2204 = vmatpush.msra.mxu3 %v5417_v31  ;;  %v5429_v3 = vld [vmem:[#allocation5 + $0x1e8] sm:$0xff]  ;;  %v5431_v26 = vld [vmem:[#allocation5 + $0x1f0] sm:$0xff]  ;;  %2546 = vmatpush.msra.mxu2 %v5295_v38  ;;  %v5459_v38 = vld [vmem:[#allocation5 + $0x198] sm:$0xff] }
 0x333   :  { %6398 = vst [vmem:[#allocation63_spill] sm:$0xff] %v5431_v26  ;;  %2224 = vmatpush.msra.mxu0 %v5419_v36  ;;  %2245 = vmatpush.msra.mxu1 %v5431_v26  ;;  %v5464_v26 = vld [vmem:[#allocation5 + $0x1a8] sm:$0xff] }
 0x334   :  { %v3644_v54 = vmul.f32 -1.442695, %v1990_v4  ;;  %2205 = vmatpush.msra.mxu3 %v5427_v37  ;;  %v5439_v4 = vld [vmem:[#allocation5 + $0x1d0] sm:$0xff]  ;;  %2547 = vmatpush.msra.mxu2 %v5308_v47  ;;  %v5469_v47 = vld [vmem:[#allocation5 + $0x180] sm:$0xff] }
 0x335   :  { %2225 = vmatpush.msra.mxu0 %v5429_v3  ;;  %2246 = vmatpush.msra.mxu1 %v5441_v41  ;;  %v5472_v41 = vld [vmem:[#allocation5 + $0x188] sm:$0xff] }
 0x336   :  { %v3808_v20 = vpop.eup %3807  ;;  %3809 = vpow2.f32 %v3644_v54  ;;  %2206 = vmatpush.msra.mxu3 %v5436_v27  ;;  %v5453_v54 = vld [vmem:[#allocation5 + $0x1c0] sm:$0xff]  ;;  %2548 = vmatpush.msra.mxu2 %v5326_v9  ;;  %v5474_v27 = vld [vmem:[#allocation5 + $0x190] sm:$0xff] }
 0x337   :  { %v5444_v19 = vadd.f32 1.0, %v3808_v20  ;;  %6402 = vst [vmem:[#allocation68_spill] sm:$0xff] %v5453_v54  ;;  %2226 = vmatpush.msra.mxu0 %v5439_v4  ;;  %v5462_v20 = vld [vmem:[#allocation5 + $0x1a0] sm:$0xff]  ;;  %2247 = vmatpush.msra.mxu1 %v5453_v54 }
 0x338   :  { %2207 = vmatpush.msra.mxu3 %v5448_v14  ;;  %2549 = vmatpush.msra.mxu2 %v5339_v30 }
 0x339   :  { %3811 = vrcp.f32 %v5444_v19  ;;  %2227 = vmatpush.msra.mxu0 %v5451_v12  ;;  %2248 = vmatpush.msra.mxu1 %v5464_v26  ;;  %v1986_v30 = vand.u32 2147483648, %v5444_v19  ;;  %vm1980_vm9 = vweird.f32 %v5444_v19 }
 0x33a   :  { %2208 = vmatpush.msra.mxu3 %v5459_v38  ;;  %2550 = vmatpush.msra.mxu2 %v5349_v50 }
 0x33b   :  { %2228 = vmatpush.msra.mxu0 %v5462_v20  ;;  %2249 = vmatpush.msra.mxu1 %v5474_v27 }
 0x33c   :  { %v3810_v35 = vpop.eup %3809  ;;  %2209 = vmatpush.msra.mxu3 %v5469_v47  ;;  %2551 = vmatpush.msra.mxu2 %v5359_v39  ;;  %v6417_v39 = vld [vmem:[#allocation57_spill] sm:$0xff] }
 0x33d   :  { %v5477_v14 = vadd.f32 1.0, %v3810_v35  ;;  %2229 = vmatpush.msra.mxu0 %v5472_v41  ;;  %2526 = vmatpush.msrb.mxu1 %v5293_v55  ;;  %v1919_v55 = vpop.f32.mrf.mxu3 }
 0x33e   :  { %2438 = vmatpush.msrb.mxu3 %v5134_v48  ;;  %2552 = vmatpush.msra.mxu2 %v5369_v49  ;;  %v1984_v48 = vand.u32 2147483647, %v5444_v19  ;;  %v6420_v49 = vld [vmem:[#allocation62_spill] sm:$0xff] }
 0x33f   :  { %v3812_v9 = vpop.eup %3811  ;;  %3813 = vrcp.f32 %v5477_v14  ;;  %2458 = vmatpush.msrb.mxu0 %v5136_v11  ;;  %2527 = vmatpush.msrb.mxu1 %v5306_v1  ;;  %v1987_v1 = vor.u32 1.1754944e-38, %v1986_v30  ;;  %vm2000_vm13 = vweird.f32 %v5477_v14 }
 0x340   :  { %v1976_v54 = vmul.f32 %v3812_v9, %v5444_v19  ;;  %2439 = vmatpush.msrb.mxu3 %v5143_v57  ;;  %vm1981_vm8 = vweird.f32 %v3812_v9  ;;  %2553 = vmatpush.msra.mxu2 %v5381_v52  ;;  %vm1985_vm11 = vcmp.eq.f32.partialorder %v1984_v48, 8.507059e+37  ;;  %v2010_v52 = vadd.f32 %v5117_v0, %v1919_v55 }
 0x341   :  { %2459 = vmatpush.msrb.mxu0 %v5145_v16  ;;  %2528 = vmatpush.msrb.mxu1 %v5324_v58  ;;  %vm1982_vm10 = vmor %vm1980_vm9, %vm1981_vm8  ;;  %v2004_v0 = vand.u32 2147483647, %v5477_v14 }
 0x342   :  { %v1977_v35 = vsub.f32 1.0, %v1976_v54  ;;  %2440 = vmatpush.msrb.mxu3 %v5152_v62  ;;  %2554 = vmatpush.msra.mxu2 %v5393_v2  ;;  %v6423_v2 = vld [vmem:[#allocation68_spill] sm:$0xff] }
 0x343   :  { %2460 = vmatpush.msrb.mxu0 %v5154_v34  ;;  %2529 = vmatpush.msrb.mxu1 %v5337_v13  ;;  %vm2005_vm15 = vcmp.eq.f32.partialorder %v2004_v0, 8.507059e+37 }
 0x344   :  { %v1978_v50 = vmul.f32 %v3812_v9, %v1977_v35  ;;  %2441 = vmatpush.msrb.mxu3 %v5161_v21  ;;  %2555 = vmatpush.msra.mxu2 %v5406_v24  ;;  %v6424_v24 = vld [vmem:[#allocation17_spill] sm:$0xff] }
 0x345   :  { %v3814_v11 = vpop.eup %3813  ;;  %2461 = vmatpush.msrb.mxu0 %v5163_v40  ;;  %2530 = vmatpush.msrb.mxu1 %v5347_v56  ;;  %v2006_v40 = vand.u32 2147483648, %v5477_v14  ;;  %v6415_v56 = vld [vmem:[#allocation55_spill] sm:$0xff] }
 0x346   :  { %v1996_v57 = vmul.f32 %v3814_v11, %v5477_v14  ;;  %v1979_v16 = vadd.f32 %v3812_v9, %v1978_v50  ;;  %2442 = vmatpush.msrb.mxu3 %v5170_v5  ;;  %vm2001_vm12 = vweird.f32 %v3814_v11  ;;  %2556 = vmatpush.msra.mxu2 %v5419_v36  ;;  %v6421_v36 = vld [vmem:[#allocation63_spill] sm:$0xff] }
 0x347   :  { %2462 = vmatpush.msrb.mxu0 %v5172_v17  ;;  %2531 = vmatpush.msrb.mxu1 %v5357_v59  ;;  %v6403_v17 = vld [vmem:[#allocation38_spill] sm:$0xff]  ;;  %vm2002_vm14 = vmor %vm2000_vm13, %vm2001_vm12  ;;  %v6416_v59 = vld [vmem:[#allocation56_spill] sm:$0xff] }
 0x348   :  { %v1997_v62 = vsub.f32 1.0, %v1996_v57  ;;  %v1983_v34 = vsel %vm1982_vm10, %v3812_v9, %v1979_v16  ;;  %2443 = vmatpush.msrb.mxu3 %v5179_v28  ;;  %2557 = vmatpush.msra.mxu2 %v5429_v3  ;;  %v2007_v28 = vor.u32 1.1754944e-38, %v2006_v40 }
 0x349   :  { %v1988_v19 = vsel %vm1985_vm11, %v1987_v1, %v1983_v34  ;;  %2463 = vmatpush.msrb.mxu0 %v5181_v45  ;;  %2532 = vmatpush.msrb.mxu1 %v5367_v29  ;;  %v6419_v29 = vld [vmem:[#allocation60_spill] sm:$0xff] }
 0x34a   :  { %v1998_v21 = vmul.f32 %v3814_v11, %v1997_v62  ;;  %v2011_v58 = vmul.f32 %v2010_v52, %v1988_v19  ;;  %2444 = vmatpush.msrb.mxu3 %v5188_v8  ;;  %2558 = vmatpush.msra.mxu2 %v5439_v4  ;;  %v5587_v52 = vld [vmem:[%s6138_s4] ss:$0 sm:$0xff] }
 0x34b   :  { %2464 = vmatpush.msrb.mxu0 %v5190_v44  ;;  %2533 = vmatpush.msrb.mxu1 %v5379_v7  ;;  %v6418_v7 = vld [vmem:[#allocation59_spill] sm:$0xff] }
 0x34c   :  { %v1999_v5 = vadd.f32 %v3814_v11, %v1998_v21  ;;  %v2012_v13 = vadd.f32 %v2011_v58, %v6403_v17  ;;  %2445 = vmatpush.msrb.mxu3 %v5196_v53  ;;  %2559 = vmatpush.msra.mxu2 %v5451_v12  ;;  %v6414_v12 = vld [vmem:[#allocation54_spill] sm:$0xff]  ;;  %v6426_v17 = vld [vmem:[#allocation12_spill] sm:$0xff] }
 0x34d   :  { %2465 = vmatpush.msrb.mxu0 %v5198_v33  ;;  %2534 = vmatpush.msrb.mxu1 %v5391_v10  ;;  %v6422_v10 = vld [vmem:[#allocation65_spill] sm:$0xff] }
 0x34e   :  { %v2003_v45 = vsel %vm2002_vm14, %v3814_v11, %v1999_v5  ;;  %3815 = vtanh.f32 %v2012_v13  ;;  %2446 = vmatpush.msrb.mxu3 %v5203_v63  ;;  %2560 = vmatpush.msra.mxu2 %v5462_v20 }
 0x34f   :  { %v2008_v8 = vsel %vm2005_vm15, %v2007_v28, %v2003_v45  ;;  %2466 = vmatpush.msrb.mxu0 %v5209_v15  ;;  %2535 = vmatpush.msrb.mxu1 %v5404_v43 }
 0x350   :  { %2447 = vmatpush.msrb.mxu3 %v5214_v23  ;;  %v2014_v44 = vsub.f32 1.0, %v2008_v8  ;;  %v2016_v63 = vmul.f32 %v2008_v8, %v5122_v42  ;;  %2561 = vmatpush.msra.mxu2 %v5472_v41  ;;  %v6404_v42 = vld [vmem:[#allocation64_spill] sm:$0xff] }
 0x351   :  { %2467 = vmatpush.msrb.mxu0 %v5218_v61  ;;  %2536 = vmatpush.msrb.mxu1 %v5417_v31  ;;  %v6405_v61 = vld [vmem:[#allocation47_spill] sm:$0xff]  ;;  %v6425_v31 = vld [vmem:[#allocation30_spill] sm:$0xff] }
 0x352   :  { %2448 = vmatpush.msrb.mxu3 %v5223_v46  ;;  %v6406_v46 = vld [vmem:[#allocation48_spill] sm:$0xff] }
 0x353   :  { %2468 = vmatpush.msrb.mxu0 %v5227_v6  ;;  %2537 = vmatpush.msrb.mxu1 %v5427_v37  ;;  %v6407_v6 = vld [vmem:[#allocation66_spill] sm:$0xff] }
 0x354   :  { %v3816_v53 = vpop.eup %3815  ;;  %2449 = vmatpush.msrb.mxu3 %v5232_v25  ;;  %v6408_v25 = vld [vmem:[#allocation49_spill] sm:$0xff] }
 0x355   :  { %v2015_v33 = vmul.f32 %v3816_v53, %v2014_v44  ;;  %2469 = vmatpush.msrb.mxu0 %v5236_v22  ;;  %2538 = vmatpush.msrb.mxu1 %v6404_v42  ;;  %v6409_v22 = vld [vmem:[#allocation50_spill] sm:$0xff] }
 0x356   :  { %2450 = vmatpush.msrb.mxu3 %v5241_v51  ;;  %v6410_v51 = vld [vmem:[#allocation67_spill] sm:$0xff] }
 0x357   :  { %v5543_v15 = vadd.f32 %v2016_v63, %v2015_v33  ;;  %2470 = vmatpush.msrb.mxu0 %v5245_v60  ;;  %2539 = vmatpush.msrb.mxu1 %v6407_v6  ;;  %v6411_v60 = vld [vmem:[#allocation51_spill] sm:$0xff] }
 0x358   :  { %2451 = vmatpush.msrb.mxu3 %v5250_v32  ;;  %v6412_v32 = vld [vmem:[#allocation52_spill] sm:$0xff] }
 0x359   :  { %v2021_v23 = vpack.c.bf16 %v5543_v15, %v5543_v15  ;;  %2210 = vmatmul.f32.vlgmr.msra.gmra.mxu3 %v5543_v15  ;;  %2230 = vmatmul.f32.vlgmr.msra.gmra.mxu0 %v5543_v15 }
 0x35a   :  { %2250 = vmatmul.f32.vlgmr.msra.gmra.mxu1 %v5543_v15  ;;  %2471 = vmatpush.msrb.mxu0 %v5254_v18  ;;  %v6413_v18 = vld [vmem:[#allocation53_spill] sm:$0xff] }
 0x35b   :  { %3646 = vst [vmem:[%s6139_s5 + $0x2c] sm:$0xf] %v2021_v23  ;;  %2452 = vmatpush.msrb.mxu3 %v6405_v61  ;;  %2540 = vmatpush.msrb.mxu1 %v5459_v38  ;;  %v6427_v23 = vld [vmem:[#allocation58_spill] sm:$0xff]  ;;  %v6428_v61 = vld [vmem:[#allocation39_spill] sm:$0xff] }
 0x35c   :  { %2472 = vmatpush.msrb.mxu0 %v6406_v46 }
 0x35d   :  { %2453 = vmatpush.msrb.mxu3 %v6408_v25  ;;  %2541 = vmatpush.msrb.mxu1 %v5469_v47 }
 0x35e   :  { %2473 = vmatpush.msrb.mxu0 %v6409_v22 }
 0x35f   :  { %2566 = vmatpush.msra.mxu3 %v6410_v51 }
 0x361   :  { %2567 = vmatpush.msra.mxu3 %v6411_v60  ;;  %v6429_v60 = vld [vmem:[#allocation19_spill] sm:$0xff] }
 0x363   :  { %2568 = vmatpush.msra.mxu3 %v6412_v32 }
 0x365   :  { %2569 = vmatpush.msra.mxu3 %v6413_v18 }
 0x367   :  { %2570 = vmatpush.msra.mxu3 %v6414_v12 }
 0x369   :  { %2571 = vmatpush.msra.mxu3 %v6415_v56 }
 0x36b   :  { %2572 = vmatpush.msra.mxu3 %v6416_v59 }
 0x36d   :  { %2573 = vmatpush.msra.mxu3 %v6417_v39 }
 0x36f   :  { %2574 = vmatpush.msra.mxu3 %v6418_v7 }
 0x371   :  { %2575 = vmatpush.msra.mxu3 %v6419_v29 }
 0x373   :  { %2576 = vmatpush.msra.mxu3 %v6420_v49 }
 0x375   :  { %2577 = vmatpush.msra.mxu3 %v6421_v36 }
 0x377   :  { %2578 = vmatpush.msra.mxu3 %v6422_v10 }
 0x379   :  { %2579 = vmatpush.msra.mxu3 %v6423_v2 }
 0x37b   :  { %2580 = vmatpush.msra.mxu3 %v5464_v26 }
 0x37d   :  { %2581 = vmatpush.msra.mxu3 %v5474_v27 }
 0x3ac   :  { %v2103_v37 = vpop.f32.mrf.mxu0  ;;  %v2123_v43 = vpop.f32.mrf.mxu1 }
 0x3ad   :  { %v2254_v41 = vadd.f32 %v2103_v37, %v6424_v24  ;;  %v2274_v3 = vadd.f32 %v2123_v43, %v6425_v31 }
 0x3af   :  { %v3647_v4 = vmul.f32 -1.442695, %v2254_v41  ;;  %v3648_v14 = vmul.f32 -1.442695, %v2274_v3 }
 0x3b1   :  { %3817 = vpow2.f32 %v3647_v4 }
 0x3b2   :  { %3819 = vpow2.f32 %v3648_v14  ;;  %v5607_v14 = vld [vmem:[%s6138_s4 + $0x1] ss:$0 sm:$0xff] }
 0x3b3   :  { %v2143_v16 = vpop.f32.mrf.mxu2 }
 0x3b4   :  { %v2294_v19 = vadd.f32 %v5587_v52, %v2143_v16 }
 0x3b7   :  { %v3818_v54 = vpop.eup %3817 }
 0x3b8   :  { %v3820_v38 = vpop.eup %3819  ;;  %v2258_v20 = vadd.f32 1.0, %v3818_v54 }
 0x3b9   :  { %v2278_v47 = vadd.f32 1.0, %v3820_v38 }
 0x3ba   :  { %3821 = vrcp.f32 %v2258_v20  ;;  %v2270_v48 = vand.u32 2147483648, %v2258_v20  ;;  %v2268_v55 = vand.u32 2147483647, %v2258_v20  ;;  %vm2264_vm1 = vweird.f32 %v2258_v20 }
 0x3bb   :  { %3823 = vrcp.f32 %v2278_v47  ;;  %v2290_v58 = vand.u32 2147483648, %v2278_v47  ;;  %vm2284_vm5 = vweird.f32 %v2278_v47  ;;  %v2288_v5 = vand.u32 2147483647, %v2278_v47 }
 0x3bc   :  { %v2271_v62 = vor.u32 1.1754944e-38, %v2270_v48  ;;  %vm2269_vm3 = vcmp.eq.f32.partialorder %v2268_v55, 8.507059e+37 }
 0x3bd   :  { %v2291_v45 = vor.u32 1.1754944e-38, %v2290_v58  ;;  %vm2289_vm7 = vcmp.eq.f32.partialorder %v2288_v5, 8.507059e+37  ;;  %v5633_v58 = vld [vmem:[#allocation5 + $0x158] sm:$0xff] }
 0x3be   :  { %v5640_v5 = vld [vmem:[#allocation5 + $0x138] sm:$0xff] }
 0x3c0   :  { %v3822_v9 = vpop.eup %3821 }
 0x3c1   :  { %v3824_v26 = vpop.eup %3823  ;;  %v2260_v35 = vmul.f32 %v3822_v9, %v2258_v20  ;;  %vm2265_vm0 = vweird.f32 %v3822_v9 }
 0x3c2   :  { %v2280_v27 = vmul.f32 %v3824_v26, %v2278_v47  ;;  %vm2266_vm2 = vmor %vm2264_vm1, %vm2265_vm0  ;;  %vm2285_vm4 = vweird.f32 %v3824_v26 }
 0x3c3   :  { %v2261_v30 = vsub.f32 1.0, %v2260_v35  ;;  %vm2286_vm6 = vmor %vm2284_vm5, %vm2285_vm4 }
 0x3c4   :  { %v2281_v50 = vsub.f32 1.0, %v2280_v27  ;;  %v6430_v27 = vld [vmem:[#allocation40_spill] sm:$0xff] }
 0x3c5   :  { %v2262_v11 = vmul.f32 %v3822_v9, %v2261_v30 }
 0x3c6   :  { %v2282_v57 = vmul.f32 %v3824_v26, %v2281_v50 }
 0x3c7   :  { %v2263_v1 = vadd.f32 %v3822_v9, %v2262_v11 }
 0x3c8   :  { %v2283_v21 = vadd.f32 %v3824_v26, %v2282_v57 }
 0x3c9   :  { %v2267_v34 = vsel %vm2266_vm2, %v3822_v9, %v2263_v1 }
 0x3ca   :  { %v2272_v40 = vsel %vm2269_vm3, %v2271_v62, %v2267_v34  ;;  %v2287_v28 = vsel %vm2286_vm6, %v3824_v26, %v2283_v21  ;;  %v5624_v21 = vld [vmem:[#allocation5 + $0x170] sm:$0xff] }
 0x3cb   :  { %v2295_v0 = vmul.f32 %v2294_v19, %v2272_v40  ;;  %v2292_v8 = vsel %vm2289_vm7, %v2291_v45, %v2287_v28  ;;  %v5622_v19 = vld [vmem:[#allocation5 + $0x168] sm:$0xff]  ;;  %2770 = vmatpush.msra.mxu1 %v5624_v21  ;;  %v5631_v40 = vld [vmem:[#allocation5 + $0x150] sm:$0xff]  ;;  %v5649_v28 = vld [vmem:[#allocation5 + $0x120] sm:$0xff] }
 0x3cc   :  { %v2298_v44 = vsub.f32 1.0, %v2292_v8  ;;  %v2300_v42 = vmul.f32 %v2292_v8, %v6427_v23  ;;  %2750 = vmatpush.msra.mxu0 %v5622_v19  ;;  %v5651_v45 = vld [vmem:[#allocation5 + $0x128] sm:$0xff]  ;;  %v5653_v8 = vld [vmem:[#allocation5 + $0x130] sm:$0xff]  ;;  %v5669_v23 = vld [vmem:[#allocation5 + $0xf8] sm:$0xff] }
 0x3cd   :  { %v2296_v13 = vadd.f32 %v2295_v0, %v6426_v17  ;;  %v5635_v0 = vld [vmem:[#allocation5 + $0x160] sm:$0xff]  ;;  %2771 = vmatpush.msra.mxu1 %v5633_v58 }
 0x3ce   :  { %2751 = vmatpush.msra.mxu0 %v5631_v40  ;;  %v5642_v17 = vld [vmem:[#allocation5 + $0x140] sm:$0xff] }
 0x3cf   :  { %3825 = vtanh.f32 %v2296_v13  ;;  %v5644_v13 = vld [vmem:[#allocation5 + $0x148] sm:$0xff]  ;;  %2772 = vmatpush.msra.mxu1 %v5642_v17 }
 0x3d0   :  { %2752 = vmatpush.msra.mxu0 %v5640_v5 }
 0x3d1   :  { %2773 = vmatpush.msra.mxu1 %v5651_v45 }
 0x3d2   :  { %2753 = vmatpush.msra.mxu0 %v5649_v28 }
 0x3d5   :  { %v3826_v53 = vpop.eup %3825 }
 0x3d6   :  { %v2299_v33 = vmul.f32 %v3826_v53, %v2298_v44  ;;  %v2231_v63 = vpop.f32.mrf.mxu0  ;;  %v5658_v44 = vld [vmem:[#allocation5 + $0x108] sm:$0xff]  ;;  %v5660_v53 = vld [vmem:[#allocation5 + $0x110] sm:$0xff] }
 0x3d7   :  { %v2322_v46 = vadd.f32 %v2231_v63, %v6428_v61  ;;  %v2251_v31 = vpop.f32.mrf.mxu1  ;;  %2754 = vmatpush.msra.mxu0 %v5658_v44  ;;  %2774 = vmatpush.msra.mxu1 %v5660_v53  ;;  %v5667_v63 = vld [vmem:[#allocation5 + $0xf0] sm:$0xff]  ;;  %v5676_v61 = vld [vmem:[#allocation5 + $0xd8] sm:$0xff] }
 0x3d8   :  { %v5593_v6 = vadd.f32 %v2300_v42, %v2299_v33  ;;  %v2342_v54 = vadd.f32 %v5607_v14, %v2251_v31  ;;  %v5662_v33 = vld [vmem:[#allocation5 + $0x118] sm:$0xff]  ;;  %v5671_v42 = vld [vmem:[#allocation5 + $0x100] sm:$0xff]  ;;  %v5717_v31 = vld [vmem:[#allocation5 + $0x88] sm:$0xff] }
 0x3d9   :  { %v3650_v25 = vmul.f32 -1.442695, %v2322_v46  ;;  %2755 = vmatpush.msra.mxu0 %v5667_v63  ;;  %2775 = vmatpush.msra.mxu1 %v5669_v23  ;;  %v5678_v46 = vld [vmem:[#allocation5 + $0xe0] sm:$0xff] }
 0x3da   :  { %v2350_v22 = vpack.c.bf16 %v5593_v6, %v5593_v6  ;;  %2434 = vmatmul.f32.vlgmr.msrb.gmra.mxu2 %v5593_v6  ;;  %2454 = vmatmul.f32.vlgmr.msrb.gmra.mxu3 %v5593_v6 }
 0x3db   :  { %3827 = vpow2.f32 %v3650_v25  ;;  %2474 = vmatmul.f32.vlgmr.msrb.gmra.mxu0 %v5593_v6  ;;  %v5680_v25 = vld [vmem:[#allocation5 + $0xe8] sm:$0xff]  ;;  %2776 = vmatpush.msra.mxu1 %v5678_v46 }
 0x3dc   :  { %3651 = vst [vmem:[%s6139_s5 + $0x10] sm:$0xf] %v2350_v22  ;;  %v2211_v51 = vpop.f32.mrf.mxu3  ;;  %2756 = vmatpush.msra.mxu0 %v5676_v61  ;;  %v5684_v22 = vld [vmem:[#allocation5 + $0xc0] sm:$0xff] }
 0x3dd   :  { %v2302_v32 = vadd.f32 %v2211_v51, %v6429_v60  ;;  %v5686_v51 = vld [vmem:[#allocation5 + $0xc8] sm:$0xff]  ;;  %v5688_v60 = vld [vmem:[#allocation5 + $0xd0] sm:$0xff] }
 0x3de   :  { %2757 = vmatpush.msra.mxu0 %v5684_v22  ;;  %2777 = vmatpush.msra.mxu1 %v5686_v51 }
 0x3df   :  { %v3649_v18 = vmul.f32 -1.442695, %v2302_v32 }
 0x3e1   :  { %v3828_v12 = vpop.eup %3827  ;;  %3829 = vpow2.f32 %v3649_v18 }
 0x3e2   :  { %v2326_v56 = vadd.f32 1.0, %v3828_v12  ;;  %v5691_v12 = vld [vmem:[#allocation5 + $0xa8] sm:$0xff] }
 0x3e3   :  { %2758 = vmatpush.msra.mxu0 %v5691_v12 }
 0x3e4   :  { %3831 = vrcp.f32 %v2326_v56  ;;  %v2338_v9 = vand.u32 2147483648, %v2326_v56  ;;  %vm2332_vm13 = vweird.f32 %v2326_v56  ;;  %v2336_v35 = vand.u32 2147483647, %v2326_v56 }
 0x3e6   :  { %v2339_v48 = vor.u32 1.1754944e-38, %v2338_v9  ;;  %vm2337_vm15 = vcmp.eq.f32.partialorder %v2336_v35, 8.507059e+37  ;;  %v5738_v9 = vld [vmem:[#allocation5 + $0x30] sm:$0xff] }
 0x3e7   :  { %v3830_v59 = vpop.eup %3829 }
 0x3e8   :  { %v2306_v39 = vadd.f32 1.0, %v3830_v59  ;;  %v6431_v59 = vld [vmem:[#allocation14_spill] sm:$0xff] }
 0x3ea   :  { %3833 = vrcp.f32 %v2306_v39  ;;  %v3832_v7 = vpop.eup %3831  ;;  %v2318_v37 = vand.u32 2147483648, %v2306_v39  ;;  %v2316_v24 = vand.u32 2147483647, %v2306_v39  ;;  %vm2312_vm9 = vweird.f32 %v2306_v39 }
 0x3eb   :  { %v2328_v29 = vmul.f32 %v3832_v7, %v2326_v56  ;;  %vm2333_vm12 = vweird.f32 %v3832_v7  ;;  %v5693_v56 = vld [vmem:[#allocation5 + $0xb0] sm:$0xff] }
 0x3ec   :  { %v2319_v4 = vor.u32 1.1754944e-38, %v2318_v37  ;;  %vm2317_vm11 = vcmp.eq.f32.partialorder %v2316_v24, 8.507059e+37  ;;  %vm2334_vm14 = vmor %vm2332_vm13, %vm2333_vm12  ;;  %2778 = vmatpush.msra.mxu1 %v5693_v56  ;;  %v5711_v24 = vld [vmem:[#allocation5 + $0x78] sm:$0xff] }
 0x3ed   :  { %v2329_v10 = vsub.f32 1.0, %v2328_v29 }
 0x3ef   :  { %v2330_v41 = vmul.f32 %v3832_v7, %v2329_v10  ;;  %v5704_v10 = vld [vmem:[#allocation5 + $0x98] sm:$0xff] }
 0x3f0   :  { %v3834_v49 = vpop.eup %3833  ;;  %2779 = vmatpush.msra.mxu1 %v5704_v10 }
 0x3f1   :  { %v2308_v36 = vmul.f32 %v3834_v49, %v2306_v39  ;;  %vm2313_vm8 = vweird.f32 %v3834_v49  ;;  %v2331_v20 = vadd.f32 %v3832_v7, %v2330_v41  ;;  %v5713_v41 = vld [vmem:[#allocation5 + $0x80] sm:$0xff] }
 0x3f2   :  { %vm2314_vm10 = vmor %vm2312_vm9, %vm2313_vm8  ;;  %2780 = vmatpush.msra.mxu1 %v5713_v41 }
 0x3f3   :  { %v2309_v2 = vsub.f32 1.0, %v2308_v36  ;;  %v2335_v50 = vsel %vm2334_vm14, %v3832_v7, %v2331_v20  ;;  %v6432_v7 = vld [vmem:[#allocation22_spill] sm:$0xff]  ;;  %v5702_v36 = vld [vmem:[#allocation5 + $0x90] sm:$0xff] }
 0x3f4   :  { %v2340_v11 = vsel %vm2337_vm15, %v2339_v48, %v2335_v50  ;;  %2759 = vmatpush.msra.mxu0 %v5702_v36  ;;  %v5731_v20 = vld [vmem:[#allocation5 + $0x50] sm:$0xff] }
 0x3f5   :  { %v2310_v43 = vmul.f32 %v3834_v49, %v2309_v2  ;;  %v2346_v55 = vsub.f32 1.0, %v2340_v11  ;;  %v2348_v1 = vmul.f32 %v2340_v11, %v5543_v15  ;;  %v5626_v15 = vld [vmem:[#allocation5 + $0x178] sm:$0xff] }
 0x3f6   :  { %2790 = vmatpush.msrb.mxu2 %v5626_v15  ;;  %2760 = vmatpush.msra.mxu0 %v5711_v24  ;;  %v5752_v11 = vld [vmem:[#allocation5 + $0x18] sm:$0xff] }
 0x3f7   :  { %v2311_v3 = vadd.f32 %v3834_v49, %v2310_v43  ;;  %v5708_v43 = vld [vmem:[#allocation5 + $0xa0] sm:$0xff] }
 0x3f8   :  { %2791 = vmatpush.msrb.mxu2 %v5635_v0 }
 0x3f9   :  { %v2315_v38 = vsel %vm2314_vm10, %v3834_v49, %v2311_v3  ;;  %v5699_v49 = vld [vmem:[#allocation5 + $0xb8] sm:$0xff]  ;;  %v5720_v3 = vld [vmem:[#allocation5 + $0x60] sm:$0xff] }
 0x3fa   :  { %v2320_v47 = vsel %vm2317_vm11, %v2319_v4, %v2315_v38  ;;  %2792 = vmatpush.msrb.mxu2 %v5644_v13  ;;  %v5722_v4 = vld [vmem:[#allocation5 + $0x68] sm:$0xff]  ;;  %2761 = vmatpush.msra.mxu0 %v5720_v3 }
 0x3fb   :  { %v2343_v26 = vmul.f32 %v2342_v54, %v2320_v47  ;;  %v5726_v54 = vld [vmem:[#allocation5 + $0x70] sm:$0xff]  ;;  %v5729_v38 = vld [vmem:[#allocation5 + $0x48] sm:$0xff]  ;;  %2781 = vmatpush.msra.mxu1 %v5722_v4  ;;  %v5735_v47 = vld [vmem:[#allocation5 + $0x58] sm:$0xff] }
 0x3fc   :  { %2793 = vmatpush.msrb.mxu2 %v5653_v8  ;;  %2762 = vmatpush.msra.mxu0 %v5729_v38 }
 0x3fd   :  { %v2344_v30 = vadd.f32 %v2343_v26, %v6430_v27  ;;  %v5740_v26 = vld [vmem:[#allocation5 + $0x38] sm:$0xff]  ;;  %2782 = vmatpush.msra.mxu1 %v5731_v20  ;;  %v5744_v27 = vld [vmem:[#allocation5 + $0x40] sm:$0xff] }
 0x3fe   :  { %2794 = vmatpush.msrb.mxu2 %v5662_v33  ;;  %2763 = vmatpush.msra.mxu0 %v5738_v9 }
 0x3ff   :  { %3835 = vtanh.f32 %v2344_v30  ;;  %2783 = vmatpush.msra.mxu1 %v5740_v26 }
 0x400   :  { %2795 = vmatpush.msrb.mxu2 %v5671_v42  ;;  %2764 = vmatpush.msra.mxu0 %v5752_v11 }
 0x402   :  { %2796 = vmatpush.msrb.mxu2 %v5680_v25 }
 0x404   :  { %2797 = vmatpush.msrb.mxu2 %v5688_v60 }
 0x405   :  { %v3836_v57 = vpop.eup %3835 }
 0x406   :  { %v2347_v16 = vmul.f32 %v3836_v57, %v2346_v55  ;;  %2798 = vmatpush.msrb.mxu2 %v5699_v49  ;;  %v5754_v55 = vld [vmem:[#allocation5 + $0x20] sm:$0xff]  ;;  %v5756_v57 = vld [vmem:[#allocation5 + $0x28] sm:$0xff] }
 0x407   :  { %6433 = vst [vmem:[#allocation20_spill] sm:$0xff] %v5754_v55  ;;  %2784 = vmatpush.msra.mxu1 %v5754_v55 }
 0x408   :  { %v5612_v62 = vadd.f32 %v2348_v1, %v2347_v16  ;;  %2799 = vmatpush.msrb.mxu2 %v5708_v43  ;;  %6434 = vst [vmem:[#allocation9_spill] sm:$0xff] %v5756_v57  ;;  %v5762_v16 = vld [vmem:[#allocation5] sm:$0xff]  ;;  %v5764_v1 = vld [vmem:[#allocation5 + $0x8] sm:$0xff] }
 0x409   :  { %6435 = vst [vmem:[#allocation13_spill] sm:$0xff] %v5764_v1  ;;  %2765 = vmatpush.msra.mxu0 %v5762_v16  ;;  %2785 = vmatpush.msra.mxu1 %v5764_v1 }
 0x40a   :  { %v2353_v34 = vpack.c.bf16 %v5612_v62, %v5612_v62  ;;  %2542 = vmatmul.f32.vlgmr.msrb.gmra.mxu1 %v5612_v62  ;;  %2562 = vmatmul.f32.vlgmr.msra.gmra.mxu2 %v5612_v62 }
 0x40b   :  { %2582 = vmatmul.f32.vlgmr.msra.gmra.mxu3 %v5612_v62  ;;  %2800 = vmatpush.msrb.mxu2 %v5717_v31 }
 0x40c   :  { %3652 = vst [vmem:[%s6139_s5 + $0x30] sm:$0xf] %v2353_v34  ;;  %v5766_v34 = vld [vmem:[#allocation5 + $0x10] sm:$0xff] }
 0x40d   :  { %2801 = vmatpush.msrb.mxu2 %v5726_v54  ;;  %6436 = vst [vmem:[#allocation25_spill] sm:$0xff] %v5766_v34 }
 0x40f   :  { %2802 = vmatpush.msrb.mxu2 %v5735_v47 }
 0x411   :  { %2803 = vmatpush.msrb.mxu2 %v5744_v27 }
 0x413   :  { %2804 = vmatpush.msrb.mxu2 %v5756_v57 }
 0x415   :  { %2805 = vmatpush.msrb.mxu2 %v5766_v34 }
 0x417   :  { %3082 = vmatpush.msra.mxu2 %v5622_v19 }
 0x419   :  { %3083 = vmatpush.msra.mxu2 %v5631_v40 }
 0x41b   :  { %3084 = vmatpush.msra.mxu2 %v5640_v5  ;;  %v5783_v5 = vld [vmem:[#allocation5 + $0x2e8] sm:$0xff] }
 0x41c   :  { %2858 = vmatpush.msrb.mxu3 %v5783_v5 }
 0x41d   :  { %3085 = vmatpush.msra.mxu2 %v5649_v28  ;;  %v5787_v28 = vld [vmem:[#allocation5 + $0x2f8] sm:$0xff] }
 0x41e   :  { %6437 = vst [vmem:[#allocation11_spill] sm:$0xff] %v5787_v28  ;;  %2898 = vmatpush.msrb.mxu1 %v5787_v28  ;;  %v5873_v28 = vld [vmem:[#allocation5 + $0x250] sm:$0xff] }
 0x41f   :  { %3086 = vmatpush.msra.mxu2 %v5658_v44  ;;  %6448 = vst [vmem:[#allocation29_spill] sm:$0xff] %v5873_v28 }
 0x421   :  { %3087 = vmatpush.msra.mxu2 %v5667_v63  ;;  %v5851_v63 = vld [vmem:[#allocation5 + $0x280] sm:$0xff] }
 0x422   :  { %6445 = vst [vmem:[#allocation23_spill] sm:$0xff] %v5851_v63 }
 0x423   :  { %3088 = vmatpush.msra.mxu2 %v5676_v61  ;;  %v5818_v61 = vld [vmem:[#allocation5 + $0x2c8] sm:$0xff] }
 0x424   :  { %6442 = vst [vmem:[#allocation35_spill] sm:$0xff] %v5818_v61 }
 0x425   :  { %3089 = vmatpush.msra.mxu2 %v5684_v22 }
 0x427   :  { %3090 = vmatpush.msra.mxu2 %v5691_v12  ;;  %v5847_v12 = vld [vmem:[#allocation5 + $0x270] sm:$0xff] }
 0x429   :  { %3091 = vmatpush.msra.mxu2 %v5702_v36 }
 0x42b   :  { %3092 = vmatpush.msra.mxu2 %v5711_v24 }
 0x42d   :  { %3093 = vmatpush.msra.mxu2 %v5720_v3 }
 0x42f   :  { %3094 = vmatpush.msra.mxu2 %v5729_v38 }
 0x431   :  { %3095 = vmatpush.msra.mxu2 %v5738_v9 }
 0x433   :  { %3096 = vmatpush.msra.mxu2 %v5752_v11  ;;  %v5926_v11 = vld [vmem:[#allocation5 + $0x1c8] sm:$0xff] }
 0x434   :  { %6455 = vst [vmem:[#allocation48_spill] sm:$0xff] %v5926_v11 }
 0x435   :  { %3097 = vmatpush.msra.mxu2 %v5762_v16  ;;  %v5938_v16 = vld [vmem:[#allocation5 + $0x1b0] sm:$0xff] }
 0x436   :  { %6457 = vst [vmem:[#allocation49_spill] sm:$0xff] %v5938_v16 }
 0x458   :  { %v2475_v19 = vpop.f32.mrf.mxu0 }
 0x45d   :  { %v2435_v32 = vpop.f32.mrf.mxu2  ;;  %v2455_v18 = vpop.f32.mrf.mxu3 }
 0x45e   :  { %v2586_v39 = vadd.f32 %v2435_v32, %v6431_v59  ;;  %v2606_v29 = vadd.f32 %v2455_v18, %v6432_v7 }
 0x460   :  { %v3653_v2 = vmul.f32 -1.442695, %v2586_v39  ;;  %v3654_v37 = vmul.f32 -1.442695, %v2606_v29 }
 0x462   :  { %3837 = vpow2.f32 %v3653_v2 }
 0x463   :  { %3839 = vpow2.f32 %v3654_v37 }
 0x468   :  { %v3838_v35 = vpop.eup %3837 }
 0x469   :  { %v3840_v30 = vpop.eup %3839  ;;  %v2590_v50 = vadd.f32 1.0, %v3838_v35 }
 0x46a   :  { %v5747_v48 = vadd.f32 1.0, %v3840_v30 }
 0x46b   :  { %3841 = vrcp.f32 %v2590_v50  ;;  %v2602_v29 = vand.u32 2147483648, %v2590_v50  ;;  %v2600_v35 = vand.u32 2147483647, %v2590_v50  ;;  %vm2596_vm1 = vweird.f32 %v2590_v50 }
 0x46c   :  { %3843 = vrcp.f32 %v5747_v48  ;;  %vm2616_vm5 = vweird.f32 %v5747_v48  ;;  %v2622_v44 = vand.u32 2147483648, %v5747_v48 }
 0x46d   :  { %v2603_v40 = vor.u32 1.1754944e-38, %v2602_v29  ;;  %vm2601_vm3 = vcmp.eq.f32.partialorder %v2600_v35, 8.507059e+37  ;;  %v5800_v29 = vld [vmem:[#allocation5 + $0x2e0] sm:$0xff]  ;;  %v5814_v35 = vld [vmem:[#allocation5 + $0x2b8] sm:$0xff] }
 0x46e   :  { %6438 = vst [vmem:[#allocation61_spill] sm:$0xff] %v5800_v29  ;;  %2899 = vmatpush.msrb.mxu1 %v5800_v29  ;;  %v5871_v29 = vld [vmem:[#allocation5 + $0x248] sm:$0xff] }
 0x470   :  { %2900 = vmatpush.msrb.mxu1 %v5818_v61 }
 0x471   :  { %v3842_v32 = vpop.eup %3841 }
 0x472   :  { %v5772_v18 = vpop.eup %3843  ;;  %v2592_v59 = vmul.f32 %v3842_v32, %v2590_v50  ;;  %vm2597_vm0 = vweird.f32 %v3842_v32 }
 0x473   :  { %v2612_v39 = vmul.f32 %v5772_v18, %v5747_v48  ;;  %vm2598_vm2 = vmor %vm2596_vm1, %vm2597_vm0  ;;  %vm2617_vm4 = vweird.f32 %v5772_v18 }
 0x474   :  { %v2593_v7 = vsub.f32 1.0, %v2592_v59  ;;  %v2626_v59 = vadd.f32 %v5587_v52, %v2475_v19  ;;  %vm5805_vm6 = vmor %vm2616_vm5, %vm2617_vm4  ;;  %v5816_v19 = vld [vmem:[#allocation5 + $0x2c0] sm:$0xff] }
 0x475   :  { %v2613_v2 = vsub.f32 1.0, %v2612_v39  ;;  %v5785_v39 = vld [vmem:[#allocation5 + $0x2f0] sm:$0xff] }
 0x476   :  { %v2594_v37 = vmul.f32 %v3842_v32, %v2593_v7  ;;  %2878 = vmatpush.msrb.mxu0 %v5785_v39 }
 0x477   :  { %v2614_v30 = vmul.f32 %v5772_v18, %v2613_v2  ;;  %v6441_v2 = vld [vmem:[#allocation16_spill] sm:$0xff] }
 0x478   :  { %v2595_v34 = vadd.f32 %v3842_v32, %v2594_v37 }
 0x479   :  { %v2615_v50 = vadd.f32 %v5772_v18, %v2614_v30  ;;  %v2623_v30 = vor.u32 1.1754944e-38, %v2622_v44  ;;  %v5849_v44 = vld [vmem:[#allocation5 + $0x278] sm:$0xff] }
 0x47a   :  { %v2599_v1 = vsel %vm2598_vm2, %v3842_v32, %v2595_v34  ;;  %v5796_v34 = vld [vmem:[#allocation5 + $0x2d0] sm:$0xff]  ;;  %v5798_v32 = vld [vmem:[#allocation5 + $0x2d8] sm:$0xff] }
 0x47b   :  { %v2604_v7 = vsel %vm2601_vm3, %v2603_v40, %v2599_v1  ;;  %v2620_v1 = vand.u32 2147483647, %v5747_v48  ;;  %2859 = vmatpush.msrb.mxu3 %v5796_v34  ;;  %2879 = vmatpush.msrb.mxu0 %v5798_v32  ;;  %v2619_v48 = vsel %vm5805_vm6, %v5772_v18, %v2615_v50  ;;  %v5827_v40 = vld [vmem:[#allocation5 + $0x2a0] sm:$0xff]  ;;  %v5837_v18 = vld [vmem:[#allocation5 + $0x288] sm:$0xff]  ;;  %v5839_v50 = vld [vmem:[#allocation5 + $0x290] sm:$0xff] }
 0x47c   :  { %v2627_v52 = vmul.f32 %v2626_v59, %v2604_v7  ;;  %v5829_v59 = vld [vmem:[#allocation5 + $0x2a8] sm:$0xff]  ;;  %v5831_v7 = vld [vmem:[#allocation5 + $0x2b0] sm:$0xff] }
 0x47d   :  { %2860 = vmatpush.msrb.mxu3 %v5814_v35  ;;  %2880 = vmatpush.msrb.mxu0 %v5816_v19  ;;  %6443 = vst [vmem:[#allocation27_spill] sm:$0xff] %v5831_v7  ;;  %vm2621_vm7 = vcmp.eq.f32.partialorder %v2620_v1, 8.507059e+37 }
 0x47e   :  { %v2628_v37 = vadd.f32 %v2627_v52, %v6441_v2  ;;  %v2624_v22 = vsel %vm2621_vm7, %v2623_v30, %v2619_v48  ;;  %2901 = vmatpush.msrb.mxu1 %v5831_v7  ;;  %v5841_v52 = vld [vmem:[#allocation5 + $0x298] sm:$0xff]  ;;  %v5861_v48 = vld [vmem:[#allocation5 + $0x268] sm:$0xff] }
 0x47f   :  { %2861 = vmatpush.msrb.mxu3 %v5827_v40  ;;  %2881 = vmatpush.msrb.mxu0 %v5829_v59  ;;  %6444 = vst [vmem:[#allocation36_spill] sm:$0xff] %v5841_v52  ;;  %v2630_v1 = vsub.f32 1.0, %v2624_v22  ;;  %v5857_v2 = vld [vmem:[#allocation5 + $0x258] sm:$0xff]  ;;  %v2632_v24 = vmul.f32 %v2624_v22, %v5593_v6  ;;  %v6447_v7 = vld [vmem:[#allocation18_spill] sm:$0xff]  ;;  %v5883_v22 = vld [vmem:[#allocation5 + $0x230] sm:$0xff] }
 0x480   :  { %3845 = vtanh.f32 %v2628_v37  ;;  %2902 = vmatpush.msrb.mxu1 %v5841_v52  ;;  %v5859_v37 = vld [vmem:[#allocation5 + $0x260] sm:$0xff]  ;;  %6446 = vst [vmem:[#allocation15_spill] sm:$0xff] %v5861_v48 }
 0x481   :  { %2862 = vmatpush.msrb.mxu3 %v5837_v18  ;;  %2882 = vmatpush.msrb.mxu0 %v5839_v50 }
 0x482   :  { %2903 = vmatpush.msrb.mxu1 %v5851_v63  ;;  %v5869_v63 = vld [vmem:[#allocation5 + $0x240] sm:$0xff] }
 0x483   :  { %2863 = vmatpush.msrb.mxu3 %v5847_v12  ;;  %2883 = vmatpush.msrb.mxu0 %v5849_v44 }
 0x484   :  { %2904 = vmatpush.msrb.mxu1 %v5861_v48 }
 0x485   :  { %2864 = vmatpush.msrb.mxu3 %v5857_v2  ;;  %2884 = vmatpush.msrb.mxu0 %v5859_v37 }
 0x486   :  { %v3846_v36 = vpop.eup %3845  ;;  %2905 = vmatpush.msrb.mxu1 %v5873_v28  ;;  %v5911_v28 = vld [vmem:[#allocation5 + $0x208] sm:$0xff] }
 0x487   :  { %v2543_v30 = vpop.f32.mrf.mxu1  ;;  %v2631_v52 = vmul.f32 %v3846_v36, %v2630_v1  ;;  %2865 = vmatpush.msrb.mxu3 %v5869_v63  ;;  %2885 = vmatpush.msrb.mxu0 %v5871_v29  ;;  %v5885_v1 = vld [vmem:[#allocation5 + $0x238] sm:$0xff]  ;;  %v5898_v36 = vld [vmem:[#allocation5 + $0x220] sm:$0xff]  ;;  %6453 = vst [vmem:[#allocation64_spill] sm:$0xff] %v5911_v28 }
 0x488   :  { %v2634_v61 = vadd.f32 %v2543_v30, %v6447_v7  ;;  %v5881_v7 = vld [vmem:[#allocation5 + $0x228] sm:$0xff]  ;;  %6450 = vst [vmem:[#allocation37_spill] sm:$0xff] %v5885_v1  ;;  %2906 = vmatpush.msrb.mxu1 %v5885_v1  ;;  %v6452_v30 = vld [vmem:[#allocation41_spill] sm:$0xff] }
 0x489   :  { %v5876_v3 = vadd.f32 %v2632_v24, %v2631_v52  ;;  %2866 = vmatpush.msrb.mxu3 %v5881_v7  ;;  %v5896_v52 = vld [vmem:[#allocation5 + $0x218] sm:$0xff]  ;;  %6451 = vst [vmem:[#allocation38_spill] sm:$0xff] %v5898_v36  ;;  %2886 = vmatpush.msrb.mxu0 %v5883_v22  ;;  %v5917_v1 = vld [vmem:[#allocation5 + $0x1e0] sm:$0xff] }
 0x48a   :  { %v3655_v6 = vmul.f32 -1.442695, %v2634_v61  ;;  %v5894_v61 = vld [vmem:[#allocation5 + $0x210] sm:$0xff]  ;;  %2907 = vmatpush.msrb.mxu1 %v5898_v36  ;;  %v5931_v36 = vld [vmem:[#allocation5 + $0x1d8] sm:$0xff] }
 0x48b   :  { %6449 = vst [vmem:[#allocation10_spill] sm:$0xff] %v5876_v3  ;;  %v2682_v38 = vpack.c.bf16 %v5876_v3, %v5876_v3  ;;  %2766 = vmatmul.f32.vlgmr.msra.gmra.mxu0 %v5876_v3  ;;  %2786 = vmatmul.f32.vlgmr.msra.gmra.mxu1 %v5876_v3 }
 0x48c   :  { %3847 = vpow2.f32 %v3655_v6  ;;  %2806 = vmatmul.f32.vlgmr.msrb.gmra.mxu2 %v5876_v3  ;;  %2867 = vmatpush.msrb.mxu3 %v5894_v61  ;;  %v5907_v6 = vld [vmem:[#allocation5 + $0x1f8] sm:$0xff]  ;;  %v5909_v3 = vld [vmem:[#allocation5 + $0x200] sm:$0xff]  ;;  %6456 = vst [vmem:[#allocation66_spill] sm:$0xff] %v5931_v36 }
 0x48d   :  { %3657 = vst [vmem:[%s6139_s5 + $0x14] sm:$0xf] %v2682_v38  ;;  %v2563_v9 = vpop.f32.mrf.mxu2  ;;  %2887 = vmatpush.msrb.mxu0 %v5896_v52  ;;  %2908 = vmatpush.msrb.mxu1 %v5911_v28  ;;  %v5941_v28 = vld [vmem:[#allocation5 + $0x1b8] sm:$0xff] }
 0x48e   :  { %v2654_v24 = vadd.f32 %v2563_v9, %v6452_v30  ;;  %2868 = vmatpush.msrb.mxu3 %v5907_v6  ;;  %v5919_v9 = vld [vmem:[#allocation5 + $0x1e8] sm:$0xff]  ;;  %v5921_v30 = vld [vmem:[#allocation5 + $0x1f0] sm:$0xff]  ;;  %3210 = vmatpush.msrb.mxu2 %v5785_v39  ;;  %v5949_v39 = vld [vmem:[#allocation5 + $0x198] sm:$0xff] }
 0x48f   :  { %6454 = vst [vmem:[#allocation47_spill] sm:$0xff] %v5921_v30  ;;  %2888 = vmatpush.msrb.mxu0 %v5909_v3  ;;  %2909 = vmatpush.msrb.mxu1 %v5921_v30  ;;  %v5954_v30 = vld [vmem:[#allocation5 + $0x1a8] sm:$0xff] }
 0x490   :  { %v3656_v38 = vmul.f32 -1.442695, %v2654_v24  ;;  %2869 = vmatpush.msrb.mxu3 %v5917_v1  ;;  %v5929_v24 = vld [vmem:[#allocation5 + $0x1d0] sm:$0xff]  ;;  %3211 = vmatpush.msrb.mxu2 %v5798_v32  ;;  %v5959_v32 = vld [vmem:[#allocation5 + $0x180] sm:$0xff] }
 0x491   :  { %2889 = vmatpush.msrb.mxu0 %v5919_v9  ;;  %2910 = vmatpush.msrb.mxu1 %v5931_v36  ;;  %v5962_v36 = vld [vmem:[#allocation5 + $0x188] sm:$0xff] }
 0x492   :  { %v3848_v48 = vpop.eup %3847  ;;  %3849 = vpow2.f32 %v3656_v38  ;;  %2870 = vmatpush.msrb.mxu3 %v5926_v11  ;;  %v5943_v38 = vld [vmem:[#allocation5 + $0x1c0] sm:$0xff]  ;;  %3212 = vmatpush.msrb.mxu2 %v5816_v19  ;;  %v5964_v11 = vld [vmem:[#allocation5 + $0x190] sm:$0xff] }
 0x493   :  { %v5934_v57 = vadd.f32 1.0, %v3848_v48  ;;  %6458 = vst [vmem:[#allocation50_spill] sm:$0xff] %v5943_v38  ;;  %2890 = vmatpush.msrb.mxu0 %v5929_v24  ;;  %v5952_v48 = vld [vmem:[#allocation5 + $0x1a0] sm:$0xff]  ;;  %2911 = vmatpush.msrb.mxu1 %v5943_v38 }
 0x494   :  { %2871 = vmatpush.msrb.mxu3 %v5938_v16  ;;  %3213 = vmatpush.msrb.mxu2 %v5829_v59 }
 0x495   :  { %3851 = vrcp.f32 %v5934_v57  ;;  %2891 = vmatpush.msrb.mxu0 %v5941_v28  ;;  %2912 = vmatpush.msrb.mxu1 %v5954_v30  ;;  %v2650_v59 = vand.u32 2147483648, %v5934_v57  ;;  %vm2644_vm9 = vweird.f32 %v5934_v57 }
 0x496   :  { %2872 = vmatpush.msrb.mxu3 %v5949_v39  ;;  %3214 = vmatpush.msrb.mxu2 %v5839_v50 }
 0x497   :  { %2892 = vmatpush.msrb.mxu0 %v5952_v48  ;;  %2913 = vmatpush.msrb.mxu1 %v5964_v11 }
 0x498   :  { %v3850_v55 = vpop.eup %3849  ;;  %2873 = vmatpush.msrb.mxu3 %v5959_v32  ;;  %3215 = vmatpush.msrb.mxu2 %v5849_v44  ;;  %v6473_v44 = vld [vmem:[#allocation29_spill] sm:$0xff] }
 0x499   :  { %v5967_v16 = vadd.f32 1.0, %v3850_v55  ;;  %2893 = vmatpush.msrb.mxu0 %v5962_v36  ;;  %3190 = vmatpush.msra.mxu1 %v5783_v5  ;;  %v2583_v5 = vpop.f32.mrf.mxu3 }
 0x49a   :  { %3102 = vmatpush.msra.mxu3 %v5624_v21  ;;  %3216 = vmatpush.msrb.mxu2 %v5859_v37  ;;  %v2648_v21 = vand.u32 2147483647, %v5934_v57  ;;  %v6476_v37 = vld [vmem:[#allocation64_spill] sm:$0xff] }
 0x49b   :  { %v3852_v19 = vpop.eup %3851  ;;  %3853 = vrcp.f32 %v5967_v16  ;;  %3122 = vmatpush.msra.mxu0 %v5626_v15  ;;  %3191 = vmatpush.msra.mxu1 %v5796_v34  ;;  %v2651_v34 = vor.u32 1.1754944e-38, %v2650_v59  ;;  %vm2664_vm13 = vweird.f32 %v5967_v16 }
 0x49c   :  { %v2640_v38 = vmul.f32 %v3852_v19, %v5934_v57  ;;  %3103 = vmatpush.msra.mxu3 %v5633_v58  ;;  %vm2645_vm8 = vweird.f32 %v3852_v19  ;;  %3217 = vmatpush.msrb.mxu2 %v5871_v29  ;;  %vm2649_vm11 = vcmp.eq.f32.partialorder %v2648_v21, 8.507059e+37  ;;  %v2674_v29 = vadd.f32 %v5607_v14, %v2583_v5 }
 0x49d   :  { %3123 = vmatpush.msra.mxu0 %v5635_v0  ;;  %3192 = vmatpush.msra.mxu1 %v5814_v35  ;;  %vm2646_vm10 = vmor %vm2644_vm9, %vm2645_vm8  ;;  %v2668_v14 = vand.u32 2147483647, %v5967_v16 }
 0x49e   :  { %v2641_v55 = vsub.f32 1.0, %v2640_v38  ;;  %3104 = vmatpush.msra.mxu3 %v5642_v17  ;;  %3218 = vmatpush.msrb.mxu2 %v5883_v22  ;;  %v6479_v22 = vld [vmem:[#allocation50_spill] sm:$0xff] }
 0x49f   :  { %3124 = vmatpush.msra.mxu0 %v5644_v13  ;;  %3193 = vmatpush.msra.mxu1 %v5827_v40  ;;  %vm2669_vm15 = vcmp.eq.f32.partialorder %v2668_v14, 8.507059e+37 }
 0x4a0   :  { %v2642_v50 = vmul.f32 %v3852_v19, %v2641_v55  ;;  %3105 = vmatpush.msra.mxu3 %v5651_v45  ;;  %3219 = vmatpush.msrb.mxu2 %v5896_v52  ;;  %v6480_v52 = vld [vmem:[#allocation21_spill] sm:$0xff] }
 0x4a1   :  { %v3854_v15 = vpop.eup %3853  ;;  %3125 = vmatpush.msra.mxu0 %v5653_v8  ;;  %3194 = vmatpush.msra.mxu1 %v5837_v18  ;;  %v2670_v8 = vand.u32 2147483648, %v5967_v16  ;;  %v6471_v18 = vld [vmem:[#allocation23_spill] sm:$0xff] }
 0x4a2   :  { %v2660_v58 = vmul.f32 %v3854_v15, %v5967_v16  ;;  %v2643_v0 = vadd.f32 %v3852_v19, %v2642_v50  ;;  %3106 = vmatpush.msra.mxu3 %v5660_v53  ;;  %vm2665_vm12 = vweird.f32 %v3854_v15  ;;  %3220 = vmatpush.msrb.mxu2 %v5909_v3  ;;  %v6477_v3 = vld [vmem:[#allocation47_spill] sm:$0xff] }
 0x4a3   :  { %3126 = vmatpush.msra.mxu0 %v5662_v33  ;;  %3195 = vmatpush.msra.mxu1 %v5847_v12  ;;  %v6459_v33 = vld [vmem:[#allocation42_spill] sm:$0xff]  ;;  %vm2666_vm14 = vmor %vm2664_vm13, %vm2665_vm12  ;;  %v6472_v12 = vld [vmem:[#allocation15_spill] sm:$0xff] }
 0x4a4   :  { %v2661_v17 = vsub.f32 1.0, %v2660_v58  ;;  %v2647_v13 = vsel %vm2646_vm10, %v3852_v19, %v2643_v0  ;;  %3107 = vmatpush.msra.mxu3 %v5669_v23  ;;  %3221 = vmatpush.msrb.mxu2 %v5919_v9  ;;  %v2671_v23 = vor.u32 1.1754944e-38, %v2670_v8 }
 0x4a5   :  { %v2652_v57 = vsel %vm2649_vm11, %v2651_v34, %v2647_v13  ;;  %3127 = vmatpush.msra.mxu0 %v5671_v42  ;;  %3196 = vmatpush.msra.mxu1 %v5857_v2  ;;  %v6475_v2 = vld [vmem:[#allocation38_spill] sm:$0xff] }
 0x4a6   :  { %v2662_v45 = vmul.f32 %v3854_v15, %v2661_v17  ;;  %v2675_v35 = vmul.f32 %v2674_v29, %v2652_v57  ;;  %3108 = vmatpush.msra.mxu3 %v5678_v46  ;;  %3222 = vmatpush.msrb.mxu2 %v5929_v24  ;;  %v6077_v29 = vld [vmem:[%s6138_s4] ss:$0 sm:$0xff] }
 0x4a7   :  { %3128 = vmatpush.msra.mxu0 %v5680_v25  ;;  %3197 = vmatpush.msra.mxu1 %v5869_v63  ;;  %v6474_v63 = vld [vmem:[#allocation37_spill] sm:$0xff] }
 0x4a8   :  { %v2663_v53 = vadd.f32 %v3854_v15, %v2662_v45  ;;  %v2676_v40 = vadd.f32 %v2675_v35, %v6459_v33  ;;  %3109 = vmatpush.msra.mxu3 %v5686_v51  ;;  %3223 = vmatpush.msrb.mxu2 %v5941_v28  ;;  %v6470_v28 = vld [vmem:[#allocation36_spill] sm:$0xff]  ;;  %v6482_v33 = vld [vmem:[#allocation26_spill] sm:$0xff] }
 0x4a9   :  { %3129 = vmatpush.msra.mxu0 %v5688_v60  ;;  %3198 = vmatpush.msra.mxu1 %v5881_v7  ;;  %v6478_v7 = vld [vmem:[#allocation66_spill] sm:$0xff] }
 0x4aa   :  { %v2667_v42 = vsel %vm2666_vm14, %v3854_v15, %v2663_v53  ;;  %3855 = vtanh.f32 %v2676_v40  ;;  %3110 = vmatpush.msra.mxu3 %v5693_v56  ;;  %3224 = vmatpush.msrb.mxu2 %v5952_v48 }
 0x4ab   :  { %v2672_v46 = vsel %vm2669_vm15, %v2671_v23, %v2667_v42  ;;  %3130 = vmatpush.msra.mxu0 %v5699_v49  ;;  %3199 = vmatpush.msra.mxu1 %v5894_v61 }
 0x4ac   :  { %3111 = vmatpush.msra.mxu3 %v5704_v10  ;;  %v2678_v25 = vsub.f32 1.0, %v2672_v46  ;;  %v2680_v56 = vmul.f32 %v2672_v46, %v5612_v62  ;;  %3225 = vmatpush.msrb.mxu2 %v5962_v36  ;;  %v6460_v62 = vld [vmem:[#allocation48_spill] sm:$0xff] }
 0x4ad   :  { %3131 = vmatpush.msra.mxu0 %v5708_v43  ;;  %3200 = vmatpush.msra.mxu1 %v5907_v6  ;;  %v6461_v43 = vld [vmem:[#allocation20_spill] sm:$0xff] }
 0x4ae   :  { %3112 = vmatpush.msra.mxu3 %v5713_v41  ;;  %v6462_v41 = vld [vmem:[#allocation9_spill] sm:$0xff]  ;;  %v6481_v6 = vld [vmem:[#allocation24_spill] sm:$0xff] }
 0x4af   :  { %3132 = vmatpush.msra.mxu0 %v5717_v31  ;;  %3201 = vmatpush.msra.mxu1 %v5917_v1  ;;  %v6463_v31 = vld [vmem:[#allocation49_spill] sm:$0xff] }
 0x4b0   :  { %v3856_v51 = vpop.eup %3855  ;;  %3113 = vmatpush.msra.mxu3 %v5722_v4  ;;  %v6464_v4 = vld [vmem:[#allocation13_spill] sm:$0xff] }
 0x4b1   :  { %v2679_v60 = vmul.f32 %v3856_v51, %v2678_v25  ;;  %3133 = vmatpush.msra.mxu0 %v5726_v54  ;;  %3202 = vmatpush.msra.mxu1 %v6460_v62  ;;  %v6465_v54 = vld [vmem:[#allocation25_spill] sm:$0xff] }
 0x4b2   :  { %3114 = vmatpush.msra.mxu3 %v5731_v20  ;;  %v6466_v20 = vld [vmem:[#allocation11_spill] sm:$0xff] }
 0x4b3   :  { %v6033_v49 = vadd.f32 %v2680_v56, %v2679_v60  ;;  %3134 = vmatpush.msra.mxu0 %v5735_v47  ;;  %3203 = vmatpush.msra.mxu1 %v6463_v31  ;;  %v6467_v47 = vld [vmem:[#allocation61_spill] sm:$0xff] }
 0x4b4   :  { %3115 = vmatpush.msra.mxu3 %v5740_v26  ;;  %v6468_v26 = vld [vmem:[#allocation35_spill] sm:$0xff] }
 0x4b5   :  { %v2685_v10 = vpack.c.bf16 %v6033_v49, %v6033_v49  ;;  %2874 = vmatmul.f32.vlgmr.msrb.gmra.mxu3 %v6033_v49  ;;  %2894 = vmatmul.f32.vlgmr.msrb.gmra.mxu0 %v6033_v49 }
 0x4b6   :  { %2914 = vmatmul.f32.vlgmr.msrb.gmra.mxu1 %v6033_v49  ;;  %3135 = vmatpush.msra.mxu0 %v5744_v27  ;;  %v6469_v27 = vld [vmem:[#allocation27_spill] sm:$0xff] }
 0x4b7   :  { %3658 = vst [vmem:[%s6139_s5 + $0x34] sm:$0xf] %v2685_v10  ;;  %3116 = vmatpush.msra.mxu3 %v6461_v43  ;;  %3204 = vmatpush.msra.mxu1 %v5949_v39  ;;  %v6483_v10 = vld [vmem:[#allocation10_spill] sm:$0xff]  ;;  %v6484_v43 = vld [vmem:[#allocation43_spill] sm:$0xff] }
 0x4b8   :  { %3136 = vmatpush.msra.mxu0 %v6462_v41 }
 0x4b9   :  { %3117 = vmatpush.msra.mxu3 %v6464_v4  ;;  %3205 = vmatpush.msra.mxu1 %v5959_v32 }
 0x4ba   :  { %3137 = vmatpush.msra.mxu0 %v6465_v54 }
 0x4bb   :  { %3230 = vmatpush.msrb.mxu3 %v6466_v20 }
 0x4bd   :  { %3231 = vmatpush.msrb.mxu3 %v6467_v47  ;;  %v6485_v47 = vld [vmem:[#allocation28_spill] sm:$0xff] }
 0x4bf   :  { %3232 = vmatpush.msrb.mxu3 %v6468_v26 }
 0x4c1   :  { %3233 = vmatpush.msrb.mxu3 %v6469_v27 }
 0x4c3   :  { %3234 = vmatpush.msrb.mxu3 %v6470_v28 }
 0x4c5   :  { %3235 = vmatpush.msrb.mxu3 %v6471_v18 }
 0x4c7   :  { %3236 = vmatpush.msrb.mxu3 %v6472_v12 }
 0x4c9   :  { %3237 = vmatpush.msrb.mxu3 %v6473_v44 }
 0x4cb   :  { %3238 = vmatpush.msrb.mxu3 %v6474_v63 }
 0x4cd   :  { %3239 = vmatpush.msrb.mxu3 %v6475_v2 }
 0x4cf   :  { %3240 = vmatpush.msrb.mxu3 %v6476_v37 }
 0x4d1   :  { %3241 = vmatpush.msrb.mxu3 %v6477_v3 }
 0x4d3   :  { %3242 = vmatpush.msrb.mxu3 %v6478_v7 }
 0x4d5   :  { %3243 = vmatpush.msrb.mxu3 %v6479_v22 }
 0x4d7   :  { %3244 = vmatpush.msrb.mxu3 %v5954_v30 }
 0x4d9   :  { %3245 = vmatpush.msrb.mxu3 %v5964_v11 }
 0x508   :  { %v2767_v1 = vpop.f32.mrf.mxu0  ;;  %v2787_v61 = vpop.f32.mrf.mxu1 }
 0x509   :  { %v2918_v36 = vadd.f32 %v2767_v1, %v6480_v52  ;;  %v2938_v9 = vadd.f32 %v2787_v61, %v6481_v6 }
 0x50b   :  { %v3659_v24 = vmul.f32 -1.442695, %v2918_v36  ;;  %v3660_v16 = vmul.f32 -1.442695, %v2938_v9 }
 0x50d   :  { %3857 = vpow2.f32 %v3659_v24 }
 0x50e   :  { %3859 = vpow2.f32 %v3660_v16  ;;  %v6097_v16 = vld [vmem:[%s6138_s4 + $0x1] ss:$0 sm:$0xff] }
 0x50f   :  { %v2807_v0 = vpop.f32.mrf.mxu2 }
 0x510   :  { %v2958_v57 = vadd.f32 %v6077_v29, %v2807_v0 }
 0x513   :  { %v3858_v38 = vpop.eup %3857 }
 0x514   :  { %v3860_v39 = vpop.eup %3859  ;;  %v2922_v48 = vadd.f32 1.0, %v3858_v38 }
 0x515   :  { %v2942_v32 = vadd.f32 1.0, %v3860_v39 }
 0x516   :  { %3861 = vrcp.f32 %v2922_v48  ;;  %v2934_v21 = vand.u32 2147483648, %v2922_v48  ;;  %v2932_v5 = vand.u32 2147483647, %v2922_v48  ;;  %vm2928_vm1 = vweird.f32 %v2922_v48 }
 0x517   :  { %3863 = vrcp.f32 %v2942_v32  ;;  %v2954_v35 = vand.u32 2147483648, %v2942_v32  ;;  %vm2948_vm5 = vweird.f32 %v2942_v32  ;;  %v2952_v53 = vand.u32 2147483647, %v2942_v32 }
 0x518   :  { %v2935_v17 = vor.u32 1.1754944e-38, %v2934_v21  ;;  %vm2933_vm3 = vcmp.eq.f32.partialorder %v2932_v5, 8.507059e+37 }
 0x519   :  { %v2955_v42 = vor.u32 1.1754944e-38, %v2954_v35  ;;  %vm2953_vm7 = vcmp.eq.f32.partialorder %v2952_v53, 8.507059e+37 }
 0x51c   :  { %v3862_v19 = vpop.eup %3861 }
 0x51d   :  { %v3864_v30 = vpop.eup %3863  ;;  %v2924_v55 = vmul.f32 %v3862_v19, %v2922_v48  ;;  %vm2929_vm0 = vweird.f32 %v3862_v19 }
 0x51e   :  { %v2944_v11 = vmul.f32 %v3864_v30, %v2942_v32  ;;  %vm2930_vm2 = vmor %vm2928_vm1, %vm2929_vm0  ;;  %vm2949_vm4 = vweird.f32 %v3864_v30 }
 0x51f   :  { %v2925_v59 = vsub.f32 1.0, %v2924_v55  ;;  %vm2950_vm6 = vmor %vm2948_vm5, %vm2949_vm4 }
 0x520   :  { %v2945_v50 = vsub.f32 1.0, %v2944_v11  ;;  %v6486_v11 = vld [vmem:[#allocation44_spill] sm:$0xff] }
 0x521   :  { %v2926_v15 = vmul.f32 %v3862_v19, %v2925_v59 }
 0x522   :  { %v2946_v58 = vmul.f32 %v3864_v30, %v2945_v50 }
 0x523   :  { %v2927_v34 = vadd.f32 %v3862_v19, %v2926_v15 }
 0x524   :  { %v2947_v45 = vadd.f32 %v3864_v30, %v2946_v58 }
 0x525   :  { %v2931_v13 = vsel %vm2930_vm2, %v3862_v19, %v2927_v34 }
 0x526   :  { %v2936_v8 = vsel %vm2933_vm3, %v2935_v17, %v2931_v13  ;;  %v2951_v23 = vsel %vm2950_vm6, %v3864_v30, %v2947_v45 }
 0x527   :  { %v2959_v14 = vmul.f32 %v2958_v57, %v2936_v8  ;;  %v2956_v46 = vsel %vm2953_vm7, %v2955_v42, %v2951_v23  ;;  %v6487_v8 = vld [vmem:[#allocation31_spill] sm:$0xff] }
 0x528   :  { %v2962_v25 = vsub.f32 1.0, %v2956_v46  ;;  %v2964_v62 = vmul.f32 %v2956_v46, %v6483_v10 }
 0x529   :  { %v2960_v40 = vadd.f32 %v2959_v14, %v6482_v33 }
 0x52b   :  { %3865 = vtanh.f32 %v2960_v40 }
 0x531   :  { %v3866_v51 = vpop.eup %3865 }
 0x532   :  { %v2963_v60 = vmul.f32 %v3866_v51, %v2962_v25  ;;  %v2895_v56 = vpop.f32.mrf.mxu0 }
 0x533   :  { %v2986_v41 = vadd.f32 %v2895_v56, %v6484_v43  ;;  %v2915_v6 = vpop.f32.mrf.mxu1 }
 0x534   :  { %v6083_v31 = vadd.f32 %v2964_v62, %v2963_v60  ;;  %v3006_v38 = vadd.f32 %v6097_v16, %v2915_v6 }
 0x535   :  { %v3662_v4 = vmul.f32 -1.442695, %v2986_v41 }
 0x536   :  { %v3014_v54 = vpack.c.bf16 %v6083_v31, %v6083_v31  ;;  %3098 = vmatmul.f32.vlgmr.msra.gmra.mxu2 %v6083_v31  ;;  %3118 = vmatmul.f32.vlgmr.msra.gmra.mxu3 %v6083_v31 }
 0x537   :  { %3867 = vpow2.f32 %v3662_v4  ;;  %3138 = vmatmul.f32.vlgmr.msra.gmra.mxu0 %v6083_v31 }
 0x538   :  { %3663 = vst [vmem:[%s6139_s5 + $0x18] sm:$0xf] %v3014_v54  ;;  %v2875_v20 = vpop.f32.mrf.mxu3 }
 0x539   :  { %v2966_v26 = vadd.f32 %v2875_v20, %v6485_v47 }
 0x53b   :  { %v3661_v27 = vmul.f32 -1.442695, %v2966_v26 }
 0x53d   :  { %v3868_v28 = vpop.eup %3867  ;;  %3869 = vpow2.f32 %v3661_v27 }
 0x53e   :  { %v2990_v18 = vadd.f32 1.0, %v3868_v28 }
 0x540   :  { %3871 = vrcp.f32 %v2990_v18  ;;  %v3002_v19 = vand.u32 2147483648, %v2990_v18  ;;  %vm2996_vm13 = vweird.f32 %v2990_v18  ;;  %v3000_v55 = vand.u32 2147483647, %v2990_v18 }
 0x542   :  { %v3003_v21 = vor.u32 1.1754944e-38, %v3002_v19  ;;  %vm3001_vm15 = vcmp.eq.f32.partialorder %v3000_v55, 8.507059e+37  ;;  %v6491_v19 = vld [vmem:[#allocation45_spill] sm:$0xff] }
 0x543   :  { %v3870_v12 = vpop.eup %3869 }
 0x544   :  { %v2970_v44 = vadd.f32 1.0, %v3870_v12 }
 0x546   :  { %3873 = vrcp.f32 %v2970_v44  ;;  %v3872_v63 = vpop.eup %3871  ;;  %v2982_v1 = vand.u32 2147483648, %v2970_v44  ;;  %v2980_v52 = vand.u32 2147483647, %v2970_v44  ;;  %vm2976_vm9 = vweird.f32 %v2970_v44 }
 0x547   :  { %v2992_v2 = vmul.f32 %v3872_v63, %v2990_v18  ;;  %vm2997_vm12 = vweird.f32 %v3872_v63 }
 0x548   :  { %v2983_v24 = vor.u32 1.1754944e-38, %v2982_v1  ;;  %vm2981_vm11 = vcmp.eq.f32.partialorder %v2980_v52, 8.507059e+37  ;;  %vm2998_vm14 = vmor %vm2996_vm13, %vm2997_vm12 }
 0x549   :  { %v2993_v7 = vsub.f32 1.0, %v2992_v2 }
 0x54b   :  { %v2994_v36 = vmul.f32 %v3872_v63, %v2993_v7 }
 0x54c   :  { %v3874_v37 = vpop.eup %3873 }
 0x54d   :  { %v2972_v3 = vmul.f32 %v3874_v37, %v2970_v44  ;;  %vm2977_vm8 = vweird.f32 %v3874_v37  ;;  %v2995_v48 = vadd.f32 %v3872_v63, %v2994_v36 }
 0x54e   :  { %vm2978_vm10 = vmor %vm2976_vm9, %vm2977_vm8 }
 0x54f   :  { %v2973_v22 = vsub.f32 1.0, %v2972_v3  ;;  %v2999_v50 = vsel %vm2998_vm14, %v3872_v63, %v2995_v48 }
 0x550   :  { %v3004_v15 = vsel %vm3001_vm15, %v3003_v21, %v2999_v50 }
 0x551   :  { %v2974_v61 = vmul.f32 %v3874_v37, %v2973_v22  ;;  %v3010_v5 = vsub.f32 1.0, %v3004_v15  ;;  %v3012_v34 = vmul.f32 %v3004_v15, %v6033_v49  ;;  %v6488_v49 = vld [vmem:[#allocation32_spill] sm:$0xff] }
 0x553   :  { %v2975_v9 = vadd.f32 %v3874_v37, %v2974_v61 }
 0x555   :  { %v2979_v39 = vsel %vm2978_vm10, %v3874_v37, %v2975_v9  ;;  %v6489_v37 = vld [vmem:[#allocation33_spill] sm:$0xff]  ;;  %v6490_v9 = vld [vmem:[#allocation34_spill] sm:$0xff] }
 0x556   :  { %v2984_v32 = vsel %vm2981_vm11, %v2983_v24, %v2979_v39 }
 0x557   :  { %v3007_v30 = vmul.f32 %v3006_v38, %v2984_v32 }
 0x559   :  { %v3008_v59 = vadd.f32 %v3007_v30, %v6486_v11 }
 0x55b   :  { %3875 = vtanh.f32 %v3008_v59 }
 0x561   :  { %v3876_v58 = vpop.eup %3875 }
 0x562   :  { %v3011_v0 = vmul.f32 %v3876_v58, %v3010_v5 }
 0x564   :  { %v6102_v17 = vadd.f32 %v3012_v34, %v3011_v0 }
 0x566   :  { %v3017_v13 = vpack.c.bf16 %v6102_v17, %v6102_v17  ;;  %3206 = vmatmul.f32.vlgmr.msra.gmra.mxu1 %v6102_v17  ;;  %3226 = vmatmul.f32.vlgmr.msrb.gmra.mxu2 %v6102_v17 }
 0x567   :  { %3246 = vmatmul.f32.vlgmr.msrb.gmra.mxu3 %v6102_v17 }
 0x568   :  { %3664 = vst [vmem:[%s6139_s5 + $0x38] sm:$0xf] %v3017_v13 }
 0x5b4   :  { %v3139_v54 = vpop.f32.mrf.mxu0 }
 0x5b5   :  { %v3290_v27 = vadd.f32 %v6077_v29, %v3139_v54 }
 0x5b9   :  { %v3099_v57 = vpop.f32.mrf.mxu2  ;;  %v3119_v45 = vpop.f32.mrf.mxu3 }
 0x5ba   :  { %v3250_v35 = vadd.f32 %v3099_v57, %v6487_v8  ;;  %v3270_v14 = vadd.f32 %v3119_v45, %v6488_v49 }
 0x5bc   :  { %v3665_v53 = vmul.f32 -1.442695, %v3250_v35  ;;  %v3666_v33 = vmul.f32 -1.442695, %v3270_v14 }
 0x5be   :  { %3877 = vpow2.f32 %v3665_v53 }
 0x5bf   :  { %3879 = vpow2.f32 %v3666_v33 }
 0x5c4   :  { %v3878_v40 = vpop.eup %3877 }
 0x5c5   :  { %v3880_v23 = vpop.eup %3879  ;;  %v3254_v42 = vadd.f32 1.0, %v3878_v40 }
 0x5c6   :  { %v3274_v46 = vadd.f32 1.0, %v3880_v23 }
 0x5c7   :  { %3881 = vrcp.f32 %v3254_v42  ;;  %v3266_v62 = vand.u32 2147483648, %v3254_v42  ;;  %v3264_v4 = vand.u32 2147483647, %v3254_v42  ;;  %vm3260_vm1 = vweird.f32 %v3254_v42 }
 0x5c8   :  { %3883 = vrcp.f32 %v3274_v46  ;;  %v3286_v63 = vand.u32 2147483648, %v3274_v46  ;;  %vm3280_vm5 = vweird.f32 %v3274_v46  ;;  %v3284_v2 = vand.u32 2147483647, %v3274_v46 }
 0x5c9   :  { %v3267_v26 = vor.u32 1.1754944e-38, %v3266_v62  ;;  %vm3265_vm3 = vcmp.eq.f32.partialorder %v3264_v4, 8.507059e+37 }
 0x5ca   :  { %v3287_v22 = vor.u32 1.1754944e-38, %v3286_v63  ;;  %vm3285_vm7 = vcmp.eq.f32.partialorder %v3284_v2, 8.507059e+37 }
 0x5cd   :  { %v3882_v25 = vpop.eup %3881 }
 0x5ce   :  { %v3884_v51 = vpop.eup %3883  ;;  %v3256_v60 = vmul.f32 %v3882_v25, %v3254_v42  ;;  %vm3261_vm0 = vweird.f32 %v3882_v25 }
 0x5cf   :  { %v3276_v56 = vmul.f32 %v3884_v51, %v3274_v46  ;;  %vm3262_vm2 = vmor %vm3260_vm1, %vm3261_vm0  ;;  %vm3281_vm4 = vweird.f32 %v3884_v51 }
 0x5d0   :  { %v3257_v10 = vsub.f32 1.0, %v3256_v60  ;;  %vm3282_vm6 = vmor %vm3280_vm5, %vm3281_vm4 }
 0x5d1   :  { %v3277_v43 = vsub.f32 1.0, %v3276_v56 }
 0x5d2   :  { %v3258_v41 = vmul.f32 %v3882_v25, %v3257_v10 }
 0x5d3   :  { %v3278_v20 = vmul.f32 %v3884_v51, %v3277_v43 }
 0x5d4   :  { %v3259_v47 = vadd.f32 %v3882_v25, %v3258_v41 }
 0x5d5   :  { %v3279_v12 = vadd.f32 %v3884_v51, %v3278_v20 }
 0x5d6   :  { %v3263_v28 = vsel %vm3262_vm2, %v3882_v25, %v3259_v47 }
 0x5d7   :  { %v3268_v18 = vsel %vm3265_vm3, %v3267_v26, %v3263_v28  ;;  %v3283_v7 = vsel %vm3282_vm6, %v3884_v51, %v3279_v12  ;;  %v6492_v51 = vld [vmem:[#allocation46_spill] sm:$0xff] }
 0x5d8   :  { %v3291_v44 = vmul.f32 %v3290_v27, %v3268_v18  ;;  %v3288_v1 = vsel %vm3285_vm7, %v3287_v22, %v3283_v7 }
 0x5d9   :  { %v3294_v61 = vsub.f32 1.0, %v3288_v1  ;;  %v3296_v36 = vmul.f32 %v3288_v1, %v6083_v31 }
 0x5da   :  { %v3292_v3 = vadd.f32 %v3291_v44, %v6489_v37 }
 0x5dc   :  { %3885 = vtanh.f32 %v3292_v3 }
 0x5e2   :  { %v3886_v52 = vpop.eup %3885 }
 0x5e3   :  { %v3295_v29 = vmul.f32 %v3886_v52, %v3294_v61  ;;  %v3207_v6 = vpop.f32.mrf.mxu1 }
 0x5e4   :  { %v3298_v24 = vadd.f32 %v3207_v6, %v6490_v9 }
 0x5e5   :  { %v3297_v38 = vadd.f32 %v3296_v36, %v3295_v29 }
 0x5e6   :  { %v3667_v39 = vmul.f32 -1.442695, %v3298_v24 }
 0x5e7   :  { %v3346_v48 = vpack.c.bf16 %v3297_v38, %v3297_v38  ;;  %3354 = vst [vmem:[%s6140_s6] sm:$0xff] %v3297_v38 }
 0x5e8   :  { %3887 = vpow2.f32 %v3667_v39 }
 0x5e9   :  { %3669 = vst [vmem:[%s6139_s5 + $0x1c] sm:$0xf] %v3346_v48  ;;  %v3227_v32 = vpop.f32.mrf.mxu2 }
 0x5ea   :  { %v3318_v30 = vadd.f32 %v3227_v32, %v6491_v19  ;;  %v3247_v57 = vpop.f32.mrf.mxu3 }
 0x5eb   :  { %v3338_v53 = vadd.f32 %v6097_v16, %v3247_v57 }
 0x5ec   :  { %v3668_v55 = vmul.f32 -1.442695, %v3318_v30 }
 0x5ee   :  { %v3888_v31 = vpop.eup %3887  ;;  %3889 = vpow2.f32 %v3668_v55 }
 0x5ef   :  { %v3302_v11 = vadd.f32 1.0, %v3888_v31 }
 0x5f1   :  { %3891 = vrcp.f32 %v3302_v11  ;;  %v3314_v58 = vand.u32 2147483648, %v3302_v11  ;;  %v3312_v34 = vand.u32 2147483647, %v3302_v11  ;;  %vm3308_vm9 = vweird.f32 %v3302_v11 }
 0x5f3   :  { %v3315_v35 = vor.u32 1.1754944e-38, %v3314_v58  ;;  %vm3313_vm11 = vcmp.eq.f32.partialorder %v3312_v34, 8.507059e+37 }
 0x5f4   :  { %v3890_v59 = vpop.eup %3889 }
 0x5f5   :  { %v3322_v50 = vadd.f32 1.0, %v3890_v59 }
 0x5f7   :  { %v3892_v21 = vpop.eup %3891  ;;  %3893 = vrcp.f32 %v3322_v50  ;;  %v3334_v23 = vand.u32 2147483648, %v3322_v50  ;;  %v3332_v46 = vand.u32 2147483647, %v3322_v50  ;;  %vm3328_vm13 = vweird.f32 %v3322_v50 }
 0x5f8   :  { %v3304_v15 = vmul.f32 %v3892_v21, %v3302_v11  ;;  %vm3309_vm8 = vweird.f32 %v3892_v21 }
 0x5f9   :  { %vm3310_vm10 = vmor %vm3308_vm9, %vm3309_vm8  ;;  %v3335_v56 = vor.u32 1.1754944e-38, %v3334_v23  ;;  %vm3333_vm15 = vcmp.eq.f32.partialorder %v3332_v46, 8.507059e+37 }
 0x5fa   :  { %v3305_v5 = vsub.f32 1.0, %v3304_v15 }
 0x5fc   :  { %v3306_v0 = vmul.f32 %v3892_v21, %v3305_v5 }
 0x5fd   :  { %v3894_v13 = vpop.eup %3893 }
 0x5fe   :  { %v3324_v45 = vmul.f32 %v3894_v13, %v3322_v50  ;;  %v3307_v8 = vadd.f32 %v3892_v21, %v3306_v0  ;;  %vm3329_vm12 = vweird.f32 %v3894_v13 }
 0x5ff   :  { %vm3330_vm14 = vmor %vm3328_vm13, %vm3329_vm12 }
 0x600   :  { %v3325_v49 = vsub.f32 1.0, %v3324_v45  ;;  %v3311_v14 = vsel %vm3310_vm10, %v3892_v21, %v3307_v8 }
 0x601   :  { %v3316_v33 = vsel %vm3313_vm11, %v3315_v35, %v3311_v14 }
 0x602   :  { %v3326_v40 = vmul.f32 %v3894_v13, %v3325_v49  ;;  %v3339_v42 = vmul.f32 %v3338_v53, %v3316_v33 }
 0x604   :  { %v3327_v25 = vadd.f32 %v3894_v13, %v3326_v40  ;;  %v3340_v60 = vadd.f32 %v3339_v42, %v6492_v51 }
 0x606   :  { %v3331_v10 = vsel %vm3330_vm14, %v3894_v13, %v3327_v25  ;;  %3895 = vtanh.f32 %v3340_v60 }
 0x607   :  { %v3336_v62 = vsel %vm3333_vm15, %v3335_v56, %v3331_v10 }
 0x608   :  { %v3342_v43 = vsub.f32 1.0, %v3336_v62  ;;  %v3344_v16 = vmul.f32 %v3336_v62, %v6102_v17 }
 0x60c   :  { %v3896_v41 = vpop.eup %3895 }
 0x60d   :  { %v3343_v4 = vmul.f32 %v3896_v41, %v3342_v43 }
 0x60f   :  { %v3345_v54 = vadd.f32 %v3344_v16, %v3343_v4 }
 0x611   :  { %v3349_v20 = vpack.c.bf16 %v3345_v54, %v3345_v54  ;;  %3671 = vst [vmem:[%s6140_s6 + $0x8] sm:$0xff] %v3345_v54 }
 0x613   :  { %3670 = vst [vmem:[%s6139_s5 + $0x3c] sm:$0xf] %v3349_v20 }
 0x614   :  { %3364 = vsyncpa [#allocation4], 1 }
 0x615   :  { %3365 = vsyncpa [#allocation6], 1 }

</bundles_post_ra>
